<compile_context>
chip_gen: v5e
topology: v5e:2x2
jax: 0.10.0
libtpu: 0.0.40
codegen_flags: <defaults>
</compile_context>

<pallas_src>
import functools

import jax
import jax.numpy as jnp
import numpy as np
from jax.experimental import pallas as pl
from jax.experimental.pallas import tpu as pltpu


def _magnn_kernel(ed_ref, dstr_ref, dstc_ref, nid_ref, big_ref, expand_ref,
                  out_ref, denom_scr, m_scr,
                  *, hd, hd_pad, num_heads, lrelu_alpha):
    t = pl.program_id(1)                       # edge-tile axis (innermost, "arbitrary")

    @pl.when(t == 0)
    def _init():                               # fresh accumulators for this node block
        out_ref[...] = jnp.zeros(out_ref.shape, out_ref.dtype)
        denom_scr[...] = jnp.zeros(denom_scr.shape, denom_scr.dtype)
        m_scr[...] = jnp.full(m_scr.shape, -1e30, m_scr.dtype)

    ed = ed_ref[...]                                                     # (TE, L*D)

    # ---- ONE fused MXU pass over the edge tile: per-head lane-tiled rotated-mean hidden in
    #      lanes [0, HD) and attention logits (a1 + a2) in the lane-aligned slot [hd_pad, +H) ----
    res = jnp.dot(ed, big_ref[...], preferred_element_type=jnp.float32)  # (TE, hd_pad+128)
    hid = res[:, :hd]                                                    # (TE, H*D)
    a = res[:, hd_pad:hd_pad + num_heads]                                # (TE, H)
    a = jnp.where(a > 0, a, jnp.float32(lrelu_alpha) * a)                # LeakyReLU
    a = jnp.where(dstc_ref[...] >= 0, a, jnp.float32(-1e30))             # mask padded edges

    # ---- scatter mask in (node-rows x edge-lanes) orientation from the resident node-id column
    #      (no per-step iota).  Padded dst=-1 / padded node ids never match. ----
    mask = (dstr_ref[...] == nid_ref[...]).astype(jnp.float32)           # (TN, TE)

    # ---- online softmax with a running per-head max (global over edges; identical to DGL's
    #      per-node edge_softmax after normalization) ----
    m_old = m_scr[...]                                                   # (1, H)
    m_new = jnp.maximum(m_old, jnp.max(a, axis=0, keepdims=True))        # (1, H)
    c_exp = jnp.dot(jnp.exp(m_old - m_new), expand_ref[...],
                    preferred_element_type=jnp.float32)                  # (1, H*D) rescale
    ex = jnp.exp(a - m_new)                                              # (TE, H)
    m_scr[...] = m_new

    # per-head weights replicated per lane block, shared by numerator and denominator
    ex_exp = jnp.dot(ex, expand_ref[...], preferred_element_type=jnp.float32)   # (TE, H*D)

    # ---- ONE scatter matmul: mask @ [ex*hid | ex] contracts the whole edge tile ----
    upd = jnp.dot(mask, jnp.concatenate([ex_exp * hid, ex_exp], axis=1),
                  preferred_element_type=jnp.float32)                    # (TN, 2*H*D)
    out_ref[...] = out_ref[...] * c_exp + upd[:, :hd]                    # numerator (lane-dense)
    denom_scr[...] = denom_scr[...] * c_exp + upd[:, hd:]                # denominator (lane-dense)

    @pl.when(t == pl.num_programs(1) - 1)
    def _finalize():
        d = denom_scr[...]
        d = jnp.where(d > 0.0, d, 1.0)         # isolated / padded nodes -> output stays 0
        r = pl.reciprocal(d, approx=True)
        r = r * (2.0 - d * r)                  # one Newton step -> ~f32 accuracy
        out_ref[...] = out_ref[...] * r


def _default_vmem_limit():
    try:
        info = pltpu.get_tpu_info()
        cap = int(getattr(info, "vmem_capacity_bytes", 0) or 0)
        if cap > 0:
            return min(cap // 2, 96 * 1024 * 1024)   # per-generation (v5e/v6e 128M, v7x 64M)
    except Exception:
        pass
    return 32 * 1024 * 1024


def magnn_metapath_forward(features, edge_metapath_indices, dst, etypes, params, *,
                           num_nodes, num_heads, out_dim, lrelu_alpha=0.01,
                           tile_e=1024, tile_n=None, vmem_limit_bytes=None):
    E, L = edge_metapath_indices.shape
    D = out_dim
    D2 = D // 2
    H = num_heads
    LD = L * D
    HD = H * D
    HD_pad = -(-HD // 128) * 128
    AW = 128                                   # lane-aligned slot holding the H attention logits

    # ---------------- glue: gather per-edge metapath features (F.embedding), interleaved ----
    edflat = features[edge_metapath_indices].reshape(E, LD).astype(jnp.float32)

    # ---------------- RotatE0: normalize r_vec, double with conjugates, cumulative product ----
    r_vec = params["r_vec"]                                   # (R, D2, 2)
    norm = jnp.maximum(jnp.sqrt(jnp.sum(r_vec ** 2, axis=2, keepdims=True)), 1e-12)
    r_n = r_vec / norm
    r = jnp.stack([r_n, r_n], axis=1)                         # (R, 2, D2, 2)
    r = r.at[:, 1, :, 1].multiply(-1.0)
    r = r.reshape(r_vec.shape[0] * 2, D2, 2)                  # (2R, D2, 2)

    fre = [None] * L
    fim = [None] * L
    fre[L - 1] = jnp.ones((D2,), jnp.float32)
    fim[L - 1] = jnp.zeros((D2,), jnp.float32)
    for i in range(L - 2, -1, -1):
        if etypes[i] is not None:
            fre[i] = fre[i + 1] * r[etypes[i], :, 0] - fim[i + 1] * r[etypes[i], :, 1]
            fim[i] = fre[i + 1] * r[etypes[i], :, 1] + fim[i + 1] * r[etypes[i], :, 0]
        else:
            fre[i], fim[i] = fre[i + 1], fim[i + 1]
    fre = jnp.stack(fre, axis=0)                              # (L, D2)
    fim = jnp.stack(fim, axis=0)                              # (L, D2)

    # ---- fold rotation + mean-over-positions into a block-diagonal (L*D, D) matrix ----
    idx = 2 * jnp.arange(D2)
    R = jnp.zeros((L, D, D), jnp.float32)
    R = R.at[:, idx, idx].set(fre)            # out[2j]   += e[2j]   *  fre
    R = R.at[:, idx, idx + 1].set(fim)        # out[2j+1] += e[2j]   *  fim
    R = R.at[:, idx + 1, idx].set(-fim)       # out[2j]   += e[2j+1] * -fim
    R = R.at[:, idx + 1, idx + 1].set(fre)    # out[2j+1] += e[2j+1] *  fre
    rbig = (R / L).reshape(LD, D)             # hidden = edflat @ rbig   (mean included)
    rbig_tiled = jnp.tile(rbig, (1, H))       # (L*D, H*D): hidden replicated per head (lane-dense)

    # ---- fold attn1 (center node == last metapath position) and attn2 (rotated mean) ----
    abig = jnp.zeros((LD, H), jnp.float32).at[(L - 1) * D:, :].set(params["attn1_w"].T)
    abig = abig + rbig @ params["attn2"][0].T                 # (L*D, H)

    # ---- fused edge-side RHS: [hidden (H*D lanes, padded to 128) | logits (128-lane slot)] ----
    big = jnp.zeros((LD, HD_pad + AW), jnp.float32)
    big = big.at[:, :HD].set(rbig_tiled)
    big = big.at[:, HD_pad:HD_pad + H].set(abig)

    # ---- per-head lane-expansion matrix: head h -> output columns [h*D, (h+1)*D) ----
    expand = (jnp.arange(H)[:, None] == (jnp.arange(HD)[None, :] // D)).astype(jnp.float32)

    # ---------------- pad edges / nodes to tile multiples ----------------
    tile_e = max(128, -(-int(tile_e) // 128) * 128)
    n_et = max(1, -(-E // tile_e))
    e_pad = n_et * tile_e
    edflat_p = jnp.pad(edflat, ((0, e_pad - E), (0, 0)))           # padded rows: zero features
    dst_i32 = dst.astype(jnp.int32)
    dst_row = jnp.pad(dst_i32, (0, e_pad - E), constant_values=-1).reshape(1, e_pad)
    dst_col = dst_row.reshape(e_pad, 1)

    n_pad8 = -(-num_nodes // 8) * 8
    if tile_n is None:
        tile_n = min(n_pad8, 2048)            # node-block axis bounds VMEM (v7x) / enables 2 TCs
    tile_n = max(8, -(-int(tile_n) // 8) * 8)
    n_nb = max(1, -(-num_nodes // tile_n))
    n_pad = n_nb * tile_n
    nid = jnp.arange(n_pad, dtype=jnp.int32).reshape(n_pad, 1)     # padded ids never match a dst

    if vmem_limit_bytes is None:
        vmem_limit_bytes = _default_vmem_limit()

    kernel = functools.partial(_magnn_kernel, hd=HD, hd_pad=HD_pad,
                               num_heads=H, lrelu_alpha=lrelu_alpha)
    h = pl.pallas_call(
        kernel,
        out_shape=jax.ShapeDtypeStruct((n_pad, HD), jnp.float32),
        grid_spec=pltpu.PrefetchScalarGridSpec(
            num_scalar_prefetch=0,
            grid=(n_nb, n_et),
            in_specs=[
                pl.BlockSpec((tile_e, LD), lambda nb, t: (t, 0)),          # edge features (stream)
                pl.BlockSpec((1, tile_e), lambda nb, t: (0, t)),           # dst ids, row layout
                pl.BlockSpec((tile_e, 1), lambda nb, t: (t, 0)),           # dst ids, col layout
                pl.BlockSpec((tile_n, 1), lambda nb, t: (nb, 0)),          # node ids (resident/blk)
                pl.BlockSpec((LD, HD_pad + AW), lambda nb, t: (0, 0)),     # fused RHS (resident)
                pl.BlockSpec((H, HD), lambda nb, t: (0, 0)),               # head->lane expand
            ],
            out_specs=pl.BlockSpec((tile_n, HD), lambda nb, t: (nb, 0)),   # resident accumulator
            scratch_shapes=[pltpu.VMEM((tile_n, HD), jnp.float32),         # lane-dense denom
                            pltpu.VMEM((1, H), jnp.float32)],              # running per-head max
        ),
        compiler_params=pltpu.CompilerParams(
            dimension_semantics=("parallel", "arbitrary"),
            vmem_limit_bytes=int(vmem_limit_bytes)),
    )(edflat_p, dst_row, dst_col, nid, big, expand)

    # lane-dense kernel output is already in final layout; drop node padding, split head axis
    return h[:num_nodes].reshape(num_nodes, H, D)


def _reference(features, indices, dst, etypes, params, *, num_nodes, num_heads,
               out_dim, lrelu_alpha=0.01):
    """Pure-JAX re-statement of the PyTorch forward (RotatE0, eval mode)."""
    E, L = indices.shape
    D = out_dim
    D2 = D // 2
    edata = features[indices]                                # (E, L, D)
    r_vec = params["r_vec"]
    norm = jnp.maximum(jnp.sqrt(jnp.sum(r_vec ** 2, axis=2, keepdims=True)), 1e-12)
    r_n = r_vec / norm
    r = jnp.stack([r_n, r_n], axis=1)
    r = r.at[:, 1, :, 1].multiply(-1.0)
    r = r.reshape(r_vec.shape[0] * 2, D2, 2)
    edc = edata.reshape(E, L, D2, 2)
    final = np.empty((L,), dtype=object)
    final[L - 1] = (jnp.ones((D2,), jnp.float32), jnp.zeros((D2,), jnp.float32))
    for i in range(L - 2, -1, -1):
        if etypes[i] is not None:
            re = final[i + 1][0] * r[etypes[i], :, 0] - final[i + 1][1] * r[etypes[i], :, 1]
            im = final[i + 1][0] * r[etypes[i], :, 1] + final[i + 1][1] * r[etypes[i], :, 0]
            final[i] = (re, im)
        else:
            final[i] = final[i + 1]
    pos = []
    for i in range(L):
        if i < L - 1:
            re = edc[:, i, :, 0] * final[i][0] - edc[:, i, :, 1] * final[i][1]
            im = edc[:, i, :, 0] * final[i][1] + edc[:, i, :, 1] * final[i][0]
        else:
            re, im = edc[:, i, :, 0], edc[:, i, :, 1]
        pos.append(jnp.stack([re, im], axis=-1).reshape(E, D))
    hidden = jnp.mean(jnp.stack(pos, axis=1), axis=1)        # (E, D)
    eft = jnp.broadcast_to(hidden[:, None, :], (E, num_heads, D))
    center = features[indices[:, -1]]
    a1 = center @ params["attn1_w"].T                        # (E, H)
    a2 = jnp.sum(eft * params["attn2"], axis=-1)             # (E, H)
    a = a1 + a2
    a = jnp.where(a > 0, a, lrelu_alpha * a)
    m = jax.ops.segment_max(a, dst, num_segments=num_nodes)
    ex = jnp.exp(a - m[dst])
    denom = jax.ops.segment_sum(ex, dst, num_segments=num_nodes)
    alpha = ex / denom[dst]
    ft = eft * alpha[:, :, None]
    return jax.ops.segment_sum(ft, dst, num_segments=num_nodes)   # (N, H, D)


if __name__ == "__main__":
    # small shapes consistent with the module
    N_NODES = 24       # graph nodes / embedding table rows
    OUT_DIM = 32       # out_dim (even, for RotatE complex pairs)
    NUM_HEADS = 4
    L_PATH = 3         # metapath length
    N_EDGES = 1200     # spans multiple edge tiles + exercises the padded last tile
    N_ETYPES = 2
    ETYPES = [0, 3]    # length L-1, indices into the RotatE0-doubled r_vec (2*N_ETYPES rows)

    key = jax.random.PRNGKey(0)
    k1, k2, k3, k4, k5, k6 = jax.random.split(key, 6)
    features = jax.random.normal(k1, (N_NODES, OUT_DIM), jnp.float32)
    edge_metapath_indices = jax.random.randint(k2, (N_EDGES, L_PATH), 0, N_NODES, dtype=jnp.int32)
    dst = jax.random.randint(k3, (N_EDGES,), 0, N_NODES, dtype=jnp.int32)

    # deterministic parameter init (shapes per the module __init__)
    params = {
        "attn1_w": jax.random.normal(k4, (NUM_HEADS, OUT_DIM), jnp.float32)
                   * np.float32(1.0 / np.sqrt(OUT_DIM)),
        "attn2": jax.random.normal(k5, (1, NUM_HEADS, OUT_DIM), jnp.float32)
                 * np.float32(1.441 * np.sqrt(2.0 / (NUM_HEADS + OUT_DIM))),   # xavier_normal(1.441)
        "r_vec": jax.random.normal(k6, (N_ETYPES, OUT_DIM // 2, 2), jnp.float32),
    }

    h_ref = _reference(features, edge_metapath_indices, dst, ETYPES, params,
                       num_nodes=N_NODES, num_heads=NUM_HEADS, out_dim=OUT_DIM)
    h_ref = np.asarray(jax.block_until_ready(h_ref))

    # default config: big edge tiles (tile_e=1024 -> 2 edge tiles), single node block
    h1 = magnn_metapath_forward(features, edge_metapath_indices, dst, ETYPES, params,
                                num_nodes=N_NODES, num_heads=NUM_HEADS, out_dim=OUT_DIM)
    h1 = np.asarray(jax.block_until_ready(h1))
    assert h1.shape == (N_NODES, NUM_HEADS, OUT_DIM)
    np.testing.assert_allclose(h1, h_ref, rtol=1e-3, atol=1e-5)

    # node-blocked config: exercises the "parallel" node axis plus node and edge padding
    h2 = magnn_metapath_forward(features, edge_metapath_indices, dst, ETYPES, params,
                                num_nodes=N_NODES, num_heads=NUM_HEADS, out_dim=OUT_DIM,
                                tile_e=512, tile_n=16)
    h2 = np.asarray(jax.block_until_ready(h2))
    np.testing.assert_allclose(h2, h_ref, rtol=1e-3, atol=1e-5)

    print("KERNEL_OK")
</pallas_src>

<mosaic_0001>
module attributes {stable_mosaic.version = 11 : i64} {
  func.func @_magnn_kernel(%arg0: i32, %arg1: i32, %arg2: memref<1024x96xf32, #tpu.memory_space<vmem>>, %arg3: memref<1x1024xi32, #tpu.memory_space<vmem>>, %arg4: memref<1024x1xi32, #tpu.memory_space<vmem>>, %arg5: memref<24x1xi32, #tpu.memory_space<vmem>>, %arg6: memref<96x256xf32, #tpu.memory_space<vmem>>, %arg7: memref<4x128xf32, #tpu.memory_space<vmem>>, %arg8: memref<24x128xf32, #tpu.memory_space<vmem>>, %arg9: memref<24x128xf32, #tpu.memory_space<vmem>>, %arg10: memref<1x4xf32, #tpu.memory_space<vmem>>) attributes {dimension_semantics = [#tpu.dimension_semantics<parallel>, #tpu.dimension_semantics<arbitrary>], iteration_bounds = array<i64: 1, 2>, scalar_prefetch = 0 : i64, scratch_operands = 2 : i64, tpu.core_type = #tpu.core_type<tc>, window_params = [{transform_indices = @transform_0, window_bounds = array<i64: 1024, 96>}, {transform_indices = @transform_1, window_bounds = array<i64: 1, 1024>}, {transform_indices = @transform_2, window_bounds = array<i64: 1024, 1>}, {transform_indices = @transform_3, window_bounds = array<i64: 24, 1>}, {pipeline_mode = #tpu.pipeline_mode<synchronous>, transform_indices = @transform_4, window_bounds = array<i64: 96, 256>}, {pipeline_mode = #tpu.pipeline_mode<synchronous>, transform_indices = @transform_5, window_bounds = array<i64: 4, 128>}, {transform_indices = @transform_6, window_bounds = array<i64: 24, 128>}]} {
    %c0_i32 = arith.constant 0 : i32
    %0 = arith.cmpi eq, %arg1, %c0_i32 : i32
    %1 = arith.extui %0 : i1 to i32
    %c0_i32_0 = arith.constant 0 : i32
    %2 = arith.cmpi ne, %1, %c0_i32_0 : i32
    scf.if %2 {
      %cst_35 = arith.constant 0.000000e+00 : f32
      %59 = vector.broadcast %cst_35 : f32 to vector<24x128xf32>
      %c0_36 = arith.constant 0 : index
      %c0_37 = arith.constant 0 : index
      %60 = vector.load %arg8[%c0_36, %c0_37] : memref<24x128xf32, #tpu.memory_space<vmem>>, vector<24x128xf32>
      tpu.vector_store %arg8[%c0_36, %c0_37], %59 {strides = array<i32>} : memref<24x128xf32, #tpu.memory_space<vmem>>, vector<24x128xf32>,
      %cst_38 = arith.constant 0.000000e+00 : f32
      %61 = vector.broadcast %cst_38 : f32 to vector<24x128xf32>
      %c0_39 = arith.constant 0 : index
      %c0_40 = arith.constant 0 : index
      %62 = vector.load %arg9[%c0_39, %c0_40] : memref<24x128xf32, #tpu.memory_space<vmem>>, vector<24x128xf32>
      tpu.vector_store %arg9[%c0_39, %c0_40], %61 {strides = array<i32>} : memref<24x128xf32, #tpu.memory_space<vmem>>, vector<24x128xf32>,
      %cst_41 = arith.constant -1.000000e+30 : f32
      %63 = vector.broadcast %cst_41 : f32 to vector<1x4xf32>
      %c0_42 = arith.constant 0 : index
      %c0_43 = arith.constant 0 : index
      %64 = vector.load %arg10[%c0_42, %c0_43] : memref<1x4xf32, #tpu.memory_space<vmem>>, vector<1x4xf32>
      tpu.vector_store %arg10[%c0_42, %c0_43], %63 {strides = array<i32>} : memref<1x4xf32, #tpu.memory_space<vmem>>, vector<1x4xf32>,
    } else {
    }
    %c0 = arith.constant 0 : index
    %c0_1 = arith.constant 0 : index
    %3 = vector.load %arg2[%c0, %c0_1] : memref<1024x96xf32, #tpu.memory_space<vmem>>, vector<1024x96xf32>
    %c0_2 = arith.constant 0 : index
    %c0_3 = arith.constant 0 : index
    %4 = vector.load %arg6[%c0_2, %c0_3] : memref<96x256xf32, #tpu.memory_space<vmem>>, vector<96x256xf32>
    %cst = arith.constant dense<0.000000e+00> : vector<1024x256xf32>
    %5 = tpu.matmul %3, %4, %cst {dimension_numbers = #tpu.dot_dimension_numbers<[1], [0], [0], [1], [0, 0, 1, 1], [], []>} : vector<1024x96xf32>, vector<96x256xf32>, vector<1024x256xf32> -> vector<1024x256xf32>
    %6 = vector.extract_strided_slice %5 {offsets = [0, 0], sizes = [1024, 128], strides = [1, 1]} : vector<1024x256xf32> to vector<1024x128xf32>
    %7 = vector.extract_strided_slice %5 {offsets = [0, 128], sizes = [1024, 4], strides = [1, 1]} : vector<1024x256xf32> to vector<1024x4xf32>
    %cst_4 = arith.constant 0.000000e+00 : f32
    %8 = vector.broadcast %cst_4 : f32 to vector<1024x4xf32>
    %9 = arith.cmpf ogt, %7, %8 : vector<1024x4xf32>
    %cst_5 = arith.constant 0.00999999977 : f32
    %10 = vector.broadcast %cst_5 : f32 to vector<1024x4xf32>
    %11 = arith.mulf %10, %7 : vector<1024x4xf32>
    %12 = arith.select %9, %7, %11 : vector<1024x4xi1>, vector<1024x4xf32>
    %c0_6 = arith.constant 0 : index
    %c0_7 = arith.constant 0 : index
    %13 = vector.load %arg4[%c0_6, %c0_7] : memref<1024x1xi32, #tpu.memory_space<vmem>>, vector<1024x1xi32>
    %c0_i32_8 = arith.constant 0 : i32
    %14 = vector.broadcast %c0_i32_8 : i32 to vector<1024x1xi32>
    %15 = arith.cmpi sge, %13, %14 : vector<1024x1xi32>
    %cst_9 = arith.constant -1.000000e+30 : f32
    %16 = vector.shape_cast %15 : vector<1024x1xi1> to vector<1024x1xi1>
    %17 = vector.broadcast %16 : vector<1024x1xi1> to vector<1024x4xi1>
    %18 = vector.broadcast %cst_9 : f32 to vector<1024x4xf32>
    %19 = arith.select %17, %12, %18 : vector<1024x4xi1>, vector<1024x4xf32>
    %c0_10 = arith.constant 0 : index
    %c0_11 = arith.constant 0 : index
    %20 = vector.load %arg3[%c0_10, %c0_11] : memref<1x1024xi32, #tpu.memory_space<vmem>>, vector<1x1024xi32>
    %c0_12 = arith.constant 0 : index
    %c0_13 = arith.constant 0 : index
    %21 = vector.load %arg5[%c0_12, %c0_13] : memref<24x1xi32, #tpu.memory_space<vmem>>, vector<24x1xi32>
    %22 = vector.broadcast %20 : vector<1x1024xi32> to vector<24x1024xi32>
    %23 = vector.broadcast %21 : vector<24x1xi32> to vector<24x1024xi32>
    %24 = arith.cmpi eq, %22, %23 : vector<24x1024xi32>
    %25 = arith.extui %24 : vector<24x1024xi1> to vector<24x1024xi32>
    %26 = arith.sitofp %25 : vector<24x1024xi32> to vector<24x1024xf32>
    %c0_14 = arith.constant 0 : index
    %c0_15 = arith.constant 0 : index
    %27 = vector.load %arg10[%c0_14, %c0_15] : memref<1x4xf32, #tpu.memory_space<vmem>>, vector<1x4xf32>
    %cst_16 = arith.constant dense<0xFF800000> : vector<4xf32>
    %28 = vector.multi_reduction <maximumf>, %19, %cst_16 [0] : vector<1024x4xf32> to vector<4xf32>
    %29 = vector.shape_cast %28 : vector<4xf32> to vector<1x4xf32>
    %30 = arith.maximumf %27, %29 : vector<1x4xf32>
    %31 = arith.subf %27, %30 : vector<1x4xf32>
    %32 = math.exp %31 : vector<1x4xf32>
    %c0_17 = arith.constant 0 : index
    %c0_18 = arith.constant 0 : index
    %33 = vector.load %arg7[%c0_17, %c0_18] : memref<4x128xf32, #tpu.memory_space<vmem>>, vector<4x128xf32>
    %cst_19 = arith.constant dense<0.000000e+00> : vector<1x128xf32>
    %34 = tpu.matmul %32, %33, %cst_19 {dimension_numbers = #tpu.dot_dimension_numbers<[1], [0], [0], [1], [0, 0, 1, 1], [], []>} : vector<1x4xf32>, vector<4x128xf32>, vector<1x128xf32> -> vector<1x128xf32>
    %35 = vector.broadcast %30 : vector<1x4xf32> to vector<1024x4xf32>
    %36 = arith.subf %19, %35 : vector<1024x4xf32>
    %37 = math.exp %36 : vector<1024x4xf32>
    %c0_20 = arith.constant 0 : index
    %c0_21 = arith.constant 0 : index
    %38 = vector.load %arg10[%c0_20, %c0_21] : memref<1x4xf32, #tpu.memory_space<vmem>>, vector<1x4xf32>
    tpu.vector_store %arg10[%c0_20, %c0_21], %30 {strides = array<i32>} : memref<1x4xf32, #tpu.memory_space<vmem>>, vector<1x4xf32>,
    %c0_22 = arith.constant 0 : index
    %c0_23 = arith.constant 0 : index
    %39 = vector.load %arg7[%c0_22, %c0_23] : memref<4x128xf32, #tpu.memory_space<vmem>>, vector<4x128xf32>
    %cst_24 = arith.constant dense<0.000000e+00> : vector<1024x128xf32>
    %40 = tpu.matmul %37, %39, %cst_24 {dimension_numbers = #tpu.dot_dimension_numbers<[1], [0], [0], [1], [0, 0, 1, 1], [], []>} : vector<1024x4xf32>, vector<4x128xf32>, vector<1024x128xf32> -> vector<1024x128xf32>
    %41 = arith.mulf %40, %6 : vector<1024x128xf32>
    %42 = tpu.concatenate %41, %40 in 1 : vector<1024x128xf32>, vector<1024x128xf32> -> vector<1024x256xf32>
    %cst_25 = arith.constant dense<0.000000e+00> : vector<24x256xf32>
    %43 = tpu.matmul %26, %42, %cst_25 {dimension_numbers = #tpu.dot_dimension_numbers<[1], [0], [0], [1], [0, 0, 1, 1], [], []>} : vector<24x1024xf32>, vector<1024x256xf32>, vector<24x256xf32> -> vector<24x256xf32>
    %c0_26 = arith.constant 0 : index
    %c0_27 = arith.constant 0 : index
    %44 = vector.load %arg8[%c0_26, %c0_27] : memref<24x128xf32, #tpu.memory_space<vmem>>, vector<24x128xf32>
    %45 = vector.broadcast %34 : vector<1x128xf32> to vector<24x128xf32>
    %46 = arith.mulf %44, %45 : vector<24x128xf32>
    %47 = vector.extract_strided_slice %43 {offsets = [0, 0], sizes = [24, 128], strides = [1, 1]} : vector<24x256xf32> to vector<24x128xf32>
    %48 = arith.addf %46, %47 : vector<24x128xf32>
    %c0_28 = arith.constant 0 : index
    %c0_29 = arith.constant 0 : index
    %49 = vector.load %arg8[%c0_28, %c0_29] : memref<24x128xf32, #tpu.memory_space<vmem>>, vector<24x128xf32>
    tpu.vector_store %arg8[%c0_28, %c0_29], %48 {strides = array<i32>} : memref<24x128xf32, #tpu.memory_space<vmem>>, vector<24x128xf32>,
    %c0_30 = arith.constant 0 : index
    %c0_31 = arith.constant 0 : index
    %50 = vector.load %arg9[%c0_30, %c0_31] : memref<24x128xf32, #tpu.memory_space<vmem>>, vector<24x128xf32>
    %51 = vector.broadcast %34 : vector<1x128xf32> to vector<24x128xf32>
    %52 = arith.mulf %50, %51 : vector<24x128xf32>
    %53 = vector.extract_strided_slice %43 {offsets = [0, 128], sizes = [24, 128], strides = [1, 1]} : vector<24x256xf32> to vector<24x128xf32>
    %54 = arith.addf %52, %53 : vector<24x128xf32>
    %c0_32 = arith.constant 0 : index
    %c0_33 = arith.constant 0 : index
    %55 = vector.load %arg9[%c0_32, %c0_33] : memref<24x128xf32, #tpu.memory_space<vmem>>, vector<24x128xf32>
    tpu.vector_store %arg9[%c0_32, %c0_33], %54 {strides = array<i32>} : memref<24x128xf32, #tpu.memory_space<vmem>>, vector<24x128xf32>,
    %c1_i32 = arith.constant 1 : i32
    %56 = arith.cmpi eq, %arg1, %c1_i32 : i32
    %57 = arith.extui %56 : i1 to i32
    %c0_i32_34 = arith.constant 0 : i32
    %58 = arith.cmpi ne, %57, %c0_i32_34 : i32
    scf.if %58 {
      %c0_35 = arith.constant 0 : index
      %c0_36 = arith.constant 0 : index
      %59 = vector.load %arg9[%c0_35, %c0_36] : memref<24x128xf32, #tpu.memory_space<vmem>>, vector<24x128xf32>
      %cst_37 = arith.constant 0.000000e+00 : f32
      %60 = vector.broadcast %cst_37 : f32 to vector<24x128xf32>
      %61 = arith.cmpf ogt, %59, %60 : vector<24x128xf32>
      %cst_38 = arith.constant 1.000000e+00 : f32
      %62 = vector.broadcast %cst_38 : f32 to vector<24x128xf32>
      %63 = arith.select %61, %59, %62 : vector<24x128xi1>, vector<24x128xf32>
      %64 = tpu.reciprocal %63 {approx = true} : vector<24x128xf32> -> vector<24x128xf32>
      %65 = arith.mulf %63, %64 : vector<24x128xf32>
      %cst_39 = arith.constant 2.000000e+00 : f32
      %66 = vector.broadcast %cst_39 : f32 to vector<24x128xf32>
      %67 = arith.subf %66, %65 : vector<24x128xf32>
      %68 = arith.mulf %64, %67 : vector<24x128xf32>
      %c0_40 = arith.constant 0 : index
      %c0_41 = arith.constant 0 : index
      %69 = vector.load %arg8[%c0_40, %c0_41] : memref<24x128xf32, #tpu.memory_space<vmem>>, vector<24x128xf32>
      %70 = arith.mulf %69, %68 : vector<24x128xf32>
      %c0_42 = arith.constant 0 : index
      %c0_43 = arith.constant 0 : index
      %71 = vector.load %arg8[%c0_42, %c0_43] : memref<24x128xf32, #tpu.memory_space<vmem>>, vector<24x128xf32>
      tpu.vector_store %arg8[%c0_42, %c0_43], %70 {strides = array<i32>} : memref<24x128xf32, #tpu.memory_space<vmem>>, vector<24x128xf32>,
    } else {
    }
    return
  }
  func.func @transform_0(%arg0: i32, %arg1: i32) -> (i32, i32) {
    %c0_i32 = arith.constant 0 : i32
    %c0_i32_0 = arith.constant 0 : i32
    return %arg1, %c0_i32 : i32, i32
  }
  func.func @transform_1(%arg0: i32, %arg1: i32) -> (i32, i32) {
    %c0_i32 = arith.constant 0 : i32
    %c0_i32_0 = arith.constant 0 : i32
    return %c0_i32, %arg1 : i32, i32
  }
  func.func @transform_2(%arg0: i32, %arg1: i32) -> (i32, i32) {
    %c0_i32 = arith.constant 0 : i32
    %c0_i32_0 = arith.constant 0 : i32
    return %arg1, %c0_i32 : i32, i32
  }
  func.func @transform_3(%arg0: i32, %arg1: i32) -> (i32, i32) {
    %c0_i32 = arith.constant 0 : i32
    %c0_i32_0 = arith.constant 0 : i32
    return %arg0, %c0_i32 : i32, i32
  }
  func.func @transform_4(%arg0: i32, %arg1: i32) -> (i32, i32) {
    %c0_i32 = arith.constant 0 : i32
    %c0_i32_0 = arith.constant 0 : i32
    %c0_i32_1 = arith.constant 0 : i32
    return %c0_i32, %c0_i32_0 : i32, i32
  }
  func.func @transform_5(%arg0: i32, %arg1: i32) -> (i32, i32) {
    %c0_i32 = arith.constant 0 : i32
    %c0_i32_0 = arith.constant 0 : i32
    %c0_i32_1 = arith.constant 0 : i32
    return %c0_i32, %c0_i32_0 : i32, i32
  }
  func.func @transform_6(%arg0: i32, %arg1: i32) -> (i32, i32) {
    %c0_i32 = arith.constant 0 : i32
    %c0_i32_0 = arith.constant 0 : i32
    return %arg0, %c0_i32 : i32, i32
  }
}

</mosaic_0001>

<bundles_post_ra>
// kernel: tpu_custom_call.1
= control target key start
LH: loop header
LB: loop body
LE: loop exit
PB: predicated region body
PF: predicated region fallthrough
CT: control target
= control target key end

     0   :  { %11 = vsyncpa [#allocation5], 0  ;;  %s6340_s21 = smov 0   ;;  %s6342_s22 = smov 0   ;;  %s10514_s0 = inlined_call_operand.vmem [shape: f32[2048,96], index: 0, kind: input, shape index: {}]   ;;  %s10515_s1 = inlined_call_operand.vmem [shape: s32[1,2048], index: 1, kind: input, shape index: {}]   ;;  %s10516_s2 = inlined_call_operand.vmem [shape: s32[2048,1], index: 2, kind: input, shape index: {}]   ;;  %s10517_s3 = inlined_call_operand.vmem [shape: s32[24,1], index: 3, kind: input, shape index: {}]   ;;  %s10518_s4 = inlined_call_operand.vmem [shape: f32[96,256], index: 4, kind: input, shape index: {}]   ;;  %s10519_s5 = inlined_call_operand.vmem [shape: f32[4,128], index: 5, kind: input, shape index: {}]   ;;  %s10520_s6 = inlined_call_operand.hbm [shape: f32[24,128], index: 6, kind: output, shape index: {}]  }
   0x1   :  { %s6344_s23 = smov 0  }
   0x2 LB: > { %s5349_s24 = sadd.s32 4294967295, %s6296_s23   ;;  %s26_s25 = sadd.s32 1, %s6292_s22  ;;  %s6296_s23 = sphi %s6344_s23, %s17_s23   ;;  %s6292_s22 = sphi %s6342_s22, %s11573_s22   ;;  %s6288_s21 = sphi %s6340_s21, %s11572_s21  }
   0x3   : > { %p27_p0 = scmp.ge.s32.totalorder %s26_s25, 2  ;;  %p5353_p1 = scmp.ge.s32.totalorder %s6296_s23, 1 }
   0x4   : > { %p258_p2 = scmp.lt.s32.totalorder %s6296_s23, 3 }
   0x5   : > { %s11575_s25 = smov (%p27_p0, %s26_s25), 0 }
   0x6   : > { %p259_p3 = pnand %p5353_p1, %p258_p2 }
   0x8   : > { %262 = sbr.rel (%p259_p3) target bundleno = 2613 (0xa35), region = 44 }
   0xd   : > { %s5354_s26 = sshll.u32 %s6288_s21, 7  ;;  %s5356_s27 = sshll.u32 %s6288_s21, 3 }
   0xe   : > { %p298_p4 = scmp.lt.s32.totalorder %s5354_s26, 255  ;;  %p304_p5 = scmp.lt.s32.totalorder %s5356_s27, 15 }
   0xf   : > { %p5359_p6 = scmp.ne.s32.totalorder %s6288_s21, 0 }
  0x10   : > { %s11577_s26 = smov (!%p298_p4, %s5354_s26), 255  ;;  %s11579_s27 = smov (!%p304_p5, %s5356_s27), 15 }
  0x11   : > { %s5355_s28 = sshll.u32 %s11577_s26, 3  ;;  %s6371_s10 = scalar_lea.vmem %s10515_s1, %s11579_s27 }
  0x12   : > { %s6366_s7 = scalar_lea.vmem %s10514_s0, %s5355_s28  ;;  %s6376_s13 = scalar_lea.vmem %s10516_s2, %s5355_s28 }
  0x13   : > { %324 = sbr.rel (%p5359_p6) target bundleno = 32 (0x20), region = 48 }
  0x18   : > { %v6298_v0 = vmov 0.0   ;;  %vm331_vm0 = vcmask 24576   ;;  %v6299_v1 = vmov -1e+30  }
  0x19   : > { %325 = vst [vmem:[#allocation4] sm:$0xff] %v6298_v0 }
  0x1a   : > { %326 = vst [vmem:[#allocation4 + $0x8] sm:$0xff] %v6298_v0 }
  0x1b   : > { %327 = vst [vmem:[#allocation4 + $0x10] sm:$0xff] %v6298_v0 }
  0x1c   : > { %328 = vst [vmem:[#allocation2 + $0x10] sm:$0xff] %v6298_v0 }
  0x1d   : > { %329 = vst [vmem:[#allocation2] sm:$0xff] %v6298_v0 }
  0x1e   : > { %330 = vst [vmem:[#allocation2 + $0x8] sm:$0xff] %v6298_v0 }
  0x1f   : > { %332 = vst.msk [vmem:[#allocation3] sm:$0x1] %vm331_vm0, %v6299_v1 }
  0x20 PF: > { %v6382_v2 = vld [vmem:[%s10518_s4 + $0xb8] sm:$0xff]  ;;  %v6387_v3 = vld [vmem:[%s10518_s4 + $0xa8] sm:$0xff]  ;;  %v6300_v4 = vmov 0   ;;  %v2056_v7 = vld [vmem:[%s6376_s13] sm:$0xff]  ;;  %vm485_vm4 = vcmask 785408   ;;  %p5819_p7 = scmp.ne.s32.totalorder %s6288_s21, 1 }
  0x21   : > { %1275 = vmatpush.msra.mxu1 %v6382_v2  ;;  %5886 = vset.pattern.permute.xlu0 %v6300_v4  ;;  %v6394_v5 = vld [vmem:[%s10518_s4 + $0x98] sm:$0xff]  ;;  %v6402_v6 = vld [vmem:[%s10518_s4 + $0x88] sm:$0xff]  ;;  %vm2184_vm1 = vcmp.ge.s32.totalorder %v2056_v7, 0  ;;  %v2058_v17 = vld [vmem:[%s6376_s13 + $0x10] sm:$0xff] }
  0x22   : > { %5887 = vset.pattern.permute.xlu1 %v6300_v4  ;;  %5888 = vset.pattern.permute.xlu2 %v6300_v4  ;;  %v6409_v8 = vld [vmem:[%s10518_s4 + $0x78] sm:$0xff]  ;;  %v2312_v9 = vsel %vm2184_vm1, 1, %v6300_v4  ;;  %v6416_v10 = vld [vmem:[%s10518_s4 + $0x68] sm:$0xff]  ;;  %vm2186_vm3 = vcmp.ge.s32.totalorder %v2058_v17, 0  ;;  %v6460_v21 = vld [vmem:[%s6366_s7] sm:$0xff] }
  0x23   : > { %1276 = vmatpush.msra.mxu1 %v6387_v3  ;;  %2441 = vperm.xlu0 %5886, %v2312_v9   ;;  %v2057_v11 = vld [vmem:[%s6376_s13 + $0x8] sm:$0xff]  ;;  %v6423_v12 = vld [vmem:[%s10518_s4 + $0x58] sm:$0xff]  ;;  %v2314_v19 = vsel %vm2186_vm3, 1, %v6300_v4  ;;  %v6473_v25 = vld [vmem:[%s6366_s7 + $0x10] sm:$0xff] }
  0x24   : > { %vm2185_vm2 = vcmp.ge.s32.totalorder %v2057_v11, 0  ;;  %v6429_v13 = vld [vmem:[%s10518_s4 + $0x48] sm:$0xff]  ;;  %v6436_v15 = vld [vmem:[%s10518_s4 + $0x38] sm:$0xff]  ;;  %2447 = vperm.xlu1 %5887, %v2314_v19   ;;  %v2062_v27 = vld [vmem:[%s6376_s13 + $0x30] sm:$0xff] }
  0x25   : > { %1277 = vmatpush.msra.mxu1 %v6394_v5  ;;  %v2313_v14 = vsel %vm2185_vm2, 1, %v6300_v4  ;;  %v6442_v16 = vld [vmem:[%s10518_s4 + $0x28] sm:$0xff]  ;;  %v6449_v18 = vld [vmem:[%s10518_s4 + $0x18] sm:$0xff]  ;;  %vm2190_vm6 = vcmp.ge.s32.totalorder %v2062_v27, 0  ;;  %v6485_v29 = vld [vmem:[%s6366_s7 + $0x20] sm:$0xff] }
  0x26   : > { %v6456_v20 = vld [vmem:[%s10518_s4 + $0x8] sm:$0xff]  ;;  %v2059_v22 = vld [vmem:[%s6376_s13 + $0x18] sm:$0xff]  ;;  %v2318_v28 = vsel %vm2190_vm6, 1, %v6300_v4  ;;  %v2060_v30 = vld [vmem:[%s6376_s13 + $0x20] sm:$0xff] }
  0x27   : > { %1278 = vmatpush.msra.mxu1 %v6402_v6  ;;  %vm2187_vm5 = vcmp.ge.s32.totalorder %v2059_v22, 0  ;;  %v6468_v24 = vld [vmem:[%s6366_s7 + $0x8] sm:$0xff]  ;;  %v6478_v26 = vld [vmem:[%s6366_s7 + $0x18] sm:$0xff]  ;;  %vm2188_vm7 = vcmp.ge.s32.totalorder %v2060_v30, 0  ;;  %v6501_v37 = vld [vmem:[%s6366_s7 + $0x30] sm:$0xff] }
  0x28   : > { %v2315_v23 = vsel %vm2187_vm5, 1, %v6300_v4  ;;  %v2063_v31 = vld [vmem:[%s6376_s13 + $0x38] sm:$0xff]  ;;  %v2316_v32 = vsel %vm2188_vm7, 1, %v6300_v4  ;;  %v6494_v34 = vld [vmem:[%s6366_s7 + $0x28] sm:$0xff]  ;;  %v2066_v41 = vld [vmem:[%s6376_s13 + $0x50] sm:$0xff] }
  0x29   : > { %1279 = vmatpush.msra.mxu1 %v6409_v8  ;;  %vm2191_vm8 = vcmp.ge.s32.totalorder %v2063_v31, 0  ;;  %2453 = vperm.xlu2 %5888, %v2316_v32   ;;  %v2061_v35 = vld [vmem:[%s6376_s13 + $0x28] sm:$0xff]  ;;  %v6508_v40 = vld [vmem:[%s6366_s7 + $0x38] sm:$0xff]  ;;  %vm2194_vm11 = vcmp.ge.s32.totalorder %v2066_v41, 0  ;;  %v6515_v43 = vld [vmem:[%s6366_s7 + $0x40] sm:$0xff] }
  0x2a   : > { %v2319_v33 = vsel %vm2191_vm8, 1, %v6300_v4  ;;  %vm2189_vm9 = vcmp.ge.s32.totalorder %v2061_v35, 0  ;;  %v2065_v38 = vld [vmem:[%s6376_s13 + $0x48] sm:$0xff]  ;;  %v2322_v42 = vsel %vm2194_vm11, 1, %v6300_v4  ;;  %v2064_v44 = vld [vmem:[%s6376_s13 + $0x40] sm:$0xff]  ;;  %v6529_v49 = vld [vmem:[%s6366_s7 + $0x50] sm:$0xff] }
  0x2b   : > { %1280 = vmatpush.msra.mxu1 %v6416_v10  ;;  %2444 = vperm.xlu0 %5886, %v2313_v14   ;;  %v2317_v36 = vsel %vm2189_vm9, 1, %v6300_v4  ;;  %vm2193_vm10 = vcmp.ge.s32.totalorder %v2065_v38, 0  ;;  %vm2192_vm12 = vcmp.ge.s32.totalorder %v2064_v44, 0  ;;  %v6522_v46 = vld [vmem:[%s6366_s7 + $0x48] sm:$0xff]  ;;  %v2068_v47 = vld [vmem:[%s6376_s13 + $0x60] sm:$0xff]  ;;  %v6536_v52 = vld [vmem:[%s6366_s7 + $0x58] sm:$0xff] }
  0x2c   : > { %2450 = vperm.xlu1 %5887, %v2315_v23   ;;  %v2321_v39 = vsel %vm2193_vm10, 1, %v6300_v4  ;;  %v2320_v45 = vsel %vm2192_vm12, 1, %v6300_v4  ;;  %vm2196_vm13 = vcmp.ge.s32.totalorder %v2068_v47, 0  ;;  %v2069_v50 = vld [vmem:[%s6376_s13 + $0x68] sm:$0xff]  ;;  %v2067_v53 = vld [vmem:[%s6376_s13 + $0x58] sm:$0xff]  ;;  %v6543_v55 = vld [vmem:[%s6366_s7 + $0x60] sm:$0xff] }
  0x2d   : > { %1281 = vmatpush.msra.mxu1 %v6423_v12  ;;  %v2324_v48 = vsel %vm2196_vm13, 1, %v6300_v4  ;;  %vm2197_vm14 = vcmp.ge.s32.totalorder %v2069_v50, 0  ;;  %vm2195_vm15 = vcmp.ge.s32.totalorder %v2067_v53, 0  ;;  %v2071_v56 = vld [vmem:[%s6376_s13 + $0x78] sm:$0xff]  ;;  %v6550_v58 = vld [vmem:[%s6366_s7 + $0x68] sm:$0xff]  ;;  %v2072_v59 = vld [vmem:[%s6376_s13 + $0x80] sm:$0xff] }
  0x2e   : > { %v2325_v51 = vsel %vm2197_vm14, 1, %v6300_v4  ;;  %v2323_v54 = vsel %vm2195_vm15, 1, %v6300_v4  ;;  %vm2199_vm0 = vcmp.ge.s32.totalorder %v2071_v56, 0  ;;  %vm2200_vm1 = vcmp.ge.s32.totalorder %v2072_v59, 0  ;;  %v6557_v61 = vld [vmem:[%s6366_s7 + $0x70] sm:$0xff]  ;;  %v6564_v0 = vld [vmem:[%s6366_s7 + $0x78] sm:$0xff] }
  0x2f   : > { %1282 = vmatpush.msra.mxu1 %v6429_v13  ;;  %v2327_v57 = vsel %vm2199_vm0, 1, %v6300_v4  ;;  %v2328_v60 = vsel %vm2200_vm1, 1, %v6300_v4  ;;  %v2070_v62 = vld [vmem:[%s6376_s13 + $0x70] sm:$0xff]  ;;  %v6573_v11 = vld [vmem:[%s6366_s7 + $0x80] sm:$0xff]  ;;  %v2075_v14 = vld [vmem:[%s6376_s13 + $0x98] sm:$0xff] }
  0x30   : > { %vm2198_vm2 = vcmp.ge.s32.totalorder %v2070_v62, 0  ;;  %v2074_v1 = vld [vmem:[%s6376_s13 + $0x90] sm:$0xff]  ;;  %vm2203_vm5 = vcmp.ge.s32.totalorder %v2075_v14, 0  ;;  %v6582_v22 = vld [vmem:[%s6366_s7 + $0x88] sm:$0xff]  ;;  %v6600_v35 = vld [vmem:[%s6366_s7 + $0x98] sm:$0xff] }
  0x31   : > { %1283 = vmatpush.msra.mxu1 %v6436_v15  ;;  %2456 = vperm.xlu2 %5888, %v2317_v36   ;;  %v2326_v63 = vsel %vm2198_vm2, 1, %v6300_v4  ;;  %vm2202_vm3 = vcmp.ge.s32.totalorder %v2074_v1, 0  ;;  %v2331_v17 = vsel %vm2203_vm5, 1, %v6300_v4  ;;  %v2073_v23 = vld [vmem:[%s6376_s13 + $0x88] sm:$0xff]  ;;  %v6591_v30 = vld [vmem:[%s6366_s7 + $0x90] sm:$0xff]  ;;  %v481_v41 = vld [vmem:[%s10518_s4 + $0xa0] sm:$0xff] }
  0x32   : > { %v2330_v7 = vsel %vm2202_vm3, 1, %v6300_v4  ;;  %vm2201_vm6 = vcmp.ge.s32.totalorder %v2073_v23, 0  ;;  %v2077_v31 = vld [vmem:[%s6376_s13 + $0xa8] sm:$0xff]  ;;  %v2078_v36 = vld [vmem:[%s6376_s13 + $0xb0] sm:$0xff]  ;;  %v6615_v44 = vld [vmem:[%s6366_s7 + $0xa0] sm:$0xff] }
  0x33   : > { %1284 = vmatpush.msra.mxu1 %v6442_v16  ;;  %2459 = vperm.xlu0 %5886, %v2318_v28   ;;  %v2329_v27 = vsel %vm2201_vm6, 1, %v6300_v4  ;;  %vm2205_vm7 = vcmp.ge.s32.totalorder %v2077_v31, 0  ;;  %v483_v38 = vld [vmem:[%s10518_s4 + $0xb0] sm:$0xff]  ;;  %vm2206_vm8 = vcmp.ge.s32.totalorder %v2078_v36, 0  ;;  %v477_v47 = vld [vmem:[%s10518_s4 + $0x80] sm:$0xff]  ;;  %v6640_v62 = vld [vmem:[%s6366_s7 + $0xa8] sm:$0xff] }
  0x34   : > { %2462 = vperm.xlu1 %5887, %v2319_v33   ;;  %v2333_v32 = vsel %vm2205_vm7, 1, %v6300_v4  ;;  %5824 = vmatpush.msra.mxu2 %v483_v38  ;;  %v2080_v50 = vld [vmem:[%s6376_s13 + $0xc0] sm:$0xff]  ;;  %v475_v53 = vld [vmem:[%s10518_s4 + $0x70] sm:$0xff] }
  0x35   : > { %1285 = vmatpush.msra.mxu1 %v6449_v18  ;;  %874 = vmatpush.msra.mxu0 %v483_v38  ;;  %vm2208_vm10 = vcmp.ge.s32.totalorder %v2080_v50, 0  ;;  %v473_v59 = vld [vmem:[%s10518_s4 + $0x60] sm:$0xff]  ;;  %v6663_v36 = vld [vmem:[%s6366_s7 + $0xb0] sm:$0xff] }
  0x36   : > { %5825 = vmatpush.msra.mxu2 %v481_v41  ;;  %v2336_v56 = vsel %vm2208_vm10, 1, %v6300_v4  ;;  %v469_v1 = vld [vmem:[%s10518_s4 + $0x40] sm:$0xff]  ;;  %v463_v38 = vld [vmem:[%s10518_s4 + $0x10] sm:$0xff] }
  0x37   : > { %1286 = vmatpush.msra.mxu1 %v6456_v20  ;;  %875 = vmatpush.msra.mxu0 %v481_v41  ;;  %v2084_v14 = vld [vmem:[%s6376_s13 + $0xe0] sm:$0xff] }
  0x38   : > { %5488 = vmatmul.msk.f32.vlgmr.msra.gmra.mxu1 %vm485_vm4, %v6460_v21  ;;  %vm2212_vm13 = vcmp.ge.s32.totalorder %v2084_v14, 0  ;;  %v465_v31 = vld [vmem:[%s10518_s4 + $0x20] sm:$0xff]  ;;  %v2095_v14 = vld [vmem:[%s6376_s13 + $0x138] sm:$0xff] }
  0x39   : > { %2465 = vperm.xlu2 %5888, %v2320_v45   ;;  %v479_v45 = vld [vmem:[%s10518_s4 + $0x90] sm:$0xff]  ;;  %v6674_v41 = vld [vmem:[%s6366_s7 + $0x380] sm:$0xff]  ;;  %vm2223_vm6 = vcmp.ge.s32.totalorder %v2095_v14, 0 }
  0x3a   : > { %5826 = vmatpush.msra.mxu2 %v479_v45  ;;  %876 = vmatpush.msra.mxu0 %v479_v45  ;;  %v2086_v45 = vld [vmem:[%s6376_s13 + $0xf0] sm:$0xff] }
  0x3b   : > { %2468 = vperm.xlu0 %5886, %v2321_v39   ;;  %v2334_v39 = vsel %vm2206_vm8, 1, %v6300_v4  ;;  %vm2214_vm14 = vcmp.ge.s32.totalorder %v2086_v45, 0 }
  0x3c   : > { %2471 = vperm.xlu1 %5887, %v2322_v42   ;;  %5827 = vmatpush.msra.mxu2 %v477_v47 }
  0x3d   : > { %877 = vmatpush.msra.mxu0 %v477_v47  ;;  %v2087_v47 = vld [vmem:[%s6376_s13 + $0xf8] sm:$0xff] }
  0x3e   : > { %5828 = vmatpush.msra.mxu2 %v475_v53  ;;  %vm2215_vm15 = vcmp.ge.s32.totalorder %v2087_v47, 0  ;;  %v360_v47 = vld [vmem:[%s6366_s7 + $0xd8] sm:$0xff] }
  0x3f   : > { %878 = vmatpush.msra.mxu0 %v475_v53  ;;  %v2343_v50 = vsel %vm2215_vm15, 1, %v6300_v4  ;;  %v6688_v53 = vld [vmem:[%s6366_s7 + $0xb8] sm:$0xff] }
  0x40   : > { %5489 = vmatmul.msk.f32.gmra.mxu1 %vm485_vm4, %v6468_v24  ;;  %5829 = vmatpush.msra.mxu2 %v473_v59 }
  0x41   : > { %2474 = vperm.xlu2 %5888, %v2323_v54   ;;  %879 = vmatpush.msra.mxu0 %v473_v59  ;;  %v357_v59 = vld [vmem:[%s6366_s7 + $0xc0] sm:$0xff] }
  0x43   : > { %2477 = vperm.xlu0 %5886, %v2324_v48   ;;  %v2076_v48 = vld [vmem:[%s6376_s13 + $0xa0] sm:$0xff] }
  0x44   : > { %2480 = vperm.xlu1 %5887, %v2325_v51   ;;  %v2081_v51 = vld [vmem:[%s6376_s13 + $0xc8] sm:$0xff]  ;;  %vm2204_vm9 = vcmp.ge.s32.totalorder %v2076_v48, 0  ;;  %v2342_v48 = vsel %vm2214_vm14, 1, %v6300_v4 }
  0x45   : > { %vm2209_vm11 = vcmp.ge.s32.totalorder %v2081_v51, 0  ;;  %v2332_v54 = vsel %vm2204_vm9, 1, %v6300_v4 }
  0x48   : > { %5490 = vmatmul.msk.f32.gmra.mxu1 %vm485_vm4, %v6473_v25 }
  0x49   : > { %2483 = vperm.xlu2 %5888, %v2326_v63   ;;  %v471_v63 = vld [vmem:[%s10518_s4 + $0x50] sm:$0xff] }
  0x4a   : > { %5830 = vmatpush.msra.mxu2 %v471_v63  ;;  %880 = vmatpush.msra.mxu0 %v471_v63  ;;  %v6716_v63 = vld [vmem:[%s6366_s7 + $0x390] sm:$0xff] }
  0x4b   : > { %2486 = vperm.xlu0 %5886, %v2327_v57   ;;  %v2337_v57 = vsel %vm2209_vm11, 1, %v6300_v4 }
  0x4c   : > { %2489 = vperm.xlu1 %5887, %v2328_v60   ;;  %5831 = vmatpush.msra.mxu2 %v469_v1 }
  0x4d   : > { %881 = vmatpush.msra.mxu0 %v469_v1  ;;  %v2092_v1 = vld [vmem:[%s6376_s13 + $0x120] sm:$0xff] }
  0x4e   : > { %vm2220_vm3 = vcmp.ge.s32.totalorder %v2092_v1, 0  ;;  %v6786_v1 = vld [vmem:[%s6366_s7 + $0x3b0] sm:$0xff] }
  0x50   : > { %5491 = vmatmul.msk.f32.gmra.mxu1 %vm485_vm4, %v6478_v26 }
  0x51   : > { %2492 = vperm.xlu2 %5888, %v2329_v27   ;;  %v2340_v27 = vsel %vm2212_vm13, 1, %v6300_v4 }
  0x53   : > { %2495 = vperm.xlu0 %5886, %v2330_v7   ;;  %v2083_v7 = vld [vmem:[%s6376_s13 + $0xd8] sm:$0xff] }
  0x54   : > { %2498 = vperm.xlu1 %5887, %v2331_v17   ;;  %v467_v17 = vld [vmem:[%s10518_s4 + $0x30] sm:$0xff]  ;;  %vm2211_vm12 = vcmp.ge.s32.totalorder %v2083_v7, 0  ;;  %v358_v7 = vld [vmem:[%s6366_s7 + $0xc8] sm:$0xff] }
  0x55   : > { %v2339_v23 = vsel %vm2211_vm12, 1, %v6300_v4  ;;  %5832 = vmatpush.msra.mxu2 %v467_v17  ;;  %882 = vmatpush.msra.mxu0 %v467_v17  ;;  %v359_v17 = vld [vmem:[%s6366_s7 + $0xd0] sm:$0xff] }
  0x57   : > { %5833 = vmatpush.msra.mxu2 %v465_v31  ;;  %883 = vmatpush.msra.mxu0 %v465_v31  ;;  %v2099_v31 = vld [vmem:[%s6376_s13 + $0x158] sm:$0xff] }
  0x58   : > { %5492 = vmatmul.msk.f32.gmra.mxu1 %vm485_vm4, %v6485_v29  ;;  %vm2227_vm9 = vcmp.ge.s32.totalorder %v2099_v31, 0 }
  0x59   : > { %2501 = vperm.xlu2 %5888, %v2332_v54   ;;  %5834 = vmatpush.msra.mxu2 %v463_v38  ;;  %v6695_v54 = vld [vmem:[%s6366_s7 + $0x388] sm:$0xff] }
  0x5a   : > { %884 = vmatpush.msra.mxu0 %v463_v38  ;;  %v2098_v38 = vld [vmem:[%s6376_s13 + $0x150] sm:$0xff] }
  0x5b   : > { %2504 = vperm.xlu0 %5886, %v2333_v32   ;;  %vm2226_vm10 = vcmp.ge.s32.totalorder %v2098_v38, 0 }
  0x5c   : > { %2507 = vperm.xlu1 %5887, %v2334_v39   ;;  %v461_v39 = vld [vmem:[%s10518_s4] sm:$0xff] }
  0x5d   : > { %5835 = vmatpush.msra.mxu2 %v461_v39  ;;  %885 = vmatpush.msra.mxu0 %v461_v39  ;;  %v2354_v39 = vsel %vm2226_vm10, 1, %v6300_v4 }
  0x5e   : > { %5472 = vmatmul.msk.f32.vlgmr.msra.gmra.mxu2 %vm485_vm4, %v6674_v41  ;;  %5360 = vmatmul.msk.f32.vlgmr.msra.gmra.mxu0 %vm485_vm4, %v6460_v21 }
  0x5f   : > { %5836 = vmatpush.msrb.mxu2 %v6382_v2  ;;  %v2079_v2 = vld [vmem:[%s6376_s13 + $0xb8] sm:$0xff] }
  0x60   : > { %5493 = vmatmul.msk.f32.gmra.mxu1 %vm485_vm4, %v6494_v34  ;;  %vm2207_vm0 = vcmp.ge.s32.totalorder %v2079_v2, 0 }
  0x61   : > { %5837 = vmatpush.msrb.mxu2 %v6387_v3  ;;  %v2335_v3 = vsel %vm2207_vm0, 1, %v6300_v4 }
  0x62   : > { %2510 = vperm.xlu2 %5888, %v2335_v3  }
  0x63   : > { %2513 = vperm.xlu0 %5886, %v2336_v56   ;;  %5838 = vmatpush.msrb.mxu2 %v6394_v5  ;;  %v2089_v56 = vld [vmem:[%s6376_s13 + $0x108] sm:$0xff] }
  0x64   : > { %2516 = vperm.xlu1 %5887, %v2337_v57   ;;  %v2090_v57 = vld [vmem:[%s6376_s13 + $0x110] sm:$0xff]  ;;  %vm2217_vm1 = vcmp.ge.s32.totalorder %v2089_v56, 0 }
  0x65   : > { %5839 = vmatpush.msrb.mxu2 %v6402_v6  ;;  %vm2218_vm2 = vcmp.ge.s32.totalorder %v2090_v57, 0  ;;  %v2345_v5 = vsel %vm2217_vm1, 1, %v6300_v4  ;;  %v2102_v56 = vld [vmem:[%s6376_s13 + $0x170] sm:$0xff]  ;;  %v2101_v57 = vld [vmem:[%s6376_s13 + $0x168] sm:$0xff] }
  0x66   : > { %5473 = vmatmul.msk.f32.gmra.mxu2 %vm485_vm4, %v6695_v54  ;;  %v2346_v21 = vsel %vm2218_vm2, 1, %v6300_v4  ;;  %5361 = vmatmul.msk.f32.gmra.mxu0 %vm485_vm4, %v6468_v24  ;;  %vm2230_vm12 = vcmp.ge.s32.totalorder %v2102_v56, 0  ;;  %vm2229_vm13 = vcmp.ge.s32.totalorder %v2101_v57, 0  ;;  %v2110_v56 = vld [vmem:[%s6376_s13 + $0x1b0] sm:$0xff] }
  0x67   : > { %5840 = vmatpush.msrb.mxu2 %v6409_v8  ;;  %v2093_v8 = vld [vmem:[%s6376_s13 + $0x128] sm:$0xff]  ;;  %v2357_v3 = vsel %vm2229_vm13, 1, %v6300_v4 }
  0x68   : > { %5494 = vmatmul.msk.f32.gmra.mxu1 %vm485_vm4, %v6501_v37  ;;  %vm2221_vm5 = vcmp.ge.s32.totalorder %v2093_v8, 0 }
  0x69   : > { %5841 = vmatpush.msrb.mxu2 %v6416_v10  ;;  %v2348_v10 = vsel %vm2220_vm3, 1, %v6300_v4  ;;  %v2349_v24 = vsel %vm2221_vm5, 1, %v6300_v4 }
  0x6b   : > { %2522 = vperm.xlu0 %5886, %v2339_v23   ;;  %5842 = vmatpush.msrb.mxu2 %v6423_v12  ;;  %v6752_v23 = vld [vmem:[%s6366_s7 + $0x3a0] sm:$0xff] }
  0x6c   : > { %2525 = vperm.xlu1 %5887, %v2340_v27  }
  0x6d   : > { %5843 = vmatpush.msrb.mxu2 %v6429_v13  ;;  %v6735_v13 = vld [vmem:[%s6366_s7 + $0x398] sm:$0xff] }
  0x6e   : > { %5474 = vmatmul.msk.f32.gmra.mxu2 %vm485_vm4, %v6716_v63  ;;  %5362 = vmatmul.msk.f32.gmra.mxu0 %vm485_vm4, %v6473_v25 }
  0x6f   : > { %5844 = vmatpush.msrb.mxu2 %v6436_v15  ;;  %v2096_v15 = vld [vmem:[%s6376_s13 + $0x140] sm:$0xff] }
  0x70   : > { %5495 = vmatmul.msk.f32.gmra.mxu1 %vm485_vm4, %v6508_v40  ;;  %vm2224_vm7 = vcmp.ge.s32.totalorder %v2096_v15, 0  ;;  %v362_v15 = vld [vmem:[%s6366_s7 + $0xe8] sm:$0xff] }
  0x71   : > { %5845 = vmatpush.msrb.mxu2 %v6442_v16  ;;  %v2351_v16 = vsel %vm2223_vm6, 1, %v6300_v4  ;;  %v2352_v25 = vsel %vm2224_vm7, 1, %v6300_v4  ;;  %vm2238_vm7 = vcmp.ge.s32.totalorder %v2110_v56, 0 }
  0x72   : > { %v2366_v57 = vsel %vm2238_vm7, 1, %v6300_v4 }
  0x73   : > { %2531 = vperm.xlu0 %5886, %v2342_v48   ;;  %5846 = vmatpush.msrb.mxu2 %v6449_v18  ;;  %v2085_v48 = vld [vmem:[%s6376_s13 + $0xe8] sm:$0xff] }
  0x74   : > { %2534 = vperm.xlu1 %5887, %v2343_v50   ;;  %vm2213_vm11 = vcmp.ge.s32.totalorder %v2085_v48, 0  ;;  %v6769_v50 = vld [vmem:[%s6366_s7 + $0x3a8] sm:$0xff] }
  0x75   : > { %5847 = vmatpush.msrb.mxu2 %v6456_v20  ;;  %v2082_v20 = vld [vmem:[%s6376_s13 + $0xd0] sm:$0xff]  ;;  %v2341_v2 = vsel %vm2213_vm11, 1, %v6300_v4 }
  0x76   : > { %5475 = vmatmul.msk.f32.gmra.mxu2 %vm485_vm4, %v6735_v13  ;;  %5363 = vmatmul.msk.f32.gmra.mxu0 %vm485_vm4, %v6478_v26  ;;  %vm2210_vm8 = vcmp.ge.s32.totalorder %v2082_v20, 0  ;;  %v2355_v26 = vsel %vm2227_vm9, 1, %v6300_v4  ;;  %v2108_v20 = vld [vmem:[%s6376_s13 + $0x1a0] sm:$0xff] }
  0x77   : > { %v2338_v27 = vsel %vm2210_vm8, 1, %v6300_v4  ;;  %vm2236_vm2 = vcmp.ge.s32.totalorder %v2108_v20, 0 }
  0x78   : > { %5496 = vmatmul.msk.f32.gmra.mxu1 %vm485_vm4, %v6515_v43  ;;  %2519 = vperm.xlu2 %5888, %v2338_v27   ;;  %v2107_v27 = vld [vmem:[%s6376_s13 + $0x198] sm:$0xff] }
  0x79   : > { %vm2235_vm3 = vcmp.ge.s32.totalorder %v2107_v27, 0  ;;  %v2117_v27 = vld [vmem:[%s6376_s13 + $0x1e8] sm:$0xff] }
  0x7a   : > { %v2363_v31 = vsel %vm2235_vm3, 1, %v6300_v4 }
  0x7b   : > { %2540 = vperm.xlu0 %5886, %v2345_v5  }
  0x7c   : > { %2543 = vperm.xlu1 %5887, %v2346_v21   ;;  %v361_v21 = vld [vmem:[%s6366_s7 + $0xe0] sm:$0xff] }
  0x7e   : > { %5476 = vmatmul.msk.f32.gmra.mxu2 %vm485_vm4, %v6752_v23  ;;  %5364 = vmatmul.msk.f32.gmra.mxu0 %vm485_vm4, %v6485_v29  ;;  %v2358_v29 = vsel %vm2230_vm12, 1, %v6300_v4  ;;  %vm2245_vm12 = vcmp.ge.s32.totalorder %v2117_v27, 0  ;;  %v368_v27 = vld [vmem:[%s6366_s7 + $0x118] sm:$0xff] }
  0x80   : > { %5497 = vmatmul.msk.f32.gmra.mxu1 %vm485_vm4, %v6522_v46  ;;  %2528 = vperm.xlu2 %5888, %v2341_v2   ;;  %v2111_v2 = vld [vmem:[%s6376_s13 + $0x1b8] sm:$0xff] }
  0x81   : > { %vm2239_vm6 = vcmp.ge.s32.totalorder %v2111_v2, 0  ;;  %v6871_v2 = vld [vmem:[%s6366_s7 + $0x3d8] sm:$0xff] }
  0x83   : > { %2549 = vperm.xlu0 %5886, %v2348_v10   ;;  %v2105_v10 = vld [vmem:[%s6376_s13 + $0x188] sm:$0xff] }
  0x84   : > { %2552 = vperm.xlu1 %5887, %v2349_v24   ;;  %v2104_v24 = vld [vmem:[%s6376_s13 + $0x180] sm:$0xff]  ;;  %vm2233_vm15 = vcmp.ge.s32.totalorder %v2105_v10, 0  ;;  %v2114_v10 = vld [vmem:[%s6376_s13 + $0x1d0] sm:$0xff] }
  0x85   : > { %vm2232_vm0 = vcmp.ge.s32.totalorder %v2104_v24, 0  ;;  %v2113_v24 = vld [vmem:[%s6376_s13 + $0x1c8] sm:$0xff]  ;;  %vm2242_vm9 = vcmp.ge.s32.totalorder %v2114_v10, 0  ;;  %v2106_v10 = vld [vmem:[%s6376_s13 + $0x190] sm:$0xff] }
  0x86   : > { %5477 = vmatmul.msk.f32.gmra.mxu2 %vm485_vm4, %v6769_v50  ;;  %5365 = vmatmul.msk.f32.gmra.mxu0 %vm485_vm4, %v6494_v34  ;;  %v2361_v34 = vsel %vm2233_vm15, 1, %v6300_v4  ;;  %vm2241_vm10 = vcmp.ge.s32.totalorder %v2113_v24, 0  ;;  %v6888_v24 = vld [vmem:[%s6366_s7 + $0x3e0] sm:$0xff] }
  0x88   : > { %5498 = vmatmul.msk.f32.gmra.mxu1 %vm485_vm4, %v6529_v49 }
  0x8b   : > { %2558 = vperm.xlu0 %5886, %v2351_v16   ;;  %v2091_v16 = vld [vmem:[%s6376_s13 + $0x118] sm:$0xff] }
  0x8c   : > { %2561 = vperm.xlu1 %5887, %v2352_v25   ;;  %vm2219_vm1 = vcmp.ge.s32.totalorder %v2091_v16, 0  ;;  %v6803_v25 = vld [vmem:[%s6366_s7 + $0x3b8] sm:$0xff]  ;;  %v2100_v16 = vld [vmem:[%s6376_s13 + $0x160] sm:$0xff] }
  0x8d   : > { %vm2228_vm11 = vcmp.ge.s32.totalorder %v2100_v16, 0 }
  0x8e   : > { %5478 = vmatmul.msk.f32.gmra.mxu2 %vm485_vm4, %v6786_v1  ;;  %5366 = vmatmul.msk.f32.gmra.mxu0 %vm485_vm4, %v6501_v37  ;;  %v2364_v37 = vsel %vm2236_vm2, 1, %v6300_v4  ;;  %v2356_v20 = vsel %vm2228_vm11, 1, %v6300_v4 }
  0x90   : > { %5499 = vmatmul.msk.f32.gmra.mxu1 %vm485_vm4, %v6536_v52 }
  0x93   : > { %2567 = vperm.xlu0 %5886, %v2354_v39   ;;  %v2094_v39 = vld [vmem:[%s6376_s13 + $0x130] sm:$0xff] }
  0x94   : > { %2570 = vperm.xlu1 %5887, %v2355_v26   ;;  %v363_v26 = vld [vmem:[%s6366_s7 + $0xf0] sm:$0xff]  ;;  %vm2222_vm5 = vcmp.ge.s32.totalorder %v2094_v39, 0  ;;  %v366_v39 = vld [vmem:[%s6366_s7 + $0x108] sm:$0xff] }
  0x95   : > { %v2350_v48 = vsel %vm2222_vm5, 1, %v6300_v4 }
  0x96   : > { %5479 = vmatmul.msk.f32.gmra.mxu2 %vm485_vm4, %v6803_v25  ;;  %5367 = vmatmul.msk.f32.gmra.mxu0 %vm485_vm4, %v6508_v40  ;;  %v2367_v40 = vsel %vm2239_vm6, 1, %v6300_v4 }
  0x98   : > { %5500 = vmatmul.msk.f32.gmra.mxu1 %vm485_vm4, %v6543_v55 }
  0x9b   : > { %2576 = vperm.xlu0 %5886, %v2357_v3   ;;  %v364_v3 = vld [vmem:[%s6366_s7 + $0xf8] sm:$0xff] }
  0x9c   : > { %2579 = vperm.xlu1 %5887, %v2358_v29  }
  0x9e   : > { %5368 = vmatmul.msk.f32.gmra.mxu0 %vm485_vm4, %v6515_v43  ;;  %v2370_v43 = vsel %vm2242_vm9, 1, %v6300_v4 }
  0xa0   : > { %5501 = vmatmul.msk.f32.gmra.mxu1 %vm485_vm4, %v6550_v58 }
  0xa4   : > { %2588 = vperm.xlu1 %5887, %v2361_v34   ;;  %v2369_v34 = vsel %vm2241_vm10, 1, %v6300_v4 }
  0xa6   : > { %5369 = vmatmul.msk.f32.gmra.mxu0 %vm485_vm4, %v6522_v46  ;;  %v2373_v46 = vsel %vm2245_vm12, 1, %v6300_v4 }
  0xa8   : > { %5502 = vmatmul.msk.f32.gmra.mxu1 %vm485_vm4, %v6557_v61 }
  0xac   : > { %2597 = vperm.xlu1 %5887, %v2364_v37   ;;  %v2116_v37 = vld [vmem:[%s6376_s13 + $0x1e0] sm:$0xff] }
  0xad   : > { %vm2244_vm13 = vcmp.ge.s32.totalorder %v2116_v37, 0  ;;  %v2109_v37 = vld [vmem:[%s6376_s13 + $0x1a8] sm:$0xff] }
  0xae   : > { %5370 = vmatmul.msk.f32.gmra.mxu0 %vm485_vm4, %v6529_v49  ;;  %vm2237_vm5 = vcmp.ge.s32.totalorder %v2109_v37, 0 }
  0xb0   : > { %5503 = vmatmul.msk.f32.gmra.mxu1 %vm485_vm4, %v6564_v0 }
  0xb4   : > { %2606 = vperm.xlu1 %5887, %v2367_v40   ;;  %v2120_v40 = vld [vmem:[%s6376_s13 + $0x200] sm:$0xff] }
  0xb5   : > { %v6570_v9 = vpop.f32.mrf.mxu1  ;;  %vm2248_vm15 = vcmp.ge.s32.totalorder %v2120_v40, 0 }
  0xb6   : > { %v2376_v49 = vsel %vm2248_vm15, 1, %v6300_v4  ;;  %5371 = vmatmul.msk.f32.gmra.mxu0 %vm485_vm4, %v6536_v52 }
  0xb8   : > { %5504 = vmatmul.msk.f32.gmra.mxu1 %vm485_vm4, %v6573_v11 }
  0xbc   : > { %2615 = vperm.xlu1 %5887, %v2370_v43  }
  0xbd   : > { %v6579_v19 = vpop.f32.mrf.mxu1 }
  0xbe   : > { %5372 = vmatmul.msk.f32.gmra.mxu0 %vm485_vm4, %v6543_v55 }
  0xc0   : > { %5505 = vmatmul.msk.f32.gmra.mxu1 %vm485_vm4, %v6582_v22 }
  0xc4   : > { %2624 = vperm.xlu1 %5887, %v2373_v46   ;;  %v6905_v46 = vld [vmem:[%s6366_s7 + $0x3e8] sm:$0xff] }
  0xc5   : > { %v6588_v28 = vpop.f32.mrf.mxu1 }
  0xc6   : > { %5373 = vmatmul.msk.f32.gmra.mxu0 %vm485_vm4, %v6550_v58 }
  0xc8   : > { %5506 = vmatmul.msk.f32.gmra.mxu1 %vm485_vm4, %v6591_v30 }
  0xcc   : > { %2633 = vperm.xlu1 %5887, %v2376_v49   ;;  %v2112_v49 = vld [vmem:[%s6376_s13 + $0x1c0] sm:$0xff] }
  0xcd   : > { %v6597_v33 = vpop.f32.mrf.mxu1 }
  0xce   : > { %5374 = vmatmul.msk.f32.gmra.mxu0 %vm485_vm4, %v6557_v61 }
  0xd0   : > { %5507 = vmatmul.msk.f32.gmra.mxu1 %vm485_vm4, %v6600_v35 }
  0xd5   : > { %v6612_v42 = vpop.f32.mrf.mxu1 }
  0xd6   : > { %5375 = vmatmul.msk.f32.gmra.mxu0 %vm485_vm4, %v6564_v0 }
  0xd8   : > { %5508 = vmatmul.msk.f32.gmra.mxu1 %vm485_vm4, %v6615_v44 }
  0xdd   : > { %v6637_v60 = vpop.f32.mrf.mxu1 }
  0xde   : > { %5376 = vmatmul.msk.f32.gmra.mxu0 %vm485_vm4, %v6573_v11 }
  0xe0   : > { %5509 = vmatmul.msk.f32.gmra.mxu1 %vm485_vm4, %v6640_v62 }
  0xe5   : > { %v6660_v32 = vpop.f32.mrf.mxu1 }
  0xe6   : > { %5377 = vmatmul.msk.f32.gmra.mxu0 %vm485_vm4, %v6582_v22 }
  0xe8   : > { %5510 = vmatmul.msk.f32.gmra.mxu1 %vm485_vm4, %v6663_v36 }
  0xed   : > { %v6685_v51 = vpop.f32.mrf.mxu1 }
  0xee   : > { %5378 = vmatmul.msk.f32.gmra.mxu0 %vm485_vm4, %v6591_v30 }
  0xf0   : > { %5511 = vmatmul.msk.f32.gmra.mxu1 %vm485_vm4, %v6688_v53 }
  0xf5   : > { %v6709_v6 = vpop.f32.mrf.mxu1 }
  0xf6   : > { %5379 = vmatmul.msk.f32.gmra.mxu0 %vm485_vm4, %v6600_v35 }
  0xf8   : > { %5512 = vmatmul.msk.f32.gmra.mxu1 %vm485_vm4, %v357_v59  ;;  %v2088_v59 = vld [vmem:[%s6376_s13 + $0x100] sm:$0xff] }
  0xf9   : > { %vm2216_vm14 = vcmp.ge.s32.totalorder %v2088_v59, 0  ;;  %v6837_v59 = vld [vmem:[%s6366_s7 + $0x3c8] sm:$0xff] }
  0xfa   : > { %v2344_v8 = vsel %vm2216_vm14, 1, %v6300_v4 }
  0xfb   : > { %2537 = vperm.xlu2 %5888, %v2344_v8  }
  0xfd   : > { %v6728_v12 = vpop.f32.mrf.mxu1 }
  0xfe   : > { %5380 = vmatmul.msk.f32.gmra.mxu0 %vm485_vm4, %v6615_v44 }
 0x100   : > { %5513 = vmatmul.msk.f32.gmra.mxu1 %vm485_vm4, %v358_v7  ;;  %v2360_v7 = vsel %vm2232_vm0, 1, %v6300_v4 }
 0x101   : > { %2585 = vperm.xlu0 %5886, %v2360_v7  }
 0x105   : > { %v6746_v18 = vpop.f32.mrf.mxu1 }
 0x106   : > { %5381 = vmatmul.msk.f32.gmra.mxu0 %vm485_vm4, %v6640_v62 }
 0x108   : > { %5514 = vmatmul.msk.f32.gmra.mxu1 %vm485_vm4, %v359_v17  ;;  %v2347_v17 = vsel %vm2219_vm1, 1, %v6300_v4  ;;  %vm2234_vm1 = vcmp.ge.s32.totalorder %v2106_v10, 0  ;;  %v2129_v10 = vld [vmem:[%s6376_s13 + $0x248] sm:$0xff] }
 0x109   : > { %2546 = vperm.xlu2 %5888, %v2347_v17   ;;  %2594 = vperm.xlu0 %5886, %v2363_v31   ;;  %v6854_v17 = vld [vmem:[%s6366_s7 + $0x3d0] sm:$0xff]  ;;  %v2372_v31 = vsel %vm2244_vm13, 1, %v6300_v4  ;;  %v2362_v43 = vsel %vm2234_vm1, 1, %v6300_v4  ;;  %vm2257_vm9 = vcmp.ge.s32.totalorder %v2129_v10, 0 }
 0x10a   : > { %v2385_v58 = vsel %vm2257_vm9, 1, %v6300_v4 }
 0x10d   : > { %v6763_v45 = vpop.f32.mrf.mxu1 }
 0x10e   : > { %5382 = vmatmul.msk.f32.gmra.mxu0 %vm485_vm4, %v6663_v36 }
 0x110   : > { %5515 = vmatmul.msk.f32.gmra.mxu1 %vm485_vm4, %v360_v47  ;;  %v6820_v47 = vld [vmem:[%s6366_s7 + $0x3c0] sm:$0xff] }
 0x111   : > { %2555 = vperm.xlu2 %5888, %v2350_v48   ;;  %5480 = vmatmul.msk.f32.gmra.mxu2 %vm485_vm4, %v6820_v47  ;;  %v2103_v48 = vld [vmem:[%s6376_s13 + $0x178] sm:$0xff] }
 0x112   : > { %2603 = vperm.xlu0 %5886, %v2366_v57   ;;  %vm2231_vm14 = vcmp.ge.s32.totalorder %v2103_v48, 0  ;;  %v2119_v57 = vld [vmem:[%s6376_s13 + $0x1f8] sm:$0xff]  ;;  %v2125_v48 = vld [vmem:[%s6376_s13 + $0x228] sm:$0xff] }
 0x113   : > { %v2359_v56 = vsel %vm2231_vm14, 1, %v6300_v4  ;;  %vm2247_vm0 = vcmp.ge.s32.totalorder %v2119_v57, 0  ;;  %vm2253_vm7 = vcmp.ge.s32.totalorder %v2125_v48, 0  ;;  %v369_v57 = vld [vmem:[%s6366_s7 + $0x120] sm:$0xff] }
 0x115   : > { %v6780_v5 = vpop.f32.mrf.mxu1 }
 0x116   : > { %5383 = vmatmul.msk.f32.gmra.mxu0 %vm485_vm4, %v6688_v53 }
 0x118   : > { %5516 = vmatmul.msk.f32.gmra.mxu1 %vm485_vm4, %v361_v21  ;;  %v2097_v21 = vld [vmem:[%s6376_s13 + $0x148] sm:$0xff] }
 0x119   : > { %vm2225_vm8 = vcmp.ge.s32.totalorder %v2097_v21, 0  ;;  %5481 = vmatmul.msk.f32.gmra.mxu2 %vm485_vm4, %v6837_v59 }
 0x11a   : > { %v2353_v8 = vsel %vm2225_vm8, 1, %v6300_v4  ;;  %2612 = vperm.xlu0 %5886, %v2369_v34   ;;  %v2123_v34 = vld [vmem:[%s6376_s13 + $0x218] sm:$0xff]  ;;  %vm2240_vm8 = vcmp.ge.s32.totalorder %v2112_v49, 0  ;;  %v6955_v49 = vpop.permute.xlu1 %2447 }
 0x11b   : > { %2564 = vperm.xlu2 %5888, %v2353_v8   ;;  %v367_v8 = vld [vmem:[%s6366_s7 + $0x110] sm:$0xff]  ;;  %vm2251_vm2 = vcmp.ge.s32.totalorder %v2123_v34, 0 }
 0x11c   : > { %v2379_v52 = vsel %vm2251_vm2, 1, %v6300_v4 }
 0x11d   : > { %v6797_v14 = vpop.f32.mrf.mxu1  ;;  %2642 = vperm.xlu1 %5887, %v2379_v52   ;;  %v370_v52 = vld [vmem:[%s6366_s7 + $0x128] sm:$0xff] }
 0x120   : > { %5517 = vmatmul.msk.f32.gmra.mxu1 %vm485_vm4, %v362_v15  ;;  %v365_v15 = vld [vmem:[%s6366_s7 + $0x100] sm:$0xff] }
 0x121   : > { %5482 = vmatmul.msk.f32.gmra.mxu2 %vm485_vm4, %v6854_v17 }
 0x122   : > { %2621 = vperm.xlu0 %5886, %v2372_v31   ;;  %v2365_v31 = vsel %vm2237_vm5, 1, %v6300_v4 }
 0x123   : > { %2573 = vperm.xlu2 %5888, %v2356_v20  }
 0x125   : > { %v6814_v38 = vpop.f32.mrf.mxu1 }
 0x128   : > { %5518 = vmatmul.msk.f32.gmra.mxu1 %vm485_vm4, %v363_v26 }
 0x129   : > { %5483 = vmatmul.msk.f32.gmra.mxu2 %vm485_vm4, %v6871_v2 }
 0x12b   : > { %2582 = vperm.xlu2 %5888, %v2359_v56   ;;  %v2381_v56 = vsel %vm2253_vm7, 1, %v6300_v4 }
 0x12d   : > { %v6831_v29 = vpop.f32.mrf.mxu1 }
 0x130   : > { %5519 = vmatmul.msk.f32.gmra.mxu1 %vm485_vm4, %v364_v3  ;;  %v2375_v3 = vsel %vm2247_vm0, 1, %v6300_v4 }
 0x131   : > { %2630 = vperm.xlu0 %5886, %v2375_v3   ;;  %5484 = vmatmul.msk.f32.gmra.mxu2 %vm485_vm4, %v6888_v24  ;;  %v6922_v3 = vld [vmem:[%s6366_s7 + $0x3f0] sm:$0xff] }
 0x133   : > { %2591 = vperm.xlu2 %5888, %v2362_v43   ;;  %v2128_v43 = vld [vmem:[%s6376_s13 + $0x240] sm:$0xff] }
 0x134   : > { %vm2256_vm10 = vcmp.ge.s32.totalorder %v2128_v43, 0  ;;  %v2135_v43 = vld [vmem:[%s6376_s13 + $0x278] sm:$0xff] }
 0x135   : > { %v6848_v7 = vpop.f32.mrf.mxu1  ;;  %v2384_v34 = vsel %vm2256_vm10, 1, %v6300_v4  ;;  %vm2263_vm15 = vcmp.ge.s32.totalorder %v2135_v43, 0 }
 0x136   : > { %v2391_v0 = vsel %vm2263_vm15, 1, %v6300_v4 }
 0x138   : > { %5520 = vmatmul.msk.f32.gmra.mxu1 %vm485_vm4, %v365_v15  ;;  %v2122_v15 = vld [vmem:[%s6376_s13 + $0x210] sm:$0xff] }
 0x139   : > { %vm2250_vm3 = vcmp.ge.s32.totalorder %v2122_v15, 0  ;;  %5485 = vmatmul.msk.f32.gmra.mxu2 %vm485_vm4, %v6905_v46 }
 0x13a   : > { %v2378_v16 = vsel %vm2250_vm3, 1, %v6300_v4 }
 0x13b   : > { %2639 = vperm.xlu0 %5886, %v2378_v16   ;;  %2600 = vperm.xlu2 %5888, %v2365_v31   ;;  %v2115_v16 = vld [vmem:[%s6376_s13 + $0x1d8] sm:$0xff]  ;;  %v2132_v31 = vld [vmem:[%s6376_s13 + $0x260] sm:$0xff] }
 0x13c   : > { %vm2243_vm11 = vcmp.ge.s32.totalorder %v2115_v16, 0  ;;  %vm2260_vm12 = vcmp.ge.s32.totalorder %v2132_v31, 0  ;;  %v372_v16 = vld [vmem:[%s6366_s7 + $0x138] sm:$0xff]  ;;  %v2138_v31 = vld [vmem:[%s6376_s13 + $0x290] sm:$0xff] }
 0x13d   : > { %v6865_v26 = vpop.f32.mrf.mxu1  ;;  %v2371_v37 = vsel %vm2243_vm11, 1, %v6300_v4  ;;  %v2388_v61 = vsel %vm2260_vm12, 1, %v6300_v4  ;;  %vm2266_vm2 = vcmp.ge.s32.totalorder %v2138_v31, 0  ;;  %v374_v31 = vld [vmem:[%s6366_s7 + $0x148] sm:$0xff] }
 0x140   : > { %5521 = vmatmul.msk.f32.gmra.mxu1 %vm485_vm4, %v366_v39  ;;  %v2126_v39 = vld [vmem:[%s6376_s13 + $0x230] sm:$0xff] }
 0x141   : > { %vm2254_vm6 = vcmp.ge.s32.totalorder %v2126_v39, 0  ;;  %5486 = vmatmul.msk.f32.gmra.mxu2 %vm485_vm4, %v6922_v3  ;;  %v2131_v39 = vld [vmem:[%s6376_s13 + $0x258] sm:$0xff] }
 0x142   : > { %v2382_v55 = vsel %vm2254_vm6, 1, %v6300_v4  ;;  %vm2259_vm13 = vcmp.ge.s32.totalorder %v2131_v39, 0  ;;  %v2137_v39 = vld [vmem:[%s6376_s13 + $0x288] sm:$0xff] }
 0x143   : > { %2648 = vperm.xlu0 %5886, %v2381_v56   ;;  %2651 = vperm.xlu1 %5887, %v2382_v55   ;;  %v2387_v48 = vsel %vm2259_vm13, 1, %v6300_v4  ;;  %v371_v56 = vld [vmem:[%s6366_s7 + $0x130] sm:$0xff]  ;;  %vm2265_vm3 = vcmp.ge.s32.totalorder %v2137_v39, 0  ;;  %v7009_v39 = vpop.permute.xlu2 %2453 }
 0x145   : > { %v6882_v21 = vpop.f32.mrf.mxu1 }
 0x148   : > { %5522 = vmatmul.msk.f32.gmra.mxu1 %vm485_vm4, %v367_v8  ;;  %v2368_v8 = vsel %vm2240_vm8, 1, %v6300_v4 }
 0x149   : > { %2609 = vperm.xlu2 %5888, %v2368_v8   ;;  %v6957_v8 = vpop.permute.xlu0 %2441 }
 0x14b   : > { %2657 = vperm.xlu0 %5886, %v2384_v34   ;;  %2660 = vperm.xlu1 %5887, %v2385_v58   ;;  %v2134_v58 = vld [vmem:[%s6376_s13 + $0x270] sm:$0xff]  ;;  %v7036_v35 = vpop.permute.xlu2 %2456 }
 0x14c   : > { %vm2262_vm0 = vcmp.ge.s32.totalorder %v2134_v58, 0  ;;  %v2141_v58 = vld [vmem:[%s6376_s13 + $0x2a8] sm:$0xff] }
 0x14d   : > { %v6899_v20 = vpop.f32.mrf.mxu1  ;;  %v2390_v34 = vsel %vm2262_vm0, 1, %v6300_v4  ;;  %vm2269_vm6 = vcmp.ge.s32.totalorder %v2141_v58, 0 }
 0x150   : > { %5523 = vmatmul.msk.f32.gmra.mxu1 %vm485_vm4, %v368_v27  ;;  %v6939_v27 = vld [vmem:[%s6366_s7 + $0x3f8] sm:$0xff] }
 0x151   : > { %2618 = vperm.xlu2 %5888, %v2371_v37   ;;  %5487 = vmatmul.msk.f32.gmra.mxu2 %vm485_vm4, %v6939_v27  ;;  %v2121_v37 = vld [vmem:[%s6376_s13 + $0x208] sm:$0xff]  ;;  %v6980_v11 = vpop.permute.xlu0 %2444 }
 0x152   : > { %vm2249_vm1 = vcmp.ge.s32.totalorder %v2121_v37, 0 }
 0x153   : > { %2666 = vperm.xlu0 %5886, %v2387_v48   ;;  %2669 = vperm.xlu1 %5887, %v2388_v61   ;;  %v6976_v61 = vpop.permute.xlu1 %2450  ;;  %v2394_v48 = vsel %vm2266_vm2, 1, %v6300_v4  ;;  %v7056_v44 = vpop.permute.xlu2 %2465 }
 0x155   : > { %v6916_v40 = vpop.f32.mrf.mxu1 }
 0x158   : > { %5524 = vmatmul.msk.f32.gmra.mxu1 %vm485_vm4, %v369_v57  ;;  %v2118_v57 = vld [vmem:[%s6376_s13 + $0x1f0] sm:$0xff] }
 0x159   : > { %vm2246_vm14 = vcmp.ge.s32.totalorder %v2118_v57, 0  ;;  %5600 = vmatmul.msk.f32.vlgmr.msrb.gmra.mxu2 %vm485_vm4, %v6674_v41  ;;  %v2377_v41 = vsel %vm2249_vm1, 1, %v6300_v4  ;;  %v6998_v22 = vpop.permute.xlu0 %2459 }
 0x15a   : > { %v2374_v10 = vsel %vm2246_vm14, 1, %v6300_v4 }
 0x15b   : > { %2627 = vperm.xlu2 %5888, %v2374_v10   ;;  %2675 = vperm.xlu0 %5886, %v2390_v34   ;;  %v373_v10 = vld [vmem:[%s6366_s7 + $0x140] sm:$0xff]  ;;  %v6994_v34 = vpop.permute.xlu1 %2462  ;;  %v7076_v62 = vpop.permute.xlu2 %2474 }
 0x15c   : > { %2678 = vperm.xlu1 %5887, %v2391_v0   ;;  %v2140_v0 = vld [vmem:[%s6376_s13 + $0x2a0] sm:$0xff] }
 0x15d   : > { %v6933_v15 = vpop.f32.mrf.mxu1  ;;  %vm2268_vm7 = vcmp.ge.s32.totalorder %v2140_v0, 0 }
 0x15e   : > { %v2396_v37 = vsel %vm2268_vm7, 1, %v6300_v4 }
 0x160   : > { %5525 = vmatmul.msk.f32.gmra.mxu1 %vm485_vm4, %v370_v52 }
 0x161   : > { %5601 = vmatmul.msk.f32.gmra.mxu2 %vm485_vm4, %v6695_v54  ;;  %v2124_v54 = vld [vmem:[%s6376_s13 + $0x220] sm:$0xff]  ;;  %v7018_v30 = vpop.permute.xlu0 %2468 }
 0x162   : > { %vm2252_vm5 = vcmp.ge.s32.totalorder %v2124_v54, 0 }
 0x163   : > { %2636 = vperm.xlu2 %5888, %v2377_v41   ;;  %v2380_v43 = vsel %vm2252_vm5, 1, %v6300_v4  ;;  %v7014_v54 = vpop.permute.xlu1 %2471  ;;  %v7098_v36 = vpop.permute.xlu2 %2483 }
 0x164   : > { %2687 = vperm.xlu1 %5887, %v2394_v48  }
 0x165   : > { %v6950_v55 = vpop.f32.mrf.mxu1 }
 0x168   : > { %5526 = vmatmul.msk.f32.gmra.mxu1 %vm485_vm4, %v371_v56  ;;  %v2393_v56 = vsel %vm2265_vm3, 1, %v6300_v4 }
 0x169   : > { %2684 = vperm.xlu0 %5886, %v2393_v56   ;;  %5602 = vmatmul.msk.f32.gmra.mxu2 %vm485_vm4, %v6716_v63  ;;  %v2127_v63 = vld [vmem:[%s6376_s13 + $0x238] sm:$0xff]  ;;  %v2144_v56 = vld [vmem:[%s6376_s13 + $0x2c0] sm:$0xff] }
 0x16a   : > { %vm2255_vm8 = vcmp.ge.s32.totalorder %v2127_v63, 0  ;;  %vm2272_vm9 = vcmp.ge.s32.totalorder %v2144_v56, 0  ;;  %v2146_v63 = vld [vmem:[%s6376_s13 + $0x2d0] sm:$0xff]  ;;  %v7038_v56 = vpop.permute.xlu0 %2477 }
 0x16b   : > { %2645 = vperm.xlu2 %5888, %v2380_v43   ;;  %v2383_v48 = vsel %vm2255_vm8, 1, %v6300_v4  ;;  %v2400_v43 = vsel %vm2272_vm9, 1, %v6300_v4  ;;  %vm2274_vm13 = vcmp.ge.s32.totalorder %v2146_v63, 0  ;;  %v7118_v53 = vpop.permute.xlu2 %2492 }
 0x16d   : > { %v6968_v52 = vpop.f32.mrf.mxu1 }
 0x170   : > { %5527 = vmatmul.msk.f32.gmra.mxu1 %vm485_vm4, %v372_v16  ;;  %v2397_v16 = vsel %vm2269_vm6, 1, %v6300_v4 }
 0x171   : > { %2693 = vperm.xlu0 %5886, %v2396_v37   ;;  %2696 = vperm.xlu1 %5887, %v2397_v16   ;;  %v375_v16 = vld [vmem:[%s6366_s7 + $0x150] sm:$0xff] }
 0x172   : > { %5603 = vmatmul.msk.f32.gmra.mxu2 %vm485_vm4, %v6735_v13  ;;  %v2130_v13 = vld [vmem:[%s6376_s13 + $0x250] sm:$0xff] }
 0x173   : > { %2654 = vperm.xlu2 %5888, %v2383_v48   ;;  %vm2258_vm11 = vcmp.ge.s32.totalorder %v2130_v13, 0  ;;  %v7032_v48 = vpop.permute.xlu1 %2480 }
 0x174   : > { %v2386_v37 = vsel %vm2258_vm11, 1, %v6300_v4 }
 0x175   : > { %v6986_v57 = vpop.f32.mrf.mxu1 }
 0x176   : > { %10793 = vst [vmem:[#allocation7_spill] sm:$0xff] %v6986_v57 }
 0x178   : > { %5528 = vmatmul.msk.f32.gmra.mxu1 %vm485_vm4, %v373_v10  ;;  %v2143_v10 = vld [vmem:[%s6376_s13 + $0x2b8] sm:$0xff] }
 0x179   : > { %vm2271_vm10 = vcmp.ge.s32.totalorder %v2143_v10, 0  ;;  %2705 = vperm.xlu1 %5887, %v2400_v43   ;;  %v2402_v43 = vsel %vm2274_vm13, 1, %v6300_v4 }
 0x17a   : > { %v2399_v58 = vsel %vm2271_vm10, 1, %v6300_v4  ;;  %5604 = vmatmul.msk.f32.gmra.mxu2 %vm485_vm4, %v6752_v23  ;;  %v2133_v23 = vld [vmem:[%s6376_s13 + $0x268] sm:$0xff] }
 0x17b   : > { %2702 = vperm.xlu0 %5886, %v2399_v58   ;;  %2663 = vperm.xlu2 %5888, %v2386_v37   ;;  %vm2261_vm14 = vcmp.ge.s32.totalorder %v2133_v23, 0  ;;  %v2150_v37 = vld [vmem:[%s6376_s13 + $0x2f0] sm:$0xff]  ;;  %v7052_v63 = vpop.permute.xlu1 %2489 }
 0x17c   : > { %v2389_v13 = vsel %vm2261_vm14, 1, %v6300_v4  ;;  %vm2278_vm15 = vcmp.ge.s32.totalorder %v2150_v37, 0 }
 0x17d   : > { %v7004_v41 = vpop.f32.mrf.mxu1 }
 0x17e   : > { %10794 = vst [vmem:[#allocation8_spill] sm:$0xff] %v7004_v41  ;;  %v2155_v41 = vld [vmem:[%s6376_s13 + $0x318] sm:$0xff] }
 0x17f   : > { %vm2283_vm7 = vcmp.ge.s32.totalorder %v2155_v41, 0  ;;  %v2142_v41 = vld [vmem:[%s6376_s13 + $0x2b0] sm:$0xff] }
 0x180   : > { %5529 = vmatmul.msk.f32.gmra.mxu1 %vm485_vm4, %v374_v31  ;;  %v2147_v31 = vld [vmem:[%s6376_s13 + $0x2d8] sm:$0xff]  ;;  %vm2270_vm8 = vcmp.ge.s32.totalorder %v2142_v41, 0 }
 0x181   : > { %vm2275_vm12 = vcmp.ge.s32.totalorder %v2147_v31, 0  ;;  %v2149_v31 = vld [vmem:[%s6376_s13 + $0x2e8] sm:$0xff] }
 0x182   : > { %v2403_v10 = vsel %vm2275_vm12, 1, %v6300_v4  ;;  %5605 = vmatmul.msk.f32.gmra.mxu2 %vm485_vm4, %v6769_v50  ;;  %vm2277_vm0 = vcmp.ge.s32.totalorder %v2149_v31, 0  ;;  %v2136_v50 = vld [vmem:[%s6376_s13 + $0x280] sm:$0xff]  ;;  %v2153_v31 = vld [vmem:[%s6376_s13 + $0x308] sm:$0xff] }
 0x183   : > { %2711 = vperm.xlu0 %5886, %v2402_v43   ;;  %2714 = vperm.xlu1 %5887, %v2403_v10   ;;  %v7058_v10 = vpop.permute.xlu0 %2486  ;;  %v2406_v43 = vsel %vm2278_vm15, 1, %v6300_v4  ;;  %vm2264_vm1 = vcmp.ge.s32.totalorder %v2136_v50, 0  ;;  %vm2281_vm2 = vcmp.ge.s32.totalorder %v2153_v31, 0  ;;  %v2156_v31 = vld [vmem:[%s6376_s13 + $0x320] sm:$0xff] }
 0x184   : > { %2672 = vperm.xlu2 %5888, %v2389_v13   ;;  %v377_v13 = vld [vmem:[%s6366_s7 + $0x160] sm:$0xff]  ;;  %v2392_v37 = vsel %vm2264_vm1, 1, %v6300_v4  ;;  %vm2284_vm6 = vcmp.ge.s32.totalorder %v2156_v31, 0  ;;  %v2398_v31 = vsel %vm2270_vm8, 1, %v6300_v4 }
 0x185   : > { %v7024_v0 = vpop.f32.mrf.mxu1 }
 0x186   : > { %10795 = vst [vmem:[#allocation9_spill] sm:$0xff] %v7024_v0  ;;  %v7072_v0 = vpop.permute.xlu1 %2498 }
 0x188   : > { %5530 = vmatmul.msk.f32.gmra.mxu1 %vm485_vm4, %v375_v16  ;;  %v376_v16 = vld [vmem:[%s6366_s7 + $0x158] sm:$0xff] }
 0x18a   : > { %5606 = vmatmul.msk.f32.gmra.mxu2 %vm485_vm4, %v6786_v1  ;;  %v2139_v1 = vld [vmem:[%s6376_s13 + $0x298] sm:$0xff] }
 0x18b   : > { %2723 = vperm.xlu1 %5887, %v2406_v43   ;;  %v7078_v43 = vpop.permute.xlu0 %2495  ;;  %vm2267_vm5 = vcmp.ge.s32.totalorder %v2139_v1, 0 }
 0x18c   : > { %2681 = vperm.xlu2 %5888, %v2392_v37   ;;  %v378_v37 = vld [vmem:[%s6366_s7 + $0x168] sm:$0xff] }
 0x18d   : > { %v7044_v58 = vpop.f32.mrf.mxu1 }
 0x18e   : > { %10796 = vst [vmem:[#allocation10_spill] sm:$0xff] %v7044_v58  ;;  %v2152_v58 = vld [vmem:[%s6376_s13 + $0x300] sm:$0xff]  ;;  %v7094_v57 = vpop.permute.xlu1 %2507 }
 0x18f   : > { %vm2280_vm3 = vcmp.ge.s32.totalorder %v2152_v58, 0  ;;  %v2395_v58 = vsel %vm2267_vm5, 1, %v6300_v4  ;;  %10800 = vst [vmem:[#allocation14_spill] sm:$0xff] %v7094_v57 }
 0x190   : > { %5531 = vmatmul.msk.f32.gmra.mxu1 %vm485_vm4, %v376_v16  ;;  %v2405_v16 = vsel %vm2277_vm0, 1, %v6300_v4 }
 0x191   : > { %2720 = vperm.xlu0 %5886, %v2405_v16   ;;  %v2409_v16 = vsel %vm2281_vm2, 1, %v6300_v4 }
 0x192   : > { %5607 = vmatmul.msk.f32.gmra.mxu2 %vm485_vm4, %v6803_v25 }
 0x193   : > { %2732 = vperm.xlu1 %5887, %v2409_v16   ;;  %v7100_v16 = vpop.permute.xlu0 %2504 }
 0x194   : > { %2690 = vperm.xlu2 %5888, %v2395_v58   ;;  %v379_v58 = vld [vmem:[%s6366_s7 + $0x170] sm:$0xff] }
 0x195   : > { %v7064_v23 = vpop.f32.mrf.mxu1 }
 0x196   : > { %10797 = vst [vmem:[#allocation11_spill] sm:$0xff] %v7064_v23  ;;  %v7087_v23 = vpop.f32.mrf.mxu2  ;;  %v7124_v41 = vpop.permute.xlu1 %2516 }
 0x197   : > { %10799 = vst [vmem:[#allocation13_spill] sm:$0xff] %v7087_v23  ;;  %v2159_v23 = vld [vmem:[%s6376_s13 + $0x338] sm:$0xff] }
 0x198   : > { %5532 = vmatmul.msk.f32.gmra.mxu1 %vm485_vm4, %v377_v13  ;;  %v2408_v13 = vsel %vm2280_vm3, 1, %v6300_v4  ;;  %vm2287_vm9 = vcmp.ge.s32.totalorder %v2159_v23, 0  ;;  %10804 = vst [vmem:[#allocation18_spill] sm:$0xff] %v7124_v41  ;;  %v2164_v41 = vld [vmem:[%s6376_s13 + $0x360] sm:$0xff] }
 0x199   : > { %2729 = vperm.xlu0 %5886, %v2408_v13   ;;  %v2412_v13 = vsel %vm2284_vm6, 1, %v6300_v4  ;;  %vm2292_vm0 = vcmp.ge.s32.totalorder %v2164_v41, 0 }
 0x19a   : > { %5608 = vmatmul.msk.f32.gmra.mxu2 %vm485_vm4, %v6820_v47  ;;  %v2145_v47 = vld [vmem:[%s6376_s13 + $0x2c8] sm:$0xff] }
 0x19b   : > { %2741 = vperm.xlu1 %5887, %v2412_v13   ;;  %v7120_v13 = vpop.permute.xlu0 %2513  ;;  %vm2273_vm11 = vcmp.ge.s32.totalorder %v2145_v47, 0 }
 0x19c   : > { %2699 = vperm.xlu2 %5888, %v2398_v31   ;;  %10803 = vst [vmem:[#allocation17_spill] sm:$0xff] %v7120_v13  ;;  %v380_v31 = vld [vmem:[%s6366_s7 + $0x178] sm:$0xff]  ;;  %v2161_v13 = vld [vmem:[%s6376_s13 + $0x348] sm:$0xff] }
 0x19d   : > { %v7084_v50 = vpop.f32.mrf.mxu1  ;;  %vm2289_vm13 = vcmp.ge.s32.totalorder %v2161_v13, 0  ;;  %v2165_v13 = vld [vmem:[%s6376_s13 + $0x368] sm:$0xff] }
 0x19e   : > { %10798 = vst [vmem:[#allocation12_spill] sm:$0xff] %v7084_v50  ;;  %v7109_v25 = vpop.f32.mrf.mxu2  ;;  %v2158_v50 = vld [vmem:[%s6376_s13 + $0x330] sm:$0xff]  ;;  %vm2293_vm15 = vcmp.ge.s32.totalorder %v2165_v13, 0  ;;  %v2168_v13 = vld [vmem:[%s6376_s13 + $0x380] sm:$0xff] }
 0x19f   : > { %10802 = vst [vmem:[#allocation16_spill] sm:$0xff] %v7109_v25  ;;  %vm2286_vm10 = vcmp.ge.s32.totalorder %v2158_v50, 0  ;;  %v2401_v50 = vsel %vm2273_vm11, 1, %v6300_v4  ;;  %vm2296_vm2 = vcmp.ge.s32.totalorder %v2168_v13, 0  ;;  %v2171_v13 = vld [vmem:[%s6376_s13 + $0x398] sm:$0xff] }
 0x1a0   : > { %5533 = vmatmul.msk.f32.gmra.mxu1 %vm485_vm4, %v378_v37  ;;  %v2411_v37 = vsel %vm2283_vm7, 1, %v6300_v4  ;;  %vm2299_vm6 = vcmp.ge.s32.totalorder %v2171_v13, 0  ;;  %v2174_v13 = vld [vmem:[%s6376_s13 + $0x3b0] sm:$0xff] }
 0x1a1   : > { %2738 = vperm.xlu0 %5886, %v2411_v37   ;;  %v2415_v37 = vsel %vm2287_vm9, 1, %v6300_v4  ;;  %vm2302_vm9 = vcmp.ge.s32.totalorder %v2174_v13, 0 }
 0x1a2   : > { %5609 = vmatmul.msk.f32.gmra.mxu2 %vm485_vm4, %v6837_v59  ;;  %v2148_v59 = vld [vmem:[%s6376_s13 + $0x2e0] sm:$0xff] }
 0x1a3   : > { %2750 = vperm.xlu1 %5887, %v2415_v37   ;;  %v7138_v37 = vpop.permute.xlu2 %2501  ;;  %vm2276_vm14 = vcmp.ge.s32.totalorder %v2148_v59, 0 }
 0x1a4   : > { %2708 = vperm.xlu2 %5888, %v2401_v50   ;;  %v7147_v50 = vpop.permute.xlu1 %2525 }
 0x1a5   : > { %v7106_v1 = vpop.f32.mrf.mxu1  ;;  %10809 = vst [vmem:[#allocation23_spill] sm:$0xff] %v7147_v50  ;;  %v2167_v50 = vld [vmem:[%s6376_s13 + $0x378] sm:$0xff] }
 0x1a6   : > { %10801 = vst [vmem:[#allocation15_spill] sm:$0xff] %v7106_v1  ;;  %v7131_v23 = vpop.f32.mrf.mxu2  ;;  %v2162_v1 = vld [vmem:[%s6376_s13 + $0x350] sm:$0xff]  ;;  %vm2295_vm3 = vcmp.ge.s32.totalorder %v2167_v50, 0 }
 0x1a7   : > { %10806 = vst [vmem:[#allocation20_spill] sm:$0xff] %v7131_v23  ;;  %vm2290_vm12 = vcmp.ge.s32.totalorder %v2162_v1, 0  ;;  %v381_v23 = vld [vmem:[%s6366_s7 + $0x180] sm:$0xff]  ;;  %v2404_v1 = vsel %vm2276_vm14, 1, %v6300_v4 }
 0x1a8   : > { %5534 = vmatmul.msk.f32.gmra.mxu1 %vm485_vm4, %v379_v58  ;;  %v2414_v58 = vsel %vm2286_vm10, 1, %v6300_v4 }
 0x1a9   : > { %2747 = vperm.xlu0 %5886, %v2414_v58   ;;  %v2418_v58 = vsel %vm2290_vm12, 1, %v6300_v4 }
 0x1aa   : > { %5610 = vmatmul.msk.f32.gmra.mxu2 %vm485_vm4, %v6854_v17  ;;  %v2151_v17 = vld [vmem:[%s6376_s13 + $0x2f8] sm:$0xff] }
 0x1ab   : > { %2759 = vperm.xlu1 %5887, %v2418_v58   ;;  %v7158_v58 = vpop.permute.xlu2 %2510  ;;  %vm2279_vm1 = vcmp.ge.s32.totalorder %v2151_v17, 0 }
 0x1ac   : > { %2717 = vperm.xlu2 %5888, %v2404_v1   ;;  %v7169_v1 = vpop.permute.xlu1 %2534  ;;  %v2407_v41 = vsel %vm2279_vm1, 1, %v6300_v4 }
 0x1ad   : > { %v7126_v25 = vpop.f32.mrf.mxu1  ;;  %10813 = vst [vmem:[#allocation27_spill] sm:$0xff] %v7169_v1 }
 0x1ae   : > { %10805 = vst [vmem:[#allocation19_spill] sm:$0xff] %v7126_v25  ;;  %v7145_v25 = vpop.permute.xlu0 %2522  ;;  %v7154_v57 = vpop.f32.mrf.mxu2 }
 0x1af   : > { %10808 = vst [vmem:[#allocation22_spill] sm:$0xff] %v7145_v25 }
 0x1b0   : > { %5535 = vmatmul.msk.f32.gmra.mxu1 %vm485_vm4, %v380_v31  ;;  %v2417_v31 = vsel %vm2289_vm13, 1, %v6300_v4  ;;  %10810 = vst [vmem:[#allocation24_spill] sm:$0xff] %v7154_v57 }
 0x1b1   : > { %2756 = vperm.xlu0 %5886, %v2417_v31   ;;  %v2420_v31 = vsel %vm2292_vm0, 1, %v6300_v4 }
 0x1b2   : > { %5611 = vmatmul.msk.f32.gmra.mxu2 %vm485_vm4, %v6871_v2  ;;  %v2154_v2 = vld [vmem:[%s6376_s13 + $0x310] sm:$0xff] }
 0x1b3   : > { %vm2282_vm5 = vcmp.ge.s32.totalorder %v2154_v2, 0  ;;  %v384_v2 = vld [vmem:[%s6366_s7 + $0x198] sm:$0xff] }
 0x1b4   : > { %2726 = vperm.xlu2 %5888, %v2407_v41   ;;  %v2410_v50 = vsel %vm2282_vm5, 1, %v6300_v4  ;;  %v7192_v25 = vpop.permute.xlu1 %2543 }
 0x1b5   : > { %v7142_v47 = vpop.f32.mrf.mxu1  ;;  %10816 = vst [vmem:[#allocation30_spill] sm:$0xff] %v7192_v25  ;;  %v2173_v25 = vld [vmem:[%s6376_s13 + $0x3a8] sm:$0xff] }
 0x1b6   : > { %10807 = vst [vmem:[#allocation21_spill] sm:$0xff] %v7142_v47  ;;  %v382_v47 = vld [vmem:[%s6366_s7 + $0x188] sm:$0xff]  ;;  %v7165_v57 = vpop.permute.xlu0 %2531  ;;  %v7183_v1 = vpop.f32.mrf.mxu2  ;;  %vm2301_vm10 = vcmp.ge.s32.totalorder %v2173_v25, 0 }
 0x1b7   : > { %10812 = vst [vmem:[#allocation26_spill] sm:$0xff] %v7165_v57  ;;  %v2170_v57 = vld [vmem:[%s6376_s13 + $0x390] sm:$0xff] }
 0x1b8   : > { %5536 = vmatmul.msk.f32.gmra.mxu1 %vm485_vm4, %v381_v23  ;;  %v2421_v23 = vsel %vm2293_vm15, 1, %v6300_v4  ;;  %10814 = vst [vmem:[#allocation28_spill] sm:$0xff] %v7183_v1  ;;  %vm2298_vm7 = vcmp.ge.s32.totalorder %v2170_v57, 0 }
 0x1b9   : > { %2765 = vperm.xlu0 %5886, %v2420_v31   ;;  %2768 = vperm.xlu1 %5887, %v2421_v23   ;;  %v7176_v23 = vpop.permute.xlu2 %2519  ;;  %v2423_v31 = vsel %vm2295_vm3, 1, %v6300_v4 }
 0x1ba   : > { %5612 = vmatmul.msk.f32.gmra.mxu2 %vm485_vm4, %v6888_v24  ;;  %v2157_v24 = vld [vmem:[%s6376_s13 + $0x328] sm:$0xff] }
 0x1bb   : > { %vm2285_vm8 = vcmp.ge.s32.totalorder %v2157_v24, 0 }
 0x1bc   : > { %2735 = vperm.xlu2 %5888, %v2410_v50   ;;  %v2413_v57 = vsel %vm2285_vm8, 1, %v6300_v4 }
 0x1bd   : > { %v7162_v59 = vpop.f32.mrf.mxu1 }
 0x1be   : > { %10811 = vst [vmem:[#allocation25_spill] sm:$0xff] %v7162_v59  ;;  %v383_v59 = vld [vmem:[%s6366_s7 + $0x190] sm:$0xff]  ;;  %v7187_v41 = vpop.permute.xlu0 %2540  ;;  %v7203_v50 = vpop.f32.mrf.mxu2 }
 0x1bf   : > { %10815 = vst [vmem:[#allocation29_spill] sm:$0xff] %v7187_v41  ;;  %v2176_v41 = vld [vmem:[%s6376_s13 + $0x3c0] sm:$0xff] }
 0x1c0   : > { %5537 = vmatmul.msk.f32.gmra.mxu1 %vm485_vm4, %v382_v47  ;;  %v2424_v47 = vsel %vm2296_vm2, 1, %v6300_v4  ;;  %10818 = vst [vmem:[#allocation32_spill] sm:$0xff] %v7203_v50  ;;  %v385_v50 = vld [vmem:[%s6366_s7 + $0x1a0] sm:$0xff]  ;;  %vm2304_vm13 = vcmp.ge.s32.totalorder %v2176_v41, 0 }
 0x1c1   : > { %2774 = vperm.xlu0 %5886, %v2423_v31   ;;  %2777 = vperm.xlu1 %5887, %v2424_v47   ;;  %v2426_v47 = vsel %vm2298_vm7, 1, %v6300_v4  ;;  %v7201_v1 = vpop.permute.xlu2 %2528 }
 0x1c2   : > { %5613 = vmatmul.msk.f32.gmra.mxu2 %vm485_vm4, %v6905_v46  ;;  %v2160_v46 = vld [vmem:[%s6376_s13 + $0x340] sm:$0xff] }
 0x1c3   : > { %vm2288_vm11 = vcmp.ge.s32.totalorder %v2160_v46, 0  ;;  %v386_v46 = vld [vmem:[%s6366_s7 + $0x1a8] sm:$0xff] }
 0x1c4   : > { %2744 = vperm.xlu2 %5888, %v2413_v57   ;;  %v2416_v13 = vsel %vm2288_vm11, 1, %v6300_v4  ;;  %vm1673_vm11 = vcmp.gt.f32.partialorder %v6579_v19, 0.0 }
 0x1c5   : > { %v7180_v17 = vpop.f32.mrf.mxu1 }
 0x1c6   : > { %v7225_v25 = vpop.f32.mrf.mxu2 }
 0x1c7   : > { %10822 = vst [vmem:[#allocation36_spill] sm:$0xff] %v7225_v25 }
 0x1c8   : > { %5538 = vmatmul.msk.f32.gmra.mxu1 %vm485_vm4, %v383_v59  ;;  %v2427_v59 = vsel %vm2299_vm6, 1, %v6300_v4 }
 0x1c9   : > { %2783 = vperm.xlu0 %5886, %v2426_v47   ;;  %2786 = vperm.xlu1 %5887, %v2427_v59   ;;  %v7212_v59 = vpop.permute.xlu0 %2549  ;;  %v2430_v47 = vsel %vm2302_vm9, 1, %v6300_v4  ;;  %v7221_v57 = vpop.permute.xlu2 %2537 }
 0x1ca   : > { %10819 = vst [vmem:[#allocation33_spill] sm:$0xff] %v7212_v59  ;;  %v2177_v59 = vld [vmem:[%s6376_s13 + $0x3c8] sm:$0xff]  ;;  %5614 = vmatmul.msk.f32.gmra.mxu2 %vm485_vm4, %v6922_v3  ;;  %v2163_v3 = vld [vmem:[%s6376_s13 + $0x358] sm:$0xff] }
 0x1cb   : > { %vm2305_vm12 = vcmp.ge.s32.totalorder %v2177_v59, 0  ;;  %vm2291_vm14 = vcmp.ge.s32.totalorder %v2163_v3, 0 }
 0x1cc   : > { %2753 = vperm.xlu2 %5888, %v2416_v13   ;;  %v2419_v41 = vsel %vm2291_vm14, 1, %v6300_v4  ;;  %vm1676_vm14 = vcmp.gt.f32.partialorder %v6612_v42, 0.0 }
 0x1cd   : > { %v7198_v31 = vpop.f32.mrf.mxu1 }
 0x1ce   : > { %10817 = vst [vmem:[#allocation31_spill] sm:$0xff] %v7198_v31  ;;  %v7219_v31 = vpop.permute.xlu1 %2552 }
 0x1cf   : > { %10821 = vst [vmem:[#allocation35_spill] sm:$0xff] %v7219_v31  ;;  %v2180_v31 = vld [vmem:[%s6376_s13 + $0x3e0] sm:$0xff] }
 0x1d0   : > { %5539 = vmatmul.msk.f32.gmra.mxu1 %vm485_vm4, %v384_v2  ;;  %v2429_v2 = vsel %vm2301_vm10, 1, %v6300_v4  ;;  %vm2308_vm15 = vcmp.ge.s32.totalorder %v2180_v31, 0  ;;  %v2183_v31 = vld [vmem:[%s6376_s13 + $0x3f8] sm:$0xff]  ;;  %vm1672_vm10 = vcmp.gt.f32.partialorder %v6570_v9, 0.0 }
 0x1d1   : > { %2792 = vperm.xlu0 %5886, %v2429_v2   ;;  %2795 = vperm.xlu1 %5887, %v2430_v47   ;;  %v2433_v47 = vsel %vm2305_vm12, 1, %v6300_v4  ;;  %v7237_v25 = vpop.permute.xlu0 %2558  ;;  %v7243_v59 = vpop.permute.xlu2 %2546  ;;  %vm2311_vm2 = vcmp.ge.s32.totalorder %v2183_v31, 0  ;;  %vm2824_vm12 = vcmp.eq.s32.totalorder %v6957_v8, 1 }
 0x1d2   : > { %10824 = vst [vmem:[#allocation38_spill] sm:$0xff] %v7237_v25 }
 0x1d4   : > { %2762 = vperm.xlu2 %5888, %v2419_v41  }
 0x1d5   : > { %v7216_v24 = vpop.f32.mrf.mxu1 }
 0x1d6   : > { %10820 = vst [vmem:[#allocation34_spill] sm:$0xff] %v7216_v24  ;;  %v7239_v13 = vpop.permute.xlu1 %2561  ;;  %v2179_v24 = vld [vmem:[%s6376_s13 + $0x3d8] sm:$0xff] }
 0x1d7   : > { %10825 = vst [vmem:[#allocation39_spill] sm:$0xff] %v7239_v13  ;;  %vm2307_vm0 = vcmp.ge.s32.totalorder %v2179_v24, 0  ;;  %v2182_v24 = vld [vmem:[%s6376_s13 + $0x3f0] sm:$0xff] }
 0x1d8   : > { %5540 = vmatmul.msk.f32.gmra.mxu1 %vm485_vm4, %v385_v50  ;;  %v2432_v50 = vsel %vm2304_vm13, 1, %v6300_v4  ;;  %v2435_v3 = vsel %vm2307_vm0, 1, %v6300_v4  ;;  %vm2310_vm3 = vcmp.ge.s32.totalorder %v2182_v24, 0  ;;  %v3083_v24 = vld [vmem:[%s10517_s3 + $0x10] sm:$0xff]  ;;  %vm2825_vm13 = vcmp.eq.s32.totalorder %v6980_v11, 1 }
 0x1d9   : > { %2801 = vperm.xlu0 %5886, %v2432_v50   ;;  %2804 = vperm.xlu1 %5887, %v2433_v47   ;;  %v2436_v47 = vsel %vm2308_vm15, 1, %v6300_v4  ;;  %v7258_v41 = vpop.permute.xlu0 %2567  ;;  %v7266_v25 = vpop.permute.xlu2 %2555  ;;  %vm1674_vm15 = vcmp.gt.f32.partialorder %v6588_v28, 0.0  ;;  %vm1675_vm0 = vcmp.gt.f32.partialorder %v6597_v33, 0.0 }
 0x1da   : > { %10827 = vst [vmem:[#allocation41_spill] sm:$0xff] %v7258_v41  ;;  %v2438_v41 = vsel %vm2310_vm3, 1, %v6300_v4  ;;  %vm2828_vm3 = vcmp.eq.s32.totalorder %v7009_v39, 1 }
 0x1db   : > { %10829 = vst [vmem:[#allocation43_spill] sm:$0xff] %v7266_v25 }
 0x1dd   : > { %v7234_v2 = vpop.f32.mrf.mxu1 }
 0x1de   : > { %10823 = vst [vmem:[#allocation37_spill] sm:$0xff] %v7234_v2  ;;  %v7248_v2 = vpop.f32.mrf.mxu2  ;;  %5615 = vmatmul.msk.f32.gmra.mxu2 %vm485_vm4, %v6939_v27  ;;  %v7261_v13 = vpop.permute.xlu1 %2570 }
 0x1df   : > { %10826 = vst [vmem:[#allocation40_spill] sm:$0xff] %v7248_v2  ;;  %v2166_v2 = vld [vmem:[%s6376_s13 + $0x370] sm:$0xff] }
 0x1e0   : > { %5541 = vmatmul.msk.f32.gmra.mxu1 %vm485_vm4, %v386_v46  ;;  %v387_v46 = vld [vmem:[%s6366_s7 + $0x1b0] sm:$0xff]  ;;  %10828 = vst [vmem:[#allocation42_spill] sm:$0xff] %v7261_v13  ;;  %vm2294_vm1 = vcmp.ge.s32.totalorder %v2166_v2, 0  ;;  %v2169_v2 = vld [vmem:[%s6376_s13 + $0x388] sm:$0xff] }
 0x1e1   : > { %2813 = vperm.xlu1 %5887, %v2436_v47   ;;  %2810 = vperm.xlu0 %5886, %v2435_v3   ;;  %v2422_v27 = vsel %vm2294_vm1, 1, %v6300_v4  ;;  %v2439_v47 = vsel %vm2311_vm2, 1, %v6300_v4  ;;  %v388_v3 = vld [vmem:[%s6366_s7 + $0x1b8] sm:$0xff]  ;;  %vm2297_vm5 = vcmp.ge.s32.totalorder %v2169_v2, 0  ;;  %v7289_v2 = vpop.permute.xlu2 %2564  ;;  %vm3174_vm1 = vcmask 31744  }
 0x1e2   : > { %2771 = vperm.xlu2 %5888, %v2422_v27   ;;  %v7275_v27 = vpop.permute.xlu0 %2576  ;;  %v2425_v31 = vsel %vm2297_vm5, 1, %v6300_v4  ;;  %10834 = vst [vmem:[#allocation48_spill] sm:$0xff] %v7289_v2  ;;  %vm2826_vm2 = vcmp.eq.s32.totalorder %v6955_v49, 1  ;;  %vm2827_vm5 = vcmp.eq.s32.totalorder %v6976_v61, 1 }
 0x1e3   : > { %10831 = vst [vmem:[#allocation45_spill] sm:$0xff] %v7275_v27 }
 0x1e5   : > { %v7253_v50 = vpop.f32.mrf.mxu1 }
 0x1e6   : > { %v7278_v13 = vpop.permute.xlu1 %2579 }
 0x1e7   : > { %10832 = vst [vmem:[#allocation46_spill] sm:$0xff] %v7278_v13 }
 0x1e8   : > { %5542 = vmatmul.msk.f32.gmra.mxu1 %vm485_vm4, %v387_v46 }
 0x1e9   : > { %2822 = vperm.xlu1 %5887, %v2439_v47   ;;  %2819 = vperm.xlu0 %5886, %v2438_v41   ;;  %v3082_v41 = vld [vmem:[%s10517_s3 + $0x8] sm:$0xff] }
 0x1ea   : > { %2780 = vperm.xlu2 %5888, %v2425_v31   ;;  %v2172_v31 = vld [vmem:[%s6376_s13 + $0x3a0] sm:$0xff]  ;;  %v7294_v27 = vpop.permute.xlu0 %2585 }
 0x1eb   : > { %vm2300_vm6 = vcmp.ge.s32.totalorder %v2172_v31, 0  ;;  %10835 = vst [vmem:[#allocation49_spill] sm:$0xff] %v7294_v27  ;;  %v391_v31 = vld [vmem:[%s6366_s7 + $0x1d0] sm:$0xff] }
 0x1ec   : > { %v2428_v13 = vsel %vm2300_vm6, 1, %v6300_v4  ;;  %vm1677_vm6 = vcmp.gt.f32.partialorder %v6637_v60, 0.0 }
 0x1ed   : > { %v7269_v46 = vpop.f32.mrf.mxu1 }
 0x1ee   : > { %10830 = vst [vmem:[#allocation44_spill] sm:$0xff] %v7269_v46  ;;  %v7299_v46 = vpop.permute.xlu1 %2588 }
 0x1ef   : > { %10837 = vst [vmem:[#allocation51_spill] sm:$0xff] %v7299_v46  ;;  %v2178_v46 = vld [vmem:[%s6376_s13 + $0x3d0] sm:$0xff] }
 0x1f0   : > { %5543 = vmatmul.msk.f32.gmra.mxu1 %vm485_vm4, %v388_v3  ;;  %v389_v3 = vld [vmem:[%s6366_s7 + $0x1c0] sm:$0xff]  ;;  %vm2306_vm8 = vcmp.ge.s32.totalorder %v2178_v46, 0 }
 0x1f1   : > { %3099 = vperm.xlu1 %5887, %v3083_v24   ;;  %3096 = vperm.xlu0 %5886, %v3082_v41   ;;  %v7302_v24 = vpop.permute.xlu2 %2573  ;;  %v2175_v41 = vld [vmem:[%s6376_s13 + $0x3b8] sm:$0xff] }
 0x1f2   : > { %2789 = vperm.xlu2 %5888, %v2428_v13   ;;  %10838 = vst [vmem:[#allocation52_spill] sm:$0xff] %v7302_v24  ;;  %vm2303_vm7 = vcmp.ge.s32.totalorder %v2175_v41, 0  ;;  %v7309_v27 = vpop.permute.xlu0 %2594  ;;  %v2434_v41 = vsel %vm2306_vm8, 1, %v6300_v4  ;;  %vm2830_vm8 = vcmp.eq.s32.totalorder %v6998_v22, 1 }
 0x1f3   : > { %10840 = vst [vmem:[#allocation54_spill] sm:$0xff] %v7309_v27  ;;  %v2181_v27 = vld [vmem:[%s6376_s13 + $0x3e8] sm:$0xff] }
 0x1f4   : > { %vm2309_vm9 = vcmp.ge.s32.totalorder %v2181_v27, 0  ;;  %v394_v27 = vld [vmem:[%s6366_s7 + $0x1e8] sm:$0xff] }
 0x1f5   : > { %v7286_v47 = vpop.f32.mrf.mxu1 }
 0x1f6   : > { %10833 = vst [vmem:[#allocation47_spill] sm:$0xff] %v7286_v47  ;;  %v390_v47 = vld [vmem:[%s6366_s7 + $0x1c8] sm:$0xff]  ;;  %v7311_v2 = vpop.permute.xlu1 %2597 }
 0x1f7   : > { %10841 = vst [vmem:[#allocation55_spill] sm:$0xff] %v7311_v2 }
 0x1f8   : > { %5544 = vmatmul.msk.f32.gmra.mxu1 %vm485_vm4, %v389_v3  ;;  %v2431_v3 = vsel %vm2303_vm7, 1, %v6300_v4  ;;  %vm2829_vm7 = vcmp.eq.s32.totalorder %v7036_v35, 1 }
 0x1fa   : > { %2798 = vperm.xlu2 %5888, %v2431_v3   ;;  %v392_v3 = vld [vmem:[%s6366_s7 + $0x1d8] sm:$0xff] }
 0x1fd   : > { %v7296_v25 = vpop.f32.mrf.mxu1 }
 0x1fe   : > { %10836 = vst [vmem:[#allocation50_spill] sm:$0xff] %v7296_v25  ;;  %v7325_v2 = vpop.permute.xlu1 %2606 }
 0x1ff   : > { %10845 = vst [vmem:[#allocation59_spill] sm:$0xff] %v7325_v2 }
 0x200   : > { %5545 = vmatmul.msk.f32.gmra.mxu1 %vm485_vm4, %v390_v47  ;;  %v7315_v47 = vpop.permute.xlu2 %2582 }
 0x201   : > { %10842 = vst [vmem:[#allocation56_spill] sm:$0xff] %v7315_v47 }
 0x202   : > { %2807 = vperm.xlu2 %5888, %v2434_v41   ;;  %v393_v41 = vld [vmem:[%s6366_s7 + $0x1e0] sm:$0xff] }
 0x205   : > { %v7306_v13 = vpop.f32.mrf.mxu1 }
 0x206   : > { %10839 = vst [vmem:[#allocation53_spill] sm:$0xff] %v7306_v13  ;;  %v7322_v13 = vpop.permute.xlu0 %2603  ;;  %v7339_v2 = vpop.permute.xlu1 %2615 }
 0x207   : > { %10844 = vst [vmem:[#allocation58_spill] sm:$0xff] %v7322_v13  ;;  %v3081_v13 = vld [vmem:[%s10517_s3] sm:$0xff] }
 0x208   : > { %5546 = vmatmul.msk.f32.gmra.mxu1 %vm485_vm4, %v391_v31  ;;  %v2437_v31 = vsel %vm2309_vm9, 1, %v6300_v4  ;;  %v7328_v46 = vpop.permute.xlu2 %2591  ;;  %10849 = vst [vmem:[#allocation63_spill] sm:$0xff] %v7339_v2  ;;  %vm1678_vm9 = vcmp.gt.f32.partialorder %v6660_v32, 0.0 }
 0x209   : > { %10846 = vst [vmem:[#allocation60_spill] sm:$0xff] %v7328_v46 }
 0x20a   : > { %2816 = vperm.xlu2 %5888, %v2437_v31  }
 0x20d   : > { %v7318_v24 = vpop.f32.mrf.mxu1 }
 0x20e   : > { %10843 = vst [vmem:[#allocation57_spill] sm:$0xff] %v7318_v24 }
 0x210   : > { %5547 = vmatmul.msk.f32.gmra.mxu1 %vm485_vm4, %v392_v3  ;;  %v7334_v3 = vpop.permute.xlu0 %2612  ;;  %v7344_v31 = vpop.permute.xlu2 %2600 }
 0x211   : > { %10848 = vst [vmem:[#allocation62_spill] sm:$0xff] %v7334_v3  ;;  %v395_v3 = vld [vmem:[%s6366_s7 + $0x1f0] sm:$0xff] }
 0x212   : > { %3093 = vperm.xlu2 %5888, %v3081_v13   ;;  %10851 = vst [vmem:[#allocation65_spill] sm:$0xff] %v7344_v31 }
 0x215   : > { %v7330_v47 = vpop.f32.mrf.mxu1 }
 0x216   : > { %10847 = vst [vmem:[#allocation61_spill] sm:$0xff] %v7330_v47  ;;  %v7352_v47 = vpop.permute.xlu1 %2624 }
 0x217   : > { %10854 = vst [vmem:[#allocation68_spill] sm:$0xff] %v7352_v47  ;;  %v397_v47 = vld [vmem:[%s6366_s7 + $0x200] sm:$0xff] }
 0x218   : > { %5548 = vmatmul.msk.f32.gmra.mxu1 %vm485_vm4, %v393_v41  ;;  %v7347_v46 = vpop.permute.xlu0 %2621  ;;  %v7355_v2 = vpop.permute.xlu2 %2609 }
 0x219   : > { %10852 = vst [vmem:[#allocation66_spill] sm:$0xff] %v7347_v46 }
 0x21a   : > { %10855 = vst [vmem:[#allocation69_spill] sm:$0xff] %v7355_v2 }
 0x21d   : > { %v7341_v4 = vpop.f32.mrf.mxu1 }
 0x21e   : > { %10850 = vst [vmem:[#allocation64_spill] sm:$0xff] %v7341_v4  ;;  %v396_v4 = vld [vmem:[%s6366_s7 + $0x1f8] sm:$0xff]  ;;  %v7362_v31 = vpop.permute.xlu1 %2633 }
 0x21f   : > { %10858 = vst [vmem:[#allocation72_spill] sm:$0xff] %v7362_v31  ;;  %v398_v31 = vld [vmem:[%s6366_s7 + $0x208] sm:$0xff] }
 0x220   : > { %5549 = vmatmul.msk.f32.gmra.mxu1 %vm485_vm4, %v394_v27  ;;  %v7360_v24 = vpop.permute.xlu0 %2630  ;;  %v7365_v27 = vpop.permute.xlu2 %2618 }
 0x221   : > { %10857 = vst [vmem:[#allocation71_spill] sm:$0xff] %v7360_v24 }
 0x222   : > { %10859 = vst [vmem:[#allocation73_spill] sm:$0xff] %v7365_v27 }
 0x225   : > { %v7349_v41 = vpop.f32.mrf.mxu1 }
 0x226   : > { %10853 = vst [vmem:[#allocation67_spill] sm:$0xff] %v7349_v41  ;;  %v7373_v2 = vpop.permute.xlu1 %2642 }
 0x227   : > { %10862 = vst [vmem:[#allocation76_spill] sm:$0xff] %v7373_v2 }
 0x228   : > { %5550 = vmatmul.msk.f32.gmra.mxu1 %vm485_vm4, %v395_v3  ;;  %v7371_v3 = vpop.permute.xlu0 %2639 }
 0x229   : > { %10861 = vst [vmem:[#allocation75_spill] sm:$0xff] %v7371_v3 }
 0x22d   : > { %v7357_v13 = vpop.f32.mrf.mxu1 }
 0x22e   : > { %10856 = vst [vmem:[#allocation70_spill] sm:$0xff] %v7357_v13  ;;  %v7375_v13 = vpop.permute.xlu2 %2627  ;;  %v7383_v27 = vpop.permute.xlu1 %2651 }
 0x22f   : > { %10863 = vst [vmem:[#allocation77_spill] sm:$0xff] %v7375_v13 }
 0x230   : > { %5551 = vmatmul.msk.f32.gmra.mxu1 %vm485_vm4, %v396_v4  ;;  %v7381_v4 = vpop.permute.xlu0 %2648  ;;  %10866 = vst [vmem:[#allocation80_spill] sm:$0xff] %v7383_v27 }
 0x231   : > { %10865 = vst [vmem:[#allocation79_spill] sm:$0xff] %v7381_v4  ;;  %v401_v4 = vld [vmem:[%s6366_s7 + $0x220] sm:$0xff] }
 0x235   : > { %v7367_v46 = vpop.f32.mrf.mxu1 }
 0x236   : > { %10860 = vst [vmem:[#allocation74_spill] sm:$0xff] %v7367_v46  ;;  %v7388_v41 = vpop.permute.xlu2 %2636  ;;  %v7395_v13 = vpop.permute.xlu1 %2660 }
 0x237   : > { %10868 = vst [vmem:[#allocation82_spill] sm:$0xff] %v7388_v41 }
 0x238   : > { %5552 = vmatmul.msk.f32.gmra.mxu1 %vm485_vm4, %v397_v47  ;;  %v399_v47 = vld [vmem:[%s6366_s7 + $0x210] sm:$0xff]  ;;  %v7391_v2 = vpop.permute.xlu0 %2657  ;;  %10871 = vst [vmem:[#allocation85_spill] sm:$0xff] %v7395_v13  ;;  %v402_v13 = vld [vmem:[%s6366_s7 + $0x228] sm:$0xff] }
 0x239   : > { %10869 = vst [vmem:[#allocation83_spill] sm:$0xff] %v7391_v2 }
 0x23d   : > { %v7377_v24 = vpop.f32.mrf.mxu1 }
 0x23e   : > { %10864 = vst [vmem:[#allocation78_spill] sm:$0xff] %v7377_v24  ;;  %v400_v24 = vld [vmem:[%s6366_s7 + $0x218] sm:$0xff]  ;;  %v7406_v41 = vpop.permute.xlu1 %2669 }
 0x23f   : > { %10875 = vst [vmem:[#allocation89_spill] sm:$0xff] %v7406_v41  ;;  %v403_v41 = vld [vmem:[%s6366_s7 + $0x230] sm:$0xff] }
 0x240   : > { %5553 = vmatmul.msk.f32.gmra.mxu1 %vm485_vm4, %v398_v31  ;;  %v7398_v31 = vpop.permute.xlu2 %2645 }
 0x241   : > { %10872 = vst [vmem:[#allocation86_spill] sm:$0xff] %v7398_v31 }
 0x245   : > { %v7385_v46 = vpop.f32.mrf.mxu1 }
 0x246   : > { %10867 = vst [vmem:[#allocation81_spill] sm:$0xff] %v7385_v46  ;;  %v7404_v46 = vpop.permute.xlu0 %2666 }
 0x247   : > { %10874 = vst [vmem:[#allocation88_spill] sm:$0xff] %v7404_v46 }
 0x248   : > { %5554 = vmatmul.msk.f32.gmra.mxu1 %vm485_vm4, %v399_v47  ;;  %v7409_v47 = vpop.permute.xlu2 %2654 }
 0x249   : > { %10876 = vst [vmem:[#allocation90_spill] sm:$0xff] %v7409_v47 }
 0x24d   : > { %v7393_v3 = vpop.f32.mrf.mxu1 }
 0x24e   : > { %10870 = vst [vmem:[#allocation84_spill] sm:$0xff] %v7393_v3  ;;  %v7414_v3 = vpop.permute.xlu0 %2675 }
 0x24f   : > { %10878 = vst [vmem:[#allocation92_spill] sm:$0xff] %v7414_v3  ;;  %v404_v3 = vld [vmem:[%s6366_s7 + $0x238] sm:$0xff] }
 0x250   : > { %5555 = vmatmul.msk.f32.gmra.mxu1 %vm485_vm4, %v400_v24  ;;  %v7417_v24 = vpop.permute.xlu1 %2678  ;;  %v7419_v31 = vpop.permute.xlu2 %2663 }
 0x251   : > { %10879 = vst [vmem:[#allocation93_spill] sm:$0xff] %v7417_v24 }
 0x252   : > { %10880 = vst [vmem:[#allocation94_spill] sm:$0xff] %v7419_v31 }
 0x255   : > { %v7401_v27 = vpop.f32.mrf.mxu1 }
 0x256   : > { %10873 = vst [vmem:[#allocation87_spill] sm:$0xff] %v7401_v27 }
 0x258   : > { %5556 = vmatmul.msk.f32.gmra.mxu1 %vm485_vm4, %v401_v4  ;;  %v7425_v4 = vpop.permute.xlu0 %2684  ;;  %v7427_v47 = vpop.permute.xlu1 %2687 }
 0x259   : > { %10882 = vst [vmem:[#allocation96_spill] sm:$0xff] %v7425_v4  ;;  %v7432_v27 = vpop.permute.xlu2 %2672  ;;  %v406_v4 = vld [vmem:[%s6366_s7 + $0x248] sm:$0xff] }
 0x25a   : > { %10883 = vst [vmem:[#allocation97_spill] sm:$0xff] %v7427_v47 }
 0x25b   : > { %10885 = vst [vmem:[#allocation99_spill] sm:$0xff] %v7432_v27 }
 0x25d   : > { %v7411_v2 = vpop.f32.mrf.mxu1 }
 0x25e   : > { %10877 = vst [vmem:[#allocation91_spill] sm:$0xff] %v7411_v2 }
 0x260   : > { %5557 = vmatmul.msk.f32.gmra.mxu1 %vm485_vm4, %v402_v13  ;;  %v7435_v13 = vpop.permute.xlu0 %2693  ;;  %v7437_v24 = vpop.permute.xlu1 %2696 }
 0x261   : > { %10886 = vst [vmem:[#allocation100_spill] sm:$0xff] %v7435_v13  ;;  %v407_v13 = vld [vmem:[%s6366_s7 + $0x250] sm:$0xff] }
 0x262   : > { %10887 = vst [vmem:[#allocation101_spill] sm:$0xff] %v7437_v24 }
 0x265   : > { %v7421_v46 = vpop.f32.mrf.mxu1 }
 0x266   : > { %10881 = vst [vmem:[#allocation95_spill] sm:$0xff] %v7421_v46  ;;  %v405_v46 = vld [vmem:[%s6366_s7 + $0x240] sm:$0xff] }
 0x268   : > { %5558 = vmatmul.msk.f32.gmra.mxu1 %vm485_vm4, %v403_v41  ;;  %v7442_v41 = vpop.permute.xlu2 %2681  ;;  %v7450_v27 = vpop.permute.xlu1 %2705 }
 0x269   : > { %10889 = vst [vmem:[#allocation103_spill] sm:$0xff] %v7442_v41 }
 0x26a   : > { %10892 = vst [vmem:[#allocation106_spill] sm:$0xff] %v7450_v27  ;;  %v408_v27 = vld [vmem:[%s6366_s7 + $0x258] sm:$0xff] }
 0x26d   : > { %v7429_v2 = vpop.f32.mrf.mxu1 }
 0x26e   : > { %10884 = vst [vmem:[#allocation98_spill] sm:$0xff] %v7429_v2  ;;  %v7448_v2 = vpop.permute.xlu0 %2702 }
 0x26f   : > { %10891 = vst [vmem:[#allocation105_spill] sm:$0xff] %v7448_v2 }
 0x270   : > { %5559 = vmatmul.msk.f32.gmra.mxu1 %vm485_vm4, %v404_v3  ;;  %v7453_v3 = vpop.permute.xlu2 %2690 }
 0x271   : > { %10893 = vst [vmem:[#allocation107_spill] sm:$0xff] %v7453_v3 }
 0x275   : > { %v7439_v31 = vpop.f32.mrf.mxu1 }
 0x276   : > { %10888 = vst [vmem:[#allocation102_spill] sm:$0xff] %v7439_v31  ;;  %v7458_v31 = vpop.permute.xlu0 %2711 }
 0x277   : > { %10895 = vst [vmem:[#allocation109_spill] sm:$0xff] %v7458_v31  ;;  %v409_v31 = vld [vmem:[%s6366_s7 + $0x260] sm:$0xff] }
 0x278   : > { %5560 = vmatmul.msk.f32.gmra.mxu1 %vm485_vm4, %v405_v46  ;;  %v7461_v46 = vpop.permute.xlu1 %2714  ;;  %v7463_v41 = vpop.permute.xlu2 %2699 }
 0x279   : > { %10896 = vst [vmem:[#allocation110_spill] sm:$0xff] %v7461_v46 }
 0x27a   : > { %10897 = vst [vmem:[#allocation111_spill] sm:$0xff] %v7463_v41 }
 0x27d   : > { %v7445_v47 = vpop.f32.mrf.mxu1 }
 0x27e   : > { %10890 = vst [vmem:[#allocation104_spill] sm:$0xff] %v7445_v47 }
 0x280   : > { %5561 = vmatmul.msk.f32.gmra.mxu1 %vm485_vm4, %v406_v4  ;;  %v7469_v4 = vpop.permute.xlu0 %2720  ;;  %v7471_v3 = vpop.permute.xlu1 %2723 }
 0x281   : > { %10899 = vst [vmem:[#allocation113_spill] sm:$0xff] %v7469_v4  ;;  %v7476_v47 = vpop.permute.xlu2 %2708  ;;  %v411_v4 = vld [vmem:[%s6366_s7 + $0x270] sm:$0xff] }
 0x282   : > { %10900 = vst [vmem:[#allocation114_spill] sm:$0xff] %v7471_v3 }
 0x283   : > { %10902 = vst [vmem:[#allocation116_spill] sm:$0xff] %v7476_v47 }
 0x285   : > { %v7455_v24 = vpop.f32.mrf.mxu1 }
 0x286   : > { %10894 = vst [vmem:[#allocation108_spill] sm:$0xff] %v7455_v24 }
 0x288   : > { %5562 = vmatmul.msk.f32.gmra.mxu1 %vm485_vm4, %v407_v13  ;;  %v7479_v13 = vpop.permute.xlu0 %2729  ;;  %v7481_v46 = vpop.permute.xlu1 %2732 }
 0x289   : > { %10903 = vst [vmem:[#allocation117_spill] sm:$0xff] %v7479_v13  ;;  %v412_v13 = vld [vmem:[%s6366_s7 + $0x278] sm:$0xff] }
 0x28a   : > { %10904 = vst [vmem:[#allocation118_spill] sm:$0xff] %v7481_v46 }
 0x28d   : > { %v7465_v2 = vpop.f32.mrf.mxu1 }
 0x28e   : > { %10898 = vst [vmem:[#allocation112_spill] sm:$0xff] %v7465_v2  ;;  %v410_v2 = vld [vmem:[%s6366_s7 + $0x268] sm:$0xff] }
 0x290   : > { %5563 = vmatmul.msk.f32.gmra.mxu1 %vm485_vm4, %v408_v27  ;;  %v7486_v27 = vpop.permute.xlu2 %2717  ;;  %v7494_v47 = vpop.permute.xlu1 %2741 }
 0x291   : > { %10906 = vst [vmem:[#allocation120_spill] sm:$0xff] %v7486_v27 }
 0x292   : > { %10909 = vst [vmem:[#allocation123_spill] sm:$0xff] %v7494_v47  ;;  %v413_v47 = vld [vmem:[%s6366_s7 + $0x280] sm:$0xff] }
 0x295   : > { %v7473_v24 = vpop.f32.mrf.mxu1 }
 0x296   : > { %10901 = vst [vmem:[#allocation115_spill] sm:$0xff] %v7473_v24  ;;  %v7492_v24 = vpop.permute.xlu0 %2738 }
 0x297   : > { %10908 = vst [vmem:[#allocation122_spill] sm:$0xff] %v7492_v24 }
 0x298   : > { %5564 = vmatmul.msk.f32.gmra.mxu1 %vm485_vm4, %v409_v31  ;;  %v7497_v31 = vpop.permute.xlu2 %2726 }
 0x299   : > { %10910 = vst [vmem:[#allocation124_spill] sm:$0xff] %v7497_v31 }
 0x29d   : > { %v7483_v41 = vpop.f32.mrf.mxu1 }
 0x29e   : > { %10905 = vst [vmem:[#allocation119_spill] sm:$0xff] %v7483_v41  ;;  %v7502_v41 = vpop.permute.xlu0 %2747 }
 0x29f   : > { %10912 = vst [vmem:[#allocation126_spill] sm:$0xff] %v7502_v41  ;;  %v414_v41 = vld [vmem:[%s6366_s7 + $0x288] sm:$0xff] }
 0x2a0   : > { %5565 = vmatmul.msk.f32.gmra.mxu1 %vm485_vm4, %v410_v2  ;;  %v7505_v2 = vpop.permute.xlu1 %2750  ;;  %v7507_v27 = vpop.permute.xlu2 %2735 }
 0x2a1   : > { %10913 = vst [vmem:[#allocation127_spill] sm:$0xff] %v7505_v2 }
 0x2a2   : > { %10914 = vst [vmem:[#allocation128_spill] sm:$0xff] %v7507_v27 }
 0x2a5   : > { %v7489_v3 = vpop.f32.mrf.mxu1 }
 0x2a6   : > { %10907 = vst [vmem:[#allocation121_spill] sm:$0xff] %v7489_v3 }
 0x2a8   : > { %5566 = vmatmul.msk.f32.gmra.mxu1 %vm485_vm4, %v411_v4  ;;  %v7513_v4 = vpop.permute.xlu0 %2756  ;;  %v7515_v31 = vpop.permute.xlu1 %2759 }
 0x2a9   : > { %10916 = vst [vmem:[#allocation130_spill] sm:$0xff] %v7513_v4  ;;  %v7520_v3 = vpop.permute.xlu2 %2744  ;;  %v416_v4 = vld [vmem:[%s6366_s7 + $0x298] sm:$0xff] }
 0x2aa   : > { %10917 = vst [vmem:[#allocation131_spill] sm:$0xff] %v7515_v31 }
 0x2ab   : > { %10919 = vst [vmem:[#allocation133_spill] sm:$0xff] %v7520_v3 }
 0x2ad   : > { %v7499_v46 = vpop.f32.mrf.mxu1 }
 0x2ae   : > { %10911 = vst [vmem:[#allocation125_spill] sm:$0xff] %v7499_v46 }
 0x2b0   : > { %5567 = vmatmul.msk.f32.gmra.mxu1 %vm485_vm4, %v412_v13  ;;  %v7523_v13 = vpop.permute.xlu0 %2765  ;;  %v7525_v2 = vpop.permute.xlu1 %2768 }
 0x2b1   : > { %10920 = vst [vmem:[#allocation134_spill] sm:$0xff] %v7523_v13  ;;  %v417_v13 = vld [vmem:[%s6366_s7 + $0x2a0] sm:$0xff] }
 0x2b2   : > { %10921 = vst [vmem:[#allocation135_spill] sm:$0xff] %v7525_v2 }
 0x2b5   : > { %v7509_v24 = vpop.f32.mrf.mxu1 }
 0x2b6   : > { %10915 = vst [vmem:[#allocation129_spill] sm:$0xff] %v7509_v24  ;;  %v415_v24 = vld [vmem:[%s6366_s7 + $0x290] sm:$0xff] }
 0x2b8   : > { %5568 = vmatmul.msk.f32.gmra.mxu1 %vm485_vm4, %v413_v47  ;;  %v7530_v47 = vpop.permute.xlu2 %2753  ;;  %v7538_v3 = vpop.permute.xlu1 %2777 }
 0x2b9   : > { %10923 = vst [vmem:[#allocation137_spill] sm:$0xff] %v7530_v47 }
 0x2ba   : > { %10926 = vst [vmem:[#allocation140_spill] sm:$0xff] %v7538_v3 }
 0x2bd   : > { %v7517_v46 = vpop.f32.mrf.mxu1 }
 0x2be   : > { %10918 = vst [vmem:[#allocation132_spill] sm:$0xff] %v7517_v46  ;;  %v7536_v46 = vpop.permute.xlu0 %2774 }
 0x2bf   : > { %10925 = vst [vmem:[#allocation139_spill] sm:$0xff] %v7536_v46 }
 0x2c0   : > { %5569 = vmatmul.msk.f32.gmra.mxu1 %vm485_vm4, %v414_v41  ;;  %v7541_v41 = vpop.permute.xlu2 %2762 }
 0x2c1   : > { %10927 = vst [vmem:[#allocation141_spill] sm:$0xff] %v7541_v41 }
 0x2c5   : > { %v7527_v27 = vpop.f32.mrf.mxu1 }
 0x2c6   : > { %10922 = vst [vmem:[#allocation136_spill] sm:$0xff] %v7527_v27  ;;  %v7546_v27 = vpop.permute.xlu0 %2783 }
 0x2c7   : > { %10929 = vst [vmem:[#allocation143_spill] sm:$0xff] %v7546_v27 }
 0x2c8   : > { %5570 = vmatmul.msk.f32.gmra.mxu1 %vm485_vm4, %v415_v24  ;;  %v7549_v24 = vpop.permute.xlu1 %2786  ;;  %v7551_v47 = vpop.permute.xlu2 %2771 }
 0x2c9   : > { %10930 = vst [vmem:[#allocation144_spill] sm:$0xff] %v7549_v24 }
 0x2ca   : > { %10931 = vst [vmem:[#allocation145_spill] sm:$0xff] %v7551_v47 }
 0x2cd   : > { %v7533_v31 = vpop.f32.mrf.mxu1 }
 0x2ce   : > { %10924 = vst [vmem:[#allocation138_spill] sm:$0xff] %v7533_v31  ;;  %v418_v31 = vld [vmem:[%s6366_s7 + $0x2a8] sm:$0xff]  ;;  %v7559_v41 = vpop.permute.xlu0 %2792 }
 0x2cf   : > { %10934 = vst [vmem:[#allocation148_spill] sm:$0xff] %v7559_v41 }
 0x2d0   : > { %5571 = vmatmul.msk.f32.gmra.mxu1 %vm485_vm4, %v416_v4  ;;  %v7557_v4 = vpop.f32.mrf.mxu2  ;;  %v7566_v3 = vpop.permute.xlu2 %2780 }
 0x2d1   : > { %10933 = vst [vmem:[#allocation147_spill] sm:$0xff] %v7557_v4  ;;  %v420_v4 = vld [vmem:[%s6366_s7 + $0x2b8] sm:$0xff] }
 0x2d2   : > { %10937 = vst [vmem:[#allocation151_spill] sm:$0xff] %v7566_v3 }
 0x2d5   : > { %v7543_v2 = vpop.f32.mrf.mxu1 }
 0x2d6   : > { %10928 = vst [vmem:[#allocation142_spill] sm:$0xff] %v7543_v2  ;;  %v7561_v2 = vpop.permute.xlu1 %2795 }
 0x2d7   : > { %10935 = vst [vmem:[#allocation149_spill] sm:$0xff] %v7561_v2  ;;  %v421_v2 = vld [vmem:[%s6366_s7 + $0x2c0] sm:$0xff] }
 0x2d8   : > { %5572 = vmatmul.msk.f32.gmra.mxu1 %vm485_vm4, %v417_v13  ;;  %v419_v13 = vld [vmem:[%s6366_s7 + $0x2b0] sm:$0xff]  ;;  %v7569_v47 = vpop.f32.mrf.mxu2  ;;  %v7578_v41 = vpop.permute.xlu2 %2789 }
 0x2d9   : > { %10938 = vst [vmem:[#allocation152_spill] sm:$0xff] %v7569_v47 }
 0x2da   : > { %10942 = vst [vmem:[#allocation156_spill] sm:$0xff] %v7578_v41 }
 0x2dd   : > { %v7553_v46 = vpop.f32.mrf.mxu1 }
 0x2de   : > { %10932 = vst [vmem:[#allocation146_spill] sm:$0xff] %v7553_v46  ;;  %v7571_v46 = vpop.permute.xlu0 %2801  ;;  %v7573_v24 = vpop.permute.xlu1 %2804 }
 0x2df   : > { %10939 = vst [vmem:[#allocation153_spill] sm:$0xff] %v7571_v46 }
 0x2e0   : > { %5573 = vmatmul.msk.f32.gmra.mxu1 %vm485_vm4, %v418_v31  ;;  %10940 = vst [vmem:[#allocation154_spill] sm:$0xff] %v7573_v24  ;;  %v7584_v3 = vpop.f32.mrf.mxu2  ;;  %v7591_v46 = vpop.permute.xlu2 %2798  ;;  %v1801_v24 = vmul.f32 0.01, %v6579_v19 }
 0x2e1   : > { %10944 = vst [vmem:[#allocation158_spill] sm:$0xff] %v7584_v3 }
 0x2e2   : > { %10947 = vst [vmem:[#allocation161_spill] sm:$0xff] %v7591_v46  ;;  %v1802_v46 = vmul.f32 0.01, %v6588_v28 }
 0x2e5   : > { %v7563_v27 = vpop.f32.mrf.mxu1 }
 0x2e6   : > { %10936 = vst [vmem:[#allocation150_spill] sm:$0xff] %v7563_v27  ;;  %v7588_v47 = vpop.permute.xlu0 %2810 }
 0x2e7   : > { %10946 = vst [vmem:[#allocation160_spill] sm:$0xff] %v7588_v47 }
 0x2e8   : > { %5574 = vmatmul.msk.f32.gmra.mxu1 %vm485_vm4, %v419_v13  ;;  %v7586_v13 = vpop.permute.xlu1 %2813  ;;  %v7604_v47 = vpop.f32.mrf.mxu2 }
 0x2e9   : > { %10945 = vst [vmem:[#allocation159_spill] sm:$0xff] %v7586_v13  ;;  %v1929_v13 = vsel %vm1673_vm11, %v6579_v19, %v1801_v24  ;;  %v7625_v24 = vpop.permute.xlu2 %2807  ;;  %vm2832_vm11 = vcmp.eq.s32.totalorder %v7056_v44, 1 }
 0x2ea   : > { %10949 = vst [vmem:[#allocation163_spill] sm:$0xff] %v7604_v47  ;;  %v7620_v19 = vsel %vm2825_vm13, %v1929_v13, -1e+30  ;;  %v423_v13 = vld [vmem:[%s6366_s7 + $0x2d0] sm:$0xff]  ;;  %vm1680_vm13 = vcmp.gt.f32.partialorder %v6709_v6, 0.0 }
 0x2eb   : > { %10953 = vst [vmem:[#allocation167_spill] sm:$0xff] %v7620_v19  ;;  %v7641_v39 = vsel %vm3174_vm1, %v7620_v19, -inf }
 0x2ec   : > { %10954 = vst [vmem:[#allocation168_spill] sm:$0xff] %v7625_v24  ;;  %v1810_v24 = vmul.f32 0.01, %v6746_v18 }
 0x2ed   : > { %v7575_v31 = vpop.f32.mrf.mxu1 }
 0x2ee   : > { %10941 = vst [vmem:[#allocation155_spill] sm:$0xff] %v7575_v31  ;;  %v1800_v31 = vmul.f32 0.01, %v6570_v9 }
 0x2f0   : > { %5575 = vmatmul.msk.f32.gmra.mxu1 %vm485_vm4, %v420_v4  ;;  %v1928_v3 = vsel %vm1672_vm10, %v6570_v9, %v1800_v31  ;;  %v7611_v41 = vpop.permute.xlu1 %2822  ;;  %v7613_v9 = vpop.permute.xlu0 %2819  ;;  %v1930_v31 = vsel %vm1674_vm15, %v6588_v28, %v1802_v46  ;;  %vm2831_vm10 = vcmp.eq.s32.totalorder %v6994_v34, 1  ;;  %vm2834_vm15 = vcmp.eq.s32.totalorder %v7014_v54, 1 }
 0x2f1   : > { %10950 = vst [vmem:[#allocation164_spill] sm:$0xff] %v7611_v41  ;;  %v7617_v8 = vsel %vm2824_vm12, %v1928_v3, -1e+30  ;;  %v7649_v61 = vsel %vm2826_vm2, %v1930_v31, -1e+30  ;;  %vm1679_vm12 = vcmp.gt.f32.partialorder %v6685_v51, 0.0  ;;  %v7699_v25 = vpop.permute.xlu2 %2816 }
 0x2f2   : > { %10951 = vst [vmem:[#allocation165_spill] sm:$0xff] %v7613_v9  ;;  %v424_v9 = vld [vmem:[%s6366_s7 + $0x2d8] sm:$0xff]  ;;  %vm1682_vm2 = vcmp.gt.f32.partialorder %v6746_v18, 0.0 }
 0x2f3   : > { %10952 = vst [vmem:[#allocation166_spill] sm:$0xff] %v7617_v8 }
 0x2f5   : > { %v7581_v27 = vpop.f32.mrf.mxu1 }
 0x2f6   : > { %10943 = vst [vmem:[#allocation157_spill] sm:$0xff] %v7581_v27  ;;  %v422_v27 = vld [vmem:[%s6366_s7 + $0x2c8] sm:$0xff] }
 0x2f8   : > { %5576 = vmatmul.msk.f32.gmra.mxu1 %vm485_vm4, %v421_v2  ;;  %v1804_v2 = vmul.f32 0.01, %v6612_v42 }
 0x2fa   : > { %v1932_v11 = vsel %vm1676_vm14, %v6612_v42, %v1804_v2  ;;  %v7636_v42 = vsel %vm3174_vm1, %v7617_v8, -inf  ;;  %v1807_v2 = vmul.f32 0.01, %v6685_v51  ;;  %vm2833_vm14 = vcmp.eq.s32.totalorder %v7018_v30, 1 }
 0x2fb   : > { %v7643_v28 = vsel %vm2828_vm3, %v1932_v11, -1e+30  ;;  %v1808_v11 = vmul.f32 0.01, %v6709_v6 }
 0x2fc   : > { %10956 = vst [vmem:[#allocation170_spill] sm:$0xff] %v7643_v28  ;;  %v7662_v49 = vsel %vm3174_vm1, %v7643_v28, -inf  ;;  %v7678_v28 = vpop.permute.xlu0 %3096 }
 0x2fd   : > { %v7596_v4 = vpop.f32.mrf.mxu1  ;;  %10959 = vst [vmem:[#allocation173_spill] sm:$0xff] %v7678_v28 }
 0x2fe   : > { %10948 = vst [vmem:[#allocation162_spill] sm:$0xff] %v7596_v4  ;;  %v1803_v4 = vmul.f32 0.01, %v6597_v33 }
 0x300   : > { %5577 = vmatmul.msk.f32.gmra.mxu1 %vm485_vm4, %v422_v27  ;;  %v1805_v27 = vmul.f32 0.01, %v6637_v60  ;;  %v1931_v47 = vsel %vm1675_vm0, %v6597_v33, %v1803_v4  ;;  %v1806_v33 = vmul.f32 0.01, %v6660_v32  ;;  %vm1681_vm0 = vcmp.gt.f32.partialorder %v6728_v12, 0.0 }
 0x301   : > { %v7651_v46 = vsel %vm2827_vm5, %v1931_v47, -1e+30  ;;  %v3080_v47 = vld [vmem:[%s6371_s10] sm:$0xff]  ;;  %vm1687_vm5 = vcmp.gt.f32.partialorder %v6831_v29, 0.0 }
 0x302   : > { %v1933_v4 = vsel %vm1677_vm6, %v6637_v60, %v1805_v27  ;;  %v7667_v60 = vpop.f32.mrf.mxu2  ;;  %v1934_v31 = vsel %vm1678_vm9, %v6660_v32, %v1806_v33  ;;  %v7680_v19 = vperm.slane %v3080_v47, 2  ;;  %v7682_v8 = vperm.slane %v3080_v47, 3 }
 0x303   : > { %10957 = vst [vmem:[#allocation171_spill] sm:$0xff] %v7667_v60  ;;  %v7672_v27 = vsel %vm2829_vm7, %v1933_v4, -1e+30  ;;  %v7686_v60 = vperm.slane %v3080_v47, 5  ;;  %v7688_v35 = vperm.slane %v3080_v47, 6  ;;  %v1935_v4 = vsel %vm1679_vm12, %v6685_v51, %v1807_v2 }
 0x304   : > { %10960 = vst [vmem:[#allocation174_spill] sm:$0xff] %v7680_v19  ;;  %v1936_v32 = vsel %vm1680_vm13, %v6709_v6, %v1808_v11  ;;  %v1809_v33 = vmul.f32 0.01, %v6728_v12  ;;  %vm3111_vm3 = vcmp.eq.s32.totalorder %v7680_v19, %v7678_v28  ;;  %v1811_v51 = vmul.f32 0.01, %v6763_v45 }
 0x305   : > { %v7631_v3 = vpop.f32.mrf.mxu1  ;;  %10961 = vst [vmem:[#allocation175_spill] sm:$0xff] %v7682_v8  ;;  %v7723_v6 = vsel %vm2830_vm8, %v1934_v31, -1e+30  ;;  %vm1683_vm9 = vcmp.gt.f32.partialorder %v6763_v45, 0.0  ;;  %v7728_v2 = vperm.slane %v3080_v47, 7  ;;  %vm1684_vm8 = vcmp.gt.f32.partialorder %v6780_v5, 0.0 }
 0x306   : > { %10955 = vst [vmem:[#allocation169_spill] sm:$0xff] %v7631_v3  ;;  %v7684_v3 = vperm.slane %v3080_v47, 4  ;;  %v7736_v11 = vsel %vm2832_vm11, %v1936_v32, -1e+30  ;;  %v1937_v22 = vsel %vm1681_vm0, %v6728_v12, %v1809_v33  ;;  %v1812_v31 = vmul.f32 0.01, %v6780_v5 }
 0x307   : > { %10963 = vst [vmem:[#allocation177_spill] sm:$0xff] %v7686_v60  ;;  %v1938_v47 = vsel %vm1682_vm2, %v6746_v18, %v1810_v24  ;;  %v7752_v34 = vsel %vm3174_vm1, %v7672_v27, -inf  ;;  %v7756_v12 = vsel %vm3174_vm1, %v7723_v6, -inf  ;;  %v1939_v44 = vsel %vm1683_vm9, %v6763_v45, %v1811_v51  ;;  %v11005_v8 = vld [vmem:[#allocation33_spill] sm:$0xff] }
 0x308   : > { %5578 = vmatmul.msk.f32.gmra.mxu1 %vm485_vm4, %v423_v13  ;;  %v7676_v13 = vpop.permute.xlu1 %3099  ;;  %10962 = vst [vmem:[#allocation176_spill] sm:$0xff] %v7684_v3  ;;  %vm2835_vm0 = vcmp.eq.s32.totalorder %v7076_v62, 1  ;;  %v7762_v18 = vsel %vm3174_vm1, %v7649_v61, -inf  ;;  %v7772_v32 = vsel %vm2833_vm14, %v1937_v22, -1e+30  ;;  %v425_v62 = vld [vmem:[%s6366_s7 + $0x2e0] sm:$0xff]  ;;  %v3180_v51 = vmax.f32 %v7636_v42, %v7662_v49 }
 0x309   : > { %10958 = vst [vmem:[#allocation172_spill] sm:$0xff] %v7676_v13  ;;  %v7783_v13 = vsel %vm2834_vm15, %v1938_v47, -1e+30  ;;  %v1940_v28 = vsel %vm1684_vm8, %v6780_v5, %v1812_v31  ;;  %vm2836_vm2 = vcmp.eq.s32.totalorder %v7038_v56, 1  ;;  %v7791_v30 = vsel %vm3174_vm1, %v7651_v46, -inf  ;;  %v7806_v56 = vpop.permute.xlu2 %3093 }
 0x30a   : > { %10964 = vst [vmem:[#allocation178_spill] sm:$0xff] %v7688_v35  ;;  %v7774_v33 = vpop.f32.mrf.mxu2  ;;  %v3182_v22 = vmax.f32 %v7641_v39, %v7752_v34  ;;  %v3184_v42 = vmax.f32 %v7762_v18, %v7756_v12  ;;  %v7797_v49 = vsel %vm2835_vm0, %v1939_v44, -1e+30  ;;  %v3189_v5 = vsel %vm3174_vm1, %v7772_v32, -inf }
 0x30b   : > { %10965 = vst [vmem:[#allocation179_spill] sm:$0xff] %v7728_v2  ;;  %vm2837_vm14 = vcmp.eq.s32.totalorder %v7032_v48, 1  ;;  %v3191_v39 = vsel %vm3174_vm1, %v7783_v13, -inf  ;;  %v7811_v31 = vsel %vm2836_vm2, %v1940_v28, -1e+30  ;;  %vm2838_vm15 = vcmp.eq.s32.totalorder %v7098_v36, 1 }
 0x30c   : > { %10966 = vst [vmem:[#allocation180_spill] sm:$0xff] %v7774_v33  ;;  %vm2839_vm9 = vcmp.eq.s32.totalorder %v7058_v10, 1  ;;  %v3193_v34 = vsel %vm3174_vm1, %v7797_v49, -inf  ;;  %v1813_v12 = vmul.f32 0.01, %v6797_v14  ;;  %vm1685_vm8 = vcmp.gt.f32.partialorder %v6797_v14, 0.0 }
 0x30d   : > { %v7694_v41 = vpop.f32.mrf.mxu1  ;;  %10967 = vst [vmem:[#allocation181_spill] sm:$0xff] %v7797_v49  ;;  %v1814_v44 = vmul.f32 0.01, %v6814_v38  ;;  %vm1686_vm0 = vcmp.gt.f32.partialorder %v6814_v38, 0.0  ;;  %v1815_v18 = vmul.f32 0.01, %v6831_v29  ;;  %vm3103_vm2 = vcmp.eq.s32.totalorder %v7680_v19, %v7806_v56 }
 0x30e   : > { %10968 = vst [vmem:[#allocation182_spill] sm:$0xff] %v7806_v56  ;;  %v1818_v28 = vmul.f32 0.01, %v6882_v21  ;;  %vm1690_vm13 = vcmp.gt.f32.partialorder %v6882_v21, 0.0  ;;  %vm3108_vm7 = vcmp.eq.s32.totalorder %v7728_v2, %v7806_v56  ;;  %v1819_v33 = vmul.f32 0.01, %v6899_v20 }
 0x30f   : > { %10969 = vst [vmem:[#allocation183_spill] sm:$0xff] %v7811_v31  ;;  %v1941_v35 = vsel %vm1685_vm8, %v6797_v14, %v1813_v12  ;;  %vm2840_vm6 = vcmp.eq.s32.totalorder %v7052_v63, 1  ;;  %vm1689_vm12 = vcmp.gt.f32.partialorder %v6865_v26, 0.0  ;;  %vm1691_vm11 = vcmp.gt.f32.partialorder %v6899_v20, 0.0 }
 0x310   : > { %5579 = vmatmul.msk.f32.gmra.mxu1 %vm485_vm4, %v424_v9  ;;  %v7732_v9 = vsel %vm2831_vm10, %v1935_v4, -1e+30  ;;  %v3187_v4 = vsel %vm3174_vm1, %v7736_v11, -inf  ;;  %vm1688_vm10 = vcmp.gt.f32.partialorder %v6848_v7, 0.0  ;;  %v1820_v2 = vmul.f32 0.01, %v6916_v40 }
 0x311   : > { %v7766_v24 = vsel %vm3174_vm1, %v7732_v9, -inf  ;;  %v7801_v47 = vmax.f32 %v3180_v51, %v3187_v4  ;;  %v1942_v51 = vsel %vm1686_vm0, %v6814_v38, %v1814_v44  ;;  %v1943_v38 = vsel %vm1687_vm5, %v6831_v29, %v1815_v18 }
 0x312   : > { %v3186_v54 = vmax.f32 %v7791_v30, %v7766_v24  ;;  %v1816_v24 = vmul.f32 0.01, %v6848_v7  ;;  %v1817_v30 = vmul.f32 0.01, %v6865_v26  ;;  %v7851_v60 = vpop.f32.mrf.mxu2  ;;  %v1946_v44 = vsel %vm1690_vm13, %v6882_v21, %v1818_v28 }
 0x313   : > { %10970 = vst [vmem:[#allocation184_spill] sm:$0xff] %v7851_v60  ;;  %vm2842_vm0 = vcmp.eq.s32.totalorder %v7078_v43, 1  ;;  %v3195_v14 = vsel %vm3174_vm1, %v7811_v31, -inf  ;;  %v7862_v12 = vsel %vm2838_vm15, %v1942_v51, -1e+30  ;;  %vm1692_vm8 = vcmp.gt.f32.partialorder %v6916_v40, 0.0 }
 0x314   : > { %v1944_v3 = vsel %vm1688_vm10, %v6848_v7, %v1816_v24  ;;  %v1945_v29 = vsel %vm1689_vm12, %v6865_v26, %v1817_v30  ;;  %vm2841_vm5 = vcmp.eq.s32.totalorder %v7118_v53, 1  ;;  %v1947_v21 = vsel %vm1691_vm11, %v6899_v20, %v1819_v33 }
 0x315   : > { %v7776_v45 = vpop.f32.mrf.mxu1  ;;  %vm2843_vm13 = vcmp.eq.s32.totalorder %v7072_v0, 1  ;;  %v3190_v43 = vmax.f32 %v3182_v22, %v3189_v5  ;;  %v7872_v18 = vsel %vm2837_vm14, %v1941_v35, -1e+30  ;;  %v7876_v36 = vsel %vm2839_vm9, %v1943_v38, -1e+30  ;;  %v427_v22 = vld [vmem:[%s6366_s7 + $0x2f0] sm:$0xff] }
 0x316   : > { %10971 = vst [vmem:[#allocation185_spill] sm:$0xff] %v7872_v18  ;;  %v7878_v7 = vsel %vm2842_vm0, %v1946_v44, -1e+30  ;;  %v3199_v26 = vsel %vm3174_vm1, %v7862_v12, -inf  ;;  %v7884_v53 = vsel %vm2840_vm6, %v1944_v3, -1e+30  ;;  %v1948_v20 = vsel %vm1692_vm8, %v6916_v40, %v1820_v2 }
 0x317   : > { %vm2844_vm12 = vcmp.eq.s32.totalorder %v7138_v37, 1  ;;  %v3192_v0 = vmax.f32 %v3184_v42, %v3191_v39  ;;  %v3194_v48 = vmax.f32 %v3186_v54, %v3193_v34  ;;  %v7888_v35 = vsel %vm2841_vm5, %v1945_v29, -1e+30 }
 0x318   : > { %5580 = vmatmul.msk.f32.gmra.mxu1 %vm485_vm4, %v425_v62  ;;  %v426_v62 = vld [vmem:[%s6366_s7 + $0x2e8] sm:$0xff]  ;;  %v7890_v10 = vsel %vm2843_vm13, %v1947_v21, -1e+30  ;;  %v3197_v5 = vsel %vm3174_vm1, %v7872_v18, -inf  ;;  %v3201_v63 = vsel %vm3174_vm1, %v7876_v36, -inf  ;;  %v3207_v40 = vsel %vm3174_vm1, %v7878_v7, -inf }
 0x319   : > { %v1821_v37 = vmul.f32 0.01, %v6933_v15  ;;  %v3196_v3 = vmax.f32 %v7801_v47, %v3195_v14  ;;  %v3200_v2 = vmax.f32 %v3192_v0, %v3199_v26  ;;  %v7903_v42 = vsel %vm2844_vm12, %v1948_v20, -1e+30  ;;  %v10973_v26 = vld [vmem:[#allocation14_spill] sm:$0xff]  ;;  %v10974_v20 = vld [vmem:[#allocation7_spill] sm:$0xff] }
 0x31a   : > { %vm1693_vm6 = vcmp.gt.f32.partialorder %v6933_v15, 0.0  ;;  %v3203_v54 = vsel %vm3174_vm1, %v7884_v53, -inf  ;;  %v3205_v39 = vsel %vm3174_vm1, %v7888_v35, -inf  ;;  %v3209_v34 = vsel %vm3174_vm1, %v7890_v10, -inf  ;;  %v7915_v51 = vpop.f32.mrf.mxu2 }
 0x31b   : > { %v1822_v28 = vmul.f32 0.01, %v6950_v55  ;;  %v3198_v24 = vmax.f32 %v3190_v43, %v3197_v5  ;;  %v3202_v47 = vmax.f32 %v3194_v48, %v3201_v63  ;;  %vm1694_vm10 = vcmp.gt.f32.partialorder %v6950_v55, 0.0  ;;  %10972 = vst [vmem:[#allocation186_spill] sm:$0xff] %v7915_v51 }
 0x31c   : > { %v3211_v30 = vsel %vm3174_vm1, %v7903_v42, -inf  ;;  %v1949_v38 = vsel %vm1693_vm6, %v6933_v15, %v1821_v37  ;;  %vm2845_vm11 = vcmp.eq.s32.totalorder %v7100_v16, 1  ;;  %v1823_v44 = vmul.f32 0.01, %v6968_v52  ;;  %v428_v16 = vld [vmem:[%s6366_s7 + $0x2f8] sm:$0xff] }
 0x31d   : > { %v7836_v4 = vpop.f32.mrf.mxu1  ;;  %v3204_v14 = vmax.f32 %v3196_v3, %v3203_v54  ;;  %v3206_v29 = vmax.f32 %v3198_v24, %v3205_v39  ;;  %v3210_v21 = vmax.f32 %v3202_v47, %v3209_v34  ;;  %vm1695_vm14 = vcmp.gt.f32.partialorder %v6968_v52, 0.0  ;;  %v10976_v39 = vld [vmem:[#allocation17_spill] sm:$0xff] }
 0x31e   : > { %v1950_v43 = vsel %vm1694_vm10, %v6950_v55, %v1822_v28  ;;  %vm2846_vm15 = vcmp.eq.s32.totalorder %v10973_v26, 1  ;;  %v1824_v0 = vmul.f32 0.01, %v10974_v20  ;;  %v7926_v5 = vsel %vm2845_vm11, %v1949_v38, -1e+30  ;;  %v10977_v34 = vld [vmem:[#allocation9_spill] sm:$0xff] }
 0x31f   : > { %vm1696_vm9 = vcmp.gt.f32.partialorder %v10974_v20, 0.0  ;;  %v1951_v63 = vsel %vm1695_vm14, %v6968_v52, %v1823_v44  ;;  %vm2847_vm0 = vcmp.eq.s32.totalorder %v7158_v58, 1  ;;  %v7935_v3 = vsel %vm2846_vm15, %v1950_v43, -1e+30  ;;  %v10980_v26 = vld [vmem:[#allocation11_spill] sm:$0xff] }
 0x320   : > { %5581 = vmatmul.msk.f32.gmra.mxu1 %vm485_vm4, %v426_v62  ;;  %v3208_v62 = vmax.f32 %v3200_v2, %v3207_v40  ;;  %v10975_v40 = vld [vmem:[#allocation8_spill] sm:$0xff]  ;;  %v3213_v2 = vsel %vm3174_vm1, %v7926_v5, -inf  ;;  %v1952_v54 = vsel %vm1696_vm9, %v10974_v20, %v1824_v0  ;;  %vm2848_vm5 = vcmp.eq.s32.totalorder %v10976_v39, 1 }
 0x321   : > { %v1825_v37 = vmul.f32 0.01, %v10975_v40  ;;  %vm1697_vm8 = vcmp.gt.f32.partialorder %v10975_v40, 0.0  ;;  %v1826_v28 = vmul.f32 0.01, %v10977_v34  ;;  %vm1698_vm13 = vcmp.gt.f32.partialorder %v10977_v34, 0.0 }
 0x322   : > { %v3214_v48 = vmax.f32 %v3206_v29, %v3208_v62  ;;  %v7944_v58 = vsel %vm2847_vm0, %v1951_v63, -1e+30  ;;  %v3215_v24 = vsel %vm3174_vm1, %v7935_v3, -inf  ;;  %v10978_v62 = vld [vmem:[#allocation18_spill] sm:$0xff]  ;;  %v7955_v29 = vpop.f32.mrf.mxu2  ;;  %vm2850_vm10 = vcmp.eq.s32.totalorder %v7176_v23, 1 }
 0x323   : > { %v1953_v47 = vsel %vm1697_vm8, %v10975_v40, %v1825_v37  ;;  %vm2849_vm12 = vcmp.eq.s32.totalorder %v10978_v62, 1  ;;  %v1954_v43 = vsel %vm1698_vm13, %v10977_v34, %v1826_v28  ;;  %v1828_v20 = vmul.f32 0.01, %v10980_v26  ;;  %v10982_v37 = vld [vmem:[#allocation22_spill] sm:$0xff]  ;;  %v10985_v28 = vld [vmem:[#allocation23_spill] sm:$0xff] }
 0x324   : > { %v3216_v55 = vmax.f32 %v3210_v21, %v3214_v48  ;;  %v3217_v21 = vsel %vm3174_vm1, %v7944_v58, -inf  ;;  %v7962_v48 = vsel %vm2849_vm12, %v1953_v47, -1e+30  ;;  %vm1700_vm11 = vcmp.gt.f32.partialorder %v10980_v26, 0.0 }
 0x325   : > { %v7892_v33 = vpop.f32.mrf.mxu1  ;;  %10981 = vst [vmem:[#allocation14_spill] sm:$0xff] %v7962_v48  ;;  %vm2851_vm14 = vcmp.eq.s32.totalorder %v10982_v37, 1  ;;  %v3221_v39 = vsel %vm3174_vm1, %v7962_v48, -inf  ;;  %v1956_v34 = vsel %vm1700_vm11, %v10980_v26, %v1828_v20  ;;  %vm2852_vm9 = vcmp.eq.s32.totalorder %v10985_v28, 1  ;;  %v10993_v28 = vld [vmem:[#allocation27_spill] sm:$0xff] }
 0x326   : > { %vm2853_vm8 = vcmp.eq.s32.totalorder %v7201_v1, 1  ;;  %v7990_v26 = vsel %vm2852_vm9, %v1956_v34, -1e+30  ;;  %vm2856_vm11 = vcmp.eq.s32.totalorder %v7221_v57, 1 }
 0x327   : > { %10989 = vst [vmem:[#allocation17_spill] sm:$0xff] %v7990_v26 }
 0x328   : > { %5582 = vmatmul.msk.f32.gmra.mxu1 %vm485_vm4, %v427_v22  ;;  %v3212_v22 = vmax.f32 %v3204_v14, %v3211_v30  ;;  %v10979_v30 = vld [vmem:[#allocation10_spill] sm:$0xff]  ;;  %v7952_v14 = vsel %vm2848_vm5, %v1952_v54, -1e+30  ;;  %v7973_v54 = vsel %vm2850_vm10, %v1954_v43, -1e+30 }
 0x329   : > { %v1827_v38 = vmul.f32 0.01, %v10979_v30  ;;  %vm1699_vm6 = vcmp.gt.f32.partialorder %v10979_v30, 0.0  ;;  %v3219_v63 = vsel %vm3174_vm1, %v7952_v14, -inf  ;;  %10984 = vst [vmem:[#allocation7_spill] sm:$0xff] %v7973_v54 }
 0x32a   : > { %v3218_v52 = vmax.f32 %v3212_v22, %v3216_v55  ;;  %v10983_v55 = vld [vmem:[#allocation12_spill] sm:$0xff]  ;;  %v8001_v1 = vpop.f32.mrf.mxu2 }
 0x32b   : > { %v1955_v40 = vsel %vm1699_vm6, %v10979_v30, %v1827_v38  ;;  %vm1701_vm15 = vcmp.gt.f32.partialorder %v10983_v55, 0.0  ;;  %v3223_v30 = vsel %vm3174_vm1, %v7973_v54, -inf  ;;  %vm2855_vm6 = vcmp.eq.s32.totalorder %v10993_v28, 1 }
 0x32c   : > { %v3220_v44 = vmax.f32 %v3213_v2, %v3218_v52  ;;  %v1829_v2 = vmul.f32 0.01, %v10983_v55  ;;  %v10986_v52 = vld [vmem:[#allocation15_spill] sm:$0xff]  ;;  %v7982_v62 = vsel %vm2851_vm14, %v1955_v40, -1e+30  ;;  %vm1706_vm14 = vcmp.gt.f32.partialorder %v7180_v17, 0.0 }
 0x32d   : > { %v7929_v15 = vpop.f32.mrf.mxu1  ;;  %10987 = vst [vmem:[#allocation8_spill] sm:$0xff] %v7982_v62  ;;  %vm1702_vm0 = vcmp.gt.f32.partialorder %v10986_v52, 0.0  ;;  %v3225_v20 = vsel %vm3174_vm1, %v7982_v62, -inf  ;;  %v11065_v62 = vld [vmem:[#allocation108_spill] sm:$0xff] }
 0x32e   : > { %v3222_v0 = vmax.f32 %v3215_v24, %v3220_v44  ;;  %v1830_v24 = vmul.f32 0.01, %v10986_v52  ;;  %v1957_v38 = vsel %vm1701_vm15, %v10983_v55, %v1829_v2  ;;  %v10988_v44 = vld [vmem:[#allocation19_spill] sm:$0xff] }
 0x32f   : > { %vm1703_vm5 = vcmp.gt.f32.partialorder %v10988_v44, 0.0  ;;  %v7998_v55 = vsel %vm2853_vm8, %v1957_v38, -1e+30 }
 0x330   : > { %5583 = vmatmul.msk.f32.gmra.mxu1 %vm485_vm4, %v428_v16  ;;  %v429_v16 = vld [vmem:[%s6366_s7 + $0x300] sm:$0xff]  ;;  %v3224_v23 = vmax.f32 %v3217_v21, %v3222_v0  ;;  %v1831_v21 = vmul.f32 0.01, %v10988_v44  ;;  %v1958_v0 = vsel %vm1702_vm0, %v10986_v52, %v1830_v24  ;;  %10992 = vst [vmem:[#allocation9_spill] sm:$0xff] %v7998_v55  ;;  %v3229_v38 = vsel %vm3174_vm1, %v7998_v55, -inf }
 0x331   : > { %v10994_v52 = vld [vmem:[#allocation25_spill] sm:$0xff] }
 0x332   : > { %v3226_v47 = vmax.f32 %v3219_v63, %v3224_v23  ;;  %v10991_v63 = vld [vmem:[#allocation21_spill] sm:$0xff]  ;;  %v1959_v34 = vsel %vm1703_vm5, %v10988_v44, %v1831_v21  ;;  %v1833_v24 = vmul.f32 0.01, %v10994_v52  ;;  %vm1705_vm10 = vcmp.gt.f32.partialorder %v10994_v52, 0.0 }
 0x333   : > { %v1832_v40 = vmul.f32 0.01, %v10991_v63  ;;  %vm1704_vm12 = vcmp.gt.f32.partialorder %v10991_v63, 0.0  ;;  %v430_v23 = vld [vmem:[%s6366_s7 + $0x308] sm:$0xff]  ;;  %v8020_v21 = vsel %vm2855_vm6, %v1959_v34, -1e+30 }
 0x334   : > { %v3228_v43 = vmax.f32 %v3221_v39, %v3226_v47  ;;  %v3227_v39 = vsel %vm3174_vm1, %v7990_v26, -inf  ;;  %10996 = vst [vmem:[#allocation10_spill] sm:$0xff] %v8020_v21  ;;  %v11000_v34 = vld [vmem:[#allocation30_spill] sm:$0xff]  ;;  %vm2859_vm5 = vcmp.eq.s32.totalorder %v7243_v59, 1  ;;  %vm1710_vm6 = vcmp.gt.f32.partialorder %v7253_v50, 0.0  ;;  %v11041_v55 = vld [vmem:[#allocation81_spill] sm:$0xff] }
 0x335   : > { %v7965_v22 = vpop.f32.mrf.mxu1  ;;  %vm2858_vm0 = vcmp.eq.s32.totalorder %v11000_v34, 1 }
 0x336   : > { %v3230_v37 = vmax.f32 %v3223_v30, %v3228_v43  ;;  %v1960_v43 = vsel %vm1704_vm12, %v10991_v63, %v1832_v40  ;;  %v10998_v63 = vld [vmem:[#allocation31_spill] sm:$0xff]  ;;  %vm2860_vm12 = vcmp.eq.s32.totalorder %v11005_v8, 1 }
 0x337   : > { %v1835_v40 = vmul.f32 0.01, %v10998_v63  ;;  %v8028_v28 = vsel %vm2856_vm11, %v1960_v43, -1e+30  ;;  %vm1707_vm9 = vcmp.gt.f32.partialorder %v10998_v63, 0.0 }
 0x338   : > { %5584 = vmatmul.msk.f32.gmra.mxu1 %vm485_vm4, %v429_v16  ;;  %v10990_v16 = vld [vmem:[#allocation26_spill] sm:$0xff]  ;;  %v3232_v47 = vmax.f32 %v3225_v20, %v3230_v37  ;;  %v10997_v37 = vld [vmem:[#allocation29_spill] sm:$0xff]  ;;  %10999 = vst [vmem:[#allocation11_spill] sm:$0xff] %v8028_v28  ;;  %v3235_v43 = vsel %vm3174_vm1, %v8028_v28, -inf }
 0x339   : > { %vm2854_vm13 = vcmp.eq.s32.totalorder %v10990_v16, 1  ;;  %v1834_v16 = vmul.f32 0.01, %v7180_v17  ;;  %vm2857_vm15 = vcmp.eq.s32.totalorder %v10997_v37, 1 }
 0x33a   : > { %v8011_v30 = vsel %vm2854_vm13, %v1958_v0, -1e+30  ;;  %v3234_v44 = vmax.f32 %v3227_v39, %v3232_v47  ;;  %v1961_v0 = vsel %vm1705_vm10, %v10994_v52, %v1833_v24  ;;  %v11001_v47 = vld [vmem:[#allocation34_spill] sm:$0xff] }
 0x33b   : > { %10995 = vst [vmem:[#allocation18_spill] sm:$0xff] %v8011_v30  ;;  %v3231_v20 = vsel %vm3174_vm1, %v8011_v30, -inf  ;;  %v1962_v39 = vsel %vm1706_vm14, %v7180_v17, %v1834_v16  ;;  %v1836_v60 = vmul.f32 0.01, %v11001_v47  ;;  %v8036_v52 = vsel %vm2857_vm15, %v1961_v0, -1e+30 }
 0x33c   : > { %v3236_v57 = vmax.f32 %v3229_v38, %v3234_v44  ;;  %11002 = vst [vmem:[#allocation22_spill] sm:$0xff] %v8036_v52  ;;  %vm1708_vm8 = vcmp.gt.f32.partialorder %v11001_v47, 0.0  ;;  %v431_v38 = vld [vmem:[%s6366_s7 + $0x310] sm:$0xff]  ;;  %v1963_v44 = vsel %vm1707_vm9, %v10998_v63, %v1835_v40  ;;  %v11003_v17 = vld [vmem:[#allocation37_spill] sm:$0xff]  ;;  %v8047_v34 = vsel %vm2858_vm0, %v1962_v39, -1e+30 }
 0x33d   : > { %v8003_v2 = vpop.f32.mrf.mxu1  ;;  %v1837_v16 = vmul.f32 0.01, %v11003_v17  ;;  %11004 = vst [vmem:[#allocation12_spill] sm:$0xff] %v8047_v34  ;;  %vm1709_vm13 = vcmp.gt.f32.partialorder %v11003_v17, 0.0  ;;  %v3237_v0 = vsel %vm3174_vm1, %v8036_v52, -inf  ;;  %v11007_v39 = vld [vmem:[#allocation35_spill] sm:$0xff] }
 0x33e   : > { %v3238_v51 = vmax.f32 %v3231_v20, %v3236_v57  ;;  %v8050_v20 = vpop.f32.mrf.mxu2  ;;  %v1964_v57 = vsel %vm1708_vm8, %v11001_v47, %v1836_v60  ;;  %v1838_v63 = vmul.f32 0.01, %v7253_v50  ;;  %v8058_v40 = vsel %vm2859_vm5, %v1963_v44, -1e+30  ;;  %v11008_v60 = vld [vmem:[#allocation44_spill] sm:$0xff]  ;;  %v11010_v44 = vld [vmem:[#allocation43_spill] sm:$0xff] }
 0x33f   : > { %11006 = vst [vmem:[#allocation23_spill] sm:$0xff] %v8058_v40  ;;  %vm2861_vm10 = vcmp.eq.s32.totalorder %v11007_v39, 1  ;;  %v1839_v47 = vmul.f32 0.01, %v11008_v60  ;;  %v8066_v19 = vsel %vm2860_vm12, %v1964_v57, -1e+30 }
 0x340   : > { %5585 = vmatmul.msk.f32.gmra.mxu1 %vm485_vm4, %v430_v23  ;;  %v3233_v23 = vsel %vm3174_vm1, %v8020_v21, -inf  ;;  %11009 = vst [vmem:[#allocation15_spill] sm:$0xff] %v8066_v19  ;;  %vm1711_vm11 = vcmp.gt.f32.partialorder %v11008_v60, 0.0  ;;  %vm2862_vm14 = vcmp.eq.s32.totalorder %v11010_v44, 1  ;;  %v3243_v57 = vsel %vm3174_vm1, %v8066_v19, -inf  ;;  %v11013_v39 = vld [vmem:[#allocation38_spill] sm:$0xff] }
 0x341   : > { %v3240_v37 = vmax.f32 %v3233_v23, %v3238_v51  ;;  %v3239_v51 = vsel %vm3174_vm1, %v8047_v34, -inf  ;;  %v1965_v23 = vsel %vm1709_vm13, %v11003_v17, %v1837_v16  ;;  %vm2863_vm9 = vcmp.eq.s32.totalorder %v11013_v39, 1  ;;  %v11017_v52 = vld [vmem:[#allocation53_spill] sm:$0xff]  ;;  %v11029_v21 = vld [vmem:[#allocation67_spill] sm:$0xff] }
 0x342   : > { %v8074_v17 = vsel %vm2861_vm10, %v1965_v23, -1e+30  ;;  %v1842_v19 = vmul.f32 0.01, %v11017_v52  ;;  %vm1714_vm5 = vcmp.gt.f32.partialorder %v11017_v52, 0.0 }
 0x343   : > { %v3242_v59 = vmax.f32 %v3235_v43, %v3240_v37  ;;  %v1966_v43 = vsel %vm1710_vm6, %v7253_v50, %v1838_v63  ;;  %v11011_v37 = vld [vmem:[#allocation47_spill] sm:$0xff]  ;;  %11012 = vst [vmem:[#allocation19_spill] sm:$0xff] %v8074_v17  ;;  %v11014_v50 = vld [vmem:[#allocation50_spill] sm:$0xff] }
 0x344   : > { %v1840_v56 = vmul.f32 0.01, %v11011_v37  ;;  %vm1712_vm15 = vcmp.gt.f32.partialorder %v11011_v37, 0.0  ;;  %v1841_v63 = vmul.f32 0.01, %v11014_v50  ;;  %vm1713_vm0 = vcmp.gt.f32.partialorder %v11014_v50, 0.0 }
 0x345   : > { %v8039_v24 = vpop.f32.mrf.mxu1  ;;  %v3244_v8 = vmax.f32 %v3237_v0, %v3242_v59  ;;  %v432_v0 = vld [vmem:[%s6366_s7 + $0x318] sm:$0xff]  ;;  %v1967_v59 = vsel %vm1711_vm11, %v11008_v60, %v1839_v47 }
 0x346   : > { %v1968_v23 = vsel %vm1712_vm15, %v11011_v37, %v1840_v56  ;;  %v8094_v47 = vsel %vm2863_vm9, %v1967_v59, -1e+30  ;;  %v11019_v56 = vld [vmem:[#allocation48_spill] sm:$0xff]  ;;  %v11020_v37 = vld [vmem:[#allocation57_spill] sm:$0xff]  ;;  %v1970_v59 = vsel %vm1714_vm5, %v11017_v52, %v1842_v19  ;;  %vm1718_vm9 = vcmp.gt.f32.partialorder %v11029_v21, 0.0 }
 0x347   : > { %v3246_v34 = vmax.f32 %v3239_v51, %v3244_v8  ;;  %v3245_v51 = vsel %vm3174_vm1, %v8074_v17, -inf  ;;  %v11016_v8 = vld [vmem:[#allocation39_spill] sm:$0xff]  ;;  %11018 = vst [vmem:[#allocation21_spill] sm:$0xff] %v8094_v47  ;;  %vm2865_vm13 = vcmp.eq.s32.totalorder %v11019_v56, 1  ;;  %v1843_v39 = vmul.f32 0.01, %v11020_v37 }
 0x348   : > { %5586 = vmatmul.msk.f32.gmra.mxu1 %vm485_vm4, %v431_v38  ;;  %v3241_v38 = vsel %vm3174_vm1, %v8058_v40, -inf  ;;  %v8085_v40 = vsel %vm2862_vm14, %v1966_v43, -1e+30  ;;  %vm2864_vm8 = vcmp.eq.s32.totalorder %v11016_v8, 1  ;;  %v1969_v43 = vsel %vm1713_vm0, %v11014_v50, %v1841_v63 }
 0x349   : > { %v3248_v44 = vmax.f32 %v3241_v38, %v3246_v34  ;;  %11015 = vst [vmem:[#allocation26_spill] sm:$0xff] %v8085_v40  ;;  %v8097_v34 = vpop.f32.mrf.mxu2  ;;  %v3247_v38 = vsel %vm3174_vm1, %v8085_v40, -inf  ;;  %v8104_v17 = vsel %vm2864_vm8, %v1968_v23, -1e+30  ;;  %vm1715_vm12 = vcmp.gt.f32.partialorder %v11020_v37, 0.0 }
 0x34a   : > { %11021 = vst [vmem:[#allocation27_spill] sm:$0xff] %v8104_v17  ;;  %v8112_v50 = vsel %vm2865_vm13, %v1969_v43, -1e+30  ;;  %v3251_v23 = vsel %vm3174_vm1, %v8104_v17, -inf  ;;  %v1971_v56 = vsel %vm1715_vm12, %v11020_v37, %v1843_v39  ;;  %v11028_v43 = vld [vmem:[#allocation52_spill] sm:$0xff]  ;;  %v11031_v39 = vld [vmem:[#allocation45_spill] sm:$0xff] }
 0x34b   : > { %v3250_v60 = vmax.f32 %v3243_v57, %v3248_v44  ;;  %v11022_v57 = vld [vmem:[#allocation41_spill] sm:$0xff]  ;;  %11024 = vst [vmem:[#allocation25_spill] sm:$0xff] %v8112_v50  ;;  %vm2868_vm15 = vcmp.eq.s32.totalorder %v11028_v43, 1  ;;  %v1846_v17 = vmul.f32 0.01, %v11029_v21  ;;  %vm2869_vm0 = vcmp.eq.s32.totalorder %v11031_v39, 1 }
 0x34c   : > { %vm2866_vm6 = vcmp.eq.s32.totalorder %v11022_v57, 1  ;;  %v11023_v44 = vld [vmem:[#allocation61_spill] sm:$0xff]  ;;  %v11026_v57 = vld [vmem:[#allocation64_spill] sm:$0xff] }
 0x34d   : > { %v8077_v16 = vpop.f32.mrf.mxu1  ;;  %v3252_v8 = vmax.f32 %v3245_v51, %v3250_v60  ;;  %v1844_v40 = vmul.f32 0.01, %v11023_v44  ;;  %vm1716_vm10 = vcmp.gt.f32.partialorder %v11023_v44, 0.0  ;;  %v433_v51 = vld [vmem:[%s6366_s7 + $0x320] sm:$0xff]  ;;  %v11025_v60 = vld [vmem:[#allocation42_spill] sm:$0xff]  ;;  %vm1717_vm14 = vcmp.gt.f32.partialorder %v11026_v57, 0.0 }
 0x34e   : > { %vm2867_vm11 = vcmp.eq.s32.totalorder %v11025_v60, 1  ;;  %v8123_v52 = vsel %vm2866_vm6, %v1970_v59, -1e+30  ;;  %v11032_v59 = vld [vmem:[#allocation70_spill] sm:$0xff] }
 0x34f   : > { %v3254_v28 = vmax.f32 %v3247_v38, %v3252_v8  ;;  %11027 = vst [vmem:[#allocation29_spill] sm:$0xff] %v8123_v52  ;;  %v3253_v38 = vsel %vm3174_vm1, %v8112_v50, -inf  ;;  %v1972_v8 = vsel %vm1716_vm10, %v11023_v44, %v1844_v40  ;;  %v8132_v37 = vsel %vm2867_vm11, %v1971_v56, -1e+30 }
 0x350   : > { %5587 = vmatmul.msk.f32.gmra.mxu1 %vm485_vm4, %v432_v0  ;;  %v3249_v0 = vsel %vm3174_vm1, %v8094_v47, -inf  ;;  %v1845_v47 = vmul.f32 0.01, %v11026_v57  ;;  %11030 = vst [vmem:[#allocation31_spill] sm:$0xff] %v8132_v37  ;;  %v1847_v43 = vmul.f32 0.01, %v11032_v59 }
 0x351   : > { %v3256_v19 = vmax.f32 %v3249_v0, %v3254_v28  ;;  %v3255_v28 = vsel %vm3174_vm1, %v8123_v52, -inf  ;;  %v8140_v44 = vsel %vm2868_vm15, %v1972_v8, -1e+30  ;;  %vm1719_vm8 = vcmp.gt.f32.partialorder %v11032_v59, 0.0  ;;  %v11035_v52 = vld [vmem:[#allocation74_spill] sm:$0xff] }
 0x352   : > { %v1973_v0 = vsel %vm1717_vm14, %v11026_v57, %v1845_v47  ;;  %11033 = vst [vmem:[#allocation30_spill] sm:$0xff] %v8140_v44  ;;  %v3257_v56 = vsel %vm3174_vm1, %v8132_v37, -inf  ;;  %v1848_v39 = vmul.f32 0.01, %v11035_v52  ;;  %vm1720_vm13 = vcmp.gt.f32.partialorder %v11035_v52, 0.0  ;;  %v11038_v37 = vld [vmem:[#allocation78_spill] sm:$0xff] }
 0x353   : > { %v3258_v60 = vmax.f32 %v3251_v23, %v3256_v19  ;;  %v11034_v23 = vld [vmem:[#allocation46_spill] sm:$0xff]  ;;  %v1974_v19 = vsel %vm1718_vm9, %v11029_v21, %v1846_v17  ;;  %v8150_v47 = vsel %vm2869_vm0, %v1973_v0, -1e+30  ;;  %v3259_v8 = vsel %vm3174_vm1, %v8140_v44, -inf }
 0x354   : > { %vm2870_vm5 = vcmp.eq.s32.totalorder %v11034_v23, 1  ;;  %11036 = vst [vmem:[#allocation34_spill] sm:$0xff] %v8150_v47  ;;  %v1975_v23 = vsel %vm1719_vm8, %v11032_v59, %v1847_v43  ;;  %v1849_v30 = vmul.f32 0.01, %v11038_v37  ;;  %vm1721_vm6 = vcmp.gt.f32.partialorder %v11038_v37, 0.0 }
 0x355   : > { %v8115_v63 = vpop.f32.mrf.mxu1  ;;  %v3260_v40 = vmax.f32 %v3253_v38, %v3258_v60  ;;  %v434_v38 = vld [vmem:[%s6366_s7 + $0x328] sm:$0xff]  ;;  %v11037_v60 = vld [vmem:[#allocation56_spill] sm:$0xff]  ;;  %v8161_v17 = vsel %vm2870_vm5, %v1974_v19, -1e+30  ;;  %v3261_v0 = vsel %vm3174_vm1, %v8150_v47, -inf  ;;  %vm1722_vm11 = vcmp.gt.f32.partialorder %v11041_v55, 0.0 }
 0x356   : > { %vm2871_vm12 = vcmp.eq.s32.totalorder %v11037_v60, 1  ;;  %11039 = vst [vmem:[#allocation37_spill] sm:$0xff] %v8161_v17  ;;  %v1850_v44 = vmul.f32 0.01, %v11041_v55  ;;  %v3263_v43 = vsel %vm3174_vm1, %v8161_v17, -inf  ;;  %v11044_v19 = vld [vmem:[#allocation84_spill] sm:$0xff] }
 0x357   : > { %v3262_v50 = vmax.f32 %v3255_v28, %v3260_v40  ;;  %v11040_v28 = vld [vmem:[#allocation49_spill] sm:$0xff]  ;;  %v1976_v40 = vsel %vm1720_vm13, %v11035_v52, %v1848_v39  ;;  %v8170_v59 = vsel %vm2871_vm12, %v1975_v23, -1e+30  ;;  %vm1723_vm15 = vcmp.gt.f32.partialorder %v11044_v19, 0.0 }
 0x358   : > { %5588 = vmatmul.msk.f32.gmra.mxu1 %vm485_vm4, %v433_v51  ;;  %v8143_v51 = vpop.f32.mrf.mxu2  ;;  %vm2872_vm10 = vcmp.eq.s32.totalorder %v11040_v28, 1  ;;  %11042 = vst [vmem:[#allocation33_spill] sm:$0xff] %v8170_v59  ;;  %v1851_v28 = vmul.f32 0.01, %v11044_v19  ;;  %v1978_v23 = vsel %vm1722_vm11, %v11041_v55, %v1850_v44  ;;  %v11050_v55 = vld [vmem:[#allocation91_spill] sm:$0xff] }
 0x359   : > { %v3264_v21 = vmax.f32 %v3257_v56, %v3262_v50  ;;  %v11043_v50 = vld [vmem:[#allocation51_spill] sm:$0xff]  ;;  %v1977_v56 = vsel %vm1721_vm6, %v11038_v37, %v1849_v30  ;;  %v8178_v39 = vsel %vm2872_vm10, %v1976_v40, -1e+30  ;;  %v11049_v40 = vld [vmem:[#allocation54_spill] sm:$0xff]  ;;  %v1853_v44 = vmul.f32 0.01, %v11050_v55 }
 0x35a   : > { %vm2873_vm14 = vcmp.eq.s32.totalorder %v11043_v50, 1  ;;  %11045 = vst [vmem:[#allocation35_spill] sm:$0xff] %v8178_v39  ;;  %vm2875_vm8 = vcmp.eq.s32.totalorder %v11049_v40, 1  ;;  %vm1725_vm5 = vcmp.gt.f32.partialorder %v11050_v55, 0.0  ;;  %v11053_v40 = vld [vmem:[#allocation95_spill] sm:$0xff] }
 0x35b   : > { %v3266_v60 = vmax.f32 %v3259_v8, %v3264_v21  ;;  %v3265_v8 = vsel %vm3174_vm1, %v8170_v59, -inf  ;;  %v11047_v21 = vld [vmem:[#allocation87_spill] sm:$0xff]  ;;  %v8186_v17 = vsel %vm2873_vm14, %v1977_v56, -1e+30  ;;  %v1854_v18 = vmul.f32 0.01, %v11053_v40 }
 0x35c   : > { %v1852_v50 = vmul.f32 0.01, %v11047_v21  ;;  %11048 = vst [vmem:[#allocation44_spill] sm:$0xff] %v8186_v17  ;;  %vm1724_vm0 = vcmp.gt.f32.partialorder %v11047_v21, 0.0  ;;  %v11052_v56 = vld [vmem:[#allocation55_spill] sm:$0xff]  ;;  %vm1726_vm12 = vcmp.gt.f32.partialorder %v11053_v40, 0.0 }
 0x35d   : > { %v8153_v57 = vpop.f32.mrf.mxu1  ;;  %v3268_v52 = vmax.f32 %v3261_v0, %v3266_v60  ;;  %v435_v0 = vld [vmem:[%s6366_s7 + $0x330] sm:$0xff]  ;;  %v3267_v60 = vsel %vm3174_vm1, %v8178_v39, -inf  ;;  %vm2876_vm13 = vcmp.eq.s32.totalorder %v11052_v56, 1 }
 0x35e   : > { %v1980_v26 = vsel %vm1724_vm0, %v11047_v21, %v1852_v50 }
 0x35f   : > { %v3270_v47 = vmax.f32 %v3263_v43, %v3268_v52  ;;  %v3269_v52 = vsel %vm3174_vm1, %v8186_v17, -inf  ;;  %v8216_v50 = vsel %vm2876_vm13, %v1980_v26, -1e+30  ;;  %v436_v26 = vld [vmem:[%s6366_s7 + $0x338] sm:$0xff] }
 0x360   : > { %5589 = vmatmul.msk.f32.gmra.mxu1 %vm485_vm4, %v434_v38  ;;  %v11046_v38 = vld [vmem:[#allocation60_spill] sm:$0xff]  ;;  %v8189_v30 = vpop.f32.mrf.mxu2  ;;  %11057 = vst [vmem:[#allocation38_spill] sm:$0xff] %v8216_v50 }
 0x361   : > { %vm2874_vm9 = vcmp.eq.s32.totalorder %v11046_v38, 1  ;;  %v1979_v38 = vsel %vm1723_vm15, %v11044_v19, %v1851_v28  ;;  %v3272_v59 = vmax.f32 %v3265_v8, %v3270_v47  ;;  %v11055_v47 = vld [vmem:[#allocation65_spill] sm:$0xff]  ;;  %v1981_v8 = vsel %vm1725_vm5, %v11050_v55, %v1853_v44 }
 0x362   : > { %v8199_v43 = vsel %vm2874_vm9, %v1978_v23, -1e+30  ;;  %v8208_v19 = vsel %vm2875_vm8, %v1979_v38, -1e+30  ;;  %vm2877_vm6 = vcmp.eq.s32.totalorder %v11055_v47, 1  ;;  %v11056_v23 = vld [vmem:[#allocation98_spill] sm:$0xff] }
 0x363   : > { %11051 = vst [vmem:[#allocation43_spill] sm:$0xff] %v8199_v43  ;;  %v3274_v39 = vmax.f32 %v3267_v60, %v3272_v59  ;;  %v3271_v28 = vsel %vm3174_vm1, %v8199_v43, -inf  ;;  %v1855_v56 = vmul.f32 0.01, %v11056_v23  ;;  %vm1727_vm10 = vcmp.gt.f32.partialorder %v11056_v23, 0.0  ;;  %v11058_v59 = vld [vmem:[#allocation58_spill] sm:$0xff] }
 0x364   : > { %11054 = vst [vmem:[#allocation47_spill] sm:$0xff] %v8208_v19  ;;  %vm2878_vm11 = vcmp.eq.s32.totalorder %v11058_v59, 1  ;;  %v1982_v60 = vsel %vm1726_vm12, %v11053_v40, %v1854_v18  ;;  %v11059_v38 = vld [vmem:[#allocation102_spill] sm:$0xff]  ;;  %v8224_v43 = vsel %vm2877_vm6, %v1981_v8, -1e+30  ;;  %v3275_v44 = vsel %vm3174_vm1, %v8216_v50, -inf }
 0x365   : > { %v8191_v37 = vpop.f32.mrf.mxu1  ;;  %v3276_v21 = vmax.f32 %v3269_v52, %v3274_v39  ;;  %v1856_v47 = vmul.f32 0.01, %v11059_v38  ;;  %11060 = vst [vmem:[#allocation50_spill] sm:$0xff] %v8224_v43  ;;  %vm1728_vm14 = vcmp.gt.f32.partialorder %v11059_v38, 0.0  ;;  %v11061_v39 = vld [vmem:[#allocation59_spill] sm:$0xff]  ;;  %v1983_v52 = vsel %vm1727_vm10, %v11056_v23, %v1855_v56  ;;  %v11062_v59 = vld [vmem:[#allocation104_spill] sm:$0xff] }
 0x366   : > { %vm2879_vm15 = vcmp.eq.s32.totalorder %v11061_v39, 1  ;;  %v8235_v40 = vsel %vm2878_vm11, %v1982_v60, -1e+30  ;;  %vm1729_vm9 = vcmp.gt.f32.partialorder %v11062_v59, 0.0  ;;  %v11064_v8 = vld [vmem:[#allocation69_spill] sm:$0xff]  ;;  %vm1730_vm8 = vcmp.gt.f32.partialorder %v11065_v62, 0.0 }
 0x367   : > { %v3278_v17 = vmax.f32 %v3271_v28, %v3276_v21  ;;  %11063 = vst [vmem:[#allocation39_spill] sm:$0xff] %v8235_v40  ;;  %vm2880_vm0 = vcmp.eq.s32.totalorder %v11064_v8, 1  ;;  %v3277_v21 = vsel %vm3174_vm1, %v8224_v43, -inf  ;;  %v1984_v39 = vsel %vm1728_vm14, %v11059_v38, %v1856_v47  ;;  %v11068_v8 = vld [vmem:[#allocation112_spill] sm:$0xff] }
 0x368   : > { %5590 = vmatmul.msk.f32.gmra.mxu1 %vm485_vm4, %v435_v0  ;;  %v3273_v0 = vsel %vm3174_vm1, %v8208_v19, -inf  ;;  %v1857_v19 = vmul.f32 0.01, %v11062_v59  ;;  %v8238_v28 = vpop.f32.mrf.mxu2  ;;  %v1858_v50 = vmul.f32 0.01, %v11065_v62  ;;  %vm1731_vm13 = vcmp.gt.f32.partialorder %v11068_v8, 0.0 }
 0x369   : > { %v3280_v18 = vmax.f32 %v3273_v0, %v3278_v17  ;;  %v8246_v56 = vsel %vm2879_vm15, %v1983_v52, -1e+30  ;;  %v11067_v17 = vld [vmem:[#allocation62_spill] sm:$0xff]  ;;  %v3279_v0 = vsel %vm3174_vm1, %v8235_v40, -inf  ;;  %v1859_v43 = vmul.f32 0.01, %v11068_v8 }
 0x36a   : > { %11066 = vst [vmem:[#allocation53_spill] sm:$0xff] %v8246_v56  ;;  %vm2881_vm5 = vcmp.eq.s32.totalorder %v11067_v17, 1  ;;  %v1985_v60 = vsel %vm1729_vm9, %v11062_v59, %v1857_v19  ;;  %v8254_v47 = vsel %vm2880_vm0, %v1984_v39, -1e+30  ;;  %v1986_v52 = vsel %vm1730_vm8, %v11065_v62, %v1858_v50  ;;  %v437_v59 = vld [vmem:[%s6366_s7 + $0x340] sm:$0xff] }
 0x36b   : > { %v3282_v23 = vmax.f32 %v3275_v44, %v3280_v18  ;;  %11069 = vst [vmem:[#allocation48_spill] sm:$0xff] %v8254_v47  ;;  %v3281_v44 = vsel %vm3174_vm1, %v8246_v56, -inf  ;;  %v11071_v18 = vld [vmem:[#allocation115_spill] sm:$0xff]  ;;  %v8262_v40 = vsel %vm2881_vm5, %v1985_v60, -1e+30  ;;  %v3283_v39 = vsel %vm3174_vm1, %v8254_v47, -inf }
 0x36c   : > { %v1860_v17 = vmul.f32 0.01, %v11071_v18  ;;  %11072 = vst [vmem:[#allocation57_spill] sm:$0xff] %v8262_v40  ;;  %vm1732_vm6 = vcmp.gt.f32.partialorder %v11071_v18, 0.0 }
 0x36d   : > { %v8227_v55 = vpop.f32.mrf.mxu1  ;;  %v3284_v38 = vmax.f32 %v3277_v21, %v3282_v23  ;;  %v11073_v21 = vld [vmem:[#allocation73_spill] sm:$0xff]  ;;  %v1987_v23 = vsel %vm1731_vm13, %v11068_v8, %v1859_v43 }
 0x36e   : > { %vm2883_vm10 = vcmp.eq.s32.totalorder %v11073_v21, 1  ;;  %v1988_v60 = vsel %vm1732_vm6, %v11071_v18, %v1860_v17  ;;  %vm1784_vm6 = vcmp.gt.f32.partialorder %v7955_v29, 0.0 }
 0x36f   : > { %v3286_v31 = vmax.f32 %v3279_v0, %v3284_v38  ;;  %v3285_v0 = vsel %vm3174_vm1, %v8262_v40, -inf  ;;  %v11076_v38 = vld [vmem:[#allocation121_spill] sm:$0xff]  ;;  %v8281_v47 = vsel %vm2883_vm10, %v1987_v23, -1e+30 }
 0x370   : > { %5591 = vmatmul.msk.f32.gmra.mxu1 %vm485_vm4, %v436_v26  ;;  %v11070_v26 = vld [vmem:[#allocation63_spill] sm:$0xff]  ;;  %v1862_v54 = vmul.f32 0.01, %v11076_v38  ;;  %11077 = vst [vmem:[#allocation61_spill] sm:$0xff] %v8281_v47  ;;  %vm1734_vm14 = vcmp.gt.f32.partialorder %v11076_v38, 0.0  ;;  %v8284_v43 = vpop.f32.mrf.mxu2 }
 0x371   : > { %vm2882_vm12 = vcmp.eq.s32.totalorder %v11070_v26, 1  ;;  %v11074_v26 = vld [vmem:[#allocation119_spill] sm:$0xff]  ;;  %v3288_v62 = vmax.f32 %v3281_v44, %v3286_v31  ;;  %v11078_v31 = vld [vmem:[#allocation66_spill] sm:$0xff] }
 0x372   : > { %v1861_v56 = vmul.f32 0.01, %v11074_v26  ;;  %v8273_v50 = vsel %vm2882_vm12, %v1986_v52, -1e+30  ;;  %vm1733_vm11 = vcmp.gt.f32.partialorder %v11074_v26, 0.0  ;;  %vm2884_vm15 = vcmp.eq.s32.totalorder %v11078_v31, 1 }
 0x373   : > { %11075 = vst [vmem:[#allocation41_spill] sm:$0xff] %v8273_v50  ;;  %v3290_v21 = vmax.f32 %v3283_v39, %v3288_v62  ;;  %v3287_v8 = vsel %vm3174_vm1, %v8273_v50, -inf  ;;  %v11079_v52 = vld [vmem:[#allocation125_spill] sm:$0xff]  ;;  %v8291_v40 = vsel %vm2884_vm15, %v1988_v60, -1e+30  ;;  %v3289_v39 = vsel %vm3174_vm1, %v8281_v47, -inf }
 0x374   : > { %v1989_v44 = vsel %vm1733_vm11, %v11074_v26, %v1861_v56  ;;  %v1863_v18 = vmul.f32 0.01, %v11079_v52  ;;  %11080 = vst [vmem:[#allocation42_spill] sm:$0xff] %v8291_v40  ;;  %vm1735_vm9 = vcmp.gt.f32.partialorder %v11079_v52, 0.0  ;;  %v1990_v23 = vsel %vm1734_vm14, %v11076_v38, %v1862_v54  ;;  %v11082_v62 = vld [vmem:[#allocation129_spill] sm:$0xff]  ;;  %v11086_v54 = vld [vmem:[#allocation71_spill] sm:$0xff] }
 0x375   : > { %v8265_v19 = vpop.f32.mrf.mxu1  ;;  %v3292_v17 = vmax.f32 %v3285_v0, %v3290_v21  ;;  %v1864_v31 = vmul.f32 0.01, %v11082_v62  ;;  %vm1736_vm8 = vcmp.gt.f32.partialorder %v11082_v62, 0.0  ;;  %v438_v26 = vld [vmem:[%s6366_s7 + $0x348] sm:$0xff]  ;;  %v3291_v60 = vsel %vm3174_vm1, %v8291_v40, -inf  ;;  %v11133_v40 = vld [vmem:[#allocation80_spill] sm:$0xff] }
 0x376   : > { %v11084_v0 = vld [vmem:[#allocation77_spill] sm:$0xff]  ;;  %v1991_v21 = vsel %vm1735_vm9, %v11079_v52, %v1863_v18  ;;  %vm2887_vm13 = vcmp.eq.s32.totalorder %v11086_v54, 1  ;;  %v1912_v52 = vmul.f32 0.01, %v7955_v29  ;;  %v11089_v18 = vld [vmem:[#allocation132_spill] sm:$0xff]  ;;  %vm1787_vm15 = vcmp.gt.f32.partialorder %v8097_v34, 0.0 }
 0x377   : > { %v3294_v49 = vmax.f32 %v3287_v8, %v3292_v17  ;;  %vm2886_vm5 = vcmp.eq.s32.totalorder %v11084_v0, 1  ;;  %v1992_v8 = vsel %vm1736_vm8, %v11082_v62, %v1864_v31  ;;  %v8316_v17 = vsel %vm2887_vm13, %v1991_v21, -1e+30  ;;  %v11088_v0 = vld [vmem:[#allocation72_spill] sm:$0xff] }
 0x378   : > { %5592 = vmatmul.msk.f32.gmra.mxu1 %vm485_vm4, %v437_v59  ;;  %v11081_v59 = vld [vmem:[#allocation68_spill] sm:$0xff]  ;;  %v8309_v47 = vsel %vm2886_vm5, %v1990_v23, -1e+30  ;;  %11087 = vst [vmem:[#allocation67_spill] sm:$0xff] %v8316_v17  ;;  %vm2888_vm12 = vcmp.eq.s32.totalorder %v11088_v0, 1  ;;  %v8323_v54 = vpop.f32.mrf.mxu2  ;;  %vm1737_vm10 = vcmp.gt.f32.partialorder %v11089_v18, 0.0 }
 0x379   : > { %vm2885_vm0 = vcmp.eq.s32.totalorder %v11081_v59, 1  ;;  %v3296_v59 = vmax.f32 %v3289_v39, %v3294_v49  ;;  %11085 = vst [vmem:[#allocation52_spill] sm:$0xff] %v8309_v47  ;;  %v3295_v49 = vsel %vm3174_vm1, %v8309_v47, -inf  ;;  %v1865_v39 = vmul.f32 0.01, %v11089_v18  ;;  %v11092_v0 = vld [vmem:[#allocation82_spill] sm:$0xff] }
 0x37a   : > { %v8299_v50 = vsel %vm2885_vm0, %v1989_v44, -1e+30  ;;  %v3297_v62 = vsel %vm3174_vm1, %v8316_v17, -inf  ;;  %vm2889_vm14 = vcmp.eq.s32.totalorder %v11092_v0, 1  ;;  %v1915_v47 = vmul.f32 0.01, %v8097_v34 }
 0x37b   : > { %11083 = vst [vmem:[#allocation64_spill] sm:$0xff] %v8299_v50  ;;  %v3293_v38 = vsel %vm3174_vm1, %v8299_v50, -inf  ;;  %v3298_v44 = vmax.f32 %v3291_v60, %v3296_v59  ;;  %v8325_v50 = vsel %vm2888_vm12, %v1992_v8, -1e+30  ;;  %v439_v60 = vld [vmem:[%s6366_s7 + $0x350] sm:$0xff]  ;;  %v2040_v59 = vsel %vm1784_vm6, %v7955_v29, %v1912_v52  ;;  %v11095_v52 = vld [vmem:[#allocation144_spill] sm:$0xff] }
 0x37c   : > { %11090 = vst [vmem:[#allocation45_spill] sm:$0xff] %v8325_v50  ;;  %v3299_v21 = vsel %vm3174_vm1, %v8325_v50, -inf  ;;  %v1993_v8 = vsel %vm1737_vm10, %v11089_v18, %v1865_v39  ;;  %v1914_v29 = vmul.f32 0.01, %v8050_v20  ;;  %vm2939_vm9 = vcmp.eq.s32.totalorder %v11095_v52, 1 }
 0x37d   : > { %v8302_v56 = vpop.f32.mrf.mxu1  ;;  %v3300_v23 = vmax.f32 %v3293_v38, %v3298_v44  ;;  %v11091_v38 = vld [vmem:[#allocation140_spill] sm:$0xff]  ;;  %v8344_v17 = vsel %vm2889_vm14, %v1993_v8, -1e+30  ;;  %vm1786_vm0 = vcmp.gt.f32.partialorder %v8050_v20, 0.0  ;;  %vm1785_vm12 = vcmp.gt.f32.partialorder %v8001_v1, 0.0 }
 0x37e   : > { %vm2936_vm11 = vcmp.eq.s32.totalorder %v11091_v38, 1  ;;  %11094 = vst [vmem:[#allocation46_spill] sm:$0xff] %v8344_v17  ;;  %v3301_v39 = vsel %vm3174_vm1, %v8344_v17, -inf  ;;  %v440_v8 = vld [vmem:[%s6366_s7 + $0x358] sm:$0xff]  ;;  %v2042_v52 = vsel %vm1786_vm0, %v8050_v20, %v1914_v29  ;;  %v1918_v20 = vmul.f32 0.01, %v8238_v28 }
 0x37f   : > { %v3302_v31 = vmax.f32 %v3295_v49, %v3300_v23  ;;  %v8342_v23 = vsel %vm2936_vm11, %v2040_v59, -1e+30  ;;  %v441_v29 = vld [vmem:[%s6366_s7 + $0x360] sm:$0xff]  ;;  %vm1790_vm10 = vcmp.gt.f32.partialorder %v8238_v28, 0.0  ;;  %vm1789_vm14 = vcmp.gt.f32.partialorder %v8189_v30, 0.0 }
 0x380   : > { %5593 = vmatmul.msk.f32.gmra.mxu1 %vm485_vm4, %v438_v26  ;;  %11093 = vst [vmem:[#allocation70_spill] sm:$0xff] %v8342_v23  ;;  %v3395_v18 = vsel %vm3174_vm1, %v8342_v23, -inf  ;;  %v11098_v23 = vld [vmem:[#allocation143_spill] sm:$0xff] }
 0x381   : > { %v3304_v44 = vmax.f32 %v3297_v62, %v3302_v31  ;;  %v2043_v62 = vsel %vm1787_vm15, %v8097_v34, %v1915_v47  ;;  %v11096_v31 = vld [vmem:[#allocation136_spill] sm:$0xff]  ;;  %vm2938_vm5 = vcmp.eq.s32.totalorder %v11098_v23, 1  ;;  %v11099_v47 = vld [vmem:[#allocation75_spill] sm:$0xff] }
 0x382   : > { %vm1738_vm8 = vcmp.gt.f32.partialorder %v11096_v31, 0.0  ;;  %v8362_v0 = vsel %vm2939_vm9, %v2043_v62, -1e+30  ;;  %vm2890_vm13 = vcmp.eq.s32.totalorder %v11099_v47, 1  ;;  %v8372_v50 = vsel %vm2938_vm5, %v2042_v52, -1e+30 }
 0x383   : > { %v3306_v49 = vmax.f32 %v3299_v21, %v3304_v44  ;;  %v8355_v21 = vpop.f32.mrf.mxu2  ;;  %11097 = vst [vmem:[#allocation74_spill] sm:$0xff] %v8362_v0  ;;  %v3399_v62 = vsel %vm3174_vm1, %v8372_v50, -inf  ;;  %v1917_v47 = vmul.f32 0.01, %v8189_v30 }
 0x384   : > { %11100 = vst [vmem:[#allocation56_spill] sm:$0xff] %v8372_v50  ;;  %v1916_v50 = vmul.f32 0.01, %v8143_v51 }
 0x385   : > { %v8331_v26 = vpop.f32.mrf.mxu1  ;;  %v3308_v59 = vmax.f32 %v3395_v18, %v3306_v49  ;;  %v1913_v49 = vmul.f32 0.01, %v8001_v1  ;;  %v3401_v18 = vsel %vm3174_vm1, %v8362_v0, -inf  ;;  %v11104_v0 = vld [vmem:[#allocation149_spill] sm:$0xff] }
 0x386   : > { %vm2942_vm11 = vcmp.eq.s32.totalorder %v11104_v0, 1 }
 0x387   : > { %v3310_v44 = vmax.f32 %v3301_v39, %v3308_v59  ;;  %v11102_v59 = vld [vmem:[#allocation151_spill] sm:$0xff] }
 0x388   : > { %5594 = vmatmul.msk.f32.gmra.mxu1 %vm485_vm4, %v439_v60  ;;  %v1866_v60 = vmul.f32 0.01, %v11096_v31  ;;  %vm2937_vm6 = vcmp.eq.s32.totalorder %v11102_v59, 1 }
 0x389   : > { %v3312_v17 = vmax.f32 %v3401_v18, %v3310_v44  ;;  %v2046_v18 = vsel %vm1790_vm10, %v8238_v28, %v1918_v20  ;;  %v2045_v28 = vsel %vm1789_vm14, %v8189_v30, %v1917_v47  ;;  %v11107_v20 = vld [vmem:[#allocation148_spill] sm:$0xff] }
 0x38a   : > { %v1994_v34 = vsel %vm1738_vm8, %v11096_v31, %v1866_v60  ;;  %v2041_v60 = vsel %vm1785_vm12, %v8001_v1, %v1913_v49  ;;  %v11105_v49 = vld [vmem:[#allocation138_spill] sm:$0xff]  ;;  %v8400_v59 = vsel %vm2942_vm11, %v2046_v18, -1e+30  ;;  %vm2941_vm9 = vcmp.eq.s32.totalorder %v11107_v20, 1  ;;  %v11111_v20 = vld [vmem:[#allocation156_spill] sm:$0xff] }
 0x38b   : > { %v8374_v39 = vsel %vm2890_vm13, %v1994_v34, -1e+30  ;;  %v3314_v44 = vmax.f32 %v3399_v62, %v3312_v17  ;;  %v8391_v34 = vsel %vm2937_vm6, %v2041_v60, -1e+30  ;;  %v1867_v17 = vmul.f32 0.01, %v11105_v49 }
 0x38c   : > { %11101 = vst [vmem:[#allocation78_spill] sm:$0xff] %v8374_v39  ;;  %v3303_v31 = vsel %vm3174_vm1, %v8374_v39, -inf  ;;  %v3397_v1 = vsel %vm3174_vm1, %v8391_v34, -inf  ;;  %vm1739_vm15 = vcmp.gt.f32.partialorder %v11105_v49, 0.0  ;;  %v3407_v0 = vsel %vm3174_vm1, %v8400_v59, -inf }
 0x38d   : > { %v8359_v38 = vpop.f32.mrf.mxu1  ;;  %v3316_v52 = vmax.f32 %v3303_v31, %v3314_v44  ;;  %11103 = vst [vmem:[#allocation49_spill] sm:$0xff] %v8391_v34  ;;  %v442_v31 = vld [vmem:[%s6366_s7 + $0x368] sm:$0xff]  ;;  %v1995_v60 = vsel %vm1739_vm15, %v11105_v49, %v1867_v17  ;;  %v8414_v18 = vsel %vm2941_vm9, %v2045_v28, -1e+30  ;;  %vm1788_vm8 = vcmp.gt.f32.partialorder %v8143_v51, 0.0  ;;  %v443_v17 = vld [vmem:[%s6366_s7 + $0x370] sm:$0xff] }
 0x38e   : > { %11106 = vst [vmem:[#allocation81_spill] sm:$0xff] %v8400_v59  ;;  %v3405_v30 = vsel %vm3174_vm1, %v8414_v18, -inf  ;;  %v2044_v28 = vsel %vm1788_vm8, %v8143_v51, %v1916_v50  ;;  %vm2940_vm5 = vcmp.eq.s32.totalorder %v11111_v20, 1  ;;  %vm1793_vm13 = vcmp.gt.f32.partialorder %v8355_v21, 0.0  ;;  %v11114_v50 = vld [vmem:[#allocation142_spill] sm:$0xff] }
 0x38f   : > { %v3318_v62 = vmax.f32 %v3397_v1, %v3316_v52  ;;  %11108 = vst [vmem:[#allocation51_spill] sm:$0xff] %v8414_v18  ;;  %v11109_v1 = vld [vmem:[#allocation76_spill] sm:$0xff]  ;;  %vm1792_vm6 = vcmp.gt.f32.partialorder %v8323_v54, 0.0  ;;  %v1868_v20 = vmul.f32 0.01, %v11114_v50  ;;  %vm1740_vm10 = vcmp.gt.f32.partialorder %v11114_v50, 0.0 }
 0x390   : > { %5595 = vmatmul.msk.f32.gmra.mxu1 %vm485_vm4, %v440_v8  ;;  %v8387_v8 = vpop.f32.mrf.mxu2  ;;  %vm2891_vm0 = vcmp.eq.s32.totalorder %v11109_v1, 1  ;;  %vm1791_vm15 = vcmp.gt.f32.partialorder %v8284_v43, 0.0 }
 0x391   : > { %v3320_v52 = vmax.f32 %v3407_v0, %v3318_v62  ;;  %v8418_v34 = vsel %vm2891_vm0, %v1995_v60, -1e+30  ;;  %v8433_v60 = vsel %vm2940_vm5, %v2044_v28, -1e+30  ;;  %v1996_v28 = vsel %vm1740_vm10, %v11114_v50, %v1868_v20 }
 0x392   : > { %11110 = vst [vmem:[#allocation84_spill] sm:$0xff] %v8418_v34  ;;  %v3305_v62 = vsel %vm3174_vm1, %v8418_v34, -inf  ;;  %v3403_v51 = vsel %vm3174_vm1, %v8433_v60, -inf  ;;  %vm1794_vm10 = vcmp.gt.f32.partialorder %v8387_v8, 0.0 }
 0x393   : > { %v3322_v47 = vmax.f32 %v3405_v30, %v3320_v52  ;;  %11112 = vst [vmem:[#allocation60_spill] sm:$0xff] %v8433_v60  ;;  %v1920_v52 = vmul.f32 0.01, %v8323_v54  ;;  %v11113_v30 = vld [vmem:[#allocation154_spill] sm:$0xff] }
 0x394   : > { %vm2945_vm12 = vcmp.eq.s32.totalorder %v11113_v30, 1 }
 0x395   : > { %v8378_v23 = vpop.f32.mrf.mxu1  ;;  %v3324_v0 = vmax.f32 %v3305_v62, %v3322_v47 }
 0x397   : > { %v3326_v18 = vmax.f32 %v3403_v51, %v3324_v0  ;;  %v1919_v51 = vmul.f32 0.01, %v8284_v43 }
 0x398   : > { %5596 = vmatmul.msk.f32.gmra.mxu1 %vm485_vm4, %v441_v29  ;;  %v8412_v44 = vpop.f32.mrf.mxu2 }
 0x399   : > { %vm1795_vm5 = vcmp.gt.f32.partialorder %v8412_v44, 0.0 }
 0x39d   : > { %v8403_v29 = vpop.f32.mrf.mxu1 }
 0x3a0   : > { %5597 = vmatmul.msk.f32.gmra.mxu1 %vm485_vm4, %v442_v31  ;;  %v1921_v31 = vmul.f32 0.01, %v8355_v21  ;;  %v1660_v59 = vpop.f32.mrf.mxu2 }
 0x3a1   : > { %v1924_v20 = vmul.f32 0.01, %v1660_v59  ;;  %vm1796_vm0 = vcmp.gt.f32.partialorder %v1660_v59, 0.0 }
 0x3a2   : > { %v2049_v1 = vsel %vm1793_vm13, %v8355_v21, %v1921_v31  ;;  %v2048_v21 = vsel %vm1792_vm6, %v8323_v54, %v1920_v52  ;;  %v11116_v31 = vld [vmem:[#allocation153_spill] sm:$0xff] }
 0x3a3   : > { %v8442_v34 = vsel %vm2945_vm12, %v2049_v1, -1e+30  ;;  %vm2944_vm11 = vcmp.eq.s32.totalorder %v11116_v31, 1  ;;  %v11118_v1 = vld [vmem:[#allocation86_spill] sm:$0xff] }
 0x3a4   : > { %11115 = vst [vmem:[#allocation87_spill] sm:$0xff] %v8442_v34  ;;  %v3413_v62 = vsel %vm3174_vm1, %v8442_v34, -inf  ;;  %v8454_v0 = vsel %vm2944_vm11, %v2048_v21, -1e+30  ;;  %vm2892_vm14 = vcmp.eq.s32.totalorder %v11118_v1, 1  ;;  %v11120_v21 = vld [vmem:[#allocation161_spill] sm:$0xff]  ;;  %v2052_v34 = vsel %vm1796_vm0, %v1660_v59, %v1924_v20 }
 0x3a5   : > { %v8423_v49 = vpop.f32.mrf.mxu1  ;;  %v3328_v30 = vmax.f32 %v3413_v62, %v3326_v18  ;;  %11117 = vst [vmem:[#allocation54_spill] sm:$0xff] %v8454_v0  ;;  %v8458_v60 = vsel %vm2892_vm14, %v1996_v28, -1e+30  ;;  %v3411_v54 = vsel %vm3174_vm1, %v8454_v0, -inf  ;;  %vm2943_vm9 = vcmp.eq.s32.totalorder %v11120_v21, 1  ;;  %v11123_v0 = vld [vmem:[#allocation146_spill] sm:$0xff] }
 0x3a6   : > { %11119 = vst [vmem:[#allocation91_spill] sm:$0xff] %v8458_v60  ;;  %v3307_v18 = vsel %vm3174_vm1, %v8458_v60, -inf  ;;  %v1923_v1 = vmul.f32 0.01, %v8412_v44  ;;  %v1869_v60 = vmul.f32 0.01, %v11123_v0 }
 0x3a7   : > { %v3330_v52 = vmax.f32 %v3411_v54, %v3328_v30  ;;  %v11122_v30 = vld [vmem:[#allocation159_spill] sm:$0xff]  ;;  %vm1741_vm13 = vcmp.gt.f32.partialorder %v11123_v0, 0.0  ;;  %vm2894_vm0 = vcmp.eq.s32.totalorder %v11133_v40, 1 }
 0x3a8   : > { %5598 = vmatmul.msk.f32.gmra.mxu1 %vm485_vm4, %v443_v17  ;;  %v444_v17 = vld [vmem:[%s6366_s7 + $0x378] sm:$0xff]  ;;  %v8463_v31 = vpop.f32.mrf.mxu2  ;;  %vm2948_vm8 = vcmp.eq.s32.totalorder %v11122_v30, 1 }
 0x3a9   : > { %v3332_v62 = vmax.f32 %v3307_v18, %v3330_v52  ;;  %v2051_v52 = vsel %vm1795_vm5, %v8412_v44, %v1923_v1  ;;  %v11125_v18 = vld [vmem:[#allocation160_spill] sm:$0xff] }
 0x3aa   : > { %vm2947_vm12 = vcmp.eq.s32.totalorder %v11125_v18, 1 }
 0x3ab   : > { %v8489_v30 = vsel %vm2947_vm12, %v2051_v52, -1e+30  ;;  %v11130_v52 = vld [vmem:[#allocation150_spill] sm:$0xff] }
 0x3ac   : > { %11126 = vst [vmem:[#allocation65_spill] sm:$0xff] %v8489_v30  ;;  %v3417_v44 = vsel %vm3174_vm1, %v8489_v30, -inf }
 0x3ad   : > { %v8445_v47 = vpop.f32.mrf.mxu1 }
 0x3b0   : > { %5599 = vmatmul.msk.f32.gmra.mxu1 %vm485_vm4, %v444_v17  ;;  %v2047_v17 = vsel %vm1791_vm15, %v8284_v43, %v1919_v51  ;;  %v8479_v43 = vsel %vm2948_vm8, %v2052_v34, -1e+30  ;;  %v1666_v59 = vpop.f32.mrf.mxu2  ;;  %v1922_v34 = vmul.f32 0.01, %v8387_v8  ;;  %vm1742_vm15 = vcmp.gt.f32.partialorder %v11130_v52, 0.0 }
 0x3b1   : > { %v8471_v28 = vsel %vm2943_vm9, %v2047_v17, -1e+30  ;;  %11124 = vst [vmem:[#allocation95_spill] sm:$0xff] %v8479_v43  ;;  %v3419_v20 = vsel %vm3174_vm1, %v8479_v43, -inf  ;;  %v1997_v17 = vsel %vm1741_vm13, %v11123_v0, %v1869_v60  ;;  %v1926_v18 = vmul.f32 0.01, %v1666_v59 }
 0x3b2   : > { %11121 = vst [vmem:[#allocation55_spill] sm:$0xff] %v8471_v28  ;;  %v3409_v54 = vsel %vm3174_vm1, %v8471_v28, -inf  ;;  %v2050_v60 = vsel %vm1794_vm10, %v8387_v8, %v1922_v34  ;;  %v11129_v0 = vld [vmem:[#allocation168_spill] sm:$0xff]  ;;  %vm1798_vm14 = vcmp.gt.f32.partialorder %v1666_v59, 0.0  ;;  %vm1797_vm13 = vcmp.gt.f32.partialorder %v8463_v31, 0.0 }
 0x3b3   : > { %v3334_v39 = vmax.f32 %v3409_v54, %v3332_v62  ;;  %v11127_v62 = vld [vmem:[#allocation79_spill] sm:$0xff]  ;;  %vm2946_vm11 = vcmp.eq.s32.totalorder %v11129_v0, 1  ;;  %vm2949_vm10 = vcmp.eq.s32.totalorder %v7699_v25, 1 }
 0x3b4   : > { %vm2893_vm6 = vcmp.eq.s32.totalorder %v11127_v62, 1  ;;  %v8506_v62 = vsel %vm2946_vm11, %v2050_v60, -1e+30 }
 0x3b5   : > { %v8465_v50 = vpop.f32.mrf.mxu1  ;;  %v3336_v21 = vmax.f32 %v3419_v20, %v3334_v39  ;;  %v8493_v54 = vsel %vm2893_vm6, %v1997_v17, -1e+30  ;;  %v1870_v20 = vmul.f32 0.01, %v11130_v52  ;;  %11131 = vst [vmem:[#allocation58_spill] sm:$0xff] %v8506_v62  ;;  %v3415_v8 = vsel %vm3174_vm1, %v8506_v62, -inf }
 0x3b6   : > { %11128 = vst [vmem:[#allocation98_spill] sm:$0xff] %v8493_v54  ;;  %v3309_v39 = vsel %vm3174_vm1, %v8493_v54, -inf }
 0x3b7   : > { %v3338_v1 = vmax.f32 %v3417_v44, %v3336_v21  ;;  %v2054_v21 = vsel %vm1798_vm14, %v1666_v59, %v1926_v18  ;;  %v11132_v44 = vld [vmem:[#allocation165_spill] sm:$0xff]  ;;  %v1998_v30 = vsel %vm1742_vm15, %v11130_v52, %v1870_v20  ;;  %v1925_v59 = vmul.f32 0.01, %v8463_v31  ;;  %v11136_v18 = vld [vmem:[#allocation164_spill] sm:$0xff]  ;;  %v11137_v52 = vld [vmem:[#allocation155_spill] sm:$0xff] }
 0x3b8   : > { %v1669_v43 = vpop.f32.mrf.mxu2  ;;  %vm2950_vm9 = vcmp.eq.s32.totalorder %v11132_v44, 1  ;;  %v8515_v48 = vsel %vm2894_vm0, %v1998_v30, -1e+30  ;;  %vm2951_vm5 = vcmp.eq.s32.totalorder %v11136_v18, 1  ;;  %v1871_v20 = vmul.f32 0.01, %v11137_v52 }
 0x3b9   : > { %v3340_v17 = vmax.f32 %v3309_v39, %v3338_v1  ;;  %v1927_v34 = vmul.f32 0.01, %v1669_v43  ;;  %v8513_v54 = vsel %vm2950_vm9, %v2054_v21, -1e+30  ;;  %11135 = vst [vmem:[#allocation59_spill] sm:$0xff] %v8515_v48  ;;  %vm1799_vm8 = vcmp.gt.f32.partialorder %v1669_v43, 0.0 }
 0x3ba   : > { %11134 = vst [vmem:[#allocation102_spill] sm:$0xff] %v8513_v54  ;;  %v3423_v39 = vsel %vm3174_vm1, %v8513_v54, -inf  ;;  %v3311_v40 = vsel %vm3174_vm1, %v8515_v48, -inf  ;;  %vm1743_vm12 = vcmp.gt.f32.partialorder %v11137_v52, 0.0  ;;  %v11138_v30 = vld [vmem:[#allocation157_spill] sm:$0xff]  ;;  %v2053_v18 = vsel %vm1797_vm13, %v8463_v31, %v1925_v59 }
 0x3bb   : > { %v3348_v0 = vmax.f32 %v3340_v17, %v3415_v8  ;;  %v2055_v60 = vsel %vm1799_vm8, %v1669_v43, %v1927_v34  ;;  %v1872_v21 = vmul.f32 0.01, %v11138_v30  ;;  %vm1744_vm6 = vcmp.gt.f32.partialorder %v11138_v30, 0.0  ;;  %v11140_v34 = vld [vmem:[#allocation162_spill] sm:$0xff]  ;;  %v11146_v48 = vld [vmem:[#allocation85_spill] sm:$0xff] }
 0x3bc   : > { %v8529_v8 = vsel %vm2951_vm5, %v2055_v60, -1e+30  ;;  %v1999_v43 = vsel %vm1743_vm12, %v11137_v52, %v1871_v20  ;;  %v1873_v54 = vmul.f32 0.01, %v11140_v34  ;;  %vm1745_vm11 = vcmp.gt.f32.partialorder %v11140_v34, 0.0  ;;  %v11145_v52 = vld [vmem:[#allocation83_spill] sm:$0xff] }
 0x3bd   : > { %v8482_v51 = vpop.f32.mrf.mxu1  ;;  %v3342_v17 = vmax.f32 %v3423_v39, %v3348_v0  ;;  %11139 = vst [vmem:[#allocation104_spill] sm:$0xff] %v8529_v8  ;;  %v11141_v39 = vld [vmem:[#allocation90_spill] sm:$0xff]  ;;  %v2000_v60 = vsel %vm1744_vm6, %v11138_v30, %v1872_v21  ;;  %v8544_v59 = vsel %vm2949_vm10, %v2053_v18, -1e+30  ;;  %vm2896_vm9 = vcmp.eq.s32.totalorder %v11145_v52, 1 }
 0x3be   : > { %vm2895_vm14 = vcmp.eq.s32.totalorder %v11141_v39, 1  ;;  %11143 = vst [vmem:[#allocation69_spill] sm:$0xff] %v8544_v59  ;;  %v2001_v20 = vsel %vm1745_vm11, %v11140_v34, %v1873_v54  ;;  %v1875_v39 = vmul.f32 0.01, %v7694_v41  ;;  %vm2897_vm0 = vcmp.eq.s32.totalorder %v11146_v48, 1  ;;  %v11149_v48 = vld [vmem:[#allocation94_spill] sm:$0xff] }
 0x3bf   : > { %v3350_v44 = vmax.f32 %v3342_v17, %v3311_v40  ;;  %v3425_v40 = vsel %vm3174_vm1, %v8529_v8, -inf  ;;  %v11142_v17 = vld [vmem:[#allocation169_spill] sm:$0xff]  ;;  %v8546_v25 = vsel %vm2895_vm14, %v1999_v43, -1e+30  ;;  %v8553_v8 = vsel %vm2896_vm9, %v2000_v60, -1e+30 }
 0x3c0   : > { %v1874_v62 = vmul.f32 0.01, %v11142_v17  ;;  %11144 = vst [vmem:[#allocation108_spill] sm:$0xff] %v8546_v25  ;;  %vm1746_vm15 = vcmp.gt.f32.partialorder %v11142_v17, 0.0  ;;  %vm1747_vm8 = vcmp.gt.f32.partialorder %v7694_v41, 0.0  ;;  %v3421_v30 = vsel %vm3174_vm1, %v8544_v59, -inf }
 0x3c1   : > { %v3344_v31 = vmax.f32 %v3425_v40, %v3350_v44  ;;  %11147 = vst [vmem:[#allocation62_spill] sm:$0xff] %v8553_v8  ;;  %v3313_v21 = vsel %vm3174_vm1, %v8546_v25, -inf  ;;  %v1876_v18 = vmul.f32 0.01, %v7776_v45  ;;  %v8562_v54 = vsel %vm2897_vm0, %v2001_v20, -1e+30 }
 0x3c2   : > { %v2002_v44 = vsel %vm1746_vm15, %v11142_v17, %v1874_v62  ;;  %11148 = vst [vmem:[#allocation112_spill] sm:$0xff] %v8562_v54  ;;  %vm1748_vm5 = vcmp.gt.f32.partialorder %v7776_v45, 0.0  ;;  %vm2898_vm13 = vcmp.eq.s32.totalorder %v11149_v48, 1  ;;  %v3315_v34 = vsel %vm3174_vm1, %v8553_v8, -inf  ;;  %v11151_v17 = vld [vmem:[#allocation88_spill] sm:$0xff] }
 0x3c3   : > { %v3352_v43 = vmax.f32 %v3344_v31, %v3421_v30  ;;  %v2003_v40 = vsel %vm1747_vm8, %v7694_v41, %v1875_v39  ;;  %v1877_v60 = vmul.f32 0.01, %v7836_v4  ;;  %v8570_v59 = vsel %vm2898_vm13, %v2002_v44, -1e+30  ;;  %v11153_v39 = vld [vmem:[#allocation89_spill] sm:$0xff] }
 0x3c4   : > { %11150 = vst [vmem:[#allocation63_spill] sm:$0xff] %v8570_v59  ;;  %vm1749_vm12 = vcmp.gt.f32.partialorder %v7836_v4, 0.0  ;;  %vm2899_vm6 = vcmp.eq.s32.totalorder %v11151_v17, 1  ;;  %v3317_v31 = vsel %vm3174_vm1, %v8562_v54, -inf  ;;  %v2004_v20 = vsel %vm1748_vm5, %v7776_v45, %v1876_v18  ;;  %v11155_v45 = vld [vmem:[#allocation99_spill] sm:$0xff] }
 0x3c5   : > { %v8498_v28 = vpop.f32.mrf.mxu1  ;;  %v3346_v52 = vmax.f32 %v3313_v21, %v3352_v43  ;;  %v1878_v30 = vmul.f32 0.01, %v7892_v33  ;;  %v8580_v41 = vsel %vm2899_vm6, %v2003_v40, -1e+30  ;;  %vm1750_vm10 = vcmp.gt.f32.partialorder %v7892_v33, 0.0 }
 0x3c6   : > { %11152 = vst [vmem:[#allocation115_spill] sm:$0xff] %v8580_v41  ;;  %vm2900_vm11 = vcmp.eq.s32.totalorder %v11153_v39, 1  ;;  %v3319_v21 = vsel %vm3174_vm1, %v8570_v59, -inf  ;;  %v2005_v44 = vsel %vm1749_vm12, %v7836_v4, %v1877_v60  ;;  %v1879_v43 = vmul.f32 0.01, %v7929_v15  ;;  %v11157_v4 = vld [vmem:[#allocation92_spill] sm:$0xff] }
 0x3c7   : > { %v3354_v48 = vmax.f32 %v3346_v52, %v3315_v34  ;;  %v8588_v54 = vsel %vm2900_vm11, %v2004_v20, -1e+30  ;;  %vm1751_vm14 = vcmp.gt.f32.partialorder %v7929_v15, 0.0  ;;  %vm2901_vm15 = vcmp.eq.s32.totalorder %v11155_v45, 1 }
 0x3c8   : > { %11154 = vst [vmem:[#allocation73_spill] sm:$0xff] %v8588_v54  ;;  %v3321_v18 = vsel %vm3174_vm1, %v8580_v41, -inf  ;;  %v2006_v34 = vsel %vm1750_vm10, %v7892_v33, %v1878_v30  ;;  %v1880_v40 = vmul.f32 0.01, %v7965_v22  ;;  %v8596_v39 = vsel %vm2901_vm15, %v2005_v44, -1e+30 }
 0x3c9   : > { %v3356_v17 = vmax.f32 %v3317_v31, %v3354_v48  ;;  %11156 = vst [vmem:[#allocation119_spill] sm:$0xff] %v8596_v39  ;;  %vm1752_vm9 = vcmp.gt.f32.partialorder %v7965_v22, 0.0  ;;  %vm2902_vm0 = vcmp.eq.s32.totalorder %v11157_v4, 1  ;;  %v3323_v60 = vsel %vm3174_vm1, %v8588_v54, -inf  ;;  %v11159_v30 = vld [vmem:[#allocation93_spill] sm:$0xff] }
 0x3ca   : > { %v2007_v31 = vsel %vm1751_vm14, %v7929_v15, %v1879_v43  ;;  %v1881_v20 = vmul.f32 0.01, %v8003_v2  ;;  %v8604_v45 = vsel %vm2902_vm0, %v2006_v34, -1e+30  ;;  %vm1753_vm8 = vcmp.gt.f32.partialorder %v8003_v2, 0.0  ;;  %v11161_v43 = vld [vmem:[#allocation103_spill] sm:$0xff] }
 0x3cb   : > { %v3358_v52 = vmax.f32 %v3319_v21, %v3356_v17  ;;  %11158 = vst [vmem:[#allocation121_spill] sm:$0xff] %v8604_v45  ;;  %vm2903_vm5 = vcmp.eq.s32.totalorder %v11159_v30, 1  ;;  %v3325_v21 = vsel %vm3174_vm1, %v8596_v39, -inf  ;;  %v2008_v44 = vsel %vm1752_vm9, %v7965_v22, %v1880_v40  ;;  %v11163_v22 = vld [vmem:[#allocation96_spill] sm:$0xff] }
 0x3cc   : > { %v1882_v17 = vmul.f32 0.01, %v8039_v24  ;;  %v8614_v15 = vsel %vm2903_vm5, %v2007_v31, -1e+30  ;;  %vm1754_vm13 = vcmp.gt.f32.partialorder %v8039_v24, 0.0  ;;  %vm2904_vm12 = vcmp.eq.s32.totalorder %v11161_v43, 1 }
 0x3cd   : > { %v8517_v1 = vpop.f32.mrf.mxu1  ;;  %v3360_v48 = vmax.f32 %v3321_v18, %v3358_v52  ;;  %11160 = vst [vmem:[#allocation66_spill] sm:$0xff] %v8614_v15  ;;  %v3327_v18 = vsel %vm3174_vm1, %v8604_v45, -inf  ;;  %v2009_v34 = vsel %vm1753_vm8, %v8003_v2, %v1881_v20  ;;  %v1883_v52 = vmul.f32 0.01, %v8077_v16  ;;  %v11165_v2 = vld [vmem:[#allocation97_spill] sm:$0xff] }
 0x3ce   : > { %v8622_v39 = vsel %vm2904_vm12, %v2008_v44, -1e+30  ;;  %vm1755_vm6 = vcmp.gt.f32.partialorder %v8077_v16, 0.0  ;;  %vm2905_vm10 = vcmp.eq.s32.totalorder %v11163_v22, 1  ;;  %v3329_v40 = vsel %vm3174_vm1, %v8614_v15, -inf }
 0x3cf   : > { %v3362_v4 = vmax.f32 %v3323_v60, %v3360_v48  ;;  %11162 = vst [vmem:[#allocation125_spill] sm:$0xff] %v8622_v39  ;;  %v2010_v60 = vsel %vm1754_vm13, %v8039_v24, %v1882_v17  ;;  %v1884_v31 = vmul.f32 0.01, %v8115_v63  ;;  %v8630_v43 = vsel %vm2905_vm10, %v2009_v34, -1e+30  ;;  %v11167_v17 = vld [vmem:[#allocation107_spill] sm:$0xff] }
 0x3d0   : > { %11164 = vst [vmem:[#allocation68_spill] sm:$0xff] %v8630_v43  ;;  %vm1756_vm11 = vcmp.gt.f32.partialorder %v8115_v63, 0.0  ;;  %vm2906_vm14 = vcmp.eq.s32.totalorder %v11165_v2, 1  ;;  %v3331_v20 = vsel %vm3174_vm1, %v8622_v39, -inf  ;;  %v1885_v44 = vmul.f32 0.01, %v8153_v57 }
 0x3d1   : > { %v3364_v30 = vmax.f32 %v3325_v21, %v3362_v4  ;;  %v2011_v21 = vsel %vm1755_vm6, %v8077_v16, %v1883_v52  ;;  %v8638_v22 = vsel %vm2906_vm14, %v2010_v60, -1e+30  ;;  %vm1757_vm15 = vcmp.gt.f32.partialorder %v8153_v57, 0.0  ;;  %v11169_v52 = vld [vmem:[#allocation100_spill] sm:$0xff] }
 0x3d2   : > { %11166 = vst [vmem:[#allocation129_spill] sm:$0xff] %v8638_v22  ;;  %vm2907_vm9 = vcmp.eq.s32.totalorder %v11167_v17, 1  ;;  %v2012_v34 = vsel %vm1756_vm11, %v8115_v63, %v1884_v31  ;;  %vm1758_vm0 = vcmp.gt.f32.partialorder %v8191_v37, 0.0  ;;  %vm2908_vm8 = vcmp.eq.s32.totalorder %v11169_v52, 1  ;;  %v11171_v63 = vld [vmem:[#allocation101_spill] sm:$0xff] }
 0x3d3   : > { %v3366_v48 = vmax.f32 %v3327_v18, %v3364_v30  ;;  %v3333_v18 = vsel %vm3174_vm1, %v8630_v43, -inf  ;;  %v1886_v30 = vmul.f32 0.01, %v8191_v37  ;;  %v8648_v16 = vsel %vm2907_vm9, %v2011_v21, -1e+30 }
 0x3d4   : > { %11168 = vst [vmem:[#allocation77_spill] sm:$0xff] %v8648_v16  ;;  %v2013_v60 = vsel %vm1757_vm15, %v8153_v57, %v1885_v44  ;;  %v8656_v43 = vsel %vm2908_vm8, %v2012_v34, -1e+30  ;;  %vm1759_vm5 = vcmp.gt.f32.partialorder %v8227_v55, 0.0  ;;  %vm2909_vm13 = vcmp.eq.s32.totalorder %v11171_v63, 1  ;;  %v11173_v57 = vld [vmem:[#allocation111_spill] sm:$0xff] }
 0x3d5   : > { %v8537_v0 = vpop.f32.mrf.mxu1  ;;  %v3368_v4 = vmax.f32 %v3329_v40, %v3366_v48  ;;  %v3335_v40 = vsel %vm3174_vm1, %v8638_v22, -inf  ;;  %v1887_v48 = vmul.f32 0.01, %v8227_v55  ;;  %11170 = vst [vmem:[#allocation71_spill] sm:$0xff] %v8656_v43  ;;  %v3337_v31 = vsel %vm3174_vm1, %v8648_v16, -inf }
 0x3d6   : > { %v1888_v21 = vmul.f32 0.01, %v8265_v19  ;;  %v8664_v52 = vsel %vm2909_vm13, %v2013_v60, -1e+30  ;;  %vm1760_vm12 = vcmp.gt.f32.partialorder %v8265_v19, 0.0  ;;  %vm2910_vm6 = vcmp.eq.s32.totalorder %v11173_v57, 1 }
 0x3d7   : > { %v3370_v2 = vmax.f32 %v3331_v20, %v3368_v4  ;;  %v2014_v20 = vsel %vm1758_vm0, %v8191_v37, %v1886_v30  ;;  %11172 = vst [vmem:[#allocation72_spill] sm:$0xff] %v8664_v52  ;;  %v3339_v44 = vsel %vm3174_vm1, %v8656_v43, -inf  ;;  %v1889_v34 = vmul.f32 0.01, %v8302_v56  ;;  %v11175_v30 = vld [vmem:[#allocation105_spill] sm:$0xff] }
 0x3d8   : > { %v8672_v63 = vsel %vm2910_vm6, %v2014_v20, -1e+30  ;;  %vm1761_vm10 = vcmp.gt.f32.partialorder %v8302_v56, 0.0  ;;  %vm2911_vm11 = vcmp.eq.s32.totalorder %v11175_v30, 1  ;;  %v2016_v60 = vsel %vm1760_vm12, %v8265_v19, %v1888_v21  ;;  %v11179_v19 = vld [vmem:[#allocation116_spill] sm:$0xff] }
 0x3d9   : > { %v3372_v17 = vmax.f32 %v3333_v18, %v3370_v2  ;;  %v2015_v18 = vsel %vm1759_vm5, %v8227_v55, %v1887_v48  ;;  %11174 = vst [vmem:[#allocation132_spill] sm:$0xff] %v8672_v63  ;;  %vm1762_vm14 = vcmp.gt.f32.partialorder %v8331_v26, 0.0  ;;  %v11177_v48 = vld [vmem:[#allocation106_spill] sm:$0xff]  ;;  %v2017_v20 = vsel %vm1761_vm10, %v8302_v56, %v1889_v34  ;;  %v11181_v56 = vld [vmem:[#allocation109_spill] sm:$0xff] }
 0x3da   : > { %v8682_v55 = vsel %vm2911_vm11, %v2015_v18, -1e+30  ;;  %vm2912_vm15 = vcmp.eq.s32.totalorder %v11177_v48, 1  ;;  %vm1763_vm9 = vcmp.gt.f32.partialorder %v8359_v38, 0.0  ;;  %vm2913_vm0 = vcmp.eq.s32.totalorder %v11179_v19, 1 }
 0x3db   : > { %v3374_v4 = vmax.f32 %v3335_v40, %v3372_v17  ;;  %v3341_v40 = vsel %vm3174_vm1, %v8664_v52, -inf  ;;  %v1890_v17 = vmul.f32 0.01, %v8331_v26  ;;  %11176 = vst [vmem:[#allocation140_spill] sm:$0xff] %v8682_v55  ;;  %v8690_v52 = vsel %vm2912_vm15, %v2016_v60, -1e+30 }
 0x3dc   : > { %11178 = vst [vmem:[#allocation82_spill] sm:$0xff] %v8690_v52  ;;  %v3345_v21 = vsel %vm3174_vm1, %v8682_v55, -inf  ;;  %v1892_v18 = vmul.f32 0.01, %v8378_v23  ;;  %v8698_v48 = vsel %vm2913_vm0, %v2017_v20, -1e+30 }
 0x3dd   : > { %v8573_v62 = vpop.f32.mrf.mxu1  ;;  %v3376_v2 = vmax.f32 %v3337_v31, %v3374_v4  ;;  %v3343_v31 = vsel %vm3174_vm1, %v8672_v63, -inf  ;;  %v1891_v4 = vmul.f32 0.01, %v8359_v38  ;;  %11180 = vst [vmem:[#allocation144_spill] sm:$0xff] %v8698_v48  ;;  %vm1764_vm8 = vcmp.gt.f32.partialorder %v8378_v23, 0.0 }
 0x3de   : > { %vm2914_vm5 = vcmp.eq.s32.totalorder %v11181_v56, 1  ;;  %v3347_v34 = vsel %vm3174_vm1, %v8690_v52, -inf  ;;  %v1893_v60 = vmul.f32 0.01, %v8403_v29  ;;  %vm1765_vm13 = vcmp.gt.f32.partialorder %v8403_v29, 0.0 }
 0x3df   : > { %v3378_v57 = vmax.f32 %v3339_v44, %v3376_v2  ;;  %v2018_v44 = vsel %vm1762_vm14, %v8331_v26, %v1890_v17  ;;  %v11183_v17 = vld [vmem:[#allocation110_spill] sm:$0xff]  ;;  %v2020_v20 = vsel %vm1764_vm8, %v8378_v23, %v1892_v18  ;;  %vm1766_vm6 = vcmp.gt.f32.partialorder %v8423_v49, 0.0  ;;  %v11187_v23 = vld [vmem:[#allocation113_spill] sm:$0xff] }
 0x3e0   : > { %v8706_v19 = vsel %vm2914_vm5, %v2018_v44, -1e+30  ;;  %vm2915_vm12 = vcmp.eq.s32.totalorder %v11183_v17, 1  ;;  %v2021_v44 = vsel %vm1765_vm13, %v8403_v29, %v1893_v60  ;;  %vm1767_vm11 = vcmp.gt.f32.partialorder %v8445_v47, 0.0  ;;  %v11189_v29 = vld [vmem:[#allocation114_spill] sm:$0xff] }
 0x3e1   : > { %v3380_v30 = vmax.f32 %v3341_v40, %v3378_v57  ;;  %v2019_v40 = vsel %vm1763_vm9, %v8359_v38, %v1891_v4  ;;  %11182 = vst [vmem:[#allocation136_spill] sm:$0xff] %v8706_v19  ;;  %v11185_v4 = vld [vmem:[#allocation120_spill] sm:$0xff]  ;;  %vm2917_vm14 = vcmp.eq.s32.totalorder %v11187_v23, 1  ;;  %vm1768_vm15 = vcmp.gt.f32.partialorder %v8465_v50, 0.0 }
 0x3e2   : > { %v8716_v38 = vsel %vm2915_vm12, %v2019_v40, -1e+30  ;;  %vm2916_vm10 = vcmp.eq.s32.totalorder %v11185_v4, 1  ;;  %v1896_v40 = vmul.f32 0.01, %v8465_v50  ;;  %vm2918_vm9 = vcmp.eq.s32.totalorder %v11189_v29, 1 }
 0x3e3   : > { %v3382_v2 = vmax.f32 %v3343_v31, %v3380_v30  ;;  %v3349_v31 = vsel %vm3174_vm1, %v8698_v48, -inf  ;;  %v1894_v30 = vmul.f32 0.01, %v8423_v49  ;;  %11184 = vst [vmem:[#allocation143_spill] sm:$0xff] %v8716_v38  ;;  %v8724_v48 = vsel %vm2916_vm10, %v2020_v20, -1e+30 }
 0x3e4   : > { %11186 = vst [vmem:[#allocation75_spill] sm:$0xff] %v8724_v48  ;;  %v3353_v18 = vsel %vm3174_vm1, %v8716_v38, -inf  ;;  %v8732_v4 = vsel %vm2917_vm14, %v2021_v44, -1e+30  ;;  %v3355_v60 = vsel %vm3174_vm1, %v8724_v48, -inf  ;;  %vm1769_vm0 = vcmp.gt.f32.partialorder %v8482_v51, 0.0 }
 0x3e5   : > { %v8607_v33 = vpop.f32.mrf.mxu1  ;;  %v3384_v57 = vmax.f32 %v3345_v21, %v3382_v2  ;;  %v3351_v21 = vsel %vm3174_vm1, %v8706_v19, -inf  ;;  %v1895_v2 = vmul.f32 0.01, %v8445_v47  ;;  %11188 = vst [vmem:[#allocation151_spill] sm:$0xff] %v8732_v4  ;;  %v1897_v20 = vmul.f32 0.01, %v8482_v51 }
 0x3e6   : > { %v2024_v44 = vsel %vm1768_vm15, %v8465_v50, %v1896_v40  ;;  %vm1770_vm5 = vcmp.gt.f32.partialorder %v8498_v28, 0.0  ;;  %vm1771_vm12 = vcmp.gt.f32.partialorder %v8517_v1, 0.0  ;;  %v11195_v50 = vld [vmem:[#allocation118_spill] sm:$0xff]  ;;  %vm1772_vm10 = vcmp.gt.f32.partialorder %v8537_v0, 0.0 }
 0x3e7   : > { %v3386_v56 = vmax.f32 %v3347_v34, %v3384_v57  ;;  %v2022_v34 = vsel %vm1766_vm6, %v8423_v49, %v1894_v30  ;;  %v11191_v30 = vld [vmem:[#allocation124_spill] sm:$0xff]  ;;  %vm2921_vm6 = vcmp.eq.s32.totalorder %v11195_v50, 1  ;;  %vm1773_vm14 = vcmp.gt.f32.partialorder %v8573_v62, 0.0 }
 0x3e8   : > { %v8740_v23 = vsel %vm2918_vm9, %v2022_v34, -1e+30  ;;  %vm2919_vm8 = vcmp.eq.s32.totalorder %v11191_v30, 1  ;;  %v2025_v34 = vsel %vm1769_vm0, %v8482_v51, %v1897_v20  ;;  %v11197_v51 = vld [vmem:[#allocation128_spill] sm:$0xff]  ;;  %vm1774_vm9 = vcmp.gt.f32.partialorder %v8607_v33, 0.0 }
 0x3e9   : > { %v3388_v17 = vmax.f32 %v3349_v31, %v3386_v56  ;;  %v2023_v31 = vsel %vm1767_vm11, %v8445_v47, %v1895_v2  ;;  %11190 = vst [vmem:[#allocation149_spill] sm:$0xff] %v8740_v23  ;;  %v11193_v2 = vld [vmem:[#allocation117_spill] sm:$0xff]  ;;  %vm2922_vm11 = vcmp.eq.s32.totalorder %v11197_v51, 1 }
 0x3ea   : > { %v8750_v47 = vsel %vm2919_vm8, %v2023_v31, -1e+30  ;;  %vm2920_vm13 = vcmp.eq.s32.totalorder %v11193_v2, 1  ;;  %v1900_v31 = vmul.f32 0.01, %v8537_v0 }
 0x3eb   : > { %v3396_v57 = vmax.f32 %v3388_v17, %v3351_v21  ;;  %v3357_v21 = vsel %vm3174_vm1, %v8732_v4, -inf  ;;  %v1898_v17 = vmul.f32 0.01, %v8498_v28  ;;  %11192 = vst [vmem:[#allocation138_spill] sm:$0xff] %v8750_v47  ;;  %v8758_v4 = vsel %vm2920_vm13, %v2024_v44, -1e+30 }
 0x3ec   : > { %11194 = vst [vmem:[#allocation148_spill] sm:$0xff] %v8758_v4  ;;  %v3361_v40 = vsel %vm3174_vm1, %v8750_v47, -inf  ;;  %v8766_v2 = vsel %vm2921_vm6, %v2025_v34, -1e+30  ;;  %v3363_v20 = vsel %vm3174_vm1, %v8758_v4, -inf  ;;  %v2028_v34 = vsel %vm1772_vm10, %v8537_v0, %v1900_v31  ;;  %v11203_v0 = vld [vmem:[#allocation133_spill] sm:$0xff] }
 0x3ed   : > { %v8641_v24 = vpop.f32.mrf.mxu1  ;;  %v3404_v56 = vmax.f32 %v3396_v57, %v3353_v18  ;;  %v3359_v18 = vsel %vm3174_vm1, %v8740_v23, -inf  ;;  %v1899_v57 = vmul.f32 0.01, %v8517_v1  ;;  %11196 = vst [vmem:[#allocation76_spill] sm:$0xff] %v8766_v2  ;;  %v1901_v44 = vmul.f32 0.01, %v8573_v62 }
 0x3ee   : > { %vm1775_vm8 = vcmp.gt.f32.partialorder %v8641_v24, 0.0 }
 0x3ef   : > { %v3412_v29 = vmax.f32 %v3404_v56, %v3355_v60  ;;  %v2026_v60 = vsel %vm1770_vm5, %v8498_v28, %v1898_v17  ;;  %v11199_v17 = vld [vmem:[#allocation122_spill] sm:$0xff]  ;;  %vm2925_vm5 = vcmp.eq.s32.totalorder %v11203_v0, 1 }
 0x3f0   : > { %v8774_v50 = vsel %vm2922_vm11, %v2026_v60, -1e+30  ;;  %vm2923_vm15 = vcmp.eq.s32.totalorder %v11199_v17, 1  ;;  %v1903_v60 = vmul.f32 0.01, %v8641_v24 }
 0x3f1   : > { %v3420_v30 = vmax.f32 %v3412_v29, %v3357_v21  ;;  %v2027_v21 = vsel %vm1771_vm12, %v8517_v1, %v1899_v57  ;;  %11198 = vst [vmem:[#allocation156_spill] sm:$0xff] %v8774_v50  ;;  %v11201_v1 = vld [vmem:[#allocation123_spill] sm:$0xff]  ;;  %v3367_v57 = vsel %vm3174_vm1, %v8774_v50, -inf }
 0x3f2   : > { %v8782_v4 = vsel %vm2923_vm15, %v2027_v21, -1e+30  ;;  %vm2924_vm0 = vcmp.eq.s32.totalorder %v11201_v1, 1 }
 0x3f3   : > { %v3390_v56 = vmax.f32 %v3359_v18, %v3420_v30  ;;  %v3365_v18 = vsel %vm3174_vm1, %v8766_v2, -inf  ;;  %v1902_v30 = vmul.f32 0.01, %v8607_v33  ;;  %11200 = vst [vmem:[#allocation154_spill] sm:$0xff] %v8782_v4  ;;  %v8790_v17 = vsel %vm2924_vm0, %v2028_v34, -1e+30 }
 0x3f4   : > { %11202 = vst [vmem:[#allocation142_spill] sm:$0xff] %v8790_v17  ;;  %v3369_v31 = vsel %vm3174_vm1, %v8782_v4, -inf }
 0x3f5   : > { %v8675_v37 = vpop.f32.mrf.mxu1  ;;  %v3398_v29 = vmax.f32 %v3390_v56, %v3361_v40  ;;  %v2029_v40 = vsel %vm1773_vm14, %v8573_v62, %v1901_v44  ;;  %v11205_v62 = vld [vmem:[#allocation126_spill] sm:$0xff]  ;;  %v3371_v44 = vsel %vm3174_vm1, %v8790_v17, -inf }
 0x3f6   : > { %v1904_v21 = vmul.f32 0.01, %v8675_v37  ;;  %v8798_v1 = vsel %vm2925_vm5, %v2029_v40, -1e+30  ;;  %vm1776_vm13 = vcmp.gt.f32.partialorder %v8675_v37, 0.0  ;;  %vm2926_vm12 = vcmp.eq.s32.totalorder %v11205_v62, 1 }
 0x3f7   : > { %v3406_v51 = vmax.f32 %v3398_v29, %v3363_v20  ;;  %v2030_v20 = vsel %vm1774_vm9, %v8607_v33, %v1902_v30  ;;  %11204 = vst [vmem:[#allocation153_spill] sm:$0xff] %v8798_v1  ;;  %v11207_v30 = vld [vmem:[#allocation127_spill] sm:$0xff] }
 0x3f8   : > { %v8806_v0 = vsel %vm2926_vm12, %v2030_v20, -1e+30  ;;  %vm2927_vm10 = vcmp.eq.s32.totalorder %v11207_v30, 1  ;;  %v2032_v40 = vsel %vm1776_vm13, %v8675_v37, %v1904_v21  ;;  %v11211_v37 = vld [vmem:[#allocation130_spill] sm:$0xff] }
 0x3f9   : > { %v3414_v56 = vmax.f32 %v3406_v51, %v3365_v18  ;;  %v2031_v18 = vsel %vm1775_vm8, %v8641_v24, %v1903_v60  ;;  %11206 = vst [vmem:[#allocation86_spill] sm:$0xff] %v8806_v0  ;;  %v11209_v24 = vld [vmem:[#allocation137_spill] sm:$0xff]  ;;  %v3375_v60 = vsel %vm3174_vm1, %v8806_v0, -inf  ;;  %vm2929_vm9 = vcmp.eq.s32.totalorder %v11211_v37, 1  ;;  %v11213_v0 = vld [vmem:[#allocation131_spill] sm:$0xff] }
 0x3fa   : > { %v8814_v17 = vsel %vm2927_vm10, %v2031_v18, -1e+30  ;;  %vm2928_vm14 = vcmp.eq.s32.totalorder %v11209_v24, 1  ;;  %vm2930_vm8 = vcmp.eq.s32.totalorder %v11213_v0, 1  ;;  %v11217_v0 = vld [vmem:[#allocation134_spill] sm:$0xff] }
 0x3fb   : > { %v3422_v29 = vmax.f32 %v3414_v56, %v3367_v57  ;;  %v3373_v57 = vsel %vm3174_vm1, %v8798_v1, -inf  ;;  %11208 = vst [vmem:[#allocation161_spill] sm:$0xff] %v8814_v17  ;;  %v8821_v30 = vsel %vm2928_vm14, %v2032_v40, -1e+30  ;;  %v3377_v21 = vsel %vm3174_vm1, %v8814_v17, -inf }
 0x3fc   : > { %11210 = vst [vmem:[#allocation159_spill] sm:$0xff] %v8821_v30  ;;  %vm2932_vm12 = vcmp.eq.s32.totalorder %v11217_v0, 1 }
 0x3fd   : > { %v8709_v26 = vpop.f32.mrf.mxu1  ;;  %v3427_v51 = vmax.f32 %v3369_v31, %v3422_v29 }
 0x3fe   : > { %v1905_v34 = vmul.f32 0.01, %v8709_v26  ;;  %vm1777_vm6 = vcmp.gt.f32.partialorder %v8709_v26, 0.0 }
 0x3ff   : > { %v3392_v62 = vmax.f32 %v3371_v44, %v3427_v51 }
 0x400   : > { %v2033_v31 = vsel %vm1777_vm6, %v8709_v26, %v1905_v34  ;;  %v3379_v26 = vsel %vm3174_vm1, %v8821_v30, -inf }
 0x401   : > { %v3400_v29 = vmax.f32 %v3392_v62, %v3373_v57  ;;  %v8827_v24 = vsel %vm2929_vm9, %v2033_v31, -1e+30  ;;  %v11214_v57 = vld [vmem:[#allocation141_spill] sm:$0xff]  ;;  %vm3855_vm9 = vcmask 24576  }
 0x402   : > { %11212 = vst [vmem:[#allocation146_spill] sm:$0xff] %v8827_v24  ;;  %vm2931_vm5 = vcmp.eq.s32.totalorder %v11214_v57, 1 }
 0x403   : > { %v3408_v51 = vmax.f32 %v3400_v29, %v3375_v60 }
 0x405   : > { %v8743_v49 = vpop.f32.mrf.mxu1  ;;  %v3416_v40 = vmax.f32 %v3408_v51, %v3377_v21 }
 0x406   : > { %v1906_v56 = vmul.f32 0.01, %v8743_v49  ;;  %vm1778_vm11 = vcmp.gt.f32.partialorder %v8743_v49, 0.0 }
 0x407   : > { %v3424_v31 = vmax.f32 %v3416_v40, %v3379_v26 }
 0x408   : > { %v2034_v44 = vsel %vm1778_vm11, %v8743_v49, %v1906_v56  ;;  %v3381_v49 = vsel %vm3174_vm1, %v8827_v24, -inf }
 0x409   : > { %v8833_v62 = vsel %vm2930_vm8, %v2034_v44, -1e+30  ;;  %v3394_v57 = vmax.f32 %v3381_v49, %v3424_v31  ;;  %v11219_v44 = vld [vmem:[#allocation135_spill] sm:$0xff] }
 0x40a   : > { %11215 = vst [vmem:[#allocation160_spill] sm:$0xff] %v8833_v62  ;;  %vm2933_vm6 = vcmp.eq.s32.totalorder %v11219_v44, 1 }
 0x40d   : > { %v1609_v28 = vpop.f32.mrf.mxu1 }
 0x40e   : > { %v1907_v20 = vmul.f32 0.01, %v1609_v28  ;;  %vm1779_vm15 = vcmp.gt.f32.partialorder %v1609_v28, 0.0 }
 0x410   : > { %v2035_v34 = vsel %vm1779_vm15, %v1609_v28, %v1907_v20  ;;  %v3383_v28 = vsel %vm3174_vm1, %v8833_v62, -inf }
 0x411   : > { %v8837_v29 = vsel %vm2931_vm5, %v2035_v34, -1e+30 }
 0x412   : > { %11216 = vst [vmem:[#allocation79_spill] sm:$0xff] %v8837_v29  ;;  %v3385_v51 = vsel %vm3174_vm1, %v8837_v29, -inf }
 0x415   : > { %v1612_v33 = vpop.f32.mrf.mxu1 }
 0x416   : > { %v1908_v18 = vmul.f32 0.01, %v1612_v33  ;;  %vm1780_vm0 = vcmp.gt.f32.partialorder %v1612_v33, 0.0 }
 0x418   : > { %v2036_v56 = vsel %vm1780_vm0, %v1612_v33, %v1908_v18  ;;  %v3402_v33 = vmax.f32 %v3394_v57, %v3383_v28  ;;  %vm3444_vm0 = vcmask 1043456  }
 0x419   : > { %v8842_v21 = vsel %vm2932_vm12, %v2036_v56, -1e+30  ;;  %v11221_v56 = vld [vmem:[#allocation145_spill] sm:$0xff] }
 0x41a   : > { %11218 = vst [vmem:[#allocation168_spill] sm:$0xff] %v8842_v21  ;;  %v3387_v26 = vsel %vm3174_vm1, %v8842_v21, -inf  ;;  %v3410_v34 = vmax.f32 %v3402_v33, %v3385_v51  ;;  %vm2934_vm11 = vcmp.eq.s32.totalorder %v11221_v56, 1  ;;  %v11223_v33 = vld [vmem:[#allocation139_spill] sm:$0xff] }
 0x41b   : > { %vm2935_vm15 = vcmp.eq.s32.totalorder %v11223_v33, 1 }
 0x41c   : > { %v3418_v49 = vmax.f32 %v3410_v34, %v3387_v26 }
 0x41d   : > { %v1615_v37 = vpop.f32.mrf.mxu1 }
 0x41e   : > { %vm1781_vm13 = vcmp.gt.f32.partialorder %v1615_v37, 0.0  ;;  %v1909_v60 = vmul.f32 0.01, %v1615_v37 }
 0x420   : > { %v2037_v20 = vsel %vm1781_vm13, %v1615_v37, %v1909_v60 }
 0x421   : > { %v8847_v18 = vsel %vm2933_vm6, %v2037_v20, -1e+30 }
 0x422   : > { %11220 = vst [vmem:[#allocation150_spill] sm:$0xff] %v8847_v18  ;;  %v3389_v0 = vsel %vm3174_vm1, %v8847_v18, -inf }
 0x423   : > { %v3426_v31 = vmax.f32 %v3418_v49, %v3389_v0 }
 0x425   : > { %v1618_v40 = vpop.f32.mrf.mxu1 }
 0x426   : > { %vm1782_vm10 = vcmp.gt.f32.partialorder %v1618_v40, 0.0  ;;  %v1910_v37 = vmul.f32 0.01, %v1618_v40 }
 0x428   : > { %v2038_v60 = vsel %vm1782_vm10, %v1618_v40, %v1910_v37 }
 0x429   : > { %v8854_v44 = vsel %vm2934_vm11, %v2038_v60, -1e+30  ;;  %v3173_v60 = vld [vmem:[#allocation3] sm:$0x1] }
 0x42a   : > { %11222 = vst [vmem:[#allocation165_spill] sm:$0xff] %v8854_v44  ;;  %v3391_v28 = vsel %vm3174_vm1, %v8854_v44, -inf }
 0x42b   : > { %v3428_v20 = vmax.f32 %v3391_v28, %v3426_v31 }
 0x42d   : > { %v1621_v57 = vpop.f32.mrf.mxu1 }
 0x42e   : > { %vm1783_vm14 = vcmp.gt.f32.partialorder %v1621_v57, 0.0  ;;  %v1911_v51 = vmul.f32 0.01, %v1621_v57 }
 0x430   : > { %v2039_v21 = vsel %vm1783_vm14, %v1621_v57, %v1911_v51 }
 0x431   : > { %v8859_v29 = vsel %vm2935_vm15, %v2039_v21, -1e+30 }
 0x432   : > { %11224 = vst [vmem:[#allocation80_spill] sm:$0xff] %v8859_v29  ;;  %v3393_v26 = vsel %vm3174_vm1, %v8859_v29, -inf }
 0x433   : > { %v3429_v34 = vmax.f32 %v3393_v26, %v3428_v20 }
 0x435   : > { %v3430_v40 = vrot.slane %v3429_v34, 4 }
 0x437   : > { %v3431_v0 = vmax.f32 %v3429_v34, %v3430_v40 }
 0x439   : > { %v3432_v37 = vrot.slane %v3431_v0, 2 }
 0x43b   : > { %v3433_v49 = vmax.f32 %v3431_v0, %v3432_v37 }
 0x43d   : > { %v3434_v56 = vrot.slane %v3433_v49, 1 }
 0x43f   : > { %v3435_v62 = vmax.f32 %v3433_v49, %v3434_v56 }
 0x441   : > { %v3436_v31 = vmax.f32 %v3173_v60, %v3435_v62  ;;  %v11225_v62 = vld [vmem:[#allocation166_spill] sm:$0xff] }
 0x443   : > { %v3437_v28 = vsub.f32 %v3173_v60, %v3436_v31  ;;  %v8863_v24 = vperm.slane %v3436_v31, 0  ;;  %3856 = vst.msk [vmem:[#allocation3] sm:$0x1] %vm3855_vm9, %v3436_v31  ;;  %v3440_v60 = vld [vmem:[%s10519_s5] sm:$0xf]  ;;  %v8883_v31 = vpop.f32.mrf.mxu0 }
 0x444   : > { %5640 = vmatpush.msk.msra.mxu2 %vm3444_vm0, %v3440_v60  ;;  %v6148_v60 = vld [vmem:[%s6366_s7 + $0xc8] sm:$0xff] }
 0x445   : > { %v3485_v51 = vsub.f32 %v7862_v12, %v8863_v24  ;;  %v3438_v33 = vmul.f32 1.442695, %v3437_v28  ;;  %v3471_v34 = vsub.f32 %v11225_v62, %v8863_v24  ;;  %v3486_v40 = vsub.f32 %v7876_v36, %v8863_v24  ;;  %v3857_v12 = vld [vmem:[%s10519_s5] sm:$0xf]  ;;  %v11226_v36 = vld [vmem:[#allocation167_spill] sm:$0xff] }
 0x446   : > { %v6147_v28 = vld [vmem:[%s6366_s7 + $0xc0] sm:$0xff]  ;;  %5848 = vmatpush.msk.msra.mxu3 %vm3444_vm0, %v3857_v12  ;;  %5642 = vmatpush.msk.msrb.mxu2 %vm3444_vm0, %v3857_v12 }
 0x447   : > { %v3627_v26 = vmul.f32 1.442695, %v3485_v51  ;;  %5889 = vpow2.f32 %v3438_v33  ;;  %v3599_v37 = vmul.f32 1.442695, %v3471_v34  ;;  %v3629_v56 = vmul.f32 1.442695, %v3486_v40  ;;  %5384 = vmatmul.msk.f32.gmra.mxu0 %vm485_vm4, %v6147_v28 }
 0x448   : > { %v3472_v51 = vsub.f32 %v11226_v36, %v8863_v24  ;;  %v3487_v33 = vsub.f32 %v7884_v53, %v8863_v24  ;;  %v3488_v53 = vsub.f32 %v7888_v35, %v8863_v24  ;;  %v6149_v36 = vld [vmem:[%s6366_s7 + $0xd0] sm:$0xff]  ;;  %v3489_v35 = vsub.f32 %v7878_v7, %v8863_v24 }
 0x449   : > { %5891 = vpow2.f32 %v3627_v26  ;;  %v3490_v7 = vsub.f32 %v7890_v10, %v8863_v24  ;;  %v3491_v10 = vsub.f32 %v7903_v42, %v8863_v24  ;;  %v3492_v42 = vsub.f32 %v7926_v5, %v8863_v24 }
 0x44a   : > { %5893 = vpow2.f32 %v3599_v37  ;;  %v3601_v26 = vmul.f32 1.442695, %v3472_v51  ;;  %v3631_v62 = vmul.f32 1.442695, %v3487_v33  ;;  %v3493_v5 = vsub.f32 %v7935_v3, %v8863_v24 }
 0x44b   : > { %5895 = vpow2.f32 %v3629_v56  ;;  %v8893_v40 = vpop.f32.mrf.mxu0  ;;  %v3494_v3 = vsub.f32 %v7944_v58, %v8863_v24  ;;  %v3495_v58 = vsub.f32 %v7952_v14, %v8863_v24  ;;  %v11228_v14 = vld [vmem:[#allocation14_spill] sm:$0xff] }
 0x44c   : > { %5897 = vpow2.f32 %v3601_v26  ;;  %v3635_v26 = vmul.f32 1.442695, %v3489_v35 }
 0x44d   : > { %v5890_v0 = vpop.eup %5889  ;;  %5899 = vpow2.f32 %v3631_v62 }
 0x44e   : > { %5641 = vmatmul.msk.f32.vlgmr.msra.gmra.mxu2 %vm3174_vm1, %v5890_v0  ;;  %v3473_v0 = vsub.f32 %v7649_v61, %v8863_v24  ;;  %v3474_v61 = vsub.f32 %v7651_v46, %v8863_v24  ;;  %v11227_v46 = vld [vmem:[#allocation170_spill] sm:$0xff] }
 0x44f   : > { %v5892_v49 = vpop.eup %5891  ;;  %5385 = vmatmul.msk.f32.gmra.mxu0 %vm485_vm4, %v6148_v60  ;;  %v6150_v60 = vld [vmem:[%s6366_s7 + $0xd8] sm:$0xff] }
 0x450   : > { %5657 = vmatmul.msk.f32.vlgmr.msra.gmra.mxu3 %vm3174_vm1, %v5892_v49  ;;  %v5894_v34 = vpop.eup %5893  ;;  %v3603_v37 = vmul.f32 1.442695, %v3473_v0  ;;  %v3633_v49 = vmul.f32 1.442695, %v3488_v53  ;;  %v3605_v33 = vmul.f32 1.442695, %v3474_v61  ;;  %v3475_v0 = vsub.f32 %v11227_v46, %v8863_v24 }
 0x451   : > { %v5896_v28 = vpop.eup %5895  ;;  %v3476_v61 = vsub.f32 %v7672_v27, %v8863_v24  ;;  %v3477_v27 = vsub.f32 %v7723_v6, %v8863_v24  ;;  %v3478_v6 = vsub.f32 %v7732_v9, %v8863_v24  ;;  %v3479_v9 = vsub.f32 %v7736_v11, %v8863_v24 }
 0x452   : > { %v5898_v56 = vpop.eup %5897  ;;  %5901 = vpow2.f32 %v3603_v37  ;;  %v3607_v53 = vmul.f32 1.442695, %v3475_v0  ;;  %v3637_v37 = vmul.f32 1.442695, %v3490_v7  ;;  %v3641_v0 = vmul.f32 1.442695, %v3492_v42 }
 0x453   : > { %v8903_v12 = vpop.f32.mrf.mxu0  ;;  %v5900_v51 = vpop.eup %5899  ;;  %5903 = vpow2.f32 %v3633_v49  ;;  %v3609_v35 = vmul.f32 1.442695, %v3476_v61  ;;  %v3611_v46 = vmul.f32 1.442695, %v3477_v27  ;;  %v6155_v42 = vld [vmem:[%s6366_s7 + $0x100] sm:$0xff]  ;;  %v3480_v11 = vsub.f32 %v7772_v32, %v8863_v24 }
 0x454   : > { %5905 = vpow2.f32 %v3605_v33  ;;  %v3639_v33 = vmul.f32 1.442695, %v3491_v10  ;;  %v3481_v32 = vsub.f32 %v7783_v13, %v8863_v24  ;;  %v11229_v13 = vld [vmem:[#allocation181_spill] sm:$0xff] }
 0x455   : > { %5907 = vpow2.f32 %v3635_v26 }
 0x456   : > { %5643 = vmatmul.msk.f32.vlgmr.msrb.gmra.mxu2 %vm3174_vm1, %v5894_v34  ;;  %5909 = vpow2.f32 %v3607_v53 }
 0x457   : > { %5386 = vmatmul.msk.f32.gmra.mxu0 %vm485_vm4, %v6149_v36  ;;  %v6151_v36 = vld [vmem:[%s6366_s7 + $0xe0] sm:$0xff]  ;;  %5911 = vpow2.f32 %v3637_v37  ;;  %v6153_v37 = vld [vmem:[%s6366_s7 + $0xf0] sm:$0xff] }
 0x458   : > { %5658 = vmatmul.msk.f32.gmra.mxu3 %vm3174_vm1, %v5896_v28  ;;  %v5902_v62 = vpop.eup %5901  ;;  %5913 = vpow2.f32 %v3609_v35  ;;  %v6154_v35 = vld [vmem:[%s6366_s7 + $0xf8] sm:$0xff] }
 0x459   : > { %v5904_v28 = vpop.eup %5903  ;;  %5915 = vpow2.f32 %v3639_v33 }
 0x45a   : > { %v5906_v49 = vpop.eup %5905  ;;  %5917 = vpow2.f32 %v3611_v46 }
 0x45b   : > { %v8913_v34 = vpop.f32.mrf.mxu0  ;;  %5919 = vpow2.f32 %v3641_v0  ;;  %v3617_v0 = vmul.f32 1.442695, %v3480_v11 }
 0x45e   : > { %5644 = vmatmul.msk.f32.gmra.mxu2 %vm3174_vm1, %v5898_v56 }
 0x45f   : > { %5387 = vmatmul.msk.f32.gmra.mxu0 %vm485_vm4, %v6150_v60  ;;  %v6152_v60 = vld [vmem:[%s6366_s7 + $0xe8] sm:$0xff] }
 0x460   : > { %5659 = vmatmul.msk.f32.gmra.mxu3 %vm3174_vm1, %v5900_v51  ;;  %v5908_v51 = vpop.eup %5907 }
 0x461   : > { %v5910_v26 = vpop.eup %5909 }
 0x463   : > { %v8923_v56 = vpop.f32.mrf.mxu0 }
 0x466   : > { %5645 = vmatmul.msk.f32.gmra.mxu2 %vm3174_vm1, %v5902_v62 }
 0x467   : > { %5388 = vmatmul.msk.f32.gmra.mxu0 %vm485_vm4, %v6151_v36  ;;  %v3613_v36 = vmul.f32 1.442695, %v3478_v6  ;;  %v6156_v6 = vld [vmem:[%s6366_s7 + $0x108] sm:$0xff] }
 0x468   : > { %5660 = vmatmul.msk.f32.gmra.mxu3 %vm3174_vm1, %v5904_v28  ;;  %v5912_v28 = vpop.eup %5911 }
 0x469   : > { %v5914_v7 = vpop.eup %5913  ;;  %5921 = vpow2.f32 %v3613_v36  ;;  %v3496_v36 = vsub.f32 %v11228_v14, %v8863_v24 }
 0x46b   : > { %v8933_v62 = vpop.f32.mrf.mxu0 }
 0x46e   : > { %5646 = vmatmul.msk.f32.gmra.mxu2 %vm3174_vm1, %v5906_v49  ;;  %v5916_v49 = vpop.eup %5915 }
 0x46f   : > { %5389 = vmatmul.msk.f32.gmra.mxu0 %vm485_vm4, %v6152_v60  ;;  %v5918_v61 = vpop.eup %5917  ;;  %v3645_v60 = vmul.f32 1.442695, %v3494_v3 }
 0x470   : > { %5661 = vmatmul.msk.f32.gmra.mxu3 %vm3174_vm1, %v5908_v51  ;;  %v3643_v51 = vmul.f32 1.442695, %v3493_v5  ;;  %v5920_v33 = vpop.eup %5919 }
 0x472   : > { %5923 = vpow2.f32 %v3643_v51  ;;  %v3619_v51 = vmul.f32 1.442695, %v3481_v32 }
 0x473   : > { %v8943_v53 = vpop.f32.mrf.mxu0 }
 0x476   : > { %5647 = vmatmul.msk.f32.gmra.mxu2 %vm3174_vm1, %v5910_v26  ;;  %v3615_v26 = vmul.f32 1.442695, %v3479_v9  ;;  %v6157_v9 = vld [vmem:[%s6366_s7 + $0x110] sm:$0xff] }
 0x477   : > { %5390 = vmatmul.msk.f32.gmra.mxu0 %vm485_vm4, %v6153_v37 }
 0x478   : > { %5662 = vmatmul.msk.f32.gmra.mxu3 %vm3174_vm1, %v5912_v28  ;;  %v5922_v28 = vpop.eup %5921  ;;  %5925 = vpow2.f32 %v3615_v26  ;;  %v3482_v26 = vsub.f32 %v11229_v13, %v8863_v24 }
 0x479   : > { %v5924_v46 = vpop.eup %5923  ;;  %5927 = vpow2.f32 %v3645_v60  ;;  %v11230_v60 = vld [vmem:[#allocation7_spill] sm:$0xff] }
 0x47a   : > { %5929 = vpow2.f32 %v3617_v0  ;;  %v6158_v0 = vld [vmem:[%s6366_s7 + $0x118] sm:$0xff] }
 0x47b   : > { %v8953_v10 = vpop.f32.mrf.mxu0 }
 0x47e   : > { %5648 = vmatmul.msk.f32.gmra.mxu2 %vm3174_vm1, %v5914_v7  ;;  %v3647_v7 = vmul.f32 1.442695, %v3495_v58  ;;  %v5926_v37 = vpop.eup %5925 }
 0x47f   : > { %5391 = vmatmul.msk.f32.gmra.mxu0 %vm485_vm4, %v6154_v35  ;;  %v5928_v5 = vpop.eup %5927 }
 0x480   : > { %5663 = vmatmul.msk.f32.gmra.mxu3 %vm3174_vm1, %v5916_v49  ;;  %5931 = vpow2.f32 %v3647_v7  ;;  %v5930_v35 = vpop.eup %5929 }
 0x481   : > { %5933 = vpow2.f32 %v3619_v51 }
 0x483   : > { %v8963_v27 = vpop.f32.mrf.mxu0 }
 0x486   : > { %5649 = vmatmul.msk.f32.gmra.mxu2 %vm3174_vm1, %v5918_v61  ;;  %v3649_v61 = vmul.f32 1.442695, %v3496_v36  ;;  %v5932_v3 = vpop.eup %5931 }
 0x487   : > { %5392 = vmatmul.msk.f32.gmra.mxu0 %vm485_vm4, %v6155_v42  ;;  %v3621_v42 = vmul.f32 1.442695, %v3482_v26  ;;  %v5934_v11 = vpop.eup %5933  ;;  %v11234_v26 = vld [vmem:[#allocation17_spill] sm:$0xff] }
 0x488   : > { %5664 = vmatmul.msk.f32.gmra.mxu3 %vm3174_vm1, %v5920_v33  ;;  %5935 = vpow2.f32 %v3649_v61 }
 0x489   : > { %5937 = vpow2.f32 %v3621_v42 }
 0x48b   : > { %v8973_v49 = vpop.f32.mrf.mxu0 }
 0x48e   : > { %5650 = vmatmul.msk.f32.gmra.mxu2 %vm3174_vm1, %v5922_v28  ;;  %v3497_v28 = vsub.f32 %v11230_v60, %v8863_v24  ;;  %v5936_v7 = vpop.eup %5935  ;;  %v3499_v60 = vsub.f32 %v11234_v26, %v8863_v24  ;;  %v6162_v26 = vld [vmem:[%s6366_s7 + $0x138] sm:$0xff] }
 0x48f   : > { %5393 = vmatmul.msk.f32.gmra.mxu0 %vm485_vm4, %v6156_v6  ;;  %v5938_v51 = vpop.eup %5937 }
 0x490   : > { %5665 = vmatmul.msk.f32.gmra.mxu3 %vm3174_vm1, %v5924_v46  ;;  %v3651_v46 = vmul.f32 1.442695, %v3497_v28  ;;  %v3655_v42 = vmul.f32 1.442695, %v3499_v60 }
 0x492   : > { %5939 = vpow2.f32 %v3651_v46 }
 0x493   : > { %v8983_v33 = vpop.f32.mrf.mxu0 }
 0x496   : > { %5651 = vmatmul.msk.f32.gmra.mxu2 %vm3174_vm1, %v5926_v37  ;;  %v11231_v37 = vld [vmem:[#allocation183_spill] sm:$0xff] }
 0x497   : > { %5394 = vmatmul.msk.f32.gmra.mxu0 %vm485_vm4, %v6157_v9  ;;  %v3483_v6 = vsub.f32 %v11231_v37, %v8863_v24  ;;  %v11235_v37 = vld [vmem:[#allocation9_spill] sm:$0xff] }
 0x498   : > { %5666 = vmatmul.msk.f32.gmra.mxu3 %vm3174_vm1, %v5928_v5  ;;  %v11232_v5 = vld [vmem:[#allocation8_spill] sm:$0xff]  ;;  %v5940_v9 = vpop.eup %5939 }
 0x499   : > { %v3498_v32 = vsub.f32 %v11232_v5, %v8863_v24  ;;  %v3623_v14 = vmul.f32 1.442695, %v3483_v6  ;;  %v3500_v6 = vsub.f32 %v11235_v37, %v8863_v24 }
 0x49b   : > { %v8993_v58 = vpop.f32.mrf.mxu0  ;;  %v3653_v36 = vmul.f32 1.442695, %v3498_v32  ;;  %5941 = vpow2.f32 %v3623_v14  ;;  %v3657_v5 = vmul.f32 1.442695, %v3500_v6  ;;  %v11239_v6 = vld [vmem:[#allocation11_spill] sm:$0xff] }
 0x49d   : > { %5943 = vpow2.f32 %v3653_v36  ;;  %v6161_v36 = vld [vmem:[%s6366_s7 + $0x130] sm:$0xff] }
 0x49e   : > { %5652 = vmatmul.msk.f32.gmra.mxu2 %vm3174_vm1, %v5930_v35  ;;  %v6159_v35 = vld [vmem:[%s6366_s7 + $0x120] sm:$0xff] }
 0x49f   : > { %5395 = vmatmul.msk.f32.gmra.mxu0 %vm485_vm4, %v6158_v0  ;;  %v6160_v0 = vld [vmem:[%s6366_s7 + $0x128] sm:$0xff] }
 0x4a0   : > { %5667 = vmatmul.msk.f32.gmra.mxu3 %vm3174_vm1, %v5932_v3  ;;  %v11233_v3 = vld [vmem:[#allocation185_spill] sm:$0xff] }
 0x4a1   : > { %v3484_v13 = vsub.f32 %v11233_v3, %v8863_v24  ;;  %v5942_v46 = vpop.eup %5941 }
 0x4a3   : > { %v9003_v61 = vpop.f32.mrf.mxu0  ;;  %v3625_v28 = vmul.f32 1.442695, %v3484_v13 }
 0x4a5   : > { %5945 = vpow2.f32 %v3625_v28  ;;  %v11237_v28 = vld [vmem:[#allocation10_spill] sm:$0xff] }
 0x4a6   : > { %5653 = vmatmul.msk.f32.gmra.mxu2 %vm3174_vm1, %v5934_v11  ;;  %5947 = vpow2.f32 %v3655_v42  ;;  %v3502_v42 = vsub.f32 %v11237_v28, %v8863_v24 }
 0x4a7   : > { %5396 = vmatmul.msk.f32.gmra.mxu0 %vm485_vm4, %v6159_v35  ;;  %v11236_v35 = vld [vmem:[#allocation18_spill] sm:$0xff]  ;;  %5949 = vpow2.f32 %v3657_v5  ;;  %v3503_v5 = vsub.f32 %v11239_v6, %v8863_v24 }
 0x4a8   : > { %5668 = vmatmul.msk.f32.gmra.mxu3 %vm3174_vm1, %v5936_v7  ;;  %v5944_v7 = vpop.eup %5943 }
 0x4ab   : > { %v9013_v11 = vpop.f32.mrf.mxu0  ;;  %v5946_v32 = vpop.eup %5945 }
 0x4ae   : > { %5654 = vmatmul.msk.f32.gmra.mxu2 %vm3174_vm1, %v5938_v51  ;;  %v5948_v51 = vpop.eup %5947 }
 0x4af   : > { %5397 = vmatmul.msk.f32.gmra.mxu0 %vm485_vm4, %v6160_v0  ;;  %v5950_v60 = vpop.eup %5949 }
 0x4b0   : > { %5669 = vmatmul.msk.f32.gmra.mxu3 %vm3174_vm1, %v5940_v9  ;;  %v3501_v9 = vsub.f32 %v11236_v35, %v8863_v24 }
 0x4b2   : > { %v3659_v3 = vmul.f32 1.442695, %v3501_v9  ;;  %v6164_v9 = vld [vmem:[%s6366_s7 + $0x148] sm:$0xff] }
 0x4b3   : > { %v929_v14 = vpop.f32.mrf.mxu0 }
 0x4b4   : > { %5951 = vpow2.f32 %v3659_v3 }
 0x4b6   : > { %5655 = vmatmul.msk.f32.gmra.mxu2 %vm3174_vm1, %v5942_v46  ;;  %v3661_v46 = vmul.f32 1.442695, %v3502_v42 }
 0x4b7   : > { %5398 = vmatmul.msk.f32.gmra.mxu0 %vm485_vm4, %v6161_v36 }
 0x4b8   : > { %5670 = vmatmul.msk.f32.gmra.mxu3 %vm3174_vm1, %v5944_v7  ;;  %v6163_v7 = vld [vmem:[%s6366_s7 + $0x140] sm:$0xff]  ;;  %5953 = vpow2.f32 %v3661_v46 }
 0x4ba   : > { %v5952_v37 = vpop.eup %5951 }
 0x4bb   : > { %v932_v13 = vpop.f32.mrf.mxu0 }
 0x4be   : > { %5656 = vmatmul.msk.f32.gmra.mxu2 %vm3174_vm1, %v5946_v32  ;;  %v5954_v3 = vpop.eup %5953 }
 0x4bf   : > { %5399 = vmatmul.msk.f32.gmra.mxu0 %vm485_vm4, %v6162_v26  ;;  %v11242_v26 = vld [vmem:[#allocation22_spill] sm:$0xff] }
 0x4c0   : > { %5671 = vmatmul.msk.f32.gmra.mxu3 %vm3174_vm1, %v5948_v51  ;;  %v3663_v51 = vmul.f32 1.442695, %v3503_v5  ;;  %v6165_v5 = vld [vmem:[%s6366_s7 + $0x150] sm:$0xff] }
 0x4c2   : > { %5955 = vpow2.f32 %v3663_v51  ;;  %v11244_v51 = vld [vmem:[#allocation12_spill] sm:$0xff] }
 0x4c3   : > { %v9032_v0 = vpop.f32.mrf.mxu0 }
 0x4c4   : > { %11238 = vst [vmem:[#allocation164_spill] sm:$0xff] %v9032_v0  ;;  %v6178_v0 = vld [vmem:[%s6366_s7 + $0x1b8] sm:$0xff] }
 0x4c7   : > { %5400 = vmatmul.msk.f32.gmra.mxu0 %vm485_vm4, %v6163_v7 }
 0x4c8   : > { %5672 = vmatmul.msk.f32.gmra.mxu3 %vm3174_vm1, %v5950_v60  ;;  %v3504_v60 = vsub.f32 %v11242_v26, %v8863_v24 }
 0x4ca   : > { %v3665_v7 = vmul.f32 1.442695, %v3504_v60 }
 0x4cb   : > { %v9043_v35 = vpop.f32.mrf.mxu0 }
 0x4cc   : > { %5957 = vpow2.f32 %v3665_v7 }
 0x4cf   : > { %5401 = vmatmul.msk.f32.gmra.mxu0 %vm485_vm4, %v6164_v9  ;;  %v5956_v9 = vpop.eup %5955 }
 0x4d0   : > { %5673 = vmatmul.msk.f32.gmra.mxu3 %vm3174_vm1, %v5952_v37 }
 0x4d1   : > { %v9039_v32 = vpop.f32.mrf.mxu2 }
 0x4d2   : > { %11240 = vst [vmem:[#allocation155_spill] sm:$0xff] %v9039_v32 }
 0x4d3   : > { %v9041_v36 = vpop.f32.mrf.mxu3  ;;  %v9056_v6 = vpop.f32.mrf.mxu0 }
 0x4d4   : > { %11241 = vst [vmem:[#allocation157_spill] sm:$0xff] %v9041_v36  ;;  %v4660_v37 = vmul.f32 %v9041_v36, %v929_v14 }
 0x4d7   : > { %5402 = vmatmul.msk.f32.gmra.mxu0 %vm485_vm4, %v6165_v5  ;;  %v5958_v5 = vpop.eup %5957 }
 0x4d8   : > { %5674 = vmatmul.msk.f32.gmra.mxu3 %vm3174_vm1, %v5954_v3  ;;  %v3505_v3 = vsub.f32 %v11244_v51, %v8863_v24 }
 0x4d9   : > { %v9050_v28 = vpop.f32.mrf.mxu2 }
 0x4da   : > { %v3667_v14 = vmul.f32 1.442695, %v3505_v3  ;;  %v6167_v3 = vld [vmem:[%s6366_s7 + $0x160] sm:$0xff] }
 0x4db   : > { %v9052_v42 = vpop.f32.mrf.mxu3  ;;  %v9067_v60 = vpop.f32.mrf.mxu0 }
 0x4dc   : > { %11243 = vst [vmem:[#allocation162_spill] sm:$0xff] %v9052_v42  ;;  %v4661_v46 = vmul.f32 %v9052_v42, %v932_v13  ;;  %5959 = vpow2.f32 %v3667_v14 }
 0x4de   : > { %4774 = vmatpush.msra.mxu2 %v4661_v46  ;;  %v6166_v46 = vld [vmem:[%s6366_s7 + $0x158] sm:$0xff] }
 0x4df   : > { %5403 = vmatmul.msk.f32.gmra.mxu0 %vm485_vm4, %v6166_v46  ;;  %v11248_v46 = vld [vmem:[#allocation15_spill] sm:$0xff] }
 0x4e0   : > { %5675 = vmatmul.msk.f32.gmra.mxu3 %vm3174_vm1, %v5956_v9  ;;  %4775 = vmatpush.msra.mxu2 %v4660_v37  ;;  %v11246_v37 = vld [vmem:[#allocation23_spill] sm:$0xff] }
 0x4e1   : > { %v9063_v13 = vpop.f32.mrf.mxu2  ;;  %v3506_v9 = vsub.f32 %v11246_v37, %v8863_v24 }
 0x4e2   : > { %v5960_v57 = vpop.eup %5959 }
 0x4e3   : > { %v9065_v26 = vpop.f32.mrf.mxu3  ;;  %v3669_v21 = vmul.f32 1.442695, %v3506_v9  ;;  %v9078_v20 = vpop.f32.mrf.mxu0  ;;  %v6168_v9 = vld [vmem:[%s6366_s7 + $0x168] sm:$0xff] }
 0x4e4   : > { %11245 = vst [vmem:[#allocation90_spill] sm:$0xff] %v9065_v26 }
 0x4e5   : > { %5961 = vpow2.f32 %v3669_v21 }
 0x4e7   : > { %5404 = vmatmul.msk.f32.gmra.mxu0 %vm485_vm4, %v6167_v3 }
 0x4e8   : > { %5676 = vmatmul.msk.f32.gmra.mxu3 %vm3174_vm1, %v5958_v5  ;;  %v3507_v5 = vsub.f32 %v11248_v46, %v8863_v24 }
 0x4e9   : > { %v9074_v51 = vpop.f32.mrf.mxu2 }
 0x4ea   : > { %v3671_v32 = vmul.f32 1.442695, %v3507_v5  ;;  %v6169_v5 = vld [vmem:[%s6366_s7 + $0x170] sm:$0xff] }
 0x4eb   : > { %v9076_v7 = vpop.f32.mrf.mxu3  ;;  %v9089_v36 = vpop.f32.mrf.mxu0 }
 0x4ec   : > { %11247 = vst [vmem:[#allocation169_spill] sm:$0xff] %v9076_v7  ;;  %v5962_v42 = vpop.eup %5961  ;;  %5963 = vpow2.f32 %v3671_v32 }
 0x4ef   : > { %5405 = vmatmul.msk.f32.gmra.mxu0 %vm485_vm4, %v6168_v9 }
 0x4f0   : > { %5677 = vmatmul.msk.f32.gmra.mxu3 %vm3174_vm1, %v5960_v57  ;;  %v11250_v57 = vld [vmem:[#allocation19_spill] sm:$0xff] }
 0x4f1   : > { %v9085_v37 = vpop.f32.mrf.mxu2  ;;  %v3508_v3 = vsub.f32 %v11250_v57, %v8863_v24 }
 0x4f2   : > { %v5964_v18 = vpop.eup %5963 }
 0x4f3   : > { %v9087_v14 = vpop.f32.mrf.mxu3  ;;  %v3673_v29 = vmul.f32 1.442695, %v3508_v3  ;;  %v9100_v44 = vpop.f32.mrf.mxu0  ;;  %v6170_v3 = vld [vmem:[%s6366_s7 + $0x178] sm:$0xff] }
 0x4f4   : > { %11249 = vst [vmem:[#allocation83_spill] sm:$0xff] %v9087_v14 }
 0x4f5   : > { %5965 = vpow2.f32 %v3673_v29 }
 0x4f7   : > { %5406 = vmatmul.msk.f32.gmra.mxu0 %vm485_vm4, %v6169_v5 }
 0x4f8   : > { %5678 = vmatmul.msk.f32.gmra.mxu3 %vm3174_vm1, %v5962_v42  ;;  %v11252_v42 = vld [vmem:[#allocation26_spill] sm:$0xff] }
 0x4f9   : > { %v9096_v46 = vpop.f32.mrf.mxu2  ;;  %v3509_v9 = vsub.f32 %v11252_v42, %v8863_v24 }
 0x4fb   : > { %v9098_v21 = vpop.f32.mrf.mxu3  ;;  %v3675_v30 = vmul.f32 1.442695, %v3509_v9  ;;  %v9111_v17 = vpop.f32.mrf.mxu0  ;;  %v6171_v9 = vld [vmem:[%s6366_s7 + $0x180] sm:$0xff] }
 0x4fc   : > { %11251 = vst [vmem:[#allocation85_spill] sm:$0xff] %v9098_v21  ;;  %v5966_v1 = vpop.eup %5965 }
 0x4fd   : > { %5967 = vpow2.f32 %v3675_v30 }
 0x4ff   : > { %5407 = vmatmul.msk.f32.gmra.mxu0 %vm485_vm4, %v6170_v3 }
 0x500   : > { %5679 = vmatmul.msk.f32.gmra.mxu3 %vm3174_vm1, %v5964_v18  ;;  %v11254_v18 = vld [vmem:[#allocation21_spill] sm:$0xff] }
 0x501   : > { %v9107_v57 = vpop.f32.mrf.mxu2  ;;  %v3510_v5 = vsub.f32 %v11254_v18, %v8863_v24 }
 0x503   : > { %v9109_v32 = vpop.f32.mrf.mxu3  ;;  %v3677_v4 = vmul.f32 1.442695, %v3510_v5  ;;  %v9122_v50 = vpop.f32.mrf.mxu0  ;;  %v6172_v5 = vld [vmem:[%s6366_s7 + $0x188] sm:$0xff] }
 0x504   : > { %11253 = vst [vmem:[#allocation94_spill] sm:$0xff] %v9109_v32  ;;  %v5968_v2 = vpop.eup %5967 }
 0x505   : > { %5969 = vpow2.f32 %v3677_v4 }
 0x507   : > { %5408 = vmatmul.msk.f32.gmra.mxu0 %vm485_vm4, %v6171_v9 }
 0x508   : > { %5680 = vmatmul.msk.f32.gmra.mxu3 %vm3174_vm1, %v5966_v1  ;;  %v11256_v1 = vld [vmem:[#allocation27_spill] sm:$0xff] }
 0x509   : > { %v9118_v42 = vpop.f32.mrf.mxu2  ;;  %v3511_v3 = vsub.f32 %v11256_v1, %v8863_v24 }
 0x50b   : > { %v9120_v29 = vpop.f32.mrf.mxu3  ;;  %v3679_v47 = vmul.f32 1.442695, %v3511_v3  ;;  %v9133_v23 = vpop.f32.mrf.mxu0  ;;  %v6173_v3 = vld [vmem:[%s6366_s7 + $0x190] sm:$0xff] }
 0x50c   : > { %11255 = vst [vmem:[#allocation88_spill] sm:$0xff] %v9120_v29  ;;  %v5970_v48 = vpop.eup %5969 }
 0x50d   : > { %5971 = vpow2.f32 %v3679_v47 }
 0x50f   : > { %5409 = vmatmul.msk.f32.gmra.mxu0 %vm485_vm4, %v6172_v5 }
 0x510   : > { %5681 = vmatmul.msk.f32.gmra.mxu3 %vm3174_vm1, %v5968_v2  ;;  %v11258_v2 = vld [vmem:[#allocation25_spill] sm:$0xff] }
 0x511   : > { %v9129_v18 = vpop.f32.mrf.mxu2  ;;  %v3512_v9 = vsub.f32 %v11258_v2, %v8863_v24 }
 0x513   : > { %v9131_v30 = vpop.f32.mrf.mxu3  ;;  %v3681_v38 = vmul.f32 1.442695, %v3512_v9  ;;  %v9144_v19 = vpop.f32.mrf.mxu0  ;;  %v6174_v9 = vld [vmem:[%s6366_s7 + $0x198] sm:$0xff] }
 0x514   : > { %11257 = vst [vmem:[#allocation89_spill] sm:$0xff] %v9131_v30  ;;  %v5972_v52 = vpop.eup %5971 }
 0x515   : > { %5973 = vpow2.f32 %v3681_v38 }
 0x517   : > { %5410 = vmatmul.msk.f32.gmra.mxu0 %vm485_vm4, %v6173_v3 }
 0x518   : > { %5682 = vmatmul.msk.f32.gmra.mxu3 %vm3174_vm1, %v5970_v48  ;;  %v11260_v48 = vld [vmem:[#allocation29_spill] sm:$0xff] }
 0x519   : > { %v9140_v1 = vpop.f32.mrf.mxu2  ;;  %v3513_v5 = vsub.f32 %v11260_v48, %v8863_v24 }
 0x51b   : > { %v9142_v4 = vpop.f32.mrf.mxu3  ;;  %v3683_v55 = vmul.f32 1.442695, %v3513_v5  ;;  %v9155_v63 = vpop.f32.mrf.mxu0  ;;  %v6175_v5 = vld [vmem:[%s6366_s7 + $0x1a0] sm:$0xff] }
 0x51c   : > { %11259 = vst [vmem:[#allocation99_spill] sm:$0xff] %v9142_v4  ;;  %v5974_v43 = vpop.eup %5973 }
 0x51d   : > { %5975 = vpow2.f32 %v3683_v55 }
 0x51f   : > { %5411 = vmatmul.msk.f32.gmra.mxu0 %vm485_vm4, %v6174_v9 }
 0x520   : > { %5683 = vmatmul.msk.f32.gmra.mxu3 %vm3174_vm1, %v5972_v52  ;;  %v11262_v52 = vld [vmem:[#allocation31_spill] sm:$0xff] }
 0x521   : > { %v9151_v2 = vpop.f32.mrf.mxu2  ;;  %v3514_v3 = vsub.f32 %v11262_v52, %v8863_v24 }
 0x523   : > { %v9153_v47 = vpop.f32.mrf.mxu3  ;;  %v3685_v16 = vmul.f32 1.442695, %v3514_v3  ;;  %v9166_v22 = vpop.f32.mrf.mxu0  ;;  %v6176_v3 = vld [vmem:[%s6366_s7 + $0x1a8] sm:$0xff] }
 0x524   : > { %11261 = vst [vmem:[#allocation92_spill] sm:$0xff] %v9153_v47  ;;  %v5976_v39 = vpop.eup %5975 }
 0x525   : > { %5977 = vpow2.f32 %v3685_v16 }
 0x527   : > { %5412 = vmatmul.msk.f32.gmra.mxu0 %vm485_vm4, %v6175_v5 }
 0x528   : > { %5684 = vmatmul.msk.f32.gmra.mxu3 %vm3174_vm1, %v5974_v43  ;;  %v11264_v43 = vld [vmem:[#allocation30_spill] sm:$0xff] }
 0x529   : > { %v9162_v48 = vpop.f32.mrf.mxu2  ;;  %v3515_v9 = vsub.f32 %v11264_v43, %v8863_v24 }
 0x52b   : > { %v9164_v38 = vpop.f32.mrf.mxu3  ;;  %v3687_v15 = vmul.f32 1.442695, %v3515_v9  ;;  %v9177_v45 = vpop.f32.mrf.mxu0  ;;  %v6177_v9 = vld [vmem:[%s6366_s7 + $0x1b0] sm:$0xff] }
 0x52c   : > { %11263 = vst [vmem:[#allocation93_spill] sm:$0xff] %v9164_v38  ;;  %v5978_v54 = vpop.eup %5977 }
 0x52d   : > { %5979 = vpow2.f32 %v3687_v15 }
 0x52f   : > { %5413 = vmatmul.msk.f32.gmra.mxu0 %vm485_vm4, %v6176_v3 }
 0x530   : > { %5685 = vmatmul.msk.f32.gmra.mxu3 %vm3174_vm1, %v5976_v39  ;;  %v11266_v39 = vld [vmem:[#allocation34_spill] sm:$0xff] }
 0x531   : > { %v9173_v52 = vpop.f32.mrf.mxu2  ;;  %v3516_v5 = vsub.f32 %v11266_v39, %v8863_v24 }
 0x533   : > { %v9175_v55 = vpop.f32.mrf.mxu3  ;;  %v3689_v41 = vmul.f32 1.442695, %v3516_v5  ;;  %v9188_v59 = vpop.f32.mrf.mxu0 }
 0x534   : > { %11265 = vst [vmem:[#allocation103_spill] sm:$0xff] %v9175_v55  ;;  %v5980_v8 = vpop.eup %5979 }
 0x535   : > { %5981 = vpow2.f32 %v3689_v41  ;;  %v4657_v41 = vmul.f32 %v9173_v52, %v8993_v58  ;;  %v4654_v58 = vmul.f32 %v9140_v1, %v8963_v27  ;;  %v4652_v27 = vmul.f32 %v9118_v42, %v8943_v53 }
 0x536   : > { %v4649_v53 = vmul.f32 %v9085_v37, %v8913_v34  ;;  %v4646_v34 = vmul.f32 %v9050_v28, %v8883_v31  ;;  %v11277_v31 = vld [vmem:[#allocation43_spill] sm:$0xff] }
 0x537   : > { %5414 = vmatmul.msk.f32.gmra.mxu0 %vm485_vm4, %v6177_v9 }
 0x538   : > { %5686 = vmatmul.msk.f32.gmra.mxu3 %vm3174_vm1, %v5978_v54  ;;  %v11268_v54 = vld [vmem:[#allocation37_spill] sm:$0xff] }
 0x539   : > { %v9184_v43 = vpop.f32.mrf.mxu2  ;;  %v3517_v3 = vsub.f32 %v11268_v54, %v8863_v24  ;;  %v11270_v54 = vld [vmem:[#allocation33_spill] sm:$0xff] }
 0x53a   : > { %v4658_v26 = vmul.f32 %v9184_v43, %v9003_v61  ;;  %v4656_v61 = vmul.f32 %v9162_v48, %v8983_v33  ;;  %v4653_v33 = vmul.f32 %v9129_v18, %v8953_v10  ;;  %v4650_v10 = vmul.f32 %v9096_v46, %v8923_v56 }
 0x53b   : > { %v9186_v16 = vpop.f32.mrf.mxu3  ;;  %v3691_v5 = vmul.f32 1.442695, %v3517_v3  ;;  %v980_v9 = vpop.f32.mrf.mxu0  ;;  %v4648_v56 = vmul.f32 %v9074_v51, %v8903_v12 }
 0x53c   : > { %11267 = vst [vmem:[#allocation96_spill] sm:$0xff] %v9186_v16 }
 0x53d   : > { %5983 = vpow2.f32 %v3691_v5 }
 0x53f   : > { %5415 = vmatmul.msk.f32.gmra.mxu0 %vm485_vm4, %v6178_v0  ;;  %v4655_v0 = vmul.f32 %v9151_v2, %v8973_v49  ;;  %v11272_v49 = vld [vmem:[#allocation35_spill] sm:$0xff] }
 0x540   : > { %5687 = vmatmul.msk.f32.gmra.mxu3 %vm3174_vm1, %v5980_v8  ;;  %v5982_v8 = vpop.eup %5981 }
 0x541   : > { %v9195_v39 = vpop.f32.mrf.mxu2 }
 0x542   : > { %v4659_v25 = vmul.f32 %v9195_v39, %v9013_v11  ;;  %v3518_v11 = vsub.f32 %v11270_v54, %v8863_v24 }
 0x543   : > { %v9197_v15 = vpop.f32.mrf.mxu3  ;;  %v5984_v5 = vpop.eup %5983 }
 0x544   : > { %11269 = vst [vmem:[#allocation97_spill] sm:$0xff] %v9197_v15  ;;  %4776 = vmatpush.msra.mxu2 %v4659_v25  ;;  %v3693_v3 = vmul.f32 1.442695, %v3518_v11  ;;  %v4651_v11 = vmul.f32 %v9107_v57, %v8933_v62  ;;  %v11274_v62 = vld [vmem:[#allocation44_spill] sm:$0xff] }
 0x546   : > { %4777 = vmatpush.msra.mxu2 %v4658_v26  ;;  %v9218_v26 = vpop.f32.mrf.mxu0  ;;  %5985 = vpow2.f32 %v3693_v3 }
 0x548   : > { %5688 = vmatmul.msk.f32.gmra.mxu3 %vm3174_vm1, %v5982_v8  ;;  %4778 = vmatpush.msra.mxu2 %v4657_v41  ;;  %v6179_v8 = vld [vmem:[%s6366_s7 + $0x1c0] sm:$0xff]  ;;  %v3519_v41 = vsub.f32 %v11272_v49, %v8863_v24 }
 0x549   : > { %5416 = vmatmul.msk.f32.gmra.mxu0 %vm485_vm4, %v6179_v8  ;;  %v3520_v8 = vsub.f32 %v11274_v62, %v8863_v24 }
 0x54a   : > { %4779 = vmatpush.msra.mxu2 %v4656_v61  ;;  %v3695_v61 = vmul.f32 1.442695, %v3519_v41 }
 0x54b   : > { %v9212_v25 = vpop.f32.mrf.mxu3  ;;  %v3697_v49 = vmul.f32 1.442695, %v3520_v8 }
 0x54c   : > { %11271 = vst [vmem:[#allocation107_spill] sm:$0xff] %v9212_v25  ;;  %4780 = vmatpush.msra.mxu2 %v4655_v0  ;;  %v5986_v3 = vpop.eup %5985  ;;  %5987 = vpow2.f32 %v3695_v61  ;;  %v6182_v61 = vld [vmem:[%s6366_s7 + $0x1d0] sm:$0xff]  ;;  %v4675_v62 = vmul.f32 %v9212_v25, %v9177_v45 }
 0x54d   : > { %5989 = vpow2.f32 %v3697_v49  ;;  %v6183_v49 = vld [vmem:[%s6366_s7 + $0x1d8] sm:$0xff] }
 0x54e   : > { %4781 = vmatpush.msra.mxu2 %v4654_v58  ;;  %v9235_v0 = vpop.f32.mrf.mxu0  ;;  %v6180_v58 = vld [vmem:[%s6366_s7 + $0x1c8] sm:$0xff]  ;;  %v11280_v45 = vld [vmem:[#allocation47_spill] sm:$0xff] }
 0x550   : > { %5689 = vmatmul.msk.f32.gmra.mxu3 %vm3174_vm1, %v5984_v5  ;;  %4782 = vmatpush.msra.mxu2 %v4653_v33  ;;  %v4647_v33 = vmul.f32 %v9063_v13, %v8893_v40  ;;  %v11276_v40 = vld [vmem:[#allocation182_spill] sm:$0xff] }
 0x551   : > { %5417 = vmatmul.msk.f32.gmra.mxu0 %vm485_vm4, %v6180_v58  ;;  %v10700_v58 = vmov 1.0  }
 0x552   : > { %4783 = vmatpush.msra.mxu2 %v4652_v27  ;;  %v9254_v27 = vld [vmem:[%s6371_s10] sm:$0xff] }
 0x553   : > { %v9229_v54 = vpop.f32.mrf.mxu3 }
 0x554   : > { %11273 = vst [vmem:[#allocation100_spill] sm:$0xff] %v9229_v54  ;;  %4784 = vmatpush.msra.mxu2 %v4651_v11  ;;  %v9257_v11 = vperm.slane %v9254_v27, 0 }
 0x556   : > { %4785 = vmatpush.msra.mxu2 %v4650_v10  ;;  %v9259_v12 = vpop.f32.mrf.mxu0  ;;  %v5988_v10 = vpop.eup %5987  ;;  %vm3101_vm8 = vcmp.eq.s32.totalorder %v9257_v11, %v11276_v40 }
 0x558   : > { %5690 = vmatmul.msk.f32.gmra.mxu3 %vm3174_vm1, %v5986_v3  ;;  %4786 = vmatpush.msra.mxu2 %v4649_v53  ;;  %v4676_v3 = vmul.f32 %v9229_v54, %v9188_v59  ;;  %v4673_v59 = vmul.f32 %v9186_v16, %v9155_v63  ;;  %v6197_v16 = vld [vmem:[%s6366_s7 + $0x248] sm:$0xff]  ;;  %v6198_v54 = vld [vmem:[%s6366_s7 + $0x250] sm:$0xff] }
 0x559   : > { %5418 = vmatmul.msk.f32.gmra.mxu0 %vm485_vm4, %v6182_v61  ;;  %v4672_v61 = vmul.f32 %v9175_v55, %v9144_v19  ;;  %v4669_v19 = vmul.f32 %v9142_v4, %v9111_v17 }
 0x55a   : > { %4787 = vmatpush.msra.mxu2 %v4648_v56  ;;  %v4674_v56 = vmul.f32 %v9197_v15, %v9166_v22  ;;  %v3522_v22 = vsub.f32 %v11280_v45, %v8863_v24  ;;  %v4666_v45 = vmul.f32 %v9109_v32, %v9078_v20  ;;  %v4664_v20 = vmul.f32 %v9087_v14, %v9056_v6 }
 0x55b   : > { %v9246_v5 = vpop.f32.mrf.mxu3 }
 0x55c   : > { %11275 = vst [vmem:[#allocation101_spill] sm:$0xff] %v9246_v5  ;;  %v4677_v41 = vmul.f32 %v9246_v5, %v980_v9  ;;  %4788 = vmatpush.msra.mxu2 %v4647_v33  ;;  %v3521_v9 = vsub.f32 %v11277_v31, %v8863_v24  ;;  %v3701_v31 = vmul.f32 1.442695, %v3522_v22  ;;  %v6214_v5 = vld [vmem:[%s6366_s7 + $0x2d0] sm:$0xff] }
 0x55e   : > { %4789 = vmatpush.msra.mxu2 %v4646_v34  ;;  %v3699_v8 = vmul.f32 1.442695, %v3521_v9  ;;  %v9280_v33 = vpop.f32.mrf.mxu0  ;;  %v5990_v34 = vpop.eup %5989  ;;  %v4670_v9 = vmul.f32 %v9153_v47, %v9122_v50 }
 0x55f   : > { %5771 = vmatmul.msk.f32.vlgmr.msra.gmra.mxu2 %vm3101_vm8, %v10700_v58 }
 0x560   : > { %5691 = vmatmul.msk.f32.gmra.mxu3 %vm3174_vm1, %v5988_v10  ;;  %4800 = vmatpush.msrb.mxu2 %v4677_v41  ;;  %v11279_v41 = vld [vmem:[#allocation173_spill] sm:$0xff]  ;;  %5991 = vpow2.f32 %v3699_v8  ;;  %v4671_v10 = vmul.f32 %v9164_v38, %v9133_v23  ;;  %v11283_v23 = vld [vmem:[#allocation38_spill] sm:$0xff] }
 0x561   : > { %5419 = vmatmul.msk.f32.gmra.mxu0 %vm485_vm4, %v6183_v49  ;;  %vm3109_vm5 = vcmp.eq.s32.totalorder %v9257_v11, %v11279_v41  ;;  %v3523_v50 = vsub.f32 %v11283_v23, %v8863_v24  ;;  %5993 = vpow2.f32 %v3701_v31  ;;  %v4668_v49 = vmul.f32 %v9131_v30, %v9100_v44 }
 0x562   : > { %4801 = vmatpush.msrb.mxu2 %v4676_v3  ;;  %v4665_v44 = vmul.f32 %v9098_v21, %v9067_v60  ;;  %v11288_v60 = vld [vmem:[#allocation90_spill] sm:$0xff] }
 0x563   : > { %v9274_v53 = vpop.f32.mrf.mxu3  ;;  %v6193_v21 = vld [vmem:[%s6366_s7 + $0x228] sm:$0xff] }
 0x564   : > { %11278 = vst [vmem:[#allocation111_spill] sm:$0xff] %v9274_v53  ;;  %4802 = vmatpush.msrb.mxu2 %v4675_v62  ;;  %v6184_v62 = vld [vmem:[%s6366_s7 + $0x1e0] sm:$0xff] }
 0x566   : > { %4803 = vmatpush.msrb.mxu2 %v4674_v56  ;;  %v9303_v3 = vpop.f32.mrf.mxu0  ;;  %v5992_v8 = vpop.eup %5991  ;;  %v11282_v56 = vld [vmem:[#allocation172_spill] sm:$0xff] }
 0x567   : > { %5772 = vmatmul.msk.f32.gmra.mxu2 %vm3109_vm5, %v10700_v58  ;;  %vm3117_vm13 = vcmp.eq.s32.totalorder %v9257_v11, %v11282_v56  ;;  %v11505_v11 = vld [vmem:[#allocation174_spill] sm:$0xff] }
 0x568   : > { %5692 = vmatmul.msk.f32.gmra.mxu3 %vm3174_vm1, %v5990_v34  ;;  %4804 = vmatpush.msrb.mxu2 %v4673_v59  ;;  %v4667_v34 = vmul.f32 %v9120_v29, %v9089_v36  ;;  %v3703_v59 = vmul.f32 1.442695, %v3523_v50  ;;  %v11285_v36 = vld [vmem:[#allocation50_spill] sm:$0xff]  ;;  %v9344_v50 = vperm.slane %v9254_v27, 1 }
 0x569   : > { %5420 = vmatmul.msk.f32.gmra.mxu0 %vm485_vm4, %v6184_v62  ;;  %v3524_v31 = vsub.f32 %v11285_v36, %v8863_v24  ;;  %v4663_v62 = vmul.f32 %v9076_v7, %v9043_v35  ;;  %v11290_v35 = vld [vmem:[#allocation39_spill] sm:$0xff]  ;;  %v11292_v36 = vld [vmem:[#allocation53_spill] sm:$0xff] }
 0x56a   : > { %4805 = vmatpush.msrb.mxu2 %v4672_v61  ;;  %v6185_v61 = vld [vmem:[%s6366_s7 + $0x1e8] sm:$0xff]  ;;  %5995 = vpow2.f32 %v3703_v59  ;;  %11289 = vst [vmem:[#allocation109_spill] sm:$0xff] %v9344_v50  ;;  %vm3102_vm12 = vcmp.eq.s32.totalorder %v9344_v50, %v11276_v40  ;;  %v3525_v59 = vsub.f32 %v11290_v35, %v8863_v24  ;;  %vm3110_vm6 = vcmp.eq.s32.totalorder %v9344_v50, %v11279_v41  ;;  %v6192_v7 = vld [vmem:[%s6366_s7 + $0x220] sm:$0xff] }
 0x56b   : > { %v9297_v63 = vpop.f32.mrf.mxu3  ;;  %vm3118_vm10 = vcmp.eq.s32.totalorder %v9344_v50, %v11282_v56  ;;  %v6191_v50 = vld [vmem:[%s6366_s7 + $0x218] sm:$0xff] }
 0x56c   : > { %11281 = vst [vmem:[#allocation105_spill] sm:$0xff] %v9297_v63  ;;  %4806 = vmatpush.msrb.mxu2 %v4671_v10  ;;  %v5994_v10 = vpop.eup %5993 }
 0x56e   : > { %4807 = vmatpush.msrb.mxu2 %v4670_v9  ;;  %v9326_v22 = vpop.f32.mrf.mxu0 }
 0x56f   : > { %5773 = vmatmul.msk.f32.gmra.mxu2 %vm3117_vm13, %v10700_v58 }
 0x570   : > { %5693 = vmatmul.msk.f32.gmra.mxu3 %vm3174_vm1, %v5992_v8  ;;  %4808 = vmatpush.msrb.mxu2 %v4669_v19  ;;  %v3705_v8 = vmul.f32 1.442695, %v3524_v31  ;;  %v11287_v19 = vld [vmem:[#allocation164_spill] sm:$0xff]  ;;  %v5996_v6 = vpop.eup %5995  ;;  %v3526_v31 = vsub.f32 %v11292_v36, %v8863_v24  ;;  %v11296_v36 = vld [vmem:[#allocation57_spill] sm:$0xff] }
 0x571   : > { %5421 = vmatmul.msk.f32.gmra.mxu0 %vm485_vm4, %v6185_v61  ;;  %v4662_v23 = vmul.f32 %v11288_v60, %v11287_v19  ;;  %v6188_v19 = vld [vmem:[%s6366_s7 + $0x200] sm:$0xff] }
 0x572   : > { %4809 = vmatpush.msrb.mxu2 %v4668_v49  ;;  %5997 = vpow2.f32 %v3705_v8 }
 0x573   : > { %v9320_v17 = vpop.f32.mrf.mxu3 }
 0x574   : > { %11284 = vst [vmem:[#allocation106_spill] sm:$0xff] %v9320_v17  ;;  %4810 = vmatpush.msrb.mxu2 %v4667_v34  ;;  %v6186_v34 = vld [vmem:[%s6366_s7 + $0x1f0] sm:$0xff] }
 0x576   : > { %4811 = vmatpush.msrb.mxu2 %v4666_v45  ;;  %v9346_v49 = vpop.f32.mrf.mxu0  ;;  %v3707_v45 = vmul.f32 1.442695, %v3525_v59 }
 0x578   : > { %5694 = vmatmul.msk.f32.gmra.mxu3 %vm3174_vm1, %v5994_v10  ;;  %4812 = vmatpush.msrb.mxu2 %v4665_v44  ;;  %v6187_v10 = vld [vmem:[%s6366_s7 + $0x1f8] sm:$0xff]  ;;  %v5998_v44 = vpop.eup %5997  ;;  %5999 = vpow2.f32 %v3707_v45 }
 0x579   : > { %5422 = vmatmul.msk.f32.gmra.mxu0 %vm485_vm4, %v6186_v34  ;;  %v11294_v34 = vld [vmem:[#allocation48_spill] sm:$0xff] }
 0x57a   : > { %4813 = vmatpush.msrb.mxu2 %v4664_v20 }
 0x57b   : > { %v9337_v9 = vpop.f32.mrf.mxu3 }
 0x57c   : > { %11286 = vst [vmem:[#allocation116_spill] sm:$0xff] %v9337_v9  ;;  %4814 = vmatpush.msrb.mxu2 %v4663_v62  ;;  %v3709_v62 = vmul.f32 1.442695, %v3526_v31  ;;  %v3528_v31 = vsub.f32 %v11296_v36, %v8863_v24 }
 0x57e   : > { %4815 = vmatpush.msrb.mxu2 %v4662_v23  ;;  %v9361_v61 = vpop.f32.mrf.mxu0  ;;  %v6000_v23 = vpop.eup %5999  ;;  %6001 = vpow2.f32 %v3709_v62 }
 0x57f   : > { %5774 = vmatmul.msk.f32.vlgmr.msrb.gmra.mxu2 %vm3102_vm12, %v10700_v58 }
 0x580   : > { %5695 = vmatmul.msk.f32.gmra.mxu3 %vm3174_vm1, %v5996_v6  ;;  %v3527_v6 = vsub.f32 %v11294_v34, %v8863_v24  ;;  %v6190_v34 = vld [vmem:[%s6366_s7 + $0x210] sm:$0xff] }
 0x581   : > { %5423 = vmatmul.msk.f32.gmra.mxu0 %vm485_vm4, %v6187_v10  ;;  %v6189_v10 = vld [vmem:[%s6366_s7 + $0x208] sm:$0xff] }
 0x582   : > { %v3711_v59 = vmul.f32 1.442695, %v3527_v6 }
 0x583   : > { %v9359_v27 = vpop.f32.mrf.mxu3 }
 0x584   : > { %11291 = vst [vmem:[#allocation110_spill] sm:$0xff] %v9359_v27  ;;  %6003 = vpow2.f32 %v3711_v59 }
 0x586   : > { %v9376_v8 = vpop.f32.mrf.mxu0 }
 0x587   : > { %5775 = vmatmul.msk.f32.gmra.mxu2 %vm3110_vm6, %v10700_v58 }
 0x588   : > { %5696 = vmatmul.msk.f32.gmra.mxu3 %vm3174_vm1, %v5998_v44  ;;  %v6002_v44 = vpop.eup %6001 }
 0x589   : > { %5424 = vmatmul.msk.f32.gmra.mxu0 %vm485_vm4, %v6188_v19  ;;  %v3713_v19 = vmul.f32 1.442695, %v3528_v31 }
 0x58a   : > { %v6004_v6 = vpop.eup %6003 }
 0x58b   : > { %v9374_v20 = vpop.f32.mrf.mxu3  ;;  %6005 = vpow2.f32 %v3713_v19 }
 0x58c   : > { %11293 = vst [vmem:[#allocation120_spill] sm:$0xff] %v9374_v20 }
 0x58e   : > { %v9391_v45 = vpop.f32.mrf.mxu0 }
 0x58f   : > { %5776 = vmatmul.msk.f32.gmra.mxu2 %vm3118_vm10, %v10700_v58 }
 0x590   : > { %5697 = vmatmul.msk.f32.gmra.mxu3 %vm3174_vm1, %v6000_v23 }
 0x591   : > { %5425 = vmatmul.msk.f32.gmra.mxu0 %vm485_vm4, %v6189_v10  ;;  %v11298_v10 = vld [vmem:[#allocation41_spill] sm:$0xff]  ;;  %v6006_v31 = vpop.eup %6005 }
 0x592   : > { %v3529_v58 = vsub.f32 %v11298_v10, %v8863_v24 }
 0x593   : > { %v9389_v35 = vpop.f32.mrf.mxu3 }
 0x594   : > { %11295 = vst [vmem:[#allocation113_spill] sm:$0xff] %v9389_v35  ;;  %v3715_v36 = vmul.f32 1.442695, %v3529_v58 }
 0x596   : > { %v9400_v23 = vpop.f32.mrf.mxu0  ;;  %6007 = vpow2.f32 %v3715_v36 }
 0x598   : > { %5698 = vmatmul.msk.f32.gmra.mxu3 %vm3174_vm1, %v6002_v44 }
 0x599   : > { %5426 = vmatmul.msk.f32.gmra.mxu0 %vm485_vm4, %v6190_v34  ;;  %v11300_v34 = vld [vmem:[#allocation61_spill] sm:$0xff] }
 0x59a   : > { %v3530_v60 = vsub.f32 %v11300_v34, %v8863_v24 }
 0x59b   : > { %v9398_v62 = vpop.f32.mrf.mxu3 }
 0x59c   : > { %11297 = vst [vmem:[#allocation114_spill] sm:$0xff] %v9398_v62  ;;  %v3717_v10 = vmul.f32 1.442695, %v3530_v60  ;;  %v6008_v58 = vpop.eup %6007 }
 0x59e   : > { %v9409_v59 = vpop.f32.mrf.mxu0  ;;  %6009 = vpow2.f32 %v3717_v10  ;;  %v6194_v10 = vld [vmem:[%s6366_s7 + $0x230] sm:$0xff] }
 0x5a0   : > { %5699 = vmatmul.msk.f32.gmra.mxu3 %vm3174_vm1, %v6004_v6 }
 0x5a1   : > { %5427 = vmatmul.msk.f32.gmra.mxu0 %vm485_vm4, %v6191_v50  ;;  %v11302_v50 = vld [vmem:[#allocation42_spill] sm:$0xff] }
 0x5a2   : > { %v3531_v14 = vsub.f32 %v11302_v50, %v8863_v24 }
 0x5a3   : > { %v9407_v44 = vpop.f32.mrf.mxu3 }
 0x5a4   : > { %11299 = vst [vmem:[#allocation124_spill] sm:$0xff] %v9407_v44  ;;  %v3719_v34 = vmul.f32 1.442695, %v3531_v14  ;;  %v6010_v60 = vpop.eup %6009 }
 0x5a6   : > { %v9418_v19 = vpop.f32.mrf.mxu0  ;;  %6011 = vpow2.f32 %v3719_v34  ;;  %v6195_v34 = vld [vmem:[%s6366_s7 + $0x238] sm:$0xff] }
 0x5a8   : > { %5700 = vmatmul.msk.f32.gmra.mxu3 %vm3174_vm1, %v6006_v31 }
 0x5a9   : > { %5428 = vmatmul.msk.f32.gmra.mxu0 %vm485_vm4, %v6192_v7  ;;  %v11304_v7 = vld [vmem:[#allocation64_spill] sm:$0xff] }
 0x5aa   : > { %v3532_v32 = vsub.f32 %v11304_v7, %v8863_v24 }
 0x5ab   : > { %v9416_v6 = vpop.f32.mrf.mxu3 }
 0x5ac   : > { %11301 = vst [vmem:[#allocation117_spill] sm:$0xff] %v9416_v6  ;;  %v3721_v29 = vmul.f32 1.442695, %v3532_v32  ;;  %v6012_v14 = vpop.eup %6011 }
 0x5ae   : > { %v1022_v36 = vpop.f32.mrf.mxu0  ;;  %6013 = vpow2.f32 %v3721_v29  ;;  %v6196_v29 = vld [vmem:[%s6366_s7 + $0x240] sm:$0xff] }
 0x5b0   : > { %5701 = vmatmul.msk.f32.gmra.mxu3 %vm3174_vm1, %v6008_v58 }
 0x5b1   : > { %5429 = vmatmul.msk.f32.gmra.mxu0 %vm485_vm4, %v6193_v21  ;;  %v11306_v21 = vld [vmem:[#allocation52_spill] sm:$0xff] }
 0x5b2   : > { %v3533_v30 = vsub.f32 %v11306_v21, %v8863_v24 }
 0x5b3   : > { %v9425_v31 = vpop.f32.mrf.mxu3 }
 0x5b4   : > { %11303 = vst [vmem:[#allocation118_spill] sm:$0xff] %v9425_v31  ;;  %v3723_v4 = vmul.f32 1.442695, %v3533_v30  ;;  %v6014_v32 = vpop.eup %6013 }
 0x5b6   : > { %v1025_v50 = vpop.f32.mrf.mxu0  ;;  %6015 = vpow2.f32 %v3723_v4 }
 0x5b8   : > { %5702 = vmatmul.msk.f32.gmra.mxu3 %vm3174_vm1, %v6010_v60 }
 0x5b9   : > { %5430 = vmatmul.msk.f32.gmra.mxu0 %vm485_vm4, %v6194_v10  ;;  %v11308_v10 = vld [vmem:[#allocation67_spill] sm:$0xff] }
 0x5ba   : > { %v3534_v47 = vsub.f32 %v11308_v10, %v8863_v24 }
 0x5bb   : > { %v9432_v58 = vpop.f32.mrf.mxu3 }
 0x5bc   : > { %11305 = vst [vmem:[#allocation128_spill] sm:$0xff] %v9432_v58  ;;  %v3725_v38 = vmul.f32 1.442695, %v3534_v47  ;;  %v6016_v30 = vpop.eup %6015 }
 0x5be   : > { %v1028_v7 = vpop.f32.mrf.mxu0  ;;  %6017 = vpow2.f32 %v3725_v38 }
 0x5c0   : > { %5703 = vmatmul.msk.f32.gmra.mxu3 %vm3174_vm1, %v6012_v14 }
 0x5c1   : > { %5431 = vmatmul.msk.f32.gmra.mxu0 %vm485_vm4, %v6195_v34  ;;  %v11310_v34 = vld [vmem:[#allocation45_spill] sm:$0xff] }
 0x5c2   : > { %v3535_v55 = vsub.f32 %v11310_v34, %v8863_v24 }
 0x5c3   : > { %v9439_v60 = vpop.f32.mrf.mxu3 }
 0x5c4   : > { %11307 = vst [vmem:[#allocation122_spill] sm:$0xff] %v9439_v60  ;;  %v3727_v10 = vmul.f32 1.442695, %v3535_v55  ;;  %v6018_v47 = vpop.eup %6017 }
 0x5c6   : > { %v9448_v21 = vpop.f32.mrf.mxu0  ;;  %6019 = vpow2.f32 %v3727_v10  ;;  %v11314_v10 = vld [vmem:[#allocation78_spill] sm:$0xff] }
 0x5c8   : > { %5704 = vmatmul.msk.f32.gmra.mxu3 %vm3174_vm1, %v6014_v32 }
 0x5c9   : > { %5432 = vmatmul.msk.f32.gmra.mxu0 %vm485_vm4, %v6196_v29  ;;  %v11312_v29 = vld [vmem:[#allocation46_spill] sm:$0xff] }
 0x5ca   : > { %v3536_v15 = vsub.f32 %v11312_v29, %v8863_v24  ;;  %v3537_v29 = vsub.f32 %v11314_v10, %v8863_v24  ;;  %v4685_v10 = vmul.f32 %v9398_v62, %v9361_v61  ;;  %v11318_v61 = vld [vmem:[#allocation91_spill] sm:$0xff] }
 0x5cb   : > { %v9446_v14 = vpop.f32.mrf.mxu3 }
 0x5cc   : > { %11309 = vst [vmem:[#allocation123_spill] sm:$0xff] %v9446_v14  ;;  %v3729_v34 = vmul.f32 1.442695, %v3536_v15  ;;  %v4690_v15 = vmul.f32 %v9439_v60, %v9418_v19  ;;  %v4687_v19 = vmul.f32 %v9416_v6, %v9391_v45  ;;  %v4684_v45 = vmul.f32 %v9389_v35, %v9346_v49 }
 0x5cd   : > { %v4682_v49 = vmul.f32 %v9359_v27, %v9303_v3  ;;  %v4679_v3 = vmul.f32 %v9297_v63, %v9235_v0  ;;  %v6207_v63 = vld [vmem:[%s6366_s7 + $0x298] sm:$0xff] }
 0x5ce   : > { %v9457_v4 = vpop.f32.mrf.mxu0  ;;  %6021 = vpow2.f32 %v3729_v34 }
 0x5d0   : > { %5705 = vmatmul.msk.f32.gmra.mxu3 %vm3174_vm1, %v6016_v30 }
 0x5d1   : > { %5433 = vmatmul.msk.f32.gmra.mxu0 %vm485_vm4, %v6197_v16  ;;  %v6020_v16 = vpop.eup %6019 }
 0x5d3   : > { %v9455_v32 = vpop.f32.mrf.mxu3 }
 0x5d4   : > { %11311 = vst [vmem:[#allocation133_spill] sm:$0xff] %v9455_v32  ;;  %v4692_v25 = vmul.f32 %v9455_v32, %v1025_v50  ;;  %v6022_v34 = vpop.eup %6021 }
 0x5d6   : > { %v9468_v55 = vpop.f32.mrf.mxu0 }
 0x5d8   : > { %5706 = vmatmul.msk.f32.gmra.mxu3 %vm3174_vm1, %v6018_v47  ;;  %v4691_v47 = vmul.f32 %v9446_v14, %v1022_v36  ;;  %v4688_v36 = vmul.f32 %v9425_v31, %v9400_v23  ;;  %v4686_v23 = vmul.f32 %v9407_v44, %v9376_v8  ;;  %v4683_v8 = vmul.f32 %v9374_v20, %v9326_v22  ;;  %v6209_v20 = vld [vmem:[%s6366_s7 + $0x2a8] sm:$0xff] }
 0x5d9   : > { %5434 = vmatmul.msk.f32.gmra.mxu0 %vm485_vm4, %v6198_v54  ;;  %v4689_v54 = vmul.f32 %v9432_v58, %v9409_v59  ;;  %v11316_v59 = vld [vmem:[#allocation84_spill] sm:$0xff]  ;;  %v4680_v22 = vmul.f32 %v9320_v17, %v9259_v12  ;;  %v4678_v12 = vmul.f32 %v9274_v53, %v9218_v26  ;;  %v11324_v26 = vld [vmem:[#allocation59_spill] sm:$0xff]  ;;  %v6213_v14 = vld [vmem:[%s6366_s7 + $0x2c8] sm:$0xff] }
 0x5db   : > { %v9464_v30 = vpop.f32.mrf.mxu3 }
 0x5dc   : > { %11313 = vst [vmem:[#allocation126_spill] sm:$0xff] %v9464_v30  ;;  %v4693_v38 = vmul.f32 %v9464_v30, %v1028_v7  ;;  %v3731_v7 = vmul.f32 1.442695, %v3537_v29 }
 0x5de   : > { %4826 = vmatpush.msra.mxu2 %v4693_v38  ;;  %v6199_v38 = vld [vmem:[%s6366_s7 + $0x258] sm:$0xff]  ;;  %6023 = vpow2.f32 %v3731_v7 }
 0x5e0   : > { %5707 = vmatmul.msk.f32.gmra.mxu3 %vm3174_vm1, %v6020_v16  ;;  %4827 = vmatpush.msra.mxu2 %v4692_v25  ;;  %v9484_v25 = vpop.f32.mrf.mxu0  ;;  %v3538_v16 = vsub.f32 %v11316_v59, %v8863_v24 }
 0x5e1   : > { %5435 = vmatmul.msk.f32.gmra.mxu0 %vm485_vm4, %v6199_v38 }
 0x5e2   : > { %4828 = vmatpush.msra.mxu2 %v4691_v47  ;;  %v3733_v29 = vmul.f32 1.442695, %v3538_v16  ;;  %v6201_v16 = vld [vmem:[%s6366_s7 + $0x268] sm:$0xff] }
 0x5e3   : > { %v9478_v50 = vpop.f32.mrf.mxu3 }
 0x5e4   : > { %11315 = vst [vmem:[#allocation127_spill] sm:$0xff] %v9478_v50  ;;  %4829 = vmatpush.msra.mxu2 %v4690_v15  ;;  %v6024_v7 = vpop.eup %6023  ;;  %6025 = vpow2.f32 %v3733_v29 }
 0x5e6   : > { %4830 = vmatpush.msra.mxu2 %v4689_v54  ;;  %v6200_v54 = vld [vmem:[%s6366_s7 + $0x260] sm:$0xff] }
 0x5e8   : > { %5708 = vmatmul.msk.f32.gmra.mxu3 %vm3174_vm1, %v6022_v34  ;;  %4831 = vmatpush.msra.mxu2 %v4688_v36  ;;  %v9501_v15 = vpop.f32.mrf.mxu0  ;;  %v3539_v36 = vsub.f32 %v11318_v61, %v8863_v24  ;;  %v4681_v34 = vmul.f32 %v9337_v9, %v9280_v33  ;;  %v11320_v33 = vld [vmem:[#allocation98_spill] sm:$0xff]  ;;  %v6208_v9 = vld [vmem:[%s6366_s7 + $0x2a0] sm:$0xff] }
 0x5e9   : > { %5436 = vmatmul.msk.f32.gmra.mxu0 %vm485_vm4, %v6200_v54  ;;  %v11322_v54 = vmov 1.0  }
 0x5ea   : > { %4832 = vmatpush.msra.mxu2 %v4687_v19  ;;  %v3735_v19 = vmul.f32 1.442695, %v3539_v36  ;;  %v3541_v36 = vsub.f32 %v11324_v26, %v8863_v24 }
 0x5eb   : > { %v9495_v47 = vpop.f32.mrf.mxu3 }
 0x5ec   : > { %11317 = vst [vmem:[#allocation137_spill] sm:$0xff] %v9495_v47  ;;  %4833 = vmatpush.msra.mxu2 %v4686_v23  ;;  %v6026_v23 = vpop.eup %6025  ;;  %6027 = vpow2.f32 %v3735_v19 }
 0x5ee   : > { %4834 = vmatpush.msra.mxu2 %v4685_v10  ;;  %v3540_v10 = vsub.f32 %v11320_v33, %v8863_v24 }
 0x5f0   : > { %5709 = vmatmul.msk.f32.gmra.mxu3 %vm3174_vm1, %v6024_v7  ;;  %4835 = vmatpush.msra.mxu2 %v4684_v45  ;;  %v9518_v59 = vpop.f32.mrf.mxu0  ;;  %v3737_v45 = vmul.f32 1.442695, %v3540_v10  ;;  %v11323_v7 = vld [vmem:[#allocation174_spill] sm:$0xff] }
 0x5f1   : > { %5437 = vmatmul.msk.f32.gmra.mxu0 %vm485_vm4, %v6201_v16  ;;  %vm11328_vm11 = vcmp.eq.s32.totalorder %v11323_v7, %v11282_v56  ;;  %v6206_v7 = vld [vmem:[%s6366_s7 + $0x290] sm:$0xff] }
 0x5f2   : > { %4836 = vmatpush.msra.mxu2 %v4683_v8  ;;  %v6202_v8 = vld [vmem:[%s6366_s7 + $0x270] sm:$0xff]  ;;  %v6028_v61 = vpop.eup %6027  ;;  %6029 = vpow2.f32 %v3737_v45  ;;  %v6204_v45 = vld [vmem:[%s6366_s7 + $0x280] sm:$0xff] }
 0x5f3   : > { %v9512_v38 = vpop.f32.mrf.mxu3 }
 0x5f4   : > { %11319 = vst [vmem:[#allocation130_spill] sm:$0xff] %v9512_v38  ;;  %4837 = vmatpush.msra.mxu2 %v4682_v49 }
 0x5f6   : > { %4838 = vmatpush.msra.mxu2 %v4681_v34  ;;  %v3739_v34 = vmul.f32 1.442695, %v3541_v36 }
 0x5f8   : > { %5710 = vmatmul.msk.f32.gmra.mxu3 %vm3174_vm1, %v6026_v23  ;;  %4839 = vmatpush.msra.mxu2 %v4680_v22  ;;  %v9535_v0 = vpop.f32.mrf.mxu0  ;;  %v6203_v22 = vld [vmem:[%s6366_s7 + $0x278] sm:$0xff]  ;;  %v6030_v16 = vpop.eup %6029  ;;  %6031 = vpow2.f32 %v3739_v34 }
 0x5f9   : > { %5438 = vmatmul.msk.f32.gmra.mxu0 %vm485_vm4, %v6202_v8  ;;  %v11326_v23 = vld [vmem:[#allocation108_spill] sm:$0xff] }
 0x5fa   : > { %4840 = vmatpush.msra.mxu2 %v4679_v3  ;;  %v3542_v3 = vsub.f32 %v11326_v23, %v8863_v24 }
 0x5fb   : > { %v9529_v29 = vpop.f32.mrf.mxu3 }
 0x5fc   : > { %11321 = vst [vmem:[#allocation131_spill] sm:$0xff] %v9529_v29  ;;  %4841 = vmatpush.msra.mxu2 %v4678_v12  ;;  %v3741_v10 = vmul.f32 1.442695, %v3542_v3  ;;  %v11331_v3 = vld [vmem:[#allocation112_spill] sm:$0xff] }
 0x5fd   : > { %5777 = vmatmul.msk.f32.vlgmr.msra.gmra.mxu2 %vm3103_vm2, %v11322_v54 }
 0x5fe   : > { %v6032_v8 = vpop.eup %6031  ;;  %6033 = vpow2.f32 %v3741_v10 }
 0x600   : > { %5711 = vmatmul.msk.f32.gmra.mxu3 %vm3174_vm1, %v6028_v61  ;;  %v9548_v19 = vpop.f32.mrf.mxu0  ;;  %v11329_v61 = vld [vmem:[#allocation62_spill] sm:$0xff] }
 0x601   : > { %5439 = vmatmul.msk.f32.gmra.mxu0 %vm485_vm4, %v6203_v22  ;;  %v3543_v26 = vsub.f32 %v11329_v61, %v8863_v24 }
 0x603   : > { %v9542_v49 = vpop.f32.mrf.mxu3  ;;  %v3743_v34 = vmul.f32 1.442695, %v3543_v26 }
 0x604   : > { %11325 = vst [vmem:[#allocation141_spill] sm:$0xff] %v9542_v49  ;;  %v6034_v23 = vpop.eup %6033 }
 0x605   : > { %5778 = vmatmul.msk.f32.gmra.mxu2 %vm3111_vm3, %v11322_v54  ;;  %6035 = vpow2.f32 %v3743_v34 }
 0x608   : > { %5712 = vmatmul.msk.f32.gmra.mxu3 %vm3174_vm1, %v6030_v16  ;;  %v9561_v12 = vpop.f32.mrf.mxu0  ;;  %v6205_v16 = vld [vmem:[%s6366_s7 + $0x288] sm:$0xff] }
 0x609   : > { %5440 = vmatmul.msk.f32.gmra.mxu0 %vm485_vm4, %v6204_v45  ;;  %v3544_v45 = vsub.f32 %v11331_v3, %v8863_v24 }
 0x60b   : > { %v9555_v33 = vpop.f32.mrf.mxu3  ;;  %v3745_v61 = vmul.f32 1.442695, %v3544_v45  ;;  %v6036_v26 = vpop.eup %6035 }
 0x60c   : > { %11327 = vst [vmem:[#allocation134_spill] sm:$0xff] %v9555_v33 }
 0x60d   : > { %5779 = vmatmul.msk.f32.gmra.mxu2 %vm11328_vm11, %v11322_v54  ;;  %6037 = vpow2.f32 %v3745_v61 }
 0x610   : > { %5713 = vmatmul.msk.f32.gmra.mxu3 %vm3174_vm1, %v6032_v8  ;;  %v9570_v22 = vpop.f32.mrf.mxu0 }
 0x611   : > { %5441 = vmatmul.msk.f32.gmra.mxu0 %vm485_vm4, %v6205_v16  ;;  %v11333_v16 = vld [vmem:[#allocation63_spill] sm:$0xff] }
 0x612   : > { %v3545_v53 = vsub.f32 %v11333_v16, %v8863_v24 }
 0x613   : > { %v9568_v36 = vpop.f32.mrf.mxu3  ;;  %v6038_v45 = vpop.eup %6037 }
 0x614   : > { %11330 = vst [vmem:[#allocation135_spill] sm:$0xff] %v9568_v36  ;;  %v3747_v3 = vmul.f32 1.442695, %v3545_v53 }
 0x616   : > { %6039 = vpow2.f32 %v3747_v3 }
 0x618   : > { %5714 = vmatmul.msk.f32.gmra.mxu3 %vm3174_vm1, %v6034_v23  ;;  %v9579_v10 = vpop.f32.mrf.mxu0 }
 0x619   : > { %5442 = vmatmul.msk.f32.gmra.mxu0 %vm485_vm4, %v6206_v7  ;;  %v11335_v7 = vld [vmem:[#allocation115_spill] sm:$0xff] }
 0x61a   : > { %v3546_v17 = vsub.f32 %v11335_v7, %v8863_v24 }
 0x61b   : > { %v9577_v8 = vpop.f32.mrf.mxu3 }
 0x61c   : > { %11332 = vst [vmem:[#allocation145_spill] sm:$0xff] %v9577_v8  ;;  %v3749_v16 = vmul.f32 1.442695, %v3546_v17  ;;  %v6040_v53 = vpop.eup %6039 }
 0x61e   : > { %6041 = vpow2.f32 %v3749_v16  ;;  %v6210_v16 = vld [vmem:[%s6366_s7 + $0x2b0] sm:$0xff] }
 0x620   : > { %5715 = vmatmul.msk.f32.gmra.mxu3 %vm3174_vm1, %v6036_v26  ;;  %v9588_v34 = vpop.f32.mrf.mxu0 }
 0x621   : > { %5443 = vmatmul.msk.f32.gmra.mxu0 %vm485_vm4, %v6207_v63  ;;  %v11337_v63 = vld [vmem:[#allocation73_spill] sm:$0xff] }
 0x622   : > { %v3547_v27 = vsub.f32 %v11337_v63, %v8863_v24 }
 0x623   : > { %v9586_v23 = vpop.f32.mrf.mxu3 }
 0x624   : > { %11334 = vst [vmem:[#allocation139_spill] sm:$0xff] %v9586_v23  ;;  %v3751_v7 = vmul.f32 1.442695, %v3547_v27  ;;  %v6042_v17 = vpop.eup %6041 }
 0x626   : > { %6043 = vpow2.f32 %v3751_v7  ;;  %v6211_v7 = vld [vmem:[%s6366_s7 + $0x2b8] sm:$0xff] }
 0x628   : > { %5716 = vmatmul.msk.f32.gmra.mxu3 %vm3174_vm1, %v6038_v45  ;;  %v9597_v61 = vpop.f32.mrf.mxu0 }
 0x629   : > { %5444 = vmatmul.msk.f32.gmra.mxu0 %vm485_vm4, %v6208_v9  ;;  %v11339_v9 = vld [vmem:[#allocation119_spill] sm:$0xff] }
 0x62a   : > { %v3548_v35 = vsub.f32 %v11339_v9, %v8863_v24 }
 0x62b   : > { %v9595_v26 = vpop.f32.mrf.mxu3 }
 0x62c   : > { %11336 = vst [vmem:[#allocation166_spill] sm:$0xff] %v9595_v26  ;;  %v3753_v62 = vmul.f32 1.442695, %v3548_v35  ;;  %v6044_v27 = vpop.eup %6043 }
 0x62e   : > { %6045 = vpow2.f32 %v3753_v62  ;;  %v6212_v62 = vld [vmem:[%s6366_s7 + $0x2c0] sm:$0xff] }
 0x630   : > { %5717 = vmatmul.msk.f32.gmra.mxu3 %vm3174_vm1, %v6040_v53  ;;  %v1070_v3 = vpop.f32.mrf.mxu0 }
 0x631   : > { %5445 = vmatmul.msk.f32.gmra.mxu0 %vm485_vm4, %v6209_v20  ;;  %v11341_v20 = vld [vmem:[#allocation121_spill] sm:$0xff] }
 0x632   : > { %v3549_v44 = vsub.f32 %v11341_v20, %v8863_v24 }
 0x633   : > { %v9604_v45 = vpop.f32.mrf.mxu3 }
 0x634   : > { %11338 = vst [vmem:[#allocation167_spill] sm:$0xff] %v9604_v45  ;;  %v3755_v6 = vmul.f32 1.442695, %v3549_v44  ;;  %v6046_v35 = vpop.eup %6045 }
 0x636   : > { %6047 = vpow2.f32 %v3755_v6 }
 0x638   : > { %5718 = vmatmul.msk.f32.gmra.mxu3 %vm3174_vm1, %v6042_v17  ;;  %v1073_v63 = vpop.f32.mrf.mxu0 }
 0x639   : > { %5446 = vmatmul.msk.f32.gmra.mxu0 %vm485_vm4, %v6210_v16  ;;  %v11343_v16 = vld [vmem:[#allocation66_spill] sm:$0xff] }
 0x63a   : > { %v3550_v31 = vsub.f32 %v11343_v16, %v8863_v24 }
 0x63b   : > { %v9611_v53 = vpop.f32.mrf.mxu3 }
 0x63c   : > { %11340 = vst [vmem:[#allocation170_spill] sm:$0xff] %v9611_v53  ;;  %v3757_v58 = vmul.f32 1.442695, %v3550_v31  ;;  %v6048_v44 = vpop.eup %6047 }
 0x63e   : > { %6049 = vpow2.f32 %v3757_v58 }
 0x640   : > { %5719 = vmatmul.msk.f32.gmra.mxu3 %vm3174_vm1, %v6044_v27  ;;  %v1076_v9 = vpop.f32.mrf.mxu0 }
 0x641   : > { %5447 = vmatmul.msk.f32.gmra.mxu0 %vm485_vm4, %v6211_v7  ;;  %v11345_v7 = vld [vmem:[#allocation125_spill] sm:$0xff] }
 0x642   : > { %v3551_v60 = vsub.f32 %v11345_v7, %v8863_v24 }
 0x643   : > { %v9618_v17 = vpop.f32.mrf.mxu3 }
 0x644   : > { %11342 = vst [vmem:[#allocation14_spill] sm:$0xff] %v9618_v17  ;;  %v3759_v16 = vmul.f32 1.442695, %v3551_v60  ;;  %v6050_v31 = vpop.eup %6049 }
 0x646   : > { %6051 = vpow2.f32 %v3759_v16  ;;  %v11349_v16 = vld [vmem:[#allocation129_spill] sm:$0xff] }
 0x648   : > { %5720 = vmatmul.msk.f32.gmra.mxu3 %vm3174_vm1, %v6046_v35  ;;  %v9627_v20 = vpop.f32.mrf.mxu0 }
 0x649   : > { %5448 = vmatmul.msk.f32.gmra.mxu0 %vm485_vm4, %v6212_v62  ;;  %v11347_v62 = vld [vmem:[#allocation68_spill] sm:$0xff] }
 0x64a   : > { %v3552_v32 = vsub.f32 %v11347_v62, %v8863_v24  ;;  %v3553_v62 = vsub.f32 %v11349_v16, %v8863_v24  ;;  %v4701_v16 = vmul.f32 %v9577_v8, %v9548_v19  ;;  %v11353_v19 = vld [vmem:[#allocation71_spill] sm:$0xff] }
 0x64b   : > { %v9625_v27 = vpop.f32.mrf.mxu3 }
 0x64c   : > { %11344 = vst [vmem:[#allocation181_spill] sm:$0xff] %v9625_v27  ;;  %v3761_v7 = vmul.f32 1.442695, %v3552_v32  ;;  %v4706_v32 = vmul.f32 %v9618_v17, %v9597_v61  ;;  %v4703_v61 = vmul.f32 %v9595_v26, %v9570_v22  ;;  %v4700_v22 = vmul.f32 %v9568_v36, %v9535_v0  ;;  %v6229_v17 = vld [vmem:[%s6366_s7 + $0x348] sm:$0xff] }
 0x64d   : > { %v4698_v0 = vmul.f32 %v9542_v49, %v9501_v15  ;;  %v4695_v15 = vmul.f32 %v9495_v47, %v9457_v4  ;;  %v6225_v49 = vld [vmem:[%s6366_s7 + $0x328] sm:$0xff] }
 0x64e   : > { %6053 = vpow2.f32 %v3761_v7 }
 0x650   : > { %5721 = vmatmul.msk.f32.gmra.mxu3 %vm3174_vm1, %v6048_v44  ;;  %v9636_v6 = vpop.f32.mrf.mxu0 }
 0x651   : > { %5449 = vmatmul.msk.f32.gmra.mxu0 %vm485_vm4, %v6213_v14  ;;  %v6052_v14 = vpop.eup %6051 }
 0x653   : > { %v9634_v35 = vpop.f32.mrf.mxu3 }
 0x654   : > { %11346 = vst [vmem:[#allocation7_spill] sm:$0xff] %v9634_v35  ;;  %v4708_v30 = vmul.f32 %v9634_v35, %v1073_v63  ;;  %v6054_v7 = vpop.eup %6053 }
 0x658   : > { %5722 = vmatmul.msk.f32.gmra.mxu3 %vm3174_vm1, %v6050_v31  ;;  %v9647_v60 = vpop.f32.mrf.mxu0  ;;  %v4707_v31 = vmul.f32 %v9625_v27, %v1070_v3  ;;  %v4704_v3 = vmul.f32 %v9604_v45, %v9579_v10  ;;  %v4702_v10 = vmul.f32 %v9586_v23, %v9561_v12  ;;  %v4699_v12 = vmul.f32 %v9555_v33, %v9518_v59 }
 0x659   : > { %5450 = vmatmul.msk.f32.gmra.mxu0 %vm485_vm4, %v6214_v5  ;;  %v4705_v5 = vmul.f32 %v9611_v53, %v9588_v34  ;;  %v11351_v34 = vld [vmem:[#allocation77_spill] sm:$0xff]  ;;  %v4696_v59 = vmul.f32 %v9512_v38, %v9468_v55  ;;  %v4694_v55 = vmul.f32 %v9478_v50, %v9448_v21  ;;  %v11359_v21 = vld [vmem:[#allocation132_spill] sm:$0xff] }
 0x65a   : > { %v6223_v50 = vld [vmem:[%s6366_s7 + $0x318] sm:$0xff]  ;;  %v6224_v38 = vld [vmem:[%s6366_s7 + $0x320] sm:$0xff] }
 0x65b   : > { %v9643_v44 = vpop.f32.mrf.mxu3 }
 0x65c   : > { %11348 = vst [vmem:[#allocation183_spill] sm:$0xff] %v9643_v44  ;;  %v4709_v58 = vmul.f32 %v9643_v44, %v1076_v9  ;;  %v3763_v9 = vmul.f32 1.442695, %v3553_v62  ;;  %v6230_v44 = vld [vmem:[%s6366_s7 + $0x350] sm:$0xff] }
 0x65e   : > { %4852 = vmatpush.msrb.mxu2 %v4709_v58  ;;  %v6215_v58 = vld [vmem:[%s6366_s7 + $0x2d8] sm:$0xff]  ;;  %6055 = vpow2.f32 %v3763_v9 }
 0x660   : > { %5723 = vmatmul.msk.f32.gmra.mxu3 %vm3174_vm1, %v6052_v14  ;;  %4853 = vmatpush.msrb.mxu2 %v4708_v30  ;;  %v9663_v30 = vpop.f32.mrf.mxu0  ;;  %v3554_v14 = vsub.f32 %v11351_v34, %v8863_v24 }
 0x661   : > { %5451 = vmatmul.msk.f32.gmra.mxu0 %vm485_vm4, %v6215_v58 }
 0x662   : > { %4854 = vmatpush.msrb.mxu2 %v4707_v31  ;;  %v3765_v62 = vmul.f32 1.442695, %v3554_v14  ;;  %v6217_v14 = vld [vmem:[%s6366_s7 + $0x2e8] sm:$0xff] }
 0x663   : > { %v9657_v63 = vpop.f32.mrf.mxu3 }
 0x664   : > { %11350 = vst [vmem:[#allocation8_spill] sm:$0xff] %v9657_v63  ;;  %4855 = vmatpush.msrb.mxu2 %v4706_v32  ;;  %v6056_v9 = vpop.eup %6055  ;;  %6057 = vpow2.f32 %v3765_v62 }
 0x666   : > { %4856 = vmatpush.msrb.mxu2 %v4705_v5  ;;  %v6216_v5 = vld [vmem:[%s6366_s7 + $0x2e0] sm:$0xff] }
 0x668   : > { %5724 = vmatmul.msk.f32.gmra.mxu3 %vm3174_vm1, %v6054_v7  ;;  %4857 = vmatpush.msrb.mxu2 %v4704_v3  ;;  %v9680_v32 = vpop.f32.mrf.mxu0  ;;  %v3555_v3 = vsub.f32 %v11353_v19, %v8863_v24  ;;  %v4697_v7 = vmul.f32 %v9529_v29, %v9484_v25  ;;  %v11355_v25 = vld [vmem:[#allocation72_spill] sm:$0xff]  ;;  %v3557_v19 = vsub.f32 %v11359_v21, %v8863_v24 }
 0x669   : > { %5452 = vmatmul.msk.f32.gmra.mxu0 %vm485_vm4, %v6216_v5  ;;  %v11357_v5 = vld [vmem:[#allocation175_spill] sm:$0xff] }
 0x66a   : > { %4858 = vmatpush.msrb.mxu2 %v4703_v61  ;;  %v3767_v61 = vmul.f32 1.442695, %v3555_v3  ;;  %vm11358_vm14 = vcmp.eq.s32.totalorder %v11357_v5, %v11276_v40  ;;  %vm11361_vm15 = vcmp.eq.s32.totalorder %v11357_v5, %v11279_v41  ;;  %vm11364_vm9 = vcmp.eq.s32.totalorder %v11357_v5, %v11282_v56 }
 0x66b   : > { %v9674_v31 = vpop.f32.mrf.mxu3 }
 0x66c   : > { %11352 = vst [vmem:[#allocation185_spill] sm:$0xff] %v9674_v31  ;;  %4859 = vmatpush.msrb.mxu2 %v4702_v10  ;;  %v6058_v10 = vpop.eup %6057  ;;  %6059 = vpow2.f32 %v3767_v61  ;;  %v6219_v61 = vld [vmem:[%s6366_s7 + $0x2f8] sm:$0xff] }
 0x66e   : > { %4860 = vmatpush.msrb.mxu2 %v4701_v16  ;;  %v3556_v16 = vsub.f32 %v11355_v25, %v8863_v24 }
 0x670   : > { %5725 = vmatmul.msk.f32.gmra.mxu3 %vm3174_vm1, %v6056_v9  ;;  %4861 = vmatpush.msrb.mxu2 %v4700_v22  ;;  %v9697_v34 = vpop.f32.mrf.mxu0  ;;  %v3769_v22 = vmul.f32 1.442695, %v3556_v16  ;;  %v6218_v9 = vld [vmem:[%s6366_s7 + $0x2f0] sm:$0xff] }
 0x671   : > { %5453 = vmatmul.msk.f32.gmra.mxu0 %vm485_vm4, %v6217_v14  ;;  %v11362_v14 = vld [vmem:[#allocation140_spill] sm:$0xff] }
 0x672   : > { %4862 = vmatpush.msrb.mxu2 %v4699_v12  ;;  %v6060_v12 = vpop.eup %6059  ;;  %6061 = vpow2.f32 %v3769_v22 }
 0x673   : > { %v9691_v58 = vpop.f32.mrf.mxu3 }
 0x674   : > { %11354 = vst [vmem:[#allocation17_spill] sm:$0xff] %v9691_v58  ;;  %4863 = vmatpush.msrb.mxu2 %v4698_v0  ;;  %v3771_v0 = vmul.f32 1.442695, %v3557_v19 }
 0x676   : > { %4864 = vmatpush.msrb.mxu2 %v4697_v7  ;;  %6063 = vpow2.f32 %v3771_v0 }
 0x678   : > { %5726 = vmatmul.msk.f32.gmra.mxu3 %vm3174_vm1, %v6058_v10  ;;  %4865 = vmatpush.msrb.mxu2 %v4696_v59  ;;  %v9714_v4 = vpop.f32.mrf.mxu0  ;;  %v6062_v59 = vpop.eup %6061  ;;  %v3558_v10 = vsub.f32 %v11362_v14, %v8863_v24  ;;  %v11367_v14 = vld [vmem:[#allocation144_spill] sm:$0xff] }
 0x679   : > { %5454 = vmatmul.msk.f32.gmra.mxu0 %vm485_vm4, %v6218_v9  ;;  %v11365_v9 = vld [vmem:[#allocation82_spill] sm:$0xff] }
 0x67a   : > { %4866 = vmatpush.msrb.mxu2 %v4695_v15  ;;  %v3773_v25 = vmul.f32 1.442695, %v3558_v10  ;;  %v3560_v10 = vsub.f32 %v11367_v14, %v8863_v24 }
 0x67b   : > { %v9708_v62 = vpop.f32.mrf.mxu3 }
 0x67c   : > { %11356 = vst [vmem:[#allocation9_spill] sm:$0xff] %v9708_v62  ;;  %4867 = vmatpush.msrb.mxu2 %v4694_v55  ;;  %v6220_v55 = vld [vmem:[%s6366_s7 + $0x300] sm:$0xff]  ;;  %v6064_v22 = vpop.eup %6063  ;;  %6065 = vpow2.f32 %v3773_v25 }
 0x67d   : > { %5780 = vmatmul.msk.f32.vlgmr.msrb.gmra.mxu2 %vm11358_vm14, %v11322_v54 }
 0x680   : > { %5727 = vmatmul.msk.f32.gmra.mxu3 %vm3174_vm1, %v6060_v12  ;;  %v9727_v7 = vpop.f32.mrf.mxu0  ;;  %v3559_v12 = vsub.f32 %v11365_v9, %v8863_v24  ;;  %v6222_v9 = vld [vmem:[%s6366_s7 + $0x310] sm:$0xff] }
 0x681   : > { %5455 = vmatmul.msk.f32.gmra.mxu0 %vm485_vm4, %v6219_v61  ;;  %v6221_v61 = vld [vmem:[%s6366_s7 + $0x308] sm:$0xff] }
 0x682   : > { %v3775_v19 = vmul.f32 1.442695, %v3559_v12 }
 0x683   : > { %v9721_v3 = vpop.f32.mrf.mxu3 }
 0x684   : > { %11360 = vst [vmem:[#allocation18_spill] sm:$0xff] %v9721_v3  ;;  %6067 = vpow2.f32 %v3775_v19 }
 0x685   : > { %5781 = vmatmul.msk.f32.gmra.mxu2 %vm11361_vm15, %v11322_v54 }
 0x688   : > { %5728 = vmatmul.msk.f32.gmra.mxu3 %vm3174_vm1, %v6062_v59  ;;  %v9740_v16 = vpop.f32.mrf.mxu0  ;;  %v6066_v59 = vpop.eup %6065 }
 0x689   : > { %5456 = vmatmul.msk.f32.gmra.mxu0 %vm485_vm4, %v6220_v55 }
 0x68a   : > { %v6068_v12 = vpop.eup %6067 }
 0x68b   : > { %v9734_v15 = vpop.f32.mrf.mxu3 }
 0x68c   : > { %11363 = vst [vmem:[#allocation10_spill] sm:$0xff] %v9734_v15 }
 0x68d   : > { %5782 = vmatmul.msk.f32.gmra.mxu2 %vm11364_vm9, %v11322_v54 }
 0x690   : > { %5729 = vmatmul.msk.f32.gmra.mxu3 %vm3174_vm1, %v6064_v22  ;;  %v9749_v0 = vpop.f32.mrf.mxu0  ;;  %v3777_v22 = vmul.f32 1.442695, %v3560_v10 }
 0x691   : > { %5457 = vmatmul.msk.f32.gmra.mxu0 %vm485_vm4, %v6221_v61  ;;  %v11369_v61 = vld [vmem:[#allocation136_spill] sm:$0xff] }
 0x692   : > { %v3561_v5 = vsub.f32 %v11369_v61, %v8863_v24  ;;  %6069 = vpow2.f32 %v3777_v22 }
 0x693   : > { %v9747_v21 = vpop.f32.mrf.mxu3 }
 0x694   : > { %11366 = vst [vmem:[#allocation11_spill] sm:$0xff] %v9747_v21  ;;  %v3779_v14 = vmul.f32 1.442695, %v3561_v5 }
 0x696   : > { %6071 = vpow2.f32 %v3779_v14 }
 0x698   : > { %5730 = vmatmul.msk.f32.gmra.mxu3 %vm3174_vm1, %v6066_v59  ;;  %v9758_v25 = vpop.f32.mrf.mxu0  ;;  %v6070_v10 = vpop.eup %6069 }
 0x699   : > { %5458 = vmatmul.msk.f32.gmra.mxu0 %vm485_vm4, %v6222_v9  ;;  %v11371_v9 = vld [vmem:[#allocation143_spill] sm:$0xff] }
 0x69a   : > { %v3562_v47 = vsub.f32 %v11371_v9, %v8863_v24 }
 0x69b   : > { %v9756_v55 = vpop.f32.mrf.mxu3 }
 0x69c   : > { %11368 = vst [vmem:[#allocation22_spill] sm:$0xff] %v9756_v55  ;;  %v3781_v61 = vmul.f32 1.442695, %v3562_v47  ;;  %v6072_v5 = vpop.eup %6071 }
 0x69e   : > { %6073 = vpow2.f32 %v3781_v61  ;;  %v6226_v61 = vld [vmem:[%s6366_s7 + $0x330] sm:$0xff] }
 0x6a0   : > { %5731 = vmatmul.msk.f32.gmra.mxu3 %vm3174_vm1, %v6068_v12  ;;  %v9767_v19 = vpop.f32.mrf.mxu0 }
 0x6a1   : > { %5459 = vmatmul.msk.f32.gmra.mxu0 %vm485_vm4, %v6223_v50  ;;  %v11373_v50 = vld [vmem:[#allocation75_spill] sm:$0xff] }
 0x6a2   : > { %v3563_v29 = vsub.f32 %v11373_v50, %v8863_v24 }
 0x6a3   : > { %v9765_v59 = vpop.f32.mrf.mxu3 }
 0x6a4   : > { %11370 = vst [vmem:[#allocation12_spill] sm:$0xff] %v9765_v59  ;;  %v3783_v9 = vmul.f32 1.442695, %v3563_v29  ;;  %v6074_v47 = vpop.eup %6073 }
 0x6a6   : > { %6075 = vpow2.f32 %v3783_v9  ;;  %v6227_v9 = vld [vmem:[%s6366_s7 + $0x338] sm:$0xff] }
 0x6a8   : > { %5732 = vmatmul.msk.f32.gmra.mxu3 %vm3174_vm1, %v6070_v10  ;;  %v9776_v22 = vpop.f32.mrf.mxu0 }
 0x6a9   : > { %5460 = vmatmul.msk.f32.gmra.mxu0 %vm485_vm4, %v6224_v38  ;;  %v11375_v38 = vld [vmem:[#allocation151_spill] sm:$0xff] }
 0x6aa   : > { %v3564_v33 = vsub.f32 %v11375_v38, %v8863_v24 }
 0x6ab   : > { %v9774_v12 = vpop.f32.mrf.mxu3 }
 0x6ac   : > { %11372 = vst [vmem:[#allocation23_spill] sm:$0xff] %v9774_v12  ;;  %v3785_v36 = vmul.f32 1.442695, %v3564_v33  ;;  %v6076_v29 = vpop.eup %6075 }
 0x6ae   : > { %6077 = vpow2.f32 %v3785_v36  ;;  %v6228_v36 = vld [vmem:[%s6366_s7 + $0x340] sm:$0xff] }
 0x6b0   : > { %5733 = vmatmul.msk.f32.gmra.mxu3 %vm3174_vm1, %v6072_v5  ;;  %v1118_v14 = vpop.f32.mrf.mxu0 }
 0x6b1   : > { %5461 = vmatmul.msk.f32.gmra.mxu0 %vm485_vm4, %v6225_v49  ;;  %v11377_v49 = vld [vmem:[#allocation149_spill] sm:$0xff] }
 0x6b2   : > { %v3565_v8 = vsub.f32 %v11377_v49, %v8863_v24 }
 0x6b3   : > { %v9783_v10 = vpop.f32.mrf.mxu3 }
 0x6b4   : > { %11374 = vst [vmem:[#allocation15_spill] sm:$0xff] %v9783_v10  ;;  %v3787_v23 = vmul.f32 1.442695, %v3565_v8  ;;  %v6078_v33 = vpop.eup %6077 }
 0x6b6   : > { %6079 = vpow2.f32 %v3787_v23 }
 0x6b8   : > { %5734 = vmatmul.msk.f32.gmra.mxu3 %vm3174_vm1, %v6074_v47  ;;  %v1121_v50 = vpop.f32.mrf.mxu0 }
 0x6b9   : > { %5462 = vmatmul.msk.f32.gmra.mxu0 %vm485_vm4, %v6226_v61  ;;  %v11379_v61 = vld [vmem:[#allocation138_spill] sm:$0xff] }
 0x6ba   : > { %v3566_v26 = vsub.f32 %v11379_v61, %v8863_v24 }
 0x6bb   : > { %v9790_v5 = vpop.f32.mrf.mxu3 }
 0x6bc   : > { %11376 = vst [vmem:[#allocation19_spill] sm:$0xff] %v9790_v5  ;;  %v3789_v45 = vmul.f32 1.442695, %v3566_v26  ;;  %v6080_v8 = vpop.eup %6079 }
 0x6be   : > { %6081 = vpow2.f32 %v3789_v45 }
 0x6c0   : > { %5735 = vmatmul.msk.f32.gmra.mxu3 %vm3174_vm1, %v6076_v29  ;;  %v1124_v38 = vpop.f32.mrf.mxu0 }
 0x6c1   : > { %5463 = vmatmul.msk.f32.gmra.mxu0 %vm485_vm4, %v6227_v9  ;;  %v11381_v9 = vld [vmem:[#allocation148_spill] sm:$0xff] }
 0x6c2   : > { %v3567_v53 = vsub.f32 %v11381_v9, %v8863_v24 }
 0x6c3   : > { %v9797_v47 = vpop.f32.mrf.mxu3 }
 0x6c4   : > { %11378 = vst [vmem:[#allocation26_spill] sm:$0xff] %v9797_v47  ;;  %v3791_v61 = vmul.f32 1.442695, %v3567_v53  ;;  %v6082_v26 = vpop.eup %6081 }
 0x6c6   : > { %6083 = vpow2.f32 %v3791_v61  ;;  %v11385_v61 = vld [vmem:[#allocation156_spill] sm:$0xff] }
 0x6c8   : > { %5736 = vmatmul.msk.f32.gmra.mxu3 %vm3174_vm1, %v6078_v33  ;;  %v9806_v49 = vpop.f32.mrf.mxu0 }
 0x6c9   : > { %5464 = vmatmul.msk.f32.gmra.mxu0 %vm485_vm4, %v6228_v36  ;;  %v11383_v36 = vld [vmem:[#allocation76_spill] sm:$0xff] }
 0x6ca   : > { %v3568_v27 = vsub.f32 %v11383_v36, %v8863_v24  ;;  %v3569_v36 = vsub.f32 %v11385_v61, %v8863_v24  ;;  %v4717_v61 = vmul.f32 %v9756_v55, %v9727_v7  ;;  %v11389_v7 = vld [vmem:[#allocation142_spill] sm:$0xff] }
 0x6cb   : > { %v9804_v29 = vpop.f32.mrf.mxu3 }
 0x6cc   : > { %11380 = vst [vmem:[#allocation21_spill] sm:$0xff] %v9804_v29  ;;  %v3793_v9 = vmul.f32 1.442695, %v3568_v27  ;;  %v4722_v27 = vmul.f32 %v9797_v47, %v9776_v22  ;;  %v4719_v22 = vmul.f32 %v9774_v12, %v9749_v0  ;;  %v4716_v0 = vmul.f32 %v9747_v21, %v9714_v4 }
 0x6cd   : > { %v4714_v4 = vmul.f32 %v9721_v3, %v9680_v32  ;;  %v4711_v32 = vmul.f32 %v9674_v31, %v9636_v6 }
 0x6ce   : > { %6085 = vpow2.f32 %v3793_v9 }
 0x6d0   : > { %5737 = vmatmul.msk.f32.gmra.mxu3 %vm3174_vm1, %v6080_v8  ;;  %v9815_v23 = vpop.f32.mrf.mxu0 }
 0x6d1   : > { %5465 = vmatmul.msk.f32.gmra.mxu0 %vm485_vm4, %v6229_v17  ;;  %v6084_v17 = vpop.eup %6083 }
 0x6d3   : > { %v9813_v33 = vpop.f32.mrf.mxu3 }
 0x6d4   : > { %11382 = vst [vmem:[#allocation27_spill] sm:$0xff] %v9813_v33  ;;  %v4724_v35 = vmul.f32 %v9813_v33, %v1121_v50  ;;  %v6086_v9 = vpop.eup %6085 }
 0x6d8   : > { %5738 = vmatmul.msk.f32.gmra.mxu3 %vm3174_vm1, %v6082_v26  ;;  %v9826_v53 = vpop.f32.mrf.mxu0  ;;  %v4723_v26 = vmul.f32 %v9804_v29, %v1118_v14  ;;  %v4720_v14 = vmul.f32 %v9783_v10, %v9758_v25  ;;  %v4718_v25 = vmul.f32 %v9765_v59, %v9740_v16  ;;  %v4715_v16 = vmul.f32 %v9734_v15, %v9697_v34 }
 0x6d9   : > { %5466 = vmatmul.msk.f32.gmra.mxu0 %vm485_vm4, %v6230_v44  ;;  %v4721_v44 = vmul.f32 %v9790_v5, %v9767_v19  ;;  %v11387_v19 = vld [vmem:[#allocation154_spill] sm:$0xff]  ;;  %v4712_v34 = vmul.f32 %v9691_v58, %v9647_v60  ;;  %v4710_v60 = vmul.f32 %v9657_v63, %v9627_v20 }
 0x6da   : > { %v11395_v20 = vld [vmem:[#allocation86_spill] sm:$0xff] }
 0x6db   : > { %v9822_v8 = vpop.f32.mrf.mxu3 }
 0x6dc   : > { %11384 = vst [vmem:[#allocation25_spill] sm:$0xff] %v9822_v8  ;;  %v4725_v45 = vmul.f32 %v9822_v8, %v1124_v38  ;;  %v3795_v38 = vmul.f32 1.442695, %v3569_v36 }
 0x6de   : > { %4878 = vmatpush.msra.mxu2 %v4725_v45  ;;  %v6231_v45 = vld [vmem:[%s6366_s7 + $0x358] sm:$0xff]  ;;  %6087 = vpow2.f32 %v3795_v38 }
 0x6e0   : > { %5739 = vmatmul.msk.f32.gmra.mxu3 %vm3174_vm1, %v6084_v17  ;;  %4879 = vmatpush.msra.mxu2 %v4724_v35  ;;  %v9842_v35 = vpop.f32.mrf.mxu0  ;;  %v3570_v17 = vsub.f32 %v11387_v19, %v8863_v24 }
 0x6e1   : > { %5467 = vmatmul.msk.f32.gmra.mxu0 %vm485_vm4, %v6231_v45 }
 0x6e2   : > { %4880 = vmatpush.msra.mxu2 %v4723_v26  ;;  %v3797_v36 = vmul.f32 1.442695, %v3570_v17  ;;  %v6233_v17 = vld [vmem:[%s6366_s7 + $0x368] sm:$0xff] }
 0x6e3   : > { %v9836_v50 = vpop.f32.mrf.mxu3 }
 0x6e4   : > { %11386 = vst [vmem:[#allocation29_spill] sm:$0xff] %v9836_v50  ;;  %4881 = vmatpush.msra.mxu2 %v4722_v27  ;;  %v6088_v38 = vpop.eup %6087  ;;  %6089 = vpow2.f32 %v3797_v36 }
 0x6e6   : > { %4882 = vmatpush.msra.mxu2 %v4721_v44  ;;  %v6232_v44 = vld [vmem:[%s6366_s7 + $0x360] sm:$0xff] }
 0x6e8   : > { %5740 = vmatmul.msk.f32.gmra.mxu3 %vm3174_vm1, %v6086_v9  ;;  %4883 = vmatpush.msra.mxu2 %v4720_v14  ;;  %v9859_v27 = vpop.f32.mrf.mxu0  ;;  %v3571_v14 = vsub.f32 %v11389_v7, %v8863_v24  ;;  %v4713_v9 = vmul.f32 %v9708_v62, %v9663_v30  ;;  %v11391_v30 = vld [vmem:[#allocation153_spill] sm:$0xff]  ;;  %v3573_v7 = vsub.f32 %v11395_v20, %v8863_v24 }
 0x6e9   : > { %5468 = vmatmul.msk.f32.gmra.mxu0 %vm485_vm4, %v6232_v44  ;;  %v11393_v44 = vld [vmem:[#allocation176_spill] sm:$0xff] }
 0x6ea   : > { %4884 = vmatpush.msra.mxu2 %v4719_v22  ;;  %v3799_v22 = vmul.f32 1.442695, %v3571_v14  ;;  %vm11394_vm0 = vcmp.eq.s32.totalorder %v11393_v44, %v11276_v40  ;;  %vm11397_vm11 = vcmp.eq.s32.totalorder %v11393_v44, %v11279_v41  ;;  %vm11400_vm14 = vcmp.eq.s32.totalorder %v11393_v44, %v11282_v56 }
 0x6eb   : > { %v9853_v26 = vpop.f32.mrf.mxu3 }
 0x6ec   : > { %11388 = vst [vmem:[#allocation31_spill] sm:$0xff] %v9853_v26  ;;  %4885 = vmatpush.msra.mxu2 %v4718_v25  ;;  %v6090_v25 = vpop.eup %6089  ;;  %6091 = vpow2.f32 %v3799_v22  ;;  %v6235_v22 = vld [vmem:[%s6366_s7 + $0x378] sm:$0xff] }
 0x6ee   : > { %4886 = vmatpush.msra.mxu2 %v4717_v61  ;;  %v3572_v61 = vsub.f32 %v11391_v30, %v8863_v24 }
 0x6f0   : > { %5741 = vmatmul.msk.f32.gmra.mxu3 %vm3174_vm1, %v6088_v38  ;;  %4887 = vmatpush.msra.mxu2 %v4716_v0  ;;  %v9876_v19 = vpop.f32.mrf.mxu0  ;;  %v3801_v0 = vmul.f32 1.442695, %v3572_v61  ;;  %v6234_v38 = vld [vmem:[%s6366_s7 + $0x370] sm:$0xff] }
 0x6f1   : > { %5469 = vmatmul.msk.f32.gmra.mxu0 %vm485_vm4, %v6233_v17  ;;  %v11398_v17 = vld [vmem:[#allocation161_spill] sm:$0xff] }
 0x6f2   : > { %4888 = vmatpush.msra.mxu2 %v4715_v16  ;;  %v6092_v16 = vpop.eup %6091  ;;  %6093 = vpow2.f32 %v3801_v0  ;;  %v11401_v0 = vld [vmem:[#allocation159_spill] sm:$0xff] }
 0x6f3   : > { %v9870_v45 = vpop.f32.mrf.mxu3 }
 0x6f4   : > { %11390 = vst [vmem:[#allocation30_spill] sm:$0xff] %v9870_v45  ;;  %4889 = vmatpush.msra.mxu2 %v4714_v4  ;;  %v3803_v4 = vmul.f32 1.442695, %v3573_v7 }
 0x6f6   : > { %4890 = vmatpush.msra.mxu2 %v4713_v9  ;;  %6095 = vpow2.f32 %v3803_v4 }
 0x6f8   : > { %5742 = vmatmul.msk.f32.gmra.mxu3 %vm3174_vm1, %v6090_v25  ;;  %4891 = vmatpush.msra.mxu2 %v4712_v34  ;;  %v9893_v6 = vpop.f32.mrf.mxu0  ;;  %v6094_v34 = vpop.eup %6093  ;;  %v3574_v25 = vsub.f32 %v11398_v17, %v8863_v24 }
 0x6f9   : > { %5470 = vmatmul.msk.f32.gmra.mxu0 %vm485_vm4, %v6234_v38  ;;  %v3575_v38 = vsub.f32 %v11401_v0, %v8863_v24 }
 0x6fa   : > { %4892 = vmatpush.msra.mxu2 %v4711_v32  ;;  %v3805_v30 = vmul.f32 1.442695, %v3574_v25 }
 0x6fb   : > { %v9887_v36 = vpop.f32.mrf.mxu3  ;;  %v3807_v20 = vmul.f32 1.442695, %v3575_v38 }
 0x6fc   : > { %11392 = vst [vmem:[#allocation34_spill] sm:$0xff] %v9887_v36  ;;  %4893 = vmatpush.msra.mxu2 %v4710_v60  ;;  %v6096_v60 = vpop.eup %6095  ;;  %6097 = vpow2.f32 %v3805_v30  ;;  %v11405_v30 = vld [vmem:[#allocation160_spill] sm:$0xff] }
 0x6fd   : > { %5783 = vmatmul.msk.f32.vlgmr.msra.gmra.mxu2 %vm11394_vm0, %v11322_v54  ;;  %6099 = vpow2.f32 %v3807_v20  ;;  %v3577_v0 = vsub.f32 %v11405_v30, %v8863_v24  ;;  %v11407_v20 = vld [vmem:[#allocation79_spill] sm:$0xff] }
 0x6ff   : > { %v3811_v63 = vmul.f32 1.442695, %v3577_v0 }
 0x700   : > { %5743 = vmatmul.msk.f32.gmra.mxu3 %vm3174_vm1, %v6092_v16  ;;  %v9906_v9 = vpop.f32.mrf.mxu0 }
 0x701   : > { %5471 = vmatmul.msk.f32.gmra.mxu0 %vm485_vm4, %v6235_v22  ;;  %v11403_v22 = vld [vmem:[#allocation146_spill] sm:$0xff] }
 0x702   : > { %v6098_v4 = vpop.eup %6097 }
 0x703   : > { %v9900_v14 = vpop.f32.mrf.mxu3  ;;  %v6100_v44 = vpop.eup %6099 }
 0x704   : > { %11396 = vst [vmem:[#allocation37_spill] sm:$0xff] %v9900_v14 }
 0x705   : > { %5784 = vmatmul.msk.f32.gmra.mxu2 %vm11397_vm11, %v11322_v54 }
 0x708   : > { %5744 = vmatmul.msk.f32.gmra.mxu3 %vm3174_vm1, %v6094_v34  ;;  %v9919_v61 = vpop.f32.mrf.mxu0  ;;  %v3576_v34 = vsub.f32 %v11403_v22, %v8863_v24  ;;  %v3578_v22 = vsub.f32 %v11407_v20, %v8863_v24  ;;  %v11411_v20 = vld [vmem:[#allocation150_spill] sm:$0xff] }
 0x70a   : > { %v3809_v25 = vmul.f32 1.442695, %v3576_v34  ;;  %v3813_v58 = vmul.f32 1.442695, %v3578_v22  ;;  %v11412_v22 = vsub.f32 %v11411_v20, %v8863_v24  ;;  %v11415_v20 = vld [vmem:[#allocation80_spill] sm:$0xff] }
 0x70b   : > { %v9913_v32 = vpop.f32.mrf.mxu3 }
 0x70c   : > { %11399 = vst [vmem:[#allocation33_spill] sm:$0xff] %v9913_v32  ;;  %6101 = vpow2.f32 %v3809_v25  ;;  %v11409_v25 = vld [vmem:[#allocation168_spill] sm:$0xff]  ;;  %v3817_v21 = vmul.f32 1.442695, %v11412_v22  ;;  %v11416_v22 = vsub.f32 %v11415_v20, %v8863_v24  ;;  %v11418_v20 = vld [vmem:[#allocation49_spill] sm:$0xff] }
 0x70d   : > { %5785 = vmatmul.msk.f32.gmra.mxu2 %vm11400_vm14, %v11322_v54  ;;  %6103 = vpow2.f32 %v3811_v63  ;;  %v3579_v30 = vsub.f32 %v11409_v25, %v8863_v24  ;;  %v11413_v25 = vld [vmem:[#allocation165_spill] sm:$0xff] }
 0x70e   : > { %6105 = vpow2.f32 %v3813_v58  ;;  %v3821_v10 = vmul.f32 1.442695, %v11416_v22  ;;  %v3584_v22 = vsub.f32 %v11418_v20, %v8863_v24 }
 0x70f   : > { %v3815_v3 = vmul.f32 1.442695, %v3579_v30  ;;  %v11414_v30 = vsub.f32 %v11413_v25, %v8863_v24 }
 0x710   : > { %5745 = vmatmul.msk.f32.gmra.mxu3 %vm3174_vm1, %v6096_v60  ;;  %v9926_v7 = vpop.f32.mrf.mxu0 }
 0x711   : > { %6107 = vpow2.f32 %v3815_v3  ;;  %v3819_v59 = vmul.f32 1.442695, %v11414_v30 }
 0x712   : > { %v6102_v31 = vpop.eup %6101  ;;  %6109 = vpow2.f32 %v3817_v21 }
 0x713   : > { %v9924_v16 = vpop.f32.mrf.mxu3  ;;  %6111 = vpow2.f32 %v3819_v59 }
 0x714   : > { %11402 = vst [vmem:[#allocation35_spill] sm:$0xff] %v9924_v16  ;;  %6113 = vpow2.f32 %v3821_v10  ;;  %v3825_v10 = vmul.f32 1.442695, %v3584_v22 }
 0x718   : > { %5746 = vmatmul.msk.f32.gmra.mxu3 %vm3174_vm1, %v6098_v4  ;;  %v9933_v60 = vpop.f32.mrf.mxu0 }
 0x71b   : > { %v9931_v17 = vpop.f32.mrf.mxu3 }
 0x71c   : > { %11404 = vst [vmem:[#allocation44_spill] sm:$0xff] %v9931_v17 }
 0x720   : > { %5747 = vmatmul.msk.f32.gmra.mxu3 %vm3174_vm1, %v6100_v44  ;;  %v1160_v4 = vpop.f32.mrf.mxu0  ;;  %v6104_v44 = vpop.eup %6103 }
 0x723   : > { %v9938_v38 = vpop.f32.mrf.mxu3 }
 0x724   : > { %11406 = vst [vmem:[#allocation182_spill] sm:$0xff] %v9938_v38 }
 0x728   : > { %5748 = vmatmul.msk.f32.gmra.mxu3 %vm3174_vm1, %v6102_v31  ;;  %v1163_v62 = vpop.f32.mrf.mxu0  ;;  %v6106_v31 = vpop.eup %6105 }
 0x72b   : > { %v9943_v34 = vpop.f32.mrf.mxu3 }
 0x72c   : > { %11408 = vst [vmem:[#allocation43_spill] sm:$0xff] %v9943_v34 }
 0x730   : > { %5749 = vmatmul.msk.f32.gmra.mxu3 %vm3174_vm1, %v6104_v44  ;;  %v1166_v15 = vpop.f32.mrf.mxu0  ;;  %v6108_v44 = vpop.eup %6107 }
 0x733   : > { %v9948_v0 = vpop.f32.mrf.mxu3 }
 0x734   : > { %11410 = vst [vmem:[#allocation173_spill] sm:$0xff] %v9948_v0 }
 0x738   : > { %5750 = vmatmul.msk.f32.gmra.mxu3 %vm3174_vm1, %v6106_v31  ;;  %v1169_v55 = vpop.f32.mrf.mxu0  ;;  %v6110_v31 = vpop.eup %6109 }
 0x739   : > { %v6112_v21 = vpop.eup %6111 }
 0x73a   : > { %v6114_v59 = vpop.eup %6113 }
 0x73b   : > { %v9951_v63 = vpop.f32.mrf.mxu3 }
 0x740   : > { %5751 = vmatmul.msk.f32.gmra.mxu3 %vm3174_vm1, %v6108_v44  ;;  %v1172_v12 = vpop.f32.mrf.mxu0  ;;  %v11417_v44 = vld [vmem:[#allocation70_spill] sm:$0xff] }
 0x741   : > { %v3583_v25 = vsub.f32 %v11417_v44, %v8863_v24 }
 0x743   : > { %v9957_v58 = vpop.f32.mrf.mxu3  ;;  %v3823_v47 = vmul.f32 1.442695, %v3583_v25 }
 0x745   : > { %6115 = vpow2.f32 %v3823_v47  ;;  %v4738_v47 = vmul.f32 %v9957_v58, %v1163_v62  ;;  %v11421_v62 = vld [vmem:[#allocation74_spill] sm:$0xff] }
 0x746   : > { %6117 = vpow2.f32 %v3825_v10 }
 0x748   : > { %5752 = vmatmul.msk.f32.gmra.mxu3 %vm3174_vm1, %v6110_v31  ;;  %v9968_v5 = vpop.f32.mrf.mxu0 }
 0x74b   : > { %v9963_v3 = vpop.f32.mrf.mxu3  ;;  %v6116_v25 = vpop.eup %6115 }
 0x74c   : > { %v4739_v8 = vmul.f32 %v9963_v3, %v1166_v15 }
 0x750   : > { %5753 = vmatmul.msk.f32.gmra.mxu3 %vm3174_vm1, %v6112_v21  ;;  %v9975_v31 = vpop.f32.mrf.mxu0 }
 0x753   : > { %v9973_v30 = vpop.f32.mrf.mxu3 }
 0x754   : > { %v4740_v33 = vmul.f32 %v9973_v30, %v1169_v55  ;;  %v4737_v55 = vmul.f32 %v9951_v63, %v1160_v4  ;;  %v4734_v4 = vmul.f32 %v9938_v38, %v9919_v61  ;;  %v11423_v61 = vld [vmem:[#allocation60_spill] sm:$0xff] }
 0x758   : > { %5754 = vmatmul.msk.f32.gmra.mxu3 %vm3174_vm1, %v6114_v59  ;;  %v9984_v44 = vpop.f32.mrf.mxu0  ;;  %v11419_v59 = vld [vmem:[#allocation56_spill] sm:$0xff] }
 0x759   : > { %v3585_v20 = vsub.f32 %v11419_v59, %v8863_v24 }
 0x75b   : > { %v9980_v29 = vpop.f32.mrf.mxu3  ;;  %v3827_v22 = vmul.f32 1.442695, %v3585_v20 }
 0x75c   : > { %v4741_v21 = vmul.f32 %v9980_v29, %v1172_v12 }
 0x75d   : > { %6119 = vpow2.f32 %v3827_v22  ;;  %v3587_v22 = vsub.f32 %v11423_v61, %v8863_v24 }
 0x75e   : > { %4904 = vmatpush.msrb.mxu2 %v4741_v21  ;;  %v4736_v21 = vmul.f32 %v9948_v0, %v9933_v60  ;;  %v4733_v60 = vmul.f32 %v9931_v17, %v9906_v9  ;;  %v4730_v9 = vmul.f32 %v9900_v14, %v9859_v27  ;;  %v11425_v27 = vld [vmem:[#allocation51_spill] sm:$0xff] }
 0x760   : > { %5755 = vmatmul.msk.f32.gmra.mxu3 %vm3174_vm1, %v6116_v25  ;;  %4905 = vmatpush.msrb.mxu2 %v4740_v33  ;;  %v9996_v15 = vpop.f32.mrf.mxu0  ;;  %v6118_v33 = vpop.eup %6117  ;;  %v4735_v25 = vmul.f32 %v9943_v34, %v9926_v7  ;;  %v4732_v7 = vmul.f32 %v9924_v16, %v9893_v6  ;;  %v4729_v6 = vmul.f32 %v9887_v36, %v9842_v35 }
 0x761   : > { %v4726_v35 = vmul.f32 %v9836_v50, %v9806_v49 }
 0x762   : > { %4906 = vmatpush.msrb.mxu2 %v4739_v8  ;;  %v3586_v8 = vsub.f32 %v11421_v62, %v8863_v24 }
 0x763   : > { %v9991_v12 = vpop.f32.mrf.mxu3 }
 0x764   : > { %11420 = vst [vmem:[#allocation47_spill] sm:$0xff] %v9991_v12  ;;  %4907 = vmatpush.msrb.mxu2 %v4738_v47  ;;  %v3829_v59 = vmul.f32 1.442695, %v3586_v8  ;;  %v6120_v47 = vpop.eup %6119  ;;  %v4727_v8 = vmul.f32 %v9853_v26, %v9815_v23 }
 0x766   : > { %4908 = vmatpush.msrb.mxu2 %v4737_v55  ;;  %v4731_v55 = vmul.f32 %v9913_v32, %v9876_v19  ;;  %6121 = vpow2.f32 %v3829_v59  ;;  %v4728_v19 = vmul.f32 %v9870_v45, %v9826_v53  ;;  %v11427_v59 = vld [vmem:[#allocation177_spill] sm:$0xff] }
 0x767   : > { %vm11428_vm4 = vcmp.eq.s32.totalorder %v11427_v59, %v11276_v40  ;;  %vm11431_vm15 = vcmp.eq.s32.totalorder %v11427_v59, %v11279_v41  ;;  %vm11434_vm9 = vcmp.eq.s32.totalorder %v11427_v59, %v11282_v56 }
 0x768   : > { %5756 = vmatmul.msk.f32.gmra.mxu3 %vm3174_vm1, %v6118_v33  ;;  %4909 = vmatpush.msrb.mxu2 %v4736_v21  ;;  %v10011_v20 = vpop.f32.mrf.mxu0  ;;  %v3831_v33 = vmul.f32 1.442695, %v3587_v22 }
 0x76a   : > { %4910 = vmatpush.msrb.mxu2 %v4735_v25  ;;  %6123 = vpow2.f32 %v3831_v33 }
 0x76b   : > { %v10005_v10 = vpop.f32.mrf.mxu3 }
 0x76c   : > { %11422 = vst [vmem:[#allocation172_spill] sm:$0xff] %v10005_v10  ;;  %4911 = vmatpush.msrb.mxu2 %v4734_v4  ;;  %v6122_v62 = vpop.eup %6121  ;;  %v3588_v4 = vsub.f32 %v11425_v27, %v8863_v24  ;;  %v11435_v27 = vld [vmem:[#allocation54_spill] sm:$0xff] }
 0x76e   : > { %4912 = vmatpush.msrb.mxu2 %v4733_v60  ;;  %v3833_v53 = vmul.f32 1.442695, %v3588_v4  ;;  %v3591_v4 = vsub.f32 %v11435_v27, %v8863_v24 }
 0x770   : > { %5757 = vmatmul.msk.f32.gmra.mxu3 %vm3174_vm1, %v6120_v47  ;;  %4913 = vmatpush.msrb.mxu2 %v4732_v7  ;;  %v10026_v25 = vpop.f32.mrf.mxu0  ;;  %v6124_v23 = vpop.eup %6123  ;;  %v11429_v47 = vld [vmem:[#allocation81_spill] sm:$0xff]  ;;  %6125 = vpow2.f32 %v3833_v53 }
 0x772   : > { %4914 = vmatpush.msrb.mxu2 %v4731_v55  ;;  %v3589_v55 = vsub.f32 %v11429_v47, %v8863_v24 }
 0x773   : > { %v10020_v21 = vpop.f32.mrf.mxu3 }
 0x774   : > { %11424 = vst [vmem:[#allocation38_spill] sm:$0xff] %v10020_v21  ;;  %4915 = vmatpush.msrb.mxu2 %v4730_v9  ;;  %v3835_v61 = vmul.f32 1.442695, %v3589_v55  ;;  %v11432_v9 = vld [vmem:[#allocation55_spill] sm:$0xff] }
 0x775   : > { %v11437_v55 = vld [vmem:[#allocation87_spill] sm:$0xff] }
 0x776   : > { %4916 = vmatpush.msrb.mxu2 %v4729_v6  ;;  %v6126_v22 = vpop.eup %6125  ;;  %v3590_v6 = vsub.f32 %v11432_v9, %v8863_v24  ;;  %6127 = vpow2.f32 %v3835_v61  ;;  %v3592_v61 = vsub.f32 %v11437_v55, %v8863_v24 }
 0x778   : > { %5758 = vmatmul.msk.f32.gmra.mxu3 %vm3174_vm1, %v6122_v62  ;;  %4917 = vmatpush.msrb.mxu2 %v4728_v19  ;;  %v10041_v7 = vpop.f32.mrf.mxu0  ;;  %v3837_v62 = vmul.f32 1.442695, %v3590_v6  ;;  %v3841_v9 = vmul.f32 1.442695, %v3592_v61 }
 0x77a   : > { %4918 = vmatpush.msrb.mxu2 %v4727_v8  ;;  %6129 = vpow2.f32 %v3837_v62  ;;  %v11439_v62 = vld [vmem:[#allocation58_spill] sm:$0xff] }
 0x77b   : > { %v10035_v60 = vpop.f32.mrf.mxu3  ;;  %v3593_v27 = vsub.f32 %v11439_v62, %v8863_v24 }
 0x77c   : > { %11426 = vst [vmem:[#allocation50_spill] sm:$0xff] %v10035_v60  ;;  %4919 = vmatpush.msrb.mxu2 %v4726_v35  ;;  %v6128_v8 = vpop.eup %6127 }
 0x77d   : > { %5786 = vmatmul.msk.f32.vlgmr.msrb.gmra.mxu2 %vm11428_vm4, %v11322_v54 }
 0x780   : > { %5759 = vmatmul.msk.f32.gmra.mxu3 %vm3174_vm1, %v6124_v23  ;;  %v10055_v33 = vpop.f32.mrf.mxu0  ;;  %v3839_v23 = vmul.f32 1.442695, %v3591_v4  ;;  %v6130_v47 = vpop.eup %6129  ;;  %v3843_v4 = vmul.f32 1.442695, %v3593_v27 }
 0x782   : > { %6131 = vpow2.f32 %v3839_v23  ;;  %v11440_v23 = vld [vmem:[#allocation65_spill] sm:$0xff] }
 0x783   : > { %v10046_v49 = vpop.f32.mrf.mxu3  ;;  %6133 = vpow2.f32 %v3841_v9  ;;  %v3594_v55 = vsub.f32 %v11440_v23, %v8863_v24 }
 0x784   : > { %11430 = vst [vmem:[#allocation164_spill] sm:$0xff] %v10046_v49  ;;  %6135 = vpow2.f32 %v3843_v4 }
 0x785   : > { %5787 = vmatmul.msk.f32.gmra.mxu2 %vm11431_vm15, %v11322_v54  ;;  %v3845_v26 = vmul.f32 1.442695, %v3594_v55 }
 0x787   : > { %6137 = vpow2.f32 %v3845_v26  ;;  %v11443_v26 = vld [vmem:[#allocation102_spill] sm:$0xff] }
 0x788   : > { %5760 = vmatmul.msk.f32.gmra.mxu3 %vm3174_vm1, %v6126_v22  ;;  %v10068_v53 = vpop.f32.mrf.mxu0 }
 0x78b   : > { %v10057_v19 = vpop.f32.mrf.mxu3 }
 0x78c   : > { %11433 = vst [vmem:[#allocation39_spill] sm:$0xff] %v10057_v19 }
 0x78d   : > { %5788 = vmatmul.msk.f32.gmra.mxu2 %vm11434_vm9, %v11322_v54 }
 0x790   : > { %5761 = vmatmul.msk.f32.gmra.mxu3 %vm3174_vm1, %v6128_v8  ;;  %v1202_v6 = vpop.f32.mrf.mxu0  ;;  %v6132_v8 = vpop.eup %6131 }
 0x791   : > { %v6134_v50 = vpop.eup %6133 }
 0x792   : > { %v6136_v45 = vpop.eup %6135 }
 0x793   : > { %v10066_v35 = vpop.f32.mrf.mxu3  ;;  %v6138_v14 = vpop.eup %6137 }
 0x794   : > { %11436 = vst [vmem:[#allocation53_spill] sm:$0xff] %v10066_v35 }
 0x798   : > { %5762 = vmatmul.msk.f32.gmra.mxu3 %vm3174_vm1, %v6130_v47  ;;  %v1205_v47 = vpop.f32.mrf.mxu0 }
 0x79b   : > { %v10073_v22 = vpop.f32.mrf.mxu3 }
 0x79c   : > { %11438 = vst [vmem:[#allocation48_spill] sm:$0xff] %v10073_v22 }
 0x7a0   : > { %5763 = vmatmul.msk.f32.gmra.mxu3 %vm3174_vm1, %v6132_v8  ;;  %v11441_v8 = vld [vmem:[#allocation95_spill] sm:$0xff]  ;;  %v1208_v62 = vpop.f32.mrf.mxu0 }
 0x7a1   : > { %v3595_v9 = vsub.f32 %v11441_v8, %v8863_v24  ;;  %v3597_v8 = vsub.f32 %v11443_v26, %v8863_v24 }
 0x7a3   : > { %v10078_v59 = vpop.f32.mrf.mxu3  ;;  %v3847_v36 = vmul.f32 1.442695, %v3595_v9  ;;  %v3851_v9 = vmul.f32 1.442695, %v3597_v8 }
 0x7a5   : > { %6139 = vpow2.f32 %v3847_v36  ;;  %v11444_v36 = vld [vmem:[#allocation104_spill] sm:$0xff] }
 0x7a8   : > { %5764 = vmatmul.msk.f32.gmra.mxu3 %vm3174_vm1, %v6134_v50  ;;  %v11442_v50 = vld [vmem:[#allocation69_spill] sm:$0xff]  ;;  %v1211_v55 = vpop.f32.mrf.mxu0 }
 0x7a9   : > { %v3596_v4 = vsub.f32 %v11442_v50, %v8863_v24  ;;  %v3598_v50 = vsub.f32 %v11444_v36, %v8863_v24 }
 0x7ab   : > { %v10083_v61 = vpop.f32.mrf.mxu3  ;;  %v3849_v32 = vmul.f32 1.442695, %v3596_v4  ;;  %v3853_v4 = vmul.f32 1.442695, %v3598_v50 }
 0x7ad   : > { %6141 = vpow2.f32 %v3849_v32 }
 0x7ae   : > { %6143 = vpow2.f32 %v3851_v9 }
 0x7af   : > { %6145 = vpow2.f32 %v3853_v4 }
 0x7b0   : > { %5765 = vmatmul.msk.f32.gmra.mxu3 %vm3174_vm1, %v6136_v45  ;;  %v6140_v45 = vpop.eup %6139  ;;  %v1214_v17 = vpop.f32.mrf.mxu0 }
 0x7b3   : > { %v10088_v27 = vpop.f32.mrf.mxu3 }
 0x7b4   : > { %v4752_v4 = vmul.f32 %v10088_v27, %v1205_v47  ;;  %v4747_v47 = vmul.f32 %v10057_v19, %v10026_v25  ;;  %v4742_v25 = vmul.f32 %v9991_v12, %v9968_v5  ;;  %v11453_v12 = vld [vmem:[#allocation180_spill] sm:$0xff]  ;;  %v11455_v19 = vld [vmem:[#allocation163_spill] sm:$0xff] }
 0x7b8   : > { %5766 = vmatmul.msk.f32.gmra.mxu3 %vm3174_vm1, %v6138_v14  ;;  %v6142_v14 = vpop.eup %6141 }
 0x7b9   : > { %v6144_v34 = vpop.eup %6143 }
 0x7ba   : > { %v6146_v26 = vpop.eup %6145 }
 0x7bb   : > { %v10093_v23 = vpop.f32.mrf.mxu3 }
 0x7bc   : > { %v4753_v50 = vmul.f32 %v10093_v23, %v1208_v62  ;;  %v4748_v62 = vmul.f32 %v10066_v35, %v10041_v7  ;;  %v4743_v7 = vmul.f32 %v10005_v10, %v9975_v31 }
 0x7c0   : > { %5767 = vmatmul.msk.f32.gmra.mxu3 %vm3174_vm1, %v6140_v45  ;;  %v1217_v45 = vpop.f32.mrf.mxu0 }
 0x7c3   : > { %v10098_v16 = vpop.f32.mrf.mxu3 }
 0x7c4   : > { %v4754_v36 = vmul.f32 %v10098_v16, %v1211_v55  ;;  %v4749_v55 = vmul.f32 %v10073_v22, %v10055_v33  ;;  %v4744_v33 = vmul.f32 %v10020_v21, %v9984_v44  ;;  %v11456_v22 = vld [vmem:[#allocation158_spill] sm:$0xff] }
 0x7c8   : > { %5768 = vmatmul.msk.f32.gmra.mxu3 %vm3174_vm1, %v6142_v14  ;;  %v1220_v8 = vpop.f32.mrf.mxu0 }
 0x7cb   : > { %v10103_v38 = vpop.f32.mrf.mxu3 }
 0x7cc   : > { %v4755_v9 = vmul.f32 %v10103_v38, %v1214_v17 }
 0x7d0   : > { %5769 = vmatmul.msk.f32.gmra.mxu3 %vm3174_vm1, %v6144_v34 }
 0x7d3   : > { %v10106_v32 = vpop.f32.mrf.mxu3 }
 0x7d4   : > { %v4756_v24 = vmul.f32 %v10106_v32, %v1217_v45  ;;  %v4750_v45 = vmul.f32 %v10078_v59, %v10068_v53 }
 0x7d8   : > { %5770 = vmatmul.msk.f32.gmra.mxu3 %vm3174_vm1, %v6146_v26  ;;  %v4751_v26 = vmul.f32 %v10083_v61, %v1202_v6  ;;  %v4746_v6 = vmul.f32 %v10046_v49, %v10011_v20 }
 0x7db   : > { %v10109_v0 = vpop.f32.mrf.mxu3 }
 0x7dc   : > { %v4757_v14 = vmul.f32 %v10109_v0, %v1220_v8  ;;  %v4745_v8 = vmul.f32 %v10035_v60, %v9996_v15  ;;  %v11454_v60 = vld [vmem:[#allocation171_spill] sm:$0xff] }
 0x7de   : > { %4930 = vmatpush.msra.mxu2 %v4757_v14  ;;  %v11445_v14 = vld [vmem:[#allocation178_spill] sm:$0xff] }
 0x7df   : > { %vm11446_vm1 = vcmp.eq.s32.totalorder %v11445_v14, %v11276_v40  ;;  %vm11447_vm0 = vcmp.eq.s32.totalorder %v11445_v14, %v11279_v41  ;;  %vm11448_vm11 = vcmp.eq.s32.totalorder %v11445_v14, %v11282_v56 }
 0x7e0   : > { %4931 = vmatpush.msra.mxu2 %v4756_v24 }
 0x7e2   : > { %4932 = vmatpush.msra.mxu2 %v4755_v9 }
 0x7e3   : > { %v10115_v34 = vpop.f32.mrf.mxu3 }
 0x7e4   : > { %4933 = vmatpush.msra.mxu2 %v4754_v36 }
 0x7e6   : > { %4934 = vmatpush.msra.mxu2 %v4753_v50 }
 0x7e8   : > { %4935 = vmatpush.msra.mxu2 %v4752_v4  ;;  %v10172_v4 = vpop.f32.mrf.mxu2 }
 0x7ea   : > { %4936 = vmatpush.msra.mxu2 %v4751_v26 }
 0x7eb   : > { %v10122_v17 = vpop.f32.mrf.mxu3 }
 0x7ec   : > { %4937 = vmatpush.msra.mxu2 %v4750_v45 }
 0x7ee   : > { %4938 = vmatpush.msra.mxu2 %v4749_v55 }
 0x7f0   : > { %4939 = vmatpush.msra.mxu2 %v4748_v62  ;;  %v10176_v45 = vpop.f32.mrf.mxu2 }
 0x7f2   : > { %4940 = vmatpush.msra.mxu2 %v4747_v47 }
 0x7f3   : > { %v10132_v53 = vpop.f32.mrf.mxu3 }
 0x7f4   : > { %4941 = vmatpush.msra.mxu2 %v4746_v6 }
 0x7f6   : > { %4942 = vmatpush.msra.mxu2 %v4745_v8 }
 0x7f8   : > { %4943 = vmatpush.msra.mxu2 %v4744_v33  ;;  %v10180_v62 = vpop.f32.mrf.mxu2  ;;  %v11451_v33 = vld [vmem:[#allocation186_spill] sm:$0xff] }
 0x7fa   : > { %4944 = vmatpush.msra.mxu2 %v4743_v7 }
 0x7fb   : > { %v10142_v20 = vpop.f32.mrf.mxu3 }
 0x7fc   : > { %4945 = vmatpush.msra.mxu2 %v4742_v25  ;;  %v11452_v25 = vld [vmem:[#allocation184_spill] sm:$0xff] }
 0x7fd   : > { %5789 = vmatmul.msk.f32.vlgmr.msra.gmra.mxu2 %vm11446_vm1, %v11322_v54 }
 0x800   : > { %v10184_v6 = vpop.f32.mrf.mxu2 }
 0x803   : > { %v10148_v15 = vpop.f32.mrf.mxu3 }
 0x805   : > { %5790 = vmatmul.msk.f32.gmra.mxu2 %vm11447_vm0, %v11322_v54 }
 0x808   : > { %v10194_v21 = vpop.f32.mrf.mxu2 }
 0x80b   : > { %v10154_v31 = vpop.f32.mrf.mxu3 }
 0x80d   : > { %5791 = vmatmul.msk.f32.gmra.mxu2 %vm11448_vm11, %v11322_v54 }
 0x813   : > { %v10160_v5 = vpop.f32.mrf.mxu3 }
 0x81b   : > { %v10162_v44 = vpop.f32.mrf.mxu3 }
 0x823   : > { %v10164_v24 = vpop.f32.mrf.mxu3 }
 0x824   : > { %11449 = vst [vmem:[#allocation57_spill] sm:$0xff] %v10164_v24 }
 0x82b   : > { %v10166_v9 = vpop.f32.mrf.mxu3 }
 0x833   : > { %v10168_v36 = vpop.f32.mrf.mxu3 }
 0x83b   : > { %v10170_v50 = vpop.f32.mrf.mxu3 }
 0x83c   : > { %v4769_v35 = vmul.f32 %v10170_v50, %v11455_v19  ;;  %v11460_v19 = vld [vmem:[#allocation36_spill] sm:$0xff] }
 0x843   : > { %v10174_v26 = vpop.f32.mrf.mxu3 }
 0x844   : > { %v4770_v49 = vmul.f32 %v10174_v26, %v11454_v60  ;;  %v11459_v60 = vld [vmem:[#allocation40_spill] sm:$0xff] }
 0x84b   : > { %v10178_v55 = vpop.f32.mrf.mxu3 }
 0x84c   : > { %11450 = vst [vmem:[#allocation41_spill] sm:$0xff] %v10178_v55  ;;  %v4771_v10 = vmul.f32 %v10178_v55, %v11453_v12  ;;  %v11458_v12 = vld [vmem:[#allocation147_spill] sm:$0xff]  ;;  %v10206_v55 = vpop.f32.mrf.mxu2 }
 0x853   : > { %v10182_v47 = vpop.f32.mrf.mxu3 }
 0x854   : > { %v4772_v14 = vmul.f32 %v10182_v47, %v11452_v25  ;;  %v11457_v25 = vld [vmem:[#allocation152_spill] sm:$0xff] }
 0x85b   : > { %v10186_v8 = vpop.f32.mrf.mxu3 }
 0x85c   : > { %v4773_v7 = vmul.f32 %v10186_v8, %v11451_v33  ;;  %v4768_v33 = vmul.f32 %v10168_v36, %v11456_v22  ;;  %v11461_v22 = vld [vmem:[#allocation32_spill] sm:$0xff] }
 0x85e   : > { %4956 = vmatpush.msrb.mxu2 %v4773_v7  ;;  %v4767_v7 = vmul.f32 %v10166_v9, %v11457_v25  ;;  %v11462_v25 = vld [vmem:[#allocation28_spill] sm:$0xff] }
 0x860   : > { %4957 = vmatpush.msrb.mxu2 %v4772_v14  ;;  %v4766_v14 = vmul.f32 %v10164_v24, %v11458_v12  ;;  %v10216_v12 = vpop.f32.mrf.mxu2 }
 0x862   : > { %4958 = vmatpush.msrb.mxu2 %v4771_v10  ;;  %v4765_v10 = vmul.f32 %v10162_v44, %v11459_v60  ;;  %v11464_v60 = vld [vmem:[#allocation20_spill] sm:$0xff] }
 0x864   : > { %4959 = vmatpush.msrb.mxu2 %v4770_v49  ;;  %v4764_v49 = vmul.f32 %v10160_v5, %v11460_v19  ;;  %v11465_v19 = vld [vmem:[#allocation16_spill] sm:$0xff] }
 0x866   : > { %4960 = vmatpush.msrb.mxu2 %v4769_v35  ;;  %v4763_v35 = vmul.f32 %v10154_v31, %v11461_v22  ;;  %v11466_v22 = vld [vmem:[#allocation13_spill] sm:$0xff] }
 0x868   : > { %4961 = vmatpush.msrb.mxu2 %v4768_v33  ;;  %v4762_v33 = vmul.f32 %v10148_v15, %v11462_v25  ;;  %v10230_v25 = vpop.f32.mrf.mxu2 }
 0x86a   : > { %4962 = vmatpush.msrb.mxu2 %v4767_v7  ;;  %v11463_v7 = vld [vmem:[#allocation24_spill] sm:$0xff] }
 0x86b   : > { %v4761_v24 = vmul.f32 %v10142_v20, %v11463_v7  ;;  %v11469_v7 = vld [vmem:[#allocation157_spill] sm:$0xff] }
 0x86c   : > { %4963 = vmatpush.msrb.mxu2 %v4766_v14  ;;  %v4760_v14 = vmul.f32 %v10132_v53, %v11464_v60  ;;  %v11482_v60 = vld [vmem:[#allocation88_spill] sm:$0xff] }
 0x86e   : > { %4964 = vmatpush.msrb.mxu2 %v4765_v10  ;;  %v4759_v10 = vmul.f32 %v10122_v17, %v11465_v19 }
 0x870   : > { %4965 = vmatpush.msrb.mxu2 %v4764_v49  ;;  %v4758_v49 = vmul.f32 %v10115_v34, %v11466_v22  ;;  %v11485_v22 = vld [vmem:[#allocation83_spill] sm:$0xff] }
 0x872   : > { %4966 = vmatpush.msrb.mxu2 %v4763_v35  ;;  %v11467_v35 = vld [vmem:[#allocation179_spill] sm:$0xff] }
 0x873   : > { %vm11470_vm14 = vcmp.eq.s32.totalorder %v11467_v35, %v11279_v41  ;;  %vm11471_vm4 = vcmp.eq.s32.totalorder %v11467_v35, %v11282_v56 }
 0x874   : > { %4967 = vmatpush.msrb.mxu2 %v4762_v33  ;;  %v11468_v33 = vld [vmem:[#allocation162_spill] sm:$0xff] }
 0x876   : > { %4968 = vmatpush.msrb.mxu2 %v4761_v24  ;;  %v10241_v24 = vpop.f32.mrf.mxu2 }
 0x878   : > { %4969 = vmatpush.msrb.mxu2 %v4760_v14  ;;  %v11483_v14 = vld [vmem:[#allocation94_spill] sm:$0xff] }
 0x87a   : > { %4970 = vmatpush.msrb.mxu2 %v4759_v10  ;;  %v11484_v10 = vld [vmem:[#allocation85_spill] sm:$0xff] }
 0x87c   : > { %4971 = vmatpush.msrb.mxu2 %v4758_v49  ;;  %v11486_v49 = vld [vmem:[#allocation169_spill] sm:$0xff] }
 0x87d   : > { %5792 = vmatmul.msk.f32.vlgmr.msrb.gmra.mxu2 %vm3108_vm7, %v11322_v54 }
 0x87e   : > { %4982 = vmatpush.msra.mxu2 %v11468_v33  ;;  %v11487_v33 = vld [vmem:[#allocation90_spill] sm:$0xff] }
 0x880   : > { %4983 = vmatpush.msra.mxu2 %v11469_v7  ;;  %v11489_v7 = vld [vmem:[#allocation126_spill] sm:$0xff] }
 0x882   : > { %4984 = vmatpush.msra.mxu2 %v9195_v39  ;;  %v11481_v39 = vld [vmem:[#allocation89_spill] sm:$0xff] }
 0x884   : > { %4985 = vmatpush.msra.mxu2 %v9184_v43  ;;  %v10251_v43 = vpop.f32.mrf.mxu2 }
 0x885   : > { %5793 = vmatmul.msk.f32.gmra.mxu2 %vm11470_vm14, %v11322_v54 }
 0x886   : > { %4986 = vmatpush.msra.mxu2 %v9173_v52  ;;  %v11480_v52 = vld [vmem:[#allocation99_spill] sm:$0xff] }
 0x888   : > { %4987 = vmatpush.msra.mxu2 %v9162_v48  ;;  %v11479_v48 = vld [vmem:[#allocation92_spill] sm:$0xff] }
 0x88a   : > { %4988 = vmatpush.msra.mxu2 %v9151_v2 }
 0x88c   : > { %4989 = vmatpush.msra.mxu2 %v9140_v1  ;;  %v10258_v1 = vpop.f32.mrf.mxu2 }
 0x88d   : > { %5794 = vmatmul.msk.f32.gmra.mxu2 %vm11471_vm4, %v11322_v54 }
 0x88e   : > { %4990 = vmatpush.msra.mxu2 %v9129_v18  ;;  %v11478_v18 = vld [vmem:[#allocation93_spill] sm:$0xff] }
 0x890   : > { %4991 = vmatpush.msra.mxu2 %v9118_v42  ;;  %v11472_v42 = vld [vmem:[#allocation101_spill] sm:$0xff] }
 0x892   : > { %4992 = vmatpush.msra.mxu2 %v9107_v57  ;;  %v11473_v57 = vld [vmem:[#allocation100_spill] sm:$0xff] }
 0x894   : > { %4993 = vmatpush.msra.mxu2 %v9096_v46  ;;  %v11474_v46 = vld [vmem:[#allocation107_spill] sm:$0xff] }
 0x896   : > { %4994 = vmatpush.msra.mxu2 %v9085_v37  ;;  %v10269_v37 = vpop.f32.mrf.mxu2 }
 0x898   : > { %4995 = vmatpush.msra.mxu2 %v9074_v51  ;;  %v11475_v51 = vld [vmem:[#allocation97_spill] sm:$0xff] }
 0x89a   : > { %4996 = vmatpush.msra.mxu2 %v9063_v13  ;;  %v11477_v13 = vld [vmem:[#allocation103_spill] sm:$0xff] }
 0x89c   : > { %4997 = vmatpush.msra.mxu2 %v9050_v28  ;;  %v11476_v28 = vld [vmem:[#allocation96_spill] sm:$0xff] }
 0x89d   : > { %5795 = vmatmul.msk.f32.vlgmr.msra.gmra.mxu2 %vm3101_vm8, %v11322_v54 }
 0x89e   : > { %5008 = vmatpush.msrb.mxu2 %v11472_v42  ;;  %v4895_v2 = vpop.f32.mrf.mxu2 }
 0x8a0   : > { %5009 = vmatpush.msrb.mxu2 %v11473_v57  ;;  %v11490_v57 = vld [vmem:[#allocation133_spill] sm:$0xff] }
 0x8a2   : > { %5010 = vmatpush.msrb.mxu2 %v11474_v46  ;;  %v11491_v46 = vld [vmem:[#allocation123_spill] sm:$0xff] }
 0x8a4   : > { %5011 = vmatpush.msrb.mxu2 %v11475_v51  ;;  %v11492_v51 = vld [vmem:[#allocation122_spill] sm:$0xff] }
 0x8a5   : > { %5796 = vmatmul.msk.f32.gmra.mxu2 %vm3109_vm5, %v11322_v54 }
 0x8a6   : > { %5012 = vmatpush.msrb.mxu2 %v11476_v28  ;;  %v10288_v19 = vpop.f32.mrf.mxu2  ;;  %v11493_v28 = vld [vmem:[#allocation128_spill] sm:$0xff] }
 0x8a8   : > { %5013 = vmatpush.msrb.mxu2 %v11477_v13 }
 0x8aa   : > { %5014 = vmatpush.msrb.mxu2 %v11478_v18  ;;  %v11494_v18 = vld [vmem:[#allocation118_spill] sm:$0xff] }
 0x8ac   : > { %5015 = vmatpush.msrb.mxu2 %v11479_v48  ;;  %v11495_v48 = vld [vmem:[#allocation117_spill] sm:$0xff] }
 0x8ad   : > { %5797 = vmatmul.msk.f32.gmra.mxu2 %vm3117_vm13, %v11322_v54 }
 0x8ae   : > { %5016 = vmatpush.msrb.mxu2 %v11480_v52  ;;  %v10299_v42 = vpop.f32.mrf.mxu2  ;;  %v11496_v52 = vld [vmem:[#allocation124_spill] sm:$0xff] }
 0x8b0   : > { %5017 = vmatpush.msrb.mxu2 %v11481_v39  ;;  %v11497_v39 = vld [vmem:[#allocation114_spill] sm:$0xff] }
 0x8b2   : > { %5018 = vmatpush.msrb.mxu2 %v11482_v60  ;;  %v11498_v60 = vld [vmem:[#allocation113_spill] sm:$0xff] }
 0x8b4   : > { %5019 = vmatpush.msrb.mxu2 %v11483_v14 }
 0x8b6   : > { %5020 = vmatpush.msrb.mxu2 %v11484_v10  ;;  %v4921_v13 = vpop.f32.mrf.mxu2  ;;  %v11499_v10 = vld [vmem:[#allocation120_spill] sm:$0xff] }
 0x8b8   : > { %5021 = vmatpush.msrb.mxu2 %v11485_v22  ;;  %v11500_v22 = vld [vmem:[#allocation110_spill] sm:$0xff] }
 0x8ba   : > { %5022 = vmatpush.msrb.mxu2 %v11486_v49  ;;  %v11501_v49 = vld [vmem:[#allocation116_spill] sm:$0xff] }
 0x8bc   : > { %5023 = vmatpush.msrb.mxu2 %v11487_v33  ;;  %v11502_v33 = vld [vmem:[#allocation106_spill] sm:$0xff] }
 0x8bd   : > { %5798 = vmatmul.msk.f32.vlgmr.msrb.gmra.mxu2 %vm3102_vm12, %v11322_v54 }
 0x8be   : > { %5034 = vmatpush.msra.mxu2 %v11489_v7  ;;  %v4924_v14 = vpop.f32.mrf.mxu2  ;;  %v11503_v7 = vld [vmem:[#allocation105_spill] sm:$0xff] }
 0x8c0   : > { %5035 = vmatpush.msra.mxu2 %v11490_v57 }
 0x8c2   : > { %5036 = vmatpush.msra.mxu2 %v11491_v46  ;;  %v11504_v46 = vld [vmem:[#allocation111_spill] sm:$0xff] }
 0x8c4   : > { %5037 = vmatpush.msra.mxu2 %v11492_v51  ;;  %v11506_v51 = vld [vmem:[#allocation183_spill] sm:$0xff] }
 0x8c5   : > { %5799 = vmatmul.msk.f32.gmra.mxu2 %vm3110_vm6, %v11322_v54 }
 0x8c6   : > { %5038 = vmatpush.msra.mxu2 %v11493_v28  ;;  %v4927_v57 = vpop.f32.mrf.mxu2  ;;  %v11507_v28 = vld [vmem:[#allocation7_spill] sm:$0xff] }
 0x8c8   : > { %5039 = vmatpush.msra.mxu2 %v11494_v18  ;;  %v11508_v18 = vld [vmem:[#allocation181_spill] sm:$0xff] }
 0x8ca   : > { %5040 = vmatpush.msra.mxu2 %v11495_v48 }
 0x8cc   : > { %5041 = vmatpush.msra.mxu2 %v11496_v52  ;;  %v11509_v52 = vld [vmem:[#allocation14_spill] sm:$0xff] }
 0x8cd   : > { %5800 = vmatmul.msk.f32.gmra.mxu2 %vm3118_vm10, %v11322_v54 }
 0x8ce   : > { %5042 = vmatpush.msra.mxu2 %v11497_v39  ;;  %v4947_v48 = vpop.f32.mrf.mxu2  ;;  %v11510_v39 = vld [vmem:[#allocation170_spill] sm:$0xff] }
 0x8d0   : > { %5043 = vmatpush.msra.mxu2 %v11498_v60  ;;  %v11511_v60 = vld [vmem:[#allocation167_spill] sm:$0xff] }
 0x8d2   : > { %5044 = vmatpush.msra.mxu2 %v11499_v10  ;;  %v11512_v10 = vld [vmem:[#allocation166_spill] sm:$0xff] }
 0x8d4   : > { %5045 = vmatpush.msra.mxu2 %v11500_v22  ;;  %v11513_v22 = vld [vmem:[#allocation139_spill] sm:$0xff] }
 0x8d6   : > { %5046 = vmatpush.msra.mxu2 %v11501_v49  ;;  %v4950_v49 = vpop.f32.mrf.mxu2 }
 0x8d8   : > { %5047 = vmatpush.msra.mxu2 %v11502_v33  ;;  %v11515_v33 = vld [vmem:[#allocation145_spill] sm:$0xff] }
 0x8da   : > { %5048 = vmatpush.msra.mxu2 %v11503_v7  ;;  %v11516_v7 = vld [vmem:[#allocation135_spill] sm:$0xff] }
 0x8dc   : > { %5049 = vmatpush.msra.mxu2 %v11504_v46  ;;  %v11517_v46 = vld [vmem:[#allocation134_spill] sm:$0xff] }
 0x8dd   : > { %5801 = vmatmul.msk.f32.vlgmr.msra.gmra.mxu2 %vm3103_vm2, %v11322_v54  ;;  %vm11514_vm2 = vcmp.eq.s32.totalorder %v11505_v11, %v11282_v56 }
 0x8de   : > { %5060 = vmatpush.msrb.mxu2 %v11506_v51  ;;  %v11518_v51 = vld [vmem:[#allocation141_spill] sm:$0xff] }
 0x8e0   : > { %5061 = vmatpush.msrb.mxu2 %v11507_v28  ;;  %v4818_v28 = vadd.f32 %v10184_v6, %v10172_v4  ;;  %v4821_v4 = vadd.f32 %v10194_v21, %v10176_v45  ;;  %v11528_v45 = vld [vmem:[#allocation21_spill] sm:$0xff] }
 0x8e2   : > { %5062 = vmatpush.msrb.mxu2 %v11508_v18  ;;  %v11519_v18 = vld [vmem:[#allocation131_spill] sm:$0xff] }
 0x8e4   : > { %5063 = vmatpush.msrb.mxu2 %v11509_v52  ;;  %v4844_v52 = vadd.f32 %v10216_v12, %v4818_v28  ;;  %v11526_v12 = vld [vmem:[#allocation25_spill] sm:$0xff]  ;;  %v4847_v28 = vadd.f32 %v10230_v25, %v4821_v4 }
 0x8e5   : > { %5802 = vmatmul.msk.f32.gmra.mxu2 %vm3111_vm3, %v11322_v54 }
 0x8e6   : > { %5064 = vmatpush.msrb.mxu2 %v11510_v39  ;;  %v4953_v39 = vpop.f32.mrf.mxu2  ;;  %v4870_v11 = vadd.f32 %v10251_v43, %v4844_v52  ;;  %v5190_v43 = vld [vmem:[#allocation4] sm:$0xff] }
 0x8e8   : > { %5065 = vmatpush.msrb.mxu2 %v11511_v60  ;;  %v11520_v60 = vld [vmem:[#allocation130_spill] sm:$0xff] }
 0x8ea   : > { %5066 = vmatpush.msrb.mxu2 %v11512_v10  ;;  %v11521_v10 = vld [vmem:[#allocation137_spill] sm:$0xff] }
 0x8ec   : > { %5067 = vmatpush.msrb.mxu2 %v11513_v22  ;;  %v4896_v22 = vadd.f32 %v4895_v2, %v4870_v11 }
 0x8ed   : > { %5803 = vmatmul.msk.f32.gmra.mxu2 %vm11514_vm2, %v11322_v54 }
 0x8ee   : > { %5068 = vmatpush.msrb.mxu2 %v11515_v33  ;;  %v11522_v33 = vld [vmem:[#allocation127_spill] sm:$0xff]  ;;  %v4922_v6 = vadd.f32 %v4921_v13, %v4896_v22  ;;  %v11529_v22 = vld [vmem:[#allocation26_spill] sm:$0xff] }
 0x8f0   : > { %5069 = vmatpush.msrb.mxu2 %v11516_v7  ;;  %v11523_v7 = vld [vmem:[#allocation155_spill] sm:$0xff]  ;;  %v4948_v2 = vadd.f32 %v4947_v48, %v4922_v6  ;;  %v5191_v48 = vld [vmem:[#allocation4 + $0x8] sm:$0xff] }
 0x8f2   : > { %5070 = vmatpush.msrb.mxu2 %v11517_v46  ;;  %v10357_v46 = vperm.slane %v11523_v7, 0 }
 0x8f4   : > { %5071 = vmatpush.msrb.mxu2 %v11518_v51  ;;  %v11524_v51 = vld [vmem:[#allocation175_spill] sm:$0xff]  ;;  %v5194_v21 = vmul.f32 %v10357_v46, %v5190_v43 }
 0x8f5   : > { %vm11525_vm3 = vcmp.eq.s32.totalorder %v11524_v51, %v11276_v40  ;;  %vm11530_vm8 = vcmp.eq.s32.totalorder %v11524_v51, %v11279_v41  ;;  %vm11535_vm5 = vcmp.eq.s32.totalorder %v11524_v51, %v11282_v56  ;;  %v11541_v51 = vld [vmem:[#allocation17_spill] sm:$0xff] }
 0x8f6   : > { %5072 = vmatpush.msrb.mxu2 %v11519_v18  ;;  %v11527_v18 = vld [vmem:[#allocation27_spill] sm:$0xff] }
 0x8f8   : > { %5073 = vmatpush.msrb.mxu2 %v11520_v60  ;;  %v4873_v60 = vadd.f32 %v10258_v1, %v4847_v28  ;;  %v11531_v1 = vld [vmem:[#allocation19_spill] sm:$0xff] }
 0x8fa   : > { %5074 = vmatpush.msrb.mxu2 %v11521_v10  ;;  %v4899_v13 = vadd.f32 %v10288_v19, %v4873_v60  ;;  %v11532_v19 = vld [vmem:[#allocation15_spill] sm:$0xff] }
 0x8fc   : > { %5075 = vmatpush.msrb.mxu2 %v11522_v33  ;;  %v4824_v33 = vadd.f32 %v10206_v55, %v10180_v62  ;;  %v4925_v25 = vadd.f32 %v4924_v14, %v4899_v13  ;;  %v5195_v55 = vmul.f32 %v10357_v46, %v5191_v48  ;;  %v11533_v62 = vld [vmem:[#allocation23_spill] sm:$0xff]  ;;  %v11540_v13 = vld [vmem:[#allocation9_spill] sm:$0xff]  ;;  %v11549_v48 = vld [vmem:[#allocation182_spill] sm:$0xff] }
 0x8fd   : > { %5804 = vmatmul.msk.f32.vlgmr.msrb.gmra.mxu2 %vm11525_vm3, %v11322_v54 }
 0x8fe   : > { %5086 = vmatpush.msra.mxu2 %v11526_v12  ;;  %v4850_v7 = vadd.f32 %v10241_v24, %v4824_v33  ;;  %v4951_v4 = vadd.f32 %v4950_v49, %v4925_v25  ;;  %v11536_v24 = vld [vmem:[#allocation22_spill] sm:$0xff]  ;;  %v11547_v25 = vld [vmem:[#allocation173_spill] sm:$0xff] }
 0x900   : > { %5087 = vmatpush.msra.mxu2 %v11527_v18  ;;  %v4973_v52 = vpop.f32.mrf.mxu2  ;;  %v4876_v12 = vadd.f32 %v10269_v37, %v4850_v7  ;;  %v5192_v37 = vld [vmem:[#allocation4 + $0x10] sm:$0xff]  ;;  %v11554_v7 = vld [vmem:[#allocation37_spill] sm:$0xff] }
 0x901   : > { %v4974_v11 = vadd.f32 %v4973_v52, %v4948_v2  ;;  %v11534_v2 = vld [vmem:[#allocation12_spill] sm:$0xff]  ;;  %v11537_v52 = vld [vmem:[#allocation11_spill] sm:$0xff] }
 0x902   : > { %5088 = vmatpush.msra.mxu2 %v11528_v45  ;;  %v4902_v14 = vadd.f32 %v10299_v42, %v4876_v12  ;;  %v5196_v42 = vmul.f32 %v10357_v46, %v5192_v37  ;;  %v11558_v12 = vld [vmem:[#allocation29_spill] sm:$0xff] }
 0x903   : > { %v5197_v10 = vadd.f32 %v5194_v21, %v4974_v11  ;;  %v11538_v21 = vld [vmem:[#allocation10_spill] sm:$0xff] }
 0x904   : > { %5089 = vmatpush.msra.mxu2 %v11529_v22  ;;  %v4928_v18 = vadd.f32 %v4927_v57, %v4902_v14  ;;  %v11539_v57 = vld [vmem:[#allocation18_spill] sm:$0xff]  ;;  %v11543_v22 = vld [vmem:[#allocation8_spill] sm:$0xff] }
 0x905   : > { %5200 = vst [vmem:[#allocation4] sm:$0xff] %v5197_v10  ;;  %5805 = vmatmul.msk.f32.gmra.mxu2 %vm11530_vm8, %v11322_v54  ;;  %v11542_v10 = vld [vmem:[#allocation185_spill] sm:$0xff] }
 0x906   : > { %5090 = vmatpush.msra.mxu2 %v11531_v1  ;;  %v4954_v49 = vadd.f32 %v4953_v39, %v4928_v18  ;;  %v11544_v39 = vld [vmem:[#allocation176_spill] sm:$0xff]  ;;  %v11548_v1 = vld [vmem:[#allocation43_spill] sm:$0xff] }
 0x907   : > { %vm11545_vm13 = vcmp.eq.s32.totalorder %v11544_v39, %v11276_v40  ;;  %vm11546_vm12 = vcmp.eq.s32.totalorder %v11544_v39, %v11279_v41  ;;  %vm11550_vm6 = vcmp.eq.s32.totalorder %v11544_v39, %v11282_v56  ;;  %v11568_v18 = vld [vmem:[#allocation47_spill] sm:$0xff] }
 0x908   : > { %5091 = vmatpush.msra.mxu2 %v11532_v19  ;;  %v4976_v6 = vpop.f32.mrf.mxu2  ;;  %v11556_v19 = vld [vmem:[#allocation30_spill] sm:$0xff] }
 0x909   : > { %v4977_v43 = vadd.f32 %v4976_v6, %v4951_v4  ;;  %v11557_v6 = vld [vmem:[#allocation31_spill] sm:$0xff] }
 0x90a   : > { %5092 = vmatpush.msra.mxu2 %v11533_v62 }
 0x90b   : > { %v5198_v28 = vadd.f32 %v5195_v55, %v4977_v43  ;;  %v11559_v43 = vld [vmem:[#allocation177_spill] sm:$0xff] }
 0x90c   : > { %5093 = vmatpush.msra.mxu2 %v11534_v2  ;;  %vm11560_vm10 = vcmp.eq.s32.totalorder %v11559_v43, %v11276_v40  ;;  %v11565_v2 = vld [vmem:[#allocation50_spill] sm:$0xff] }
 0x90d   : > { %5201 = vst [vmem:[#allocation4 + $0x8] sm:$0xff] %v5198_v28  ;;  %5806 = vmatmul.msk.f32.gmra.mxu2 %vm11535_vm5, %v11322_v54 }
 0x90e   : > { %5094 = vmatpush.msra.mxu2 %v11536_v24 }
 0x910   : > { %5095 = vmatpush.msra.mxu2 %v11537_v52  ;;  %v4979_v60 = vpop.f32.mrf.mxu2  ;;  %v11570_v52 = vld [vmem:[#allocation41_spill] sm:$0xff] }
 0x911   : > { %v4980_v11 = vadd.f32 %v4979_v60, %v4954_v49 }
 0x912   : > { %5096 = vmatpush.msra.mxu2 %v11538_v21 }
 0x913   : > { %v5199_v45 = vadd.f32 %v5196_v42, %v4980_v11 }
 0x914   : > { %5097 = vmatpush.msra.mxu2 %v11539_v57 }
 0x915   : > { %5202 = vst [vmem:[#allocation4 + $0x10] sm:$0xff] %v5199_v45 }
 0x916   : > { %5098 = vmatpush.msra.mxu2 %v11540_v13 }
 0x918   : > { %5099 = vmatpush.msra.mxu2 %v11541_v51 }
 0x91a   : > { %5100 = vmatpush.msra.mxu2 %v11542_v10  ;;  %v5203_v10 = vld [vmem:[#allocation2 + $0x10] sm:$0xff] }
 0x91c   : > { %5101 = vmatpush.msra.mxu2 %v11543_v22 }
 0x91d   : > { %5807 = vmatmul.msk.f32.vlgmr.msra.gmra.mxu2 %vm11545_vm13, %v11322_v54 }
 0x91e   : > { %5112 = vmatpush.msrb.mxu2 %v9980_v29 }
 0x920   : > { %5113 = vmatpush.msrb.mxu2 %v9973_v30  ;;  %v4999_v33 = vpop.f32.mrf.mxu2  ;;  %v11553_v30 = vld [vmem:[#allocation33_spill] sm:$0xff] }
 0x922   : > { %5114 = vmatpush.msrb.mxu2 %v9963_v3  ;;  %v11552_v3 = vld [vmem:[#allocation35_spill] sm:$0xff] }
 0x924   : > { %5115 = vmatpush.msrb.mxu2 %v9957_v58  ;;  %v11551_v58 = vld [vmem:[#allocation44_spill] sm:$0xff] }
 0x925   : > { %5808 = vmatmul.msk.f32.gmra.mxu2 %vm11546_vm12, %v11322_v54 }
 0x926   : > { %5116 = vmatpush.msrb.mxu2 %v9951_v63  ;;  %v11555_v63 = vld [vmem:[#allocation34_spill] sm:$0xff] }
 0x928   : > { %5117 = vmatpush.msrb.mxu2 %v11547_v25  ;;  %v5002_v29 = vpop.f32.mrf.mxu2  ;;  %v5204_v25 = vld [vmem:[#allocation2] sm:$0xff] }
 0x92a   : > { %5118 = vmatpush.msrb.mxu2 %v11548_v1 }
 0x92c   : > { %5119 = vmatpush.msrb.mxu2 %v11549_v48 }
 0x92d   : > { %5809 = vmatmul.msk.f32.gmra.mxu2 %vm11550_vm6, %v11322_v54 }
 0x92e   : > { %5120 = vmatpush.msrb.mxu2 %v11551_v58  ;;  %v5207_v58 = vmul.f32 %v5204_v25, %v10357_v46 }
 0x930   : > { %5121 = vmatpush.msrb.mxu2 %v11552_v3  ;;  %v5005_v4 = vpop.f32.mrf.mxu2 }
 0x932   : > { %5122 = vmatpush.msrb.mxu2 %v11553_v30 }
 0x934   : > { %5123 = vmatpush.msrb.mxu2 %v11554_v7  ;;  %v5205_v7 = vld [vmem:[#allocation2 + $0x8] sm:$0xff] }
 0x936   : > { %5124 = vmatpush.msrb.mxu2 %v11555_v63 }
 0x938   : > { %5125 = vmatpush.msrb.mxu2 %v11556_v19 }
 0x93a   : > { %5126 = vmatpush.msrb.mxu2 %v11557_v6  ;;  %v5208_v6 = vmul.f32 %v5205_v7, %v10357_v46 }
 0x93c   : > { %5127 = vmatpush.msrb.mxu2 %v11558_v12 }
 0x93d   : > { %5810 = vmatmul.msk.f32.vlgmr.msrb.gmra.mxu2 %vm11560_vm10, %v11322_v54 }
 0x93e   : > { %5138 = vmatpush.msra.mxu2 %v10109_v0 }
 0x940   : > { %5139 = vmatpush.msra.mxu2 %v10106_v32  ;;  %v5025_v55 = vpop.f32.mrf.mxu2 }
 0x941   : > { %v5026_v62 = vadd.f32 %v5025_v55, %v4999_v33 }
 0x942   : > { %5140 = vmatpush.msra.mxu2 %v10103_v38  ;;  %v11562_v38 = vld [vmem:[#allocation53_spill] sm:$0xff] }
 0x944   : > { %5141 = vmatpush.msra.mxu2 %v10098_v16  ;;  %v11561_v16 = vld [vmem:[#allocation48_spill] sm:$0xff] }
 0x945   : > { %5811 = vmatmul.msk.f32.gmra.mxu2 %vm11431_vm15, %v11322_v54 }
 0x946   : > { %5142 = vmatpush.msra.mxu2 %v10093_v23  ;;  %v11563_v23 = vld [vmem:[#allocation39_spill] sm:$0xff] }
 0x948   : > { %5143 = vmatpush.msra.mxu2 %v10088_v27  ;;  %v5028_v14 = vpop.f32.mrf.mxu2  ;;  %v11564_v27 = vld [vmem:[#allocation164_spill] sm:$0xff] }
 0x949   : > { %v5029_v28 = vadd.f32 %v5028_v14, %v5002_v29 }
 0x94a   : > { %5144 = vmatpush.msra.mxu2 %v10083_v61  ;;  %v11566_v61 = vld [vmem:[#allocation38_spill] sm:$0xff] }
 0x94c   : > { %5145 = vmatpush.msra.mxu2 %v10078_v59  ;;  %v11567_v59 = vld [vmem:[#allocation172_spill] sm:$0xff] }
 0x94d   : > { %5812 = vmatmul.msk.f32.gmra.mxu2 %vm11434_vm9, %v11322_v54 }
 0x94e   : > { %5146 = vmatpush.msra.mxu2 %v11561_v16 }
 0x950   : > { %5147 = vmatpush.msra.mxu2 %v11562_v38  ;;  %v5031_v0 = vpop.f32.mrf.mxu2 }
 0x951   : > { %v5032_v32 = vadd.f32 %v5031_v0, %v5005_v4 }
 0x952   : > { %5148 = vmatpush.msra.mxu2 %v11563_v23 }
 0x954   : > { %5149 = vmatpush.msra.mxu2 %v11564_v27 }
 0x956   : > { %5150 = vmatpush.msra.mxu2 %v11565_v2 }
 0x958   : > { %5151 = vmatpush.msra.mxu2 %v11566_v61 }
 0x95a   : > { %5152 = vmatpush.msra.mxu2 %v11567_v59 }
 0x95c   : > { %5153 = vmatpush.msra.mxu2 %v11568_v18 }
 0x95d   : > { %5813 = vmatmul.msk.f32.vlgmr.msra.gmra.mxu2 %vm11446_vm1, %v11322_v54 }
 0x95e   : > { %5164 = vmatpush.msrb.mxu2 %v10186_v8 }
 0x960   : > { %5165 = vmatpush.msrb.mxu2 %v10182_v47  ;;  %v5051_v37 = vpop.f32.mrf.mxu2  ;;  %v11571_v47 = vld [vmem:[#allocation57_spill] sm:$0xff] }
 0x961   : > { %v5052_v49 = vadd.f32 %v5051_v37, %v5026_v62 }
 0x962   : > { %5166 = vmatpush.msrb.mxu2 %v11570_v52 }
 0x964   : > { %5167 = vmatpush.msrb.mxu2 %v10174_v26 }
 0x965   : > { %5814 = vmatmul.msk.f32.gmra.mxu2 %vm11447_vm0, %v11322_v54 }
 0x966   : > { %5168 = vmatpush.msrb.mxu2 %v10170_v50 }
 0x968   : > { %5169 = vmatpush.msrb.mxu2 %v10168_v36  ;;  %v5054_v60 = vpop.f32.mrf.mxu2 }
 0x969   : > { %v5055_v11 = vadd.f32 %v5054_v60, %v5029_v28 }
 0x96a   : > { %5170 = vmatpush.msrb.mxu2 %v10166_v9 }
 0x96c   : > { %5171 = vmatpush.msrb.mxu2 %v11571_v47 }
 0x96d   : > { %5815 = vmatmul.msk.f32.gmra.mxu2 %vm11448_vm11, %v11322_v54 }
 0x96e   : > { %5172 = vmatpush.msrb.mxu2 %v10162_v44 }
 0x970   : > { %5173 = vmatpush.msrb.mxu2 %v10160_v5  ;;  %v5057_v26 = vpop.f32.mrf.mxu2 }
 0x971   : > { %v5058_v8 = vadd.f32 %v5057_v26, %v5032_v32 }
 0x972   : > { %5174 = vmatpush.msrb.mxu2 %v10154_v31 }
 0x974   : > { %5175 = vmatpush.msrb.mxu2 %v10148_v15 }
 0x976   : > { %5176 = vmatpush.msrb.mxu2 %v10142_v20 }
 0x978   : > { %5177 = vmatpush.msrb.mxu2 %v10132_v53 }
 0x97a   : > { %5178 = vmatpush.msrb.mxu2 %v10122_v17 }
 0x97c   : > { %5179 = vmatpush.msrb.mxu2 %v10115_v34 }
 0x97d   : > { %5816 = vmatmul.msk.f32.vlgmr.msrb.gmra.mxu2 %vm3108_vm7, %v11322_v54 }
 0x980   : > { %v5077_v5 = vpop.f32.mrf.mxu2 }
 0x981   : > { %v5078_v44 = vadd.f32 %v5077_v5, %v5052_v49 }
 0x985   : > { %5817 = vmatmul.msk.f32.gmra.mxu2 %vm11470_vm14, %v11322_v54 }
 0x988   : > { %v5080_v15 = vpop.f32.mrf.mxu2 }
 0x989   : > { %v5081_v20 = vadd.f32 %v5080_v15, %v5055_v11 }
 0x98d   : > { %5818 = vmatmul.msk.f32.gmra.mxu2 %vm11471_vm4, %v11322_v54  ;;  %v5206_v54 = vmul.f32 %v5203_v10, %v10357_v46 }
 0x990   : > { %v5083_v34 = vpop.f32.mrf.mxu2 }
 0x991   : > { %v5084_v17 = vadd.f32 %v5083_v34, %v5058_v8 }
 0x9a0   : > { %v5103_v53 = vpop.f32.mrf.mxu2 }
 0x9a1   : > { %v5104_v31 = vadd.f32 %v5103_v53, %v5078_v44 }
 0x9a8   : > { %v5106_v40 = vpop.f32.mrf.mxu2 }
 0x9a9   : > { %v5107_v9 = vadd.f32 %v5106_v40, %v5081_v20 }
 0x9b0   : > { %v5109_v36 = vpop.f32.mrf.mxu2 }
 0x9b1   : > { %v5110_v50 = vadd.f32 %v5109_v36, %v5084_v17 }
 0x9c0   : > { %v5129_v42 = vpop.f32.mrf.mxu2 }
 0x9c1   : > { %v5130_v51 = vadd.f32 %v5129_v42, %v5104_v31 }
 0x9c8   : > { %v5132_v21 = vpop.f32.mrf.mxu2 }
 0x9c9   : > { %v5133_v33 = vadd.f32 %v5132_v21, %v5107_v9 }
 0x9d0   : > { %v5135_v45 = vpop.f32.mrf.mxu2 }
 0x9d1   : > { %v5136_v30 = vadd.f32 %v5135_v45, %v5110_v50 }
 0x9e0   : > { %v5155_v41 = vpop.f32.mrf.mxu2 }
 0x9e1   : > { %v5156_v22 = vadd.f32 %v5155_v41, %v5130_v51 }
 0x9e8   : > { %v5158_v57 = vpop.f32.mrf.mxu2 }
 0x9e9   : > { %v5159_v1 = vadd.f32 %v5158_v57, %v5133_v33 }
 0x9f0   : > { %v5161_v13 = vpop.f32.mrf.mxu2 }
 0x9f1   : > { %v5162_v63 = vadd.f32 %v5161_v13, %v5136_v30 }
 0xa00   : > { %v5181_v39 = vpop.f32.mrf.mxu2 }
 0xa01   : > { %v5182_v56 = vadd.f32 %v5181_v39, %v5156_v22 }
 0xa03   : > { %v5209_v35 = vadd.f32 %v5206_v54, %v5182_v56 }
 0xa05   : > { %5212 = vst [vmem:[#allocation2 + $0x10] sm:$0xff] %v5209_v35 }
 0xa08   : > { %v5184_v48 = vpop.f32.mrf.mxu2 }
 0xa09   : > { %v5185_v29 = vadd.f32 %v5184_v48, %v5159_v1 }
 0xa0b   : > { %v5210_v3 = vadd.f32 %v5207_v58, %v5185_v29 }
 0xa0d   : > { %5213 = vst [vmem:[#allocation2] sm:$0xff] %v5210_v3 }
 0xa10   : > { %v5187_v4 = vpop.f32.mrf.mxu2 }
 0xa11   : > { %v5188_v19 = vadd.f32 %v5187_v4, %v5162_v63  ;;  %5218 = sbr.rel (%p5819_p7) target bundleno = 2607 (0xa2f), region = 52 }
 0xa13   : > { %v5211_v12 = vadd.f32 %v5208_v6, %v5188_v19 }
 0xa15   : > { %5214 = vst [vmem:[#allocation2 + $0x8] sm:$0xff] %v5211_v12 }
 0xa16   : > { %v5219_v43 = vld [vmem:[#allocation2 + $0x10] sm:$0xff]  ;;  %v5220_v55 = vld [vmem:[#allocation2] sm:$0xff] }
 0xa17   : > { %vm5222_vm7 = vcmp.gt.f32.partialorder %v5219_v43, 0.0  ;;  %vm5223_vm2 = vcmp.gt.f32.partialorder %v5220_v55, 0.0  ;;  %v5240_v61 = vld [vmem:[#allocation4] sm:$0xff]  ;;  %v5241_v24 = vld [vmem:[#allocation4 + $0x8] sm:$0xff]  ;;  %v5242_v52 = vld [vmem:[#allocation4 + $0x10] sm:$0xff] }
 0xa18   : > { %v5225_v14 = vsel %vm5222_vm7, %v5219_v43, 1.0  ;;  %v5226_v28 = vsel %vm5223_vm2, %v5220_v55, 1.0 }
 0xa19   : > { %6236 = vrcp.f32 %v5225_v14 }
 0xa1a   : > { %6238 = vrcp.f32 %v5226_v28 }
 0xa1c   : > { %v5221_v62 = vld [vmem:[#allocation2 + $0x8] sm:$0xff] }
 0xa1d   : > { %vm5224_vm3 = vcmp.gt.f32.partialorder %v5221_v62, 0.0 }
 0xa1e   : > { %v5227_v16 = vsel %vm5224_vm3, %v5221_v62, 1.0 }
 0xa1f   : > { %6240 = vrcp.f32 %v5227_v16  ;;  %v6237_v38 = vpop.eup %6236 }
 0xa20   : > { %v6239_v0 = vpop.eup %6238  ;;  %v5231_v46 = vmul.f32 %v6237_v38, %v5225_v14 }
 0xa21   : > { %v5232_v23 = vmul.f32 %v6239_v0, %v5226_v28 }
 0xa22   : > { %v5234_v27 = vsub.f32 2.0, %v5231_v46 }
 0xa23   : > { %v5235_v59 = vsub.f32 2.0, %v5232_v23 }
 0xa24   : > { %v5237_v18 = vmul.f32 %v6237_v38, %v5234_v27 }
 0xa25   : > { %v6241_v32 = vpop.eup %6240  ;;  %v5238_v49 = vmul.f32 %v6239_v0, %v5235_v59 }
 0xa26   : > { %v5233_v2 = vmul.f32 %v6241_v32, %v5227_v16  ;;  %v5243_v60 = vmul.f32 %v5240_v61, %v5237_v18 }
 0xa27   : > { %v5244_v47 = vmul.f32 %v5241_v24, %v5238_v49 }
 0xa28   : > { %v5236_v37 = vsub.f32 2.0, %v5233_v2  ;;  %5246 = vst [vmem:[#allocation4] sm:$0xff] %v5243_v60 }
 0xa29   : > { %5247 = vst [vmem:[#allocation4 + $0x8] sm:$0xff] %v5244_v47 }
 0xa2a   : > { %v5239_v11 = vmul.f32 %v6241_v32, %v5236_v37 }
 0xa2c   : > { %v5245_v26 = vmul.f32 %v5242_v52, %v5239_v11 }
 0xa2e   : > { %5248 = vst [vmem:[#allocation4 + $0x10] sm:$0xff] %v5245_v26 }
 0xa2f PF: > { %p5853_p8 = scmp.eq.s32.totalorder %s5349_s24, 1  ;;  %s5259_s10 = sshll.u32 %s10520_s6, 4  ;;  %s5260_s10 = int_to_ptr.hbm [resolvable:$true] %s5259_s10 }
 0xa30   : > { %s6302_s28 = smov [#allocation4]   ;;  %s6303_s30 = smov 128  }
 0xa31   : > { %s5257_s29 = sshll.u32 %s6302_s28, 4  ;;  %s6304_s8 = smov 8   ;;  %s5258_s29 = int_to_ptr.vmem [resolvable:$true] %s5257_s29 }
 0xa32   : > { %5850 = dma.vmem_to_hbm [thread:$0]  (%p5853_p8), %s5258_s29, 384, %s5260_s10, [#allocation5], %s6303_s30, %s6303_s30, %s6304_s8  }
 0xa33   : > { %6283 = dma.done.wait (%p5853_p8), [#allocation5], 384  }
 0xa34   : > { %6285 = vsyncadd (%p5853_p8), [#allocation5], 4294966912 }
 0xa35 PF: > { %s17_s23 = sadd.s32 1, %s6296_s23   ;;  %s11572_s21 = smov %s6292_s22 }
 0xa36   : > { %p14_p9 = scmp.ge.s32.totalorder %s17_s23, 4   ;;  %s11573_s22 = smov %s11575_s25 }
 0xa38   :  { %16 = sbr.rel (!%p14_p9) target bundleno = 2 (0x2), region = 89 }
 0xa3d   :  { %5276 = vsyncpa [#allocation5], 1 }
 0xa3e   :  { %5278 = vsyncpa [#allocation5 + $0x1], 1 }

</bundles_post_ra>
